<compile_context>
chip_gen: v5e
topology: v5e:2x2
jax: 0.10.0
libtpu: 0.0.40
codegen_flags: <defaults>
</compile_context>

<pallas_src>
import functools
import math

import jax
import jax.numpy as jnp
from jax.experimental import pallas as pl
from jax.experimental.pallas import tpu as pltpu


_LN_EPS = 1e-5  # PyTorch nn.LayerNorm default


def _tpu_vmem_capacity_bytes():
    try:
        info = pltpu.get_tpu_info()
        cap = getattr(info, "vmem_capacity_bytes", None)
        if cap:
            return int(cap)
    except Exception:
        pass
    return 64 * 1024 * 1024  # conservative default (v7x per-TC VMEM)


_VMEM_CAP = _tpu_vmem_capacity_bytes()
if _VMEM_CAP >= 100 * 1024 * 1024:
    # v5e / v6e: 128 MiB VMEM -> big row tiles to amortize bf16 weight streaming.
    _VMEM_LIMIT = 104 * 1024 * 1024
    _ROW_TILE_PREF = 1024
else:
    # v7x: 64 MiB per-TC VMEM, 3.2 TB/s HBM -> tm~512 is already compute-bound.
    _VMEM_LIMIT = 48 * 1024 * 1024
    _ROW_TILE_PREF = 512


def _pick_tile(dim, preferred, align):
    """Largest tile <= preferred dividing dim; prefer `align` (128) multiples
    (MXU-friendly), fall back to 8-multiples, else the full dim."""
    # TODO(synk): at real non-divisible sequence lengths prefer pl.cdiv grids
    # with masked edge tiles instead of the full-dim fallback.
    if dim <= preferred:
        return dim
    for a in (align, 8):
        t = (preferred // a) * a
        while t >= a:
            if dim % t == 0:
                return t
            t -= a
    return dim


# ---------------------------------------------------------------------------
# Pallas kernels
# ---------------------------------------------------------------------------

def _patch_embed_kernel(x_ref, w_ref, b_ref, pos_ref, o_ref, acc_ref):
    """Tiled o = x @ w + b + pos (all MXU operands bf16, f32 accumulator).
    Grid (M tiles, D tiles, K tiles); K (reduction) last."""
    @pl.when(pl.program_id(2) == 0)
    def _():
        acc_ref[...] = jnp.zeros_like(acc_ref)

    acc_ref[...] += jnp.dot(x_ref[...], w_ref[...],
                            preferred_element_type=jnp.float32)

    @pl.when(pl.program_id(2) == pl.num_programs(2) - 1)
    def _():
        o_ref[...] = (acc_ref[...] + b_ref[...]
                      + pos_ref[...].astype(jnp.float32)).astype(o_ref.dtype)


def _ln_matmul_bias_kernel(x_ref, g_ref, b_ref, w_ref, bias_ref, o_ref,
                           xn_ref, *, eps):
    """Fused LayerNorm(x) @ W + bias, bf16 in / bf16 out.  Grid (M, N tiles).
    LN (f32 stats) computed once per row-tile (j == 0) into a bf16 scratch and
    reused for every output-column tile of the same row-tile."""
    @pl.when(pl.program_id(1) == 0)
    def _():
        x = x_ref[...].astype(jnp.float32)
        mu = jnp.mean(x, axis=-1, keepdims=True)
        var = jnp.mean((x - mu) ** 2, axis=-1, keepdims=True)
        xn = (x - mu) * jax.lax.rsqrt(var + eps) * g_ref[...] + b_ref[...]
        xn_ref[...] = xn.astype(jnp.bfloat16)

    o_ref[...] = (
        jnp.dot(xn_ref[...], w_ref[...], preferred_element_type=jnp.float32)
        + bias_ref[...]).astype(o_ref.dtype)


def _flash_attn_proj_residual_kernel(q_ref, k_ref, v_ref, pw_ref, pb_ref,
                                     res_ref, o_ref, m_sc, l_sc, o_acc,
                                     proj_acc, *, scale):
    """Flash-style MHSA + output projection + residual add.

    Grid (B, q_tiles, heads, kv_tiles); heads and kv_tiles are reduction axes.
    Per (q tile, head): online softmax over kv tiles into f32 (m, l, o_acc)
    scratch; at the last kv tile the normalized head output is folded into the
    output projection accumulator `proj_acc += o_h @ proj_w[h]`.  At the last
    (head, kv) step: out = residual + proj_acc + proj_b.
    """
    h = pl.program_id(2)
    kv = pl.program_id(3)
    n_h = pl.num_programs(2)
    n_kv = pl.num_programs(3)

    @pl.when(jnp.logical_and(h == 0, kv == 0))
    def _():
        proj_acc[...] = jnp.zeros_like(proj_acc)

    @pl.when(kv == 0)
    def _():
        m_sc[...] = jnp.full_like(m_sc, -jnp.inf)
        l_sc[...] = jnp.zeros_like(l_sc)
        o_acc[...] = jnp.zeros_like(o_acc)

    # Fold 1/sqrt(hd) into q (tq*hd multiplies instead of tq*tkv per step).
    q = q_ref[0] * scale                                     # bf16 [tq, hd]
    # Contract last dims directly (no materialized K transpose).
    # TODO(synk): verify via pl.lower_as_mlir that this does not emit a per-head
    # XLU transpose of k at production head_dim=64; if it does, pre-transpose K
    # once per kv tile.
    s = jax.lax.dot_general(q, k_ref[0], (((1,), (1,)), ((), ())),
                            preferred_element_type=jnp.float32)  # [tq, tkv] f32

    m_prev = m_sc[...]
    m_new = jnp.maximum(m_prev, jnp.max(s, axis=-1, keepdims=True))
    alpha = jnp.exp(m_prev - m_new)
    p = jnp.exp(s - m_new)
    l_sc[...] = alpha * l_sc[...] + jnp.sum(p, axis=-1, keepdims=True)
    o_acc[...] = alpha * o_acc[...] + jnp.dot(
        p.astype(jnp.bfloat16), v_ref[0], preferred_element_type=jnp.float32)
    m_sc[...] = m_new

    @pl.when(kv == n_kv - 1)
    def _():
        # Normalize this head's output and fold it straight into the output
        # projection (head axis == K-reduction of the out-proj matmul).
        o_h = o_acc[...] * pl.reciprocal(l_sc[...], approx=True)   # [tq, hd] f32
        proj_acc[...] += jnp.dot(o_h.astype(jnp.bfloat16), pw_ref[...],
                                 preferred_element_type=jnp.float32)

    @pl.when(jnp.logical_and(h == n_h - 1, kv == n_kv - 1))
    def _():
        o_ref[0] = (proj_acc[...] + pb_ref[...]
                    + res_ref[0].astype(jnp.float32)).astype(o_ref.dtype)


def _ln_mlp_residual_kernel(x_ref, g_ref, b_ref, w1_ref, b1_ref, w2_ref, b2_ref,
                            fg_ref, fb_ref, o_ref, xn_ref, acc_ref, *, eps,
                            apply_final_ln):
    """Fused out = [final LN of] (x + MLP(LN(x))).  Grid (M tiles, hidden tiles);
    hidden is the (last, "arbitrary") reduction axis into an f32 accumulator, so
    only (D x th) / (th x D) weight slabs are ever resident (v7x-safe)."""
    k = pl.program_id(1)

    @pl.when(k == 0)
    def _():
        x = x_ref[...].astype(jnp.float32)
        mu = jnp.mean(x, axis=-1, keepdims=True)
        var = jnp.mean((x - mu) ** 2, axis=-1, keepdims=True)
        xn = (x - mu) * jax.lax.rsqrt(var + eps) * g_ref[...] + b_ref[...]
        xn_ref[...] = xn.astype(jnp.bfloat16)
        acc_ref[...] = jnp.zeros_like(acc_ref)

    hdd = (jnp.dot(xn_ref[...], w1_ref[...], preferred_element_type=jnp.float32)
           + b1_ref[...])
    # TODO(synk): PyTorch nn.GELU default is exact (erf); tanh approximation
    # kept for guaranteed Mosaic lowering (max diff ~1e-3).
    hdd = jax.nn.gelu(hdd, approximate=True)
    acc_ref[...] += jnp.dot(hdd.astype(jnp.bfloat16), w2_ref[...],
                            preferred_element_type=jnp.float32)

    @pl.when(k == pl.num_programs(1) - 1)
    def _():
        y = acc_ref[...] + b2_ref[...] + x_ref[...].astype(jnp.float32)
        if apply_final_ln:
            mu = jnp.mean(y, axis=-1, keepdims=True)
            var = jnp.mean((y - mu) ** 2, axis=-1, keepdims=True)
            y = (y - mu) * jax.lax.rsqrt(var + eps) * fg_ref[...] + fb_ref[...]
        o_ref[...] = y.astype(o_ref.dtype)


# ---------------------------------------------------------------------------
# Pallas wrappers
# ---------------------------------------------------------------------------

def pallas_patch_embed(x, w, b, pos):
    """x [M, K] bf16, w [K, D] bf16, b [D] f32, pos [N, D] bf16 -> [M, D] bf16.
    pos is NOT tiled to B*N; the index_map wraps the row-block index mod N//tm."""
    M, K = x.shape
    Npos, D = pos.shape
    tm = _pick_tile(Npos, _ROW_TILE_PREF, 128)   # divides Npos -> divides M
    tn = _pick_tile(D, 256, 128)
    tk = _pick_tile(K, 512, 128)
    n_pos_blocks = Npos // tm
    cost = pl.CostEstimate(
        flops=2 * M * K * D, transcendentals=0,
        bytes_accessed=2 * M * K + 2 * K * D + 2 * M * D + 2 * Npos * D)
    return pl.pallas_call(
        _patch_embed_kernel,
        grid=(M // tm, D // tn, K // tk),
        in_specs=[
            pl.BlockSpec((tm, tk), lambda i, j, k: (i, k)),
            pl.BlockSpec((tk, tn), lambda i, j, k: (k, j)),
            pl.BlockSpec((1, tn), lambda i, j, k: (0, j)),
            pl.BlockSpec((tm, tn), lambda i, j, k: (i % n_pos_blocks, j)),
        ],
        out_specs=pl.BlockSpec((tm, tn), lambda i, j, k: (i, j)),
        out_shape=jax.ShapeDtypeStruct((M, D), jnp.bfloat16),
        scratch_shapes=[pltpu.VMEM((tm, tn), jnp.float32)],
        compiler_params=pltpu.CompilerParams(
            dimension_semantics=("parallel", "parallel", "arbitrary"),
            vmem_limit_bytes=_VMEM_LIMIT),
        cost_estimate=cost,
    )(x, w, b.reshape(1, D), pos)


def pallas_ln_matmul_bias(x, gamma, beta, w, bias, eps=_LN_EPS):
    """[M, D] bf16 -> LayerNorm(f32 stats) -> @ w [D, N] bf16 + bias -> [M, N] bf16."""
    M, D = x.shape
    N = w.shape[1]
    tm = _pick_tile(M, _ROW_TILE_PREF, 128)
    tn = _pick_tile(N, 512, 128)
    cost = pl.CostEstimate(
        flops=2 * M * D * N, transcendentals=0,
        bytes_accessed=2 * M * D + 2 * D * N + 2 * M * N)
    return pl.pallas_call(
        functools.partial(_ln_matmul_bias_kernel, eps=eps),
        grid=(M // tm, N // tn),
        in_specs=[
            pl.BlockSpec((tm, D), lambda i, j: (i, 0)),
            pl.BlockSpec((1, D), lambda i, j: (0, 0)),
            pl.BlockSpec((1, D), lambda i, j: (0, 0)),
            pl.BlockSpec((D, tn), lambda i, j: (0, j)),
            pl.BlockSpec((1, tn), lambda i, j: (0, j)),
        ],
        out_specs=pl.BlockSpec((tm, tn), lambda i, j: (i, j)),
        out_shape=jax.ShapeDtypeStruct((M, N), jnp.bfloat16),
        scratch_shapes=[pltpu.VMEM((tm, D), jnp.bfloat16)],
        compiler_params=pltpu.CompilerParams(
            dimension_semantics=("parallel", "arbitrary"),
            vmem_limit_bytes=_VMEM_LIMIT),
        cost_estimate=cost,
    )(x, gamma.reshape(1, D), beta.reshape(1, D), w, bias.reshape(1, N))


def pallas_attention_proj_residual(qkv, proj_w, proj_b, resid, num_heads):
    """qkv [B, N, 3D] bf16, proj_w [D, D] bf16, resid [B, N, D] bf16 -> [B, N, D] bf16.

    Flash-style grid (B, q_tiles, heads, kv_tiles); the same qkv array is passed
    three times so BlockSpecs slice lane-aligned per-head q / k / v blocks."""
    B, N, three_d = qkv.shape
    D = three_d // 3
    hd = D // num_heads
    scale = 1.0 / math.sqrt(hd)
    # TODO(synk): at the real ViT-Giant head_dim=64, process two heads per step
    # (128-lane slices) or emit a [B, H, N, hd] qkv layout to stay vreg-aligned.
    tq = _pick_tile(N, 256, 128)
    tkv = _pick_tile(N, 512, 128)
    cost = pl.CostEstimate(
        flops=4 * B * num_heads * N * N * hd + 2 * B * N * D * D,
        transcendentals=B * num_heads * N * N,
        bytes_accessed=2 * 3 * B * N * D + 2 * 2 * B * N * D + 2 * D * D)
    return pl.pallas_call(
        functools.partial(_flash_attn_proj_residual_kernel, scale=scale),
        grid=(B, N // tq, num_heads, N // tkv),
        in_specs=[
            pl.BlockSpec((1, tq, hd), lambda b, qi, h, kv: (b, qi, h)),
            pl.BlockSpec((1, tkv, hd),
                         lambda b, qi, h, kv: (b, kv, num_heads + h)),
            pl.BlockSpec((1, tkv, hd),
                         lambda b, qi, h, kv: (b, kv, 2 * num_heads + h)),
            pl.BlockSpec((hd, D), lambda b, qi, h, kv: (h, 0)),
            pl.BlockSpec((1, D), lambda b, qi, h, kv: (0, 0)),
            pl.BlockSpec((1, tq, D), lambda b, qi, h, kv: (b, qi, 0)),
        ],
        out_specs=pl.BlockSpec((1, tq, D), lambda b, qi, h, kv: (b, qi, 0)),
        out_shape=jax.ShapeDtypeStruct((B, N, D), jnp.bfloat16),
        scratch_shapes=[pltpu.VMEM((tq, 1), jnp.float32),
                        pltpu.VMEM((tq, 1), jnp.float32),
                        pltpu.VMEM((tq, hd), jnp.float32),
                        pltpu.VMEM((tq, D), jnp.float32)],
        compiler_params=pltpu.CompilerParams(
            dimension_semantics=("parallel", "parallel", "arbitrary", "arbitrary"),
            vmem_limit_bytes=_VMEM_LIMIT),
        cost_estimate=cost,
    )(qkv, qkv, qkv, proj_w, proj_b.reshape(1, D), resid)


def pallas_ln_mlp_residual(x, gamma, beta, w1, b1, w2, b2,
                           final_gamma=None, final_beta=None,
                           out_dtype=jnp.bfloat16, eps=_LN_EPS):
    """out = [finalLN](x + GELU(LN(x) @ w1 + b1) @ w2 + b2), hidden dim tiled as
    the reduction axis.  The model's final LayerNorm is fused into the last
    block's epilogue by passing final_gamma / final_beta."""
    M, D = x.shape
    Hd = w1.shape[1]
    tm = _pick_tile(M, _ROW_TILE_PREF, 128)
    th = _pick_tile(Hd, 512, 128)
    apply_final_ln = final_gamma is not None
    if final_gamma is None:
        final_gamma = jnp.ones((D,), jnp.float32)
        final_beta = jnp.zeros((D,), jnp.float32)
    cost = pl.CostEstimate(
        flops=4 * M * D * Hd, transcendentals=M * Hd,
        bytes_accessed=4 * M * D + 4 * D * Hd)
    return pl.pallas_call(
        functools.partial(_ln_mlp_residual_kernel, eps=eps,
                          apply_final_ln=apply_final_ln),
        grid=(M // tm, Hd // th),
        in_specs=[
            pl.BlockSpec((tm, D), lambda i, k: (i, 0)),
            pl.BlockSpec((1, D), lambda i, k: (0, 0)),
            pl.BlockSpec((1, D), lambda i, k: (0, 0)),
            pl.BlockSpec((D, th), lambda i, k: (0, k)),
            pl.BlockSpec((1, th), lambda i, k: (0, k)),
            pl.BlockSpec((th, D), lambda i, k: (k, 0)),
            pl.BlockSpec((1, D), lambda i, k: (0, 0)),
            pl.BlockSpec((1, D), lambda i, k: (0, 0)),
            pl.BlockSpec((1, D), lambda i, k: (0, 0)),
        ],
        out_specs=pl.BlockSpec((tm, D), lambda i, k: (i, 0)),
        out_shape=jax.ShapeDtypeStruct((M, D), out_dtype),
        scratch_shapes=[pltpu.VMEM((tm, D), jnp.bfloat16),
                        pltpu.VMEM((tm, D), jnp.float32)],
        compiler_params=pltpu.CompilerParams(
            dimension_semantics=("parallel", "arbitrary"),
            vmem_limit_bytes=_VMEM_LIMIT),
        cost_estimate=cost,
    )(x, gamma.reshape(1, D), beta.reshape(1, D), w1, b1.reshape(1, Hd),
      w2, b2.reshape(1, D), final_gamma.reshape(1, D), final_beta.reshape(1, D))


# ---------------------------------------------------------------------------
# Model definition (synthetic small V-JEPA-style encoder)
# ---------------------------------------------------------------------------

class Cfg:
    tubelet = 2
    patch = 8
    embed_dim = 256    # toy stand-in for ViT-Giant's 1408; 128-aligned for lane density
    depth = 2
    num_heads = 2      # head_dim = 128 -> lane-dense per-head slices
    mlp_ratio = 4


def sincos_pos_embed(n_pos, dim):
    # TODO(synk): real V-JEPA uses a 3D (t, h, w) sin/cos embedding; 1D stand-in here.
    assert dim % 2 == 0
    omega = jnp.arange(dim // 2, dtype=jnp.float32) / (dim / 2.0)
    omega = 1.0 / (10000.0 ** omega)
    pos = jnp.arange(n_pos, dtype=jnp.float32)[:, None] * omega[None, :]
    return jnp.concatenate([jnp.sin(pos), jnp.cos(pos)], axis=-1)  # [n_pos, dim]


def init_params(key, in_chans, cfg: Cfg):
    # TODO(synk): real module loads frozen pretrained ViT-Giant weights from
    # torch.hub; deterministic synthetic weights here (bf16 MXU operands).
    # TODO(synk): on v7x consider fp8 weight storage for QKV/MLP/proj matmuls.
    D = cfg.embed_dim
    K = in_chans * cfg.tubelet * cfg.patch * cfg.patch
    Dh = D * cfg.mlp_ratio
    std = 0.02

    def nrm(k, shape):
        return (std * jax.random.normal(k, shape)).astype(jnp.bfloat16)

    keys = jax.random.split(key, 2 + cfg.depth)
    params = {
        # Conv3d weight [D, C, t, p, p] flattened (C,t,p,p)-major, transposed.
        "patch_w": nrm(keys[0], (K, D)),
        "patch_b": jnp.zeros((D,), jnp.float32),
        "final_ln_g": jnp.ones((D,), jnp.float32),
        "final_ln_b": jnp.zeros((D,), jnp.float32),
        "blocks": [],
    }
    for li in range(cfg.depth):
        bkeys = jax.random.split(keys[2 + li], 4)
        params["blocks"].append({
            "ln1_g": jnp.ones((D,), jnp.float32),
            "ln1_b": jnp.zeros((D,), jnp.float32),
            "qkv_w": nrm(bkeys[0], (D, 3 * D)),
            "qkv_b": jnp.zeros((3 * D,), jnp.float32),
            "proj_w": nrm(bkeys[1], (D, D)),
            "proj_b": jnp.zeros((D,), jnp.float32),
            "ln2_g": jnp.ones((D,), jnp.float32),
            "ln2_b": jnp.zeros((D,), jnp.float32),
            "mlp_w1": nrm(bkeys[2], (D, Dh)),
            "mlp_b1": jnp.zeros((Dh,), jnp.float32),
            "mlp_w2": nrm(bkeys[3], (Dh, D)),
            "mlp_b2": jnp.zeros((D,), jnp.float32),
        })
    return params


def patchify(pixel_values, cfg: Cfg):
    # pixel_values: [B, T, C, H, W] -> flattened bf16 tubelet patches [B*N, C*t*p*p]
    B, T, C, H, W = pixel_values.shape
    t, p = cfg.tubelet, cfg.patch
    x = jnp.transpose(pixel_values, (0, 2, 1, 3, 4))  # [B, C, T, H, W] (Conv3d layout)
    x = x.reshape(B, C, T // t, t, H // p, p, W // p, p)
    # -> [B, T', H', W', C, t, p, p] so flatten order matches conv weight flatten
    x = jnp.transpose(x, (0, 2, 4, 6, 1, 3, 5, 7))
    N = (T // t) * (H // p) * (W // p)
    return x.reshape(B * N, C * t * p * p).astype(jnp.bfloat16), B, N


def vjepa_encoder_forward(pixel_values, params, cfg: Cfg):
    """pixel_values [B, T, C, H, W] -> embeddings [B, N_patches, embed_dim] (f32)."""
    patches, B, N = patchify(pixel_values, cfg)                     # [B*N, K] bf16
    D = cfg.embed_dim
    pos = sincos_pos_embed(N, D).astype(jnp.bfloat16)               # [N, D] bf16
    # Patch-embed matmul + bias + pos-embed add fused in one tiled kernel.
    x = pallas_patch_embed(patches, params["patch_w"], params["patch_b"], pos)
    n_blocks = len(params["blocks"])
    for li, bp in enumerate(params["blocks"]):
        is_last = li == n_blocks - 1
        # --- attention branch: LN1 + QKV (fused), then flash MHSA + out-proj + residual
        qkv = pallas_ln_matmul_bias(x, bp["ln1_g"], bp["ln1_b"],
                                    bp["qkv_w"], bp["qkv_b"])       # [M, 3D] bf16
        qkv = qkv.reshape(B, N, 3 * D)                              # pure reshape
        x = pallas_attention_proj_residual(
            qkv, bp["proj_w"], bp["proj_b"], x.reshape(B, N, D),
            num_heads=cfg.num_heads).reshape(B * N, D)
        # --- MLP branch: LN2 + MLP + residual (final LN fused into last block)
        x = pallas_ln_mlp_residual(
            x, bp["ln2_g"], bp["ln2_b"], bp["mlp_w1"], bp["mlp_b1"],
            bp["mlp_w2"], bp["mlp_b2"],
            final_gamma=params["final_ln_g"] if is_last else None,
            final_beta=params["final_ln_b"] if is_last else None,
            out_dtype=jnp.float32 if is_last else jnp.bfloat16)
    return x.reshape(B, N, D)


# ---------------------------------------------------------------------------
# Main
# ---------------------------------------------------------------------------

if __name__ == "__main__":
    cfg = Cfg()
    B, T, C, H, W = 2, 4, 3, 32, 32

    key = jax.random.PRNGKey(0)
    k_data, k_params = jax.random.split(key)
    pixel_values = jax.random.normal(k_data, (B, T, C, H, W), dtype=jnp.float32)
    params = init_params(k_params, C, cfg)

    fwd = jax.jit(lambda pv: vjepa_encoder_forward(pv, params, cfg))
    embeddings = fwd(pixel_values)
    jax.block_until_ready(embeddings)

    N_expected = (T // cfg.tubelet) * (H // cfg.patch) * (W // cfg.patch)
    assert embeddings.shape == (B, N_expected, cfg.embed_dim), embeddings.shape
    assert embeddings.dtype == jnp.float32
    assert bool(jnp.all(jnp.isfinite(embeddings)))
    print("KERNEL_OK")
</pallas_src>

<mosaic_0001>
module attributes {stable_mosaic.version = 11 : i64} {
  func.func @_ln_matmul_bias_kernel(%arg0: i32, %arg1: i32, %arg2: memref<64x256xbf16, #tpu.memory_space<vmem>>, %arg3: memref<1x256xf32, #tpu.memory_space<vmem>>, %arg4: memref<1x256xf32, #tpu.memory_space<vmem>>, %arg5: memref<256x384xbf16, #tpu.memory_space<vmem>>, %arg6: memref<1x384xf32, #tpu.memory_space<vmem>>, %arg7: memref<64x384xbf16, #tpu.memory_space<vmem>>, %arg8: memref<64x256xbf16, #tpu.memory_space<vmem>>) attributes {dimension_semantics = [#tpu.dimension_semantics<parallel>, #tpu.dimension_semantics<arbitrary>], iteration_bounds = array<i64: 1, 2>, scalar_prefetch = 0 : i64, scratch_operands = 1 : i64, tpu.core_type = #tpu.core_type<tc>, window_params = [{transform_indices = @transform_0, window_bounds = array<i64: 64, 256>}, {pipeline_mode = #tpu.pipeline_mode<synchronous>, transform_indices = @transform_1, window_bounds = array<i64: 1, 256>}, {pipeline_mode = #tpu.pipeline_mode<synchronous>, transform_indices = @transform_2, window_bounds = array<i64: 1, 256>}, {transform_indices = @transform_3, window_bounds = array<i64: 256, 384>}, {transform_indices = @transform_4, window_bounds = array<i64: 1, 384>}, {transform_indices = @transform_5, window_bounds = array<i64: 64, 384>}]} {
    %c0_i32 = arith.constant 0 : i32
    %0 = arith.cmpi eq, %arg1, %c0_i32 : i32
    %1 = arith.extui %0 : i1 to i32
    %c0_i32_0 = arith.constant 0 : i32
    %2 = arith.cmpi ne, %1, %c0_i32_0 : i32
    scf.if %2 {
      %c0_8 = arith.constant 0 : index
      %c0_9 = arith.constant 0 : index
      %11 = vector.load %arg2[%c0_8, %c0_9] : memref<64x256xbf16, #tpu.memory_space<vmem>>, vector<64x256xbf16>
      %12 = arith.extf %11 : vector<64x256xbf16> to vector<64x256xf32>
      %cst_10 = arith.constant dense<0.000000e+00> : vector<64xf32>
      %13 = vector.multi_reduction <add>, %12, %cst_10 [1] : vector<64x256xf32> to vector<64xf32>
      %14 = vector.shape_cast %13 : vector<64xf32> to vector<64x1xf32>
      %cst_11 = arith.constant 2.560000e+02 : f32
      %15 = vector.broadcast %cst_11 : f32 to vector<64x1xf32>
      %16 = arith.divf %14, %15 : vector<64x1xf32>
      %17 = vector.broadcast %16 : vector<64x1xf32> to vector<64x256xf32>
      %18 = arith.subf %12, %17 : vector<64x256xf32>
      %19 = arith.mulf %18, %18 : vector<64x256xf32>
      %cst_12 = arith.constant dense<0.000000e+00> : vector<64xf32>
      %20 = vector.multi_reduction <add>, %19, %cst_12 [1] : vector<64x256xf32> to vector<64xf32>
      %21 = vector.shape_cast %20 : vector<64xf32> to vector<64x1xf32>
      %cst_13 = arith.constant 2.560000e+02 : f32
      %22 = vector.broadcast %cst_13 : f32 to vector<64x1xf32>
      %23 = arith.divf %21, %22 : vector<64x1xf32>
      %24 = vector.broadcast %16 : vector<64x1xf32> to vector<64x256xf32>
      %25 = arith.subf %12, %24 : vector<64x256xf32>
      %cst_14 = arith.constant 9.99999974E-6 : f32
      %26 = vector.broadcast %cst_14 : f32 to vector<64x1xf32>
      %27 = arith.addf %23, %26 : vector<64x1xf32>
      %28 = math.rsqrt %27 : vector<64x1xf32>
      %29 = vector.broadcast %28 : vector<64x1xf32> to vector<64x256xf32>
      %30 = arith.mulf %25, %29 : vector<64x256xf32>
      %c0_15 = arith.constant 0 : index
      %c0_16 = arith.constant 0 : index
      %31 = vector.load %arg3[%c0_15, %c0_16] : memref<1x256xf32, #tpu.memory_space<vmem>>, vector<1x256xf32>
      %32 = vector.broadcast %31 : vector<1x256xf32> to vector<64x256xf32>
      %33 = arith.mulf %30, %32 : vector<64x256xf32>
      %c0_17 = arith.constant 0 : index
      %c0_18 = arith.constant 0 : index
      %34 = vector.load %arg4[%c0_17, %c0_18] : memref<1x256xf32, #tpu.memory_space<vmem>>, vector<1x256xf32>
      %35 = vector.broadcast %34 : vector<1x256xf32> to vector<64x256xf32>
      %36 = arith.addf %33, %35 : vector<64x256xf32>
      %37 = arith.truncf %36 : vector<64x256xf32> to vector<64x256xbf16>
      %c0_19 = arith.constant 0 : index
      %c0_20 = arith.constant 0 : index
      %38 = vector.load %arg8[%c0_19, %c0_20] : memref<64x256xbf16, #tpu.memory_space<vmem>>, vector<64x256xbf16>
      tpu.vector_store %arg8[%c0_19, %c0_20], %37 {strides = array<i32>} : memref<64x256xbf16, #tpu.memory_space<vmem>>, vector<64x256xbf16>,
    } else {
    }
    %c0 = arith.constant 0 : index
    %c0_1 = arith.constant 0 : index
    %3 = vector.load %arg8[%c0, %c0_1] : memref<64x256xbf16, #tpu.memory_space<vmem>>, vector<64x256xbf16>
    %c0_2 = arith.constant 0 : index
    %c0_3 = arith.constant 0 : index
    %4 = vector.load %arg5[%c0_2, %c0_3] : memref<256x384xbf16, #tpu.memory_space<vmem>>, vector<256x384xbf16>
    %cst = arith.constant dense<0.000000e+00> : vector<64x384xf32>
    %5 = tpu.matmul %3, %4, %cst {dimension_numbers = #tpu.dot_dimension_numbers<[1], [0], [0], [1], [0, 0, 1, 1], [], []>} : vector<64x256xbf16>, vector<256x384xbf16>, vector<64x384xf32> -> vector<64x384xf32>
    %c0_4 = arith.constant 0 : index
    %c0_5 = arith.constant 0 : index
    %6 = vector.load %arg6[%c0_4, %c0_5] : memref<1x384xf32, #tpu.memory_space<vmem>>, vector<1x384xf32>
    %7 = vector.broadcast %6 : vector<1x384xf32> to vector<64x384xf32>
    %8 = arith.addf %5, %7 : vector<64x384xf32>
    %9 = arith.truncf %8 : vector<64x384xf32> to vector<64x384xbf16>
    %c0_6 = arith.constant 0 : index
    %c0_7 = arith.constant 0 : index
    %10 = vector.load %arg7[%c0_6, %c0_7] : memref<64x384xbf16, #tpu.memory_space<vmem>>, vector<64x384xbf16>
    tpu.vector_store %arg7[%c0_6, %c0_7], %9 {strides = array<i32>} : memref<64x384xbf16, #tpu.memory_space<vmem>>, vector<64x384xbf16>,
    return
  }
  func.func @transform_0(%arg0: i32, %arg1: i32) -> (i32, i32) {
    %c0_i32 = arith.constant 0 : i32
    %c0_i32_0 = arith.constant 0 : i32
    return %arg0, %c0_i32 : i32, i32
  }
  func.func @transform_1(%arg0: i32, %arg1: i32) -> (i32, i32) {
    %c0_i32 = arith.constant 0 : i32
    %c0_i32_0 = arith.constant 0 : i32
    %c0_i32_1 = arith.constant 0 : i32
    return %c0_i32, %c0_i32_0 : i32, i32
  }
  func.func @transform_2(%arg0: i32, %arg1: i32) -> (i32, i32) {
    %c0_i32 = arith.constant 0 : i32
    %c0_i32_0 = arith.constant 0 : i32
    %c0_i32_1 = arith.constant 0 : i32
    return %c0_i32, %c0_i32_0 : i32, i32
  }
  func.func @transform_3(%arg0: i32, %arg1: i32) -> (i32, i32) {
    %c0_i32 = arith.constant 0 : i32
    %c0_i32_0 = arith.constant 0 : i32
    return %c0_i32, %arg1 : i32, i32
  }
  func.func @transform_4(%arg0: i32, %arg1: i32) -> (i32, i32) {
    %c0_i32 = arith.constant 0 : i32
    %c0_i32_0 = arith.constant 0 : i32
    return %c0_i32, %arg1 : i32, i32
  }
  func.func @transform_5(%arg0: i32, %arg1: i32) -> (i32, i32) {
    %c0_i32 = arith.constant 0 : i32
    return %arg0, %arg1 : i32, i32
  }
}

module attributes {stable_mosaic.version = 11 : i64} {
  func.func @_patch_embed_kernel(%arg0: i32, %arg1: i32, %arg2: i32, %arg3: memref<32x384xbf16, #tpu.memory_space<vmem>>, %arg4: memref<384x256xbf16, #tpu.memory_space<vmem>>, %arg5: memref<1x256xf32, #tpu.memory_space<vmem>>, %arg6: memref<32x256xbf16, #tpu.memory_space<vmem>>, %arg7: memref<32x256xbf16, #tpu.memory_space<vmem>>, %arg8: memref<32x256xf32, #tpu.memory_space<vmem>>) attributes {dimension_semantics = [#tpu.dimension_semantics<parallel>, #tpu.dimension_semantics<parallel>, #tpu.dimension_semantics<arbitrary>], iteration_bounds = array<i64: 2, 1, 1>, scalar_prefetch = 0 : i64, scratch_operands = 1 : i64, tpu.core_type = #tpu.core_type<tc>, window_params = [{transform_indices = @transform_0, window_bounds = array<i64: 32, 384>}, {transform_indices = @transform_1, window_bounds = array<i64: 384, 256>}, {transform_indices = @transform_2, window_bounds = array<i64: 1, 256>}, {transform_indices = @transform_3, window_bounds = array<i64: 32, 256>}, {transform_indices = @transform_4, window_bounds = array<i64: 32, 256>}]} {
    %c0_i32 = arith.constant 0 : i32
    %0 = arith.cmpi eq, %arg2, %c0_i32 : i32
    %1 = arith.extui %0 : i1 to i32
    %c0_i32_0 = arith.constant 0 : i32
    %2 = arith.cmpi ne, %1, %c0_i32_0 : i32
    scf.if %2 {
      %cst_10 = arith.constant 0.000000e+00 : f32
      %12 = vector.broadcast %cst_10 : f32 to vector<32x256xf32>
      %c0_11 = arith.constant 0 : index
      %c0_12 = arith.constant 0 : index
      %13 = vector.load %arg8[%c0_11, %c0_12] : memref<32x256xf32, #tpu.memory_space<vmem>>, vector<32x256xf32>
      tpu.vector_store %arg8[%c0_11, %c0_12], %12 {strides = array<i32>} : memref<32x256xf32, #tpu.memory_space<vmem>>, vector<32x256xf32>,
    } else {
    }
    %c0 = arith.constant 0 : index
    %c0_1 = arith.constant 0 : index
    %3 = vector.load %arg8[%c0, %c0_1] : memref<32x256xf32, #tpu.memory_space<vmem>>, vector<32x256xf32>
    %c0_2 = arith.constant 0 : index
    %c0_3 = arith.constant 0 : index
    %4 = vector.load %arg3[%c0_2, %c0_3] : memref<32x384xbf16, #tpu.memory_space<vmem>>, vector<32x384xbf16>
    %c0_4 = arith.constant 0 : index
    %c0_5 = arith.constant 0 : index
    %5 = vector.load %arg4[%c0_4, %c0_5] : memref<384x256xbf16, #tpu.memory_space<vmem>>, vector<384x256xbf16>
    %cst = arith.constant dense<0.000000e+00> : vector<32x256xf32>
    %6 = tpu.matmul %4, %5, %cst {dimension_numbers = #tpu.dot_dimension_numbers<[1], [0], [0], [1], [0, 0, 1, 1], [], []>} : vector<32x384xbf16>, vector<384x256xbf16>, vector<32x256xf32> -> vector<32x256xf32>
    %7 = arith.addf %3, %6 : vector<32x256xf32>
    %c0_6 = arith.constant 0 : index
    %c0_7 = arith.constant 0 : index
    %8 = vector.load %arg8[%c0_6, %c0_7] : memref<32x256xf32, #tpu.memory_space<vmem>>, vector<32x256xf32>
    tpu.vector_store %arg8[%c0_6, %c0_7], %7 {strides = array<i32>} : memref<32x256xf32, #tpu.memory_space<vmem>>, vector<32x256xf32>,
    %c0_i32_8 = arith.constant 0 : i32
    %9 = arith.cmpi eq, %arg2, %c0_i32_8 : i32
    %10 = arith.extui %9 : i1 to i32
    %c0_i32_9 = arith.constant 0 : i32
    %11 = arith.cmpi ne, %10, %c0_i32_9 : i32
    scf.if %11 {
      %c0_10 = arith.constant 0 : index
      %c0_11 = arith.constant 0 : index
      %12 = vector.load %arg8[%c0_10, %c0_11] : memref<32x256xf32, #tpu.memory_space<vmem>>, vector<32x256xf32>
      %c0_12 = arith.constant 0 : index
      %c0_13 = arith.constant 0 : index
      %13 = vector.load %arg5[%c0_12, %c0_13] : memref<1x256xf32, #tpu.memory_space<vmem>>, vector<1x256xf32>
      %14 = vector.broadcast %13 : vector<1x256xf32> to vector<32x256xf32>
      %15 = arith.addf %12, %14 : vector<32x256xf32>
      %c0_14 = arith.constant 0 : index
      %c0_15 = arith.constant 0 : index
      %16 = vector.load %arg6[%c0_14, %c0_15] : memref<32x256xbf16, #tpu.memory_space<vmem>>, vector<32x256xbf16>
      %17 = arith.extf %16 : vector<32x256xbf16> to vector<32x256xf32>
      %18 = arith.addf %15, %17 : vector<32x256xf32>
      %19 = arith.truncf %18 : vector<32x256xf32> to vector<32x256xbf16>
      %c0_16 = arith.constant 0 : index
      %c0_17 = arith.constant 0 : index
      %20 = vector.load %arg7[%c0_16, %c0_17] : memref<32x256xbf16, #tpu.memory_space<vmem>>, vector<32x256xbf16>
      tpu.vector_store %arg7[%c0_16, %c0_17], %19 {strides = array<i32>} : memref<32x256xbf16, #tpu.memory_space<vmem>>, vector<32x256xbf16>,
    } else {
    }
    return
  }
  func.func @transform_0(%arg0: i32, %arg1: i32, %arg2: i32) -> (i32, i32) {
    %c0_i32 = arith.constant 0 : i32
    return %arg0, %arg2 : i32, i32
  }
  func.func @transform_1(%arg0: i32, %arg1: i32, %arg2: i32) -> (i32, i32) {
    %c0_i32 = arith.constant 0 : i32
    return %arg2, %arg1 : i32, i32
  }
  func.func @transform_2(%arg0: i32, %arg1: i32, %arg2: i32) -> (i32, i32) {
    %c0_i32 = arith.constant 0 : i32
    %c0_i32_0 = arith.constant 0 : i32
    return %c0_i32, %arg1 : i32, i32
  }
  func.func @transform_3(%arg0: i32, %arg1: i32, %arg2: i32) -> (i32, i32) {
    %c1_i32 = arith.constant 1 : i32
    %c0_i32 = arith.constant 0 : i32
    %0 = arith.cmpi eq, %c1_i32, %c0_i32 : i32
    %c1_i32_0 = arith.constant 1 : i32
    %1 = arith.select %0, %c1_i32_0, %c1_i32 : i32
    %2 = arith.remsi %arg0, %1 : i32
    %c0_i32_1 = arith.constant 0 : i32
    %3 = arith.cmpi ne, %2, %c0_i32_1 : i32
    %c0_i32_2 = arith.constant 0 : i32
    %4 = arith.cmpi slt, %2, %c0_i32_2 : i32
    %c0_i32_3 = arith.constant 0 : i32
    %5 = arith.cmpi slt, %1, %c0_i32_3 : i32
    %6 = arith.xori %4, %5 : i1
    %7 = arith.andi %6, %3 : i1
    %8 = arith.addi %2, %1 : i32
    %9 = arith.select %7, %8, %2 : i32
    %c0_i32_4 = arith.constant 0 : i32
    return %9, %arg1 : i32, i32
  }
  func.func @transform_4(%arg0: i32, %arg1: i32, %arg2: i32) -> (i32, i32) {
    %c0_i32 = arith.constant 0 : i32
    return %arg0, %arg1 : i32, i32
  }
}

module attributes {stable_mosaic.version = 11 : i64} {
  func.func @_flash_attn_proj_residual_kernel(%arg0: i32, %arg1: i32, %arg2: i32, %arg3: i32, %arg4: memref<1x32x128xbf16, #tpu.memory_space<vmem>>, %arg5: memref<1x32x128xbf16, #tpu.memory_space<vmem>>, %arg6: memref<1x32x128xbf16, #tpu.memory_space<vmem>>, %arg7: memref<128x256xbf16, #tpu.memory_space<vmem>>, %arg8: memref<1x256xf32, #tpu.memory_space<vmem>>, %arg9: memref<1x32x256xbf16, #tpu.memory_space<vmem>>, %arg10: memref<1x32x256xbf16, #tpu.memory_space<vmem>>, %arg11: memref<32x1xf32, #tpu.memory_space<vmem>>, %arg12: memref<32x1xf32, #tpu.memory_space<vmem>>, %arg13: memref<32x128xf32, #tpu.memory_space<vmem>>, %arg14: memref<32x256xf32, #tpu.memory_space<vmem>>) attributes {dimension_semantics = [#tpu.dimension_semantics<parallel>, #tpu.dimension_semantics<parallel>, #tpu.dimension_semantics<arbitrary>, #tpu.dimension_semantics<arbitrary>], iteration_bounds = array<i64: 2, 1, 2, 1>, scalar_prefetch = 0 : i64, scratch_operands = 4 : i64, tpu.core_type = #tpu.core_type<tc>, window_params = [{transform_indices = @transform_0, window_bounds = array<i64: 1, 32, 128>}, {transform_indices = @transform_1, window_bounds = array<i64: 1, 32, 128>}, {transform_indices = @transform_2, window_bounds = array<i64: 1, 32, 128>}, {transform_indices = @transform_3, window_bounds = array<i64: 128, 256>}, {pipeline_mode = #tpu.pipeline_mode<synchronous>, transform_indices = @transform_4, window_bounds = array<i64: 1, 256>}, {transform_indices = @transform_5, window_bounds = array<i64: 1, 32, 256>}, {transform_indices = @transform_6, window_bounds = array<i64: 1, 32, 256>}]} {
    %c0_i32 = arith.constant 0 : i32
    %0 = arith.cmpi eq, %arg2, %c0_i32 : i32
    %c0_i32_0 = arith.constant 0 : i32
    %1 = arith.cmpi eq, %arg3, %c0_i32_0 : i32
    %2 = arith.andi %0, %1 : i1
    %3 = arith.extui %2 : i1 to i32
    %c0_i32_1 = arith.constant 0 : i32
    %4 = arith.cmpi ne, %3, %c0_i32_1 : i32
    scf.if %4 {
      %cst_32 = arith.constant 0.000000e+00 : f32
      %48 = vector.broadcast %cst_32 : f32 to vector<32x256xf32>
      %c0_33 = arith.constant 0 : index
      %c0_34 = arith.constant 0 : index
      %49 = vector.load %arg14[%c0_33, %c0_34] : memref<32x256xf32, #tpu.memory_space<vmem>>, vector<32x256xf32>
      tpu.vector_store %arg14[%c0_33, %c0_34], %48 {strides = array<i32>} : memref<32x256xf32, #tpu.memory_space<vmem>>, vector<32x256xf32>,
    } else {
    }
    %c0_i32_2 = arith.constant 0 : i32
    %5 = arith.cmpi eq, %arg3, %c0_i32_2 : i32
    %6 = arith.extui %5 : i1 to i32
    %c0_i32_3 = arith.constant 0 : i32
    %7 = arith.cmpi ne, %6, %c0_i32_3 : i32
    scf.if %7 {
      %cst_32 = arith.constant 0xFF800000 : f32
      %48 = vector.broadcast %cst_32 : f32 to vector<32x1xf32>
      %c0_33 = arith.constant 0 : index
      %c0_34 = arith.constant 0 : index
      %49 = vector.load %arg11[%c0_33, %c0_34] : memref<32x1xf32, #tpu.memory_space<vmem>>, vector<32x1xf32>
      tpu.vector_store %arg11[%c0_33, %c0_34], %48 {strides = array<i32>} : memref<32x1xf32, #tpu.memory_space<vmem>>, vector<32x1xf32>,
      %cst_35 = arith.constant 0.000000e+00 : f32
      %50 = vector.broadcast %cst_35 : f32 to vector<32x1xf32>
      %c0_36 = arith.constant 0 : index
      %c0_37 = arith.constant 0 : index
      %51 = vector.load %arg12[%c0_36, %c0_37] : memref<32x1xf32, #tpu.memory_space<vmem>>, vector<32x1xf32>
      tpu.vector_store %arg12[%c0_36, %c0_37], %50 {strides = array<i32>} : memref<32x1xf32, #tpu.memory_space<vmem>>, vector<32x1xf32>,
      %cst_38 = arith.constant 0.000000e+00 : f32
      %52 = vector.broadcast %cst_38 : f32 to vector<32x128xf32>
      %c0_39 = arith.constant 0 : index
      %c0_40 = arith.constant 0 : index
      %53 = vector.load %arg13[%c0_39, %c0_40] : memref<32x128xf32, #tpu.memory_space<vmem>>, vector<32x128xf32>
      tpu.vector_store %arg13[%c0_39, %c0_40], %52 {strides = array<i32>} : memref<32x128xf32, #tpu.memory_space<vmem>>, vector<32x128xf32>,
    } else {
    }
    %c0 = arith.constant 0 : index
    %c0_4 = arith.constant 0 : index
    %c0_5 = arith.constant 0 : index
    %8 = vector.load %arg4[%c0, %c0_4, %c0_5] : memref<1x32x128xbf16, #tpu.memory_space<vmem>>, vector<1x32x128xbf16>
    %9 = vector.shape_cast %8 : vector<1x32x128xbf16> to vector<32x128xbf16>
    %cst = arith.constant 8.837890e-02 : bf16
    %10 = vector.broadcast %cst : bf16 to vector<32x128xbf16>
    %11 = arith.mulf %9, %10 : vector<32x128xbf16>
    %c0_6 = arith.constant 0 : index
    %c0_7 = arith.constant 0 : index
    %c0_8 = arith.constant 0 : index
    %12 = vector.load %arg5[%c0_6, %c0_7, %c0_8] : memref<1x32x128xbf16, #tpu.memory_space<vmem>>, vector<1x32x128xbf16>
    %13 = vector.shape_cast %12 : vector<1x32x128xbf16> to vector<32x128xbf16>
    %cst_9 = arith.constant dense<0.000000e+00> : vector<32x32xf32>
    %14 = tpu.matmul %11, %13, %cst_9 {dimension_numbers = #tpu.dot_dimension_numbers<[1], [1], [0], [0], [0, 0, 1, 0], [], []>} : vector<32x128xbf16>, vector<32x128xbf16>, vector<32x32xf32> -> vector<32x32xf32>
    %c0_10 = arith.constant 0 : index
    %c0_11 = arith.constant 0 : index
    %15 = vector.load %arg11[%c0_10, %c0_11] : memref<32x1xf32, #tpu.memory_space<vmem>>, vector<32x1xf32>
    %cst_12 = arith.constant dense<0xFF800000> : vector<32xf32>
    %16 = vector.multi_reduction <maximumf>, %14, %cst_12 [1] : vector<32x32xf32> to vector<32xf32>
    %17 = vector.shape_cast %16 : vector<32xf32> to vector<32x1xf32>
    %18 = arith.maximumf %15, %17 : vector<32x1xf32>
    %19 = arith.subf %15, %18 : vector<32x1xf32>
    %20 = math.exp %19 : vector<32x1xf32>
    %21 = vector.broadcast %18 : vector<32x1xf32> to vector<32x32xf32>
    %22 = arith.subf %14, %21 : vector<32x32xf32>
    %23 = math.exp %22 : vector<32x32xf32>
    %c0_13 = arith.constant 0 : index
    %c0_14 = arith.constant 0 : index
    %24 = vector.load %arg12[%c0_13, %c0_14] : memref<32x1xf32, #tpu.memory_space<vmem>>, vector<32x1xf32>
    %25 = arith.mulf %20, %24 : vector<32x1xf32>
    %cst_15 = arith.constant dense<0.000000e+00> : vector<32xf32>
    %26 = vector.multi_reduction <add>, %23, %cst_15 [1] : vector<32x32xf32> to vector<32xf32>
    %27 = vector.shape_cast %26 : vector<32xf32> to vector<32x1xf32>
    %28 = arith.addf %25, %27 : vector<32x1xf32>
    %c0_16 = arith.constant 0 : index
    %c0_17 = arith.constant 0 : index
    %29 = vector.load %arg12[%c0_16, %c0_17] : memref<32x1xf32, #tpu.memory_space<vmem>>, vector<32x1xf32>
    tpu.vector_store %arg12[%c0_16, %c0_17], %28 {strides = array<i32>} : memref<32x1xf32, #tpu.memory_space<vmem>>, vector<32x1xf32>,
    %c0_18 = arith.constant 0 : index
    %c0_19 = arith.constant 0 : index
    %30 = vector.load %arg13[%c0_18, %c0_19] : memref<32x128xf32, #tpu.memory_space<vmem>>, vector<32x128xf32>
    %31 = vector.broadcast %20 : vector<32x1xf32> to vector<32x128xf32>
    %32 = arith.mulf %31, %30 : vector<32x128xf32>
    %33 = arith.truncf %23 : vector<32x32xf32> to vector<32x32xbf16>
    %c0_20 = arith.constant 0 : index
    %c0_21 = arith.constant 0 : index
    %c0_22 = arith.constant 0 : index
    %34 = vector.load %arg6[%c0_20, %c0_21, %c0_22] : memref<1x32x128xbf16, #tpu.memory_space<vmem>>, vector<1x32x128xbf16>
    %35 = vector.shape_cast %34 : vector<1x32x128xbf16> to vector<32x128xbf16>
    %cst_23 = arith.constant dense<0.000000e+00> : vector<32x128xf32>
    %36 = tpu.matmul %33, %35, %cst_23 {dimension_numbers = #tpu.dot_dimension_numbers<[1], [0], [0], [1], [0, 0, 1, 1], [], []>} : vector<32x32xbf16>, vector<32x128xbf16>, vector<32x128xf32> -> vector<32x128xf32>
    %37 = arith.addf %32, %36 : vector<32x128xf32>
    %c0_24 = arith.constant 0 : index
    %c0_25 = arith.constant 0 : index
    %38 = vector.load %arg13[%c0_24, %c0_25] : memref<32x128xf32, #tpu.memory_space<vmem>>, vector<32x128xf32>
    tpu.vector_store %arg13[%c0_24, %c0_25], %37 {strides = array<i32>} : memref<32x128xf32, #tpu.memory_space<vmem>>, vector<32x128xf32>,
    %c0_26 = arith.constant 0 : index
    %c0_27 = arith.constant 0 : index
    %39 = vector.load %arg11[%c0_26, %c0_27] : memref<32x1xf32, #tpu.memory_space<vmem>>, vector<32x1xf32>
    tpu.vector_store %arg11[%c0_26, %c0_27], %18 {strides = array<i32>} : memref<32x1xf32, #tpu.memory_space<vmem>>, vector<32x1xf32>,
    %c0_i32_28 = arith.constant 0 : i32
    %40 = arith.cmpi eq, %arg3, %c0_i32_28 : i32
    %41 = arith.extui %40 : i1 to i32
    %c0_i32_29 = arith.constant 0 : i32
    %42 = arith.cmpi ne, %41, %c0_i32_29 : i32
    scf.if %42 {
      %c0_32 = arith.constant 0 : index
      %c0_33 = arith.constant 0 : index
      %48 = vector.load %arg13[%c0_32, %c0_33] : memref<32x128xf32, #tpu.memory_space<vmem>>, vector<32x128xf32>
      %c0_34 = arith.constant 0 : index
      %c0_35 = arith.constant 0 : index
      %49 = vector.load %arg12[%c0_34, %c0_35] : memref<32x1xf32, #tpu.memory_space<vmem>>, vector<32x1xf32>
      %50 = tpu.reciprocal %49 {approx = true} : vector<32x1xf32> -> vector<32x1xf32>
      %51 = vector.broadcast %50 : vector<32x1xf32> to vector<32x128xf32>
      %52 = arith.mulf %48, %51 : vector<32x128xf32>
      %c0_36 = arith.constant 0 : index
      %c0_37 = arith.constant 0 : index
      %53 = vector.load %arg14[%c0_36, %c0_37] : memref<32x256xf32, #tpu.memory_space<vmem>>, vector<32x256xf32>
      %54 = arith.truncf %52 : vector<32x128xf32> to vector<32x128xbf16>
      %c0_38 = arith.constant 0 : index
      %c0_39 = arith.constant 0 : index
      %55 = vector.load %arg7[%c0_38, %c0_39] : memref<128x256xbf16, #tpu.memory_space<vmem>>, vector<128x256xbf16>
      %cst_40 = arith.constant dense<0.000000e+00> : vector<32x256xf32>
      %56 = tpu.matmul %54, %55, %cst_40 {dimension_numbers = #tpu.dot_dimension_numbers<[1], [0], [0], [1], [0, 0, 1, 1], [], []>} : vector<32x128xbf16>, vector<128x256xbf16>, vector<32x256xf32> -> vector<32x256xf32>
      %57 = arith.addf %53, %56 : vector<32x256xf32>
      %c0_41 = arith.constant 0 : index
      %c0_42 = arith.constant 0 : index
      %58 = vector.load %arg14[%c0_41, %c0_42] : memref<32x256xf32, #tpu.memory_space<vmem>>, vector<32x256xf32>
      tpu.vector_store %arg14[%c0_41, %c0_42], %57 {strides = array<i32>} : memref<32x256xf32, #tpu.memory_space<vmem>>, vector<32x256xf32>,
    } else {
    }
    %c1_i32 = arith.constant 1 : i32
    %43 = arith.cmpi eq, %arg2, %c1_i32 : i32
    %c0_i32_30 = arith.constant 0 : i32
    %44 = arith.cmpi eq, %arg3, %c0_i32_30 : i32
    %45 = arith.andi %43, %44 : i1
    %46 = arith.extui %45 : i1 to i32
    %c0_i32_31 = arith.constant 0 : i32
    %47 = arith.cmpi ne, %46, %c0_i32_31 : i32
    scf.if %47 {
      %c0_32 = arith.constant 0 : index
      %c0_33 = arith.constant 0 : index
      %48 = vector.load %arg14[%c0_32, %c0_33] : memref<32x256xf32, #tpu.memory_space<vmem>>, vector<32x256xf32>
      %c0_34 = arith.constant 0 : index
      %c0_35 = arith.constant 0 : index
      %49 = vector.load %arg8[%c0_34, %c0_35] : memref<1x256xf32, #tpu.memory_space<vmem>>, vector<1x256xf32>
      %50 = vector.broadcast %49 : vector<1x256xf32> to vector<32x256xf32>
      %51 = arith.addf %48, %50 : vector<32x256xf32>
      %c0_36 = arith.constant 0 : index
      %c0_37 = arith.constant 0 : index
      %c0_38 = arith.constant 0 : index
      %52 = vector.load %arg9[%c0_36, %c0_37, %c0_38] : memref<1x32x256xbf16, #tpu.memory_space<vmem>>, vector<1x32x256xbf16>
      %53 = vector.shape_cast %52 : vector<1x32x256xbf16> to vector<32x256xbf16>
      %54 = arith.extf %53 : vector<32x256xbf16> to vector<32x256xf32>
      %55 = arith.addf %51, %54 : vector<32x256xf32>
      %56 = arith.truncf %55 : vector<32x256xf32> to vector<32x256xbf16>
      %c0_39 = arith.constant 0 : index
      %c0_40 = arith.constant 0 : index
      %c0_41 = arith.constant 0 : index
      %57 = vector.load %arg10[%c0_39, %c0_40, %c0_41] : memref<1x32x256xbf16, #tpu.memory_space<vmem>>, vector<1x32x256xbf16>
      %58 = vector.shape_cast %57 : vector<1x32x256xbf16> to vector<32x256xbf16>
      %59 = vector.shape_cast %56 : vector<32x256xbf16> to vector<1x32x256xbf16>
      tpu.vector_store %arg10[%c0_39, %c0_40, %c0_41], %59 {strides = array<i32>} : memref<1x32x256xbf16, #tpu.memory_space<vmem>>, vector<1x32x256xbf16>,
    } else {
    }
    return
  }
  func.func @transform_0(%arg0: i32, %arg1: i32, %arg2: i32, %arg3: i32) -> (i32, i32, i32) {
    %c0_i32 = arith.constant 0 : i32
    return %arg0, %arg1, %arg2 : i32, i32, i32
  }
  func.func @transform_1(%arg0: i32, %arg1: i32, %arg2: i32, %arg3: i32) -> (i32, i32, i32) {
    %c2_i32 = arith.constant 2 : i32
    %0 = arith.addi %c2_i32, %arg2 : i32
    %c0_i32 = arith.constant 0 : i32
    return %arg0, %arg3, %0 : i32, i32, i32
  }
  func.func @transform_2(%arg0: i32, %arg1: i32, %arg2: i32, %arg3: i32) -> (i32, i32, i32) {
    %c4_i32 = arith.constant 4 : i32
    %0 = arith.addi %c4_i32, %arg2 : i32
    %c0_i32 = arith.constant 0 : i32
    return %arg0, %arg3, %0 : i32, i32, i32
  }
  func.func @transform_3(%arg0: i32, %arg1: i32, %arg2: i32, %arg3: i32) -> (i32, i32) {
    %c0_i32 = arith.constant 0 : i32
    %c0_i32_0 = arith.constant 0 : i32
    return %arg2, %c0_i32 : i32, i32
  }
  func.func @transform_4(%arg0: i32, %arg1: i32, %arg2: i32, %arg3: i32) -> (i32, i32) {
    %c0_i32 = arith.constant 0 : i32
    %c0_i32_0 = arith.constant 0 : i32
    %c0_i32_1 = arith.constant 0 : i32
    return %c0_i32, %c0_i32_0 : i32, i32
  }
  func.func @transform_5(%arg0: i32, %arg1: i32, %arg2: i32, %arg3: i32) -> (i32, i32, i32) {
    %c0_i32 = arith.constant 0 : i32
    %c0_i32_0 = arith.constant 0 : i32
    return %arg0, %arg1, %c0_i32 : i32, i32, i32
  }
  func.func @transform_6(%arg0: i32, %arg1: i32, %arg2: i32, %arg3: i32) -> (i32, i32, i32) {
    %c0_i32 = arith.constant 0 : i32
    %c0_i32_0 = arith.constant 0 : i32
    return %arg0, %arg1, %c0_i32 : i32, i32, i32
  }
}

module attributes {stable_mosaic.version = 11 : i64} {
  func.func @_ln_mlp_residual_kernel(%arg0: i32, %arg1: i32, %arg2: memref<64x256xbf16, #tpu.memory_space<vmem>>, %arg3: memref<1x256xf32, #tpu.memory_space<vmem>>, %arg4: memref<1x256xf32, #tpu.memory_space<vmem>>, %arg5: memref<256x512xbf16, #tpu.memory_space<vmem>>, %arg6: memref<1x512xf32, #tpu.memory_space<vmem>>, %arg7: memref<512x256xbf16, #tpu.memory_space<vmem>>, %arg8: memref<1x256xf32, #tpu.memory_space<vmem>>, %arg9: memref<1x256xf32, #tpu.memory_space<vmem>>, %arg10: memref<1x256xf32, #tpu.memory_space<vmem>>, %arg11: memref<64x256xbf16, #tpu.memory_space<vmem>>, %arg12: memref<64x256xbf16, #tpu.memory_space<vmem>>, %arg13: memref<64x256xf32, #tpu.memory_space<vmem>>) attributes {dimension_semantics = [#tpu.dimension_semantics<parallel>, #tpu.dimension_semantics<arbitrary>], iteration_bounds = array<i64: 1, 2>, scalar_prefetch = 0 : i64, scratch_operands = 2 : i64, tpu.core_type = #tpu.core_type<tc>, window_params = [{transform_indices = @transform_0, window_bounds = array<i64: 64, 256>}, {pipeline_mode = #tpu.pipeline_mode<synchronous>, transform_indices = @transform_1, window_bounds = array<i64: 1, 256>}, {pipeline_mode = #tpu.pipeline_mode<synchronous>, transform_indices = @transform_2, window_bounds = array<i64: 1, 256>}, {transform_indices = @transform_3, window_bounds = array<i64: 256, 512>}, {transform_indices = @transform_4, window_bounds = array<i64: 1, 512>}, {transform_indices = @transform_5, window_bounds = array<i64: 512, 256>}, {pipeline_mode = #tpu.pipeline_mode<synchronous>, transform_indices = @transform_6, window_bounds = array<i64: 1, 256>}, {pipeline_mode = #tpu.pipeline_mode<synchronous>, transform_indices = @transform_7, window_bounds = array<i64: 1, 256>}, {pipeline_mode = #tpu.pipeline_mode<synchronous>, transform_indices = @transform_8, window_bounds = array<i64: 1, 256>}, {transform_indices = @transform_9, window_bounds = array<i64: 64, 256>}]} {
    %c0_i32 = arith.constant 0 : i32
    %0 = arith.cmpi eq, %arg1, %c0_i32 : i32
    %1 = arith.extui %0 : i1 to i32
    %c0_i32_0 = arith.constant 0 : i32
    %2 = arith.cmpi ne, %1, %c0_i32_0 : i32
    scf.if %2 {
      %c0_18 = arith.constant 0 : index
      %c0_19 = arith.constant 0 : index
      %31 = vector.load %arg2[%c0_18, %c0_19] : memref<64x256xbf16, #tpu.memory_space<vmem>>, vector<64x256xbf16>
      %32 = arith.extf %31 : vector<64x256xbf16> to vector<64x256xf32>
      %cst_20 = arith.constant dense<0.000000e+00> : vector<64xf32>
      %33 = vector.multi_reduction <add>, %32, %cst_20 [1] : vector<64x256xf32> to vector<64xf32>
      %34 = vector.shape_cast %33 : vector<64xf32> to vector<64x1xf32>
      %cst_21 = arith.constant 2.560000e+02 : f32
      %35 = vector.broadcast %cst_21 : f32 to vector<64x1xf32>
      %36 = arith.divf %34, %35 : vector<64x1xf32>
      %37 = vector.broadcast %36 : vector<64x1xf32> to vector<64x256xf32>
      %38 = arith.subf %32, %37 : vector<64x256xf32>
      %39 = arith.mulf %38, %38 : vector<64x256xf32>
      %cst_22 = arith.constant dense<0.000000e+00> : vector<64xf32>
      %40 = vector.multi_reduction <add>, %39, %cst_22 [1] : vector<64x256xf32> to vector<64xf32>
      %41 = vector.shape_cast %40 : vector<64xf32> to vector<64x1xf32>
      %cst_23 = arith.constant 2.560000e+02 : f32
      %42 = vector.broadcast %cst_23 : f32 to vector<64x1xf32>
      %43 = arith.divf %41, %42 : vector<64x1xf32>
      %44 = vector.broadcast %36 : vector<64x1xf32> to vector<64x256xf32>
      %45 = arith.subf %32, %44 : vector<64x256xf32>
      %cst_24 = arith.constant 9.99999974E-6 : f32
      %46 = vector.broadcast %cst_24 : f32 to vector<64x1xf32>
      %47 = arith.addf %43, %46 : vector<64x1xf32>
      %48 = math.rsqrt %47 : vector<64x1xf32>
      %49 = vector.broadcast %48 : vector<64x1xf32> to vector<64x256xf32>
      %50 = arith.mulf %45, %49 : vector<64x256xf32>
      %c0_25 = arith.constant 0 : index
      %c0_26 = arith.constant 0 : index
      %51 = vector.load %arg3[%c0_25, %c0_26] : memref<1x256xf32, #tpu.memory_space<vmem>>, vector<1x256xf32>
      %52 = vector.broadcast %51 : vector<1x256xf32> to vector<64x256xf32>
      %53 = arith.mulf %50, %52 : vector<64x256xf32>
      %c0_27 = arith.constant 0 : index
      %c0_28 = arith.constant 0 : index
      %54 = vector.load %arg4[%c0_27, %c0_28] : memref<1x256xf32, #tpu.memory_space<vmem>>, vector<1x256xf32>
      %55 = vector.broadcast %54 : vector<1x256xf32> to vector<64x256xf32>
      %56 = arith.addf %53, %55 : vector<64x256xf32>
      %57 = arith.truncf %56 : vector<64x256xf32> to vector<64x256xbf16>
      %c0_29 = arith.constant 0 : index
      %c0_30 = arith.constant 0 : index
      %58 = vector.load %arg12[%c0_29, %c0_30] : memref<64x256xbf16, #tpu.memory_space<vmem>>, vector<64x256xbf16>
      tpu.vector_store %arg12[%c0_29, %c0_30], %57 {strides = array<i32>} : memref<64x256xbf16, #tpu.memory_space<vmem>>, vector<64x256xbf16>,
      %cst_31 = arith.constant 0.000000e+00 : f32
      %59 = vector.broadcast %cst_31 : f32 to vector<64x256xf32>
      %c0_32 = arith.constant 0 : index
      %c0_33 = arith.constant 0 : index
      %60 = vector.load %arg13[%c0_32, %c0_33] : memref<64x256xf32, #tpu.memory_space<vmem>>, vector<64x256xf32>
      tpu.vector_store %arg13[%c0_32, %c0_33], %59 {strides = array<i32>} : memref<64x256xf32, #tpu.memory_space<vmem>>, vector<64x256xf32>,
    } else {
    }
    %c0 = arith.constant 0 : index
    %c0_1 = arith.constant 0 : index
    %3 = vector.load %arg12[%c0, %c0_1] : memref<64x256xbf16, #tpu.memory_space<vmem>>, vector<64x256xbf16>
    %c0_2 = arith.constant 0 : index
    %c0_3 = arith.constant 0 : index
    %4 = vector.load %arg5[%c0_2, %c0_3] : memref<256x512xbf16, #tpu.memory_space<vmem>>, vector<256x512xbf16>
    %cst = arith.constant dense<0.000000e+00> : vector<64x512xf32>
    %5 = tpu.matmul %3, %4, %cst {dimension_numbers = #tpu.dot_dimension_numbers<[1], [0], [0], [1], [0, 0, 1, 1], [], []>} : vector<64x256xbf16>, vector<256x512xbf16>, vector<64x512xf32> -> vector<64x512xf32>
    %c0_4 = arith.constant 0 : index
    %c0_5 = arith.constant 0 : index
    %6 = vector.load %arg6[%c0_4, %c0_5] : memref<1x512xf32, #tpu.memory_space<vmem>>, vector<1x512xf32>
    %7 = vector.broadcast %6 : vector<1x512xf32> to vector<64x512xf32>
    %8 = arith.addf %5, %7 : vector<64x512xf32>
    %9 = arith.mulf %8, %8 : vector<64x512xf32>
    %10 = arith.mulf %8, %9 : vector<64x512xf32>
    %cst_6 = arith.constant 4.471500e-02 : f32
    %11 = vector.broadcast %cst_6 : f32 to vector<64x512xf32>
    %12 = arith.mulf %11, %10 : vector<64x512xf32>
    %13 = arith.addf %8, %12 : vector<64x512xf32>
    %cst_7 = arith.constant 0.797884583 : f32
    %14 = vector.broadcast %cst_7 : f32 to vector<64x512xf32>
    %15 = arith.mulf %14, %13 : vector<64x512xf32>
    %16 = math.tanh %15 : vector<64x512xf32>
    %cst_8 = arith.constant 1.000000e+00 : f32
    %17 = vector.broadcast %cst_8 : f32 to vector<64x512xf32>
    %18 = arith.addf %17, %16 : vector<64x512xf32>
    %cst_9 = arith.constant 5.000000e-01 : f32
    %19 = vector.broadcast %cst_9 : f32 to vector<64x512xf32>
    %20 = arith.mulf %19, %18 : vector<64x512xf32>
    %21 = arith.mulf %8, %20 : vector<64x512xf32>
    %c0_10 = arith.constant 0 : index
    %c0_11 = arith.constant 0 : index
    %22 = vector.load %arg13[%c0_10, %c0_11] : memref<64x256xf32, #tpu.memory_space<vmem>>, vector<64x256xf32>
    %23 = arith.truncf %21 : vector<64x512xf32> to vector<64x512xbf16>
    %c0_12 = arith.constant 0 : index
    %c0_13 = arith.constant 0 : index
    %24 = vector.load %arg7[%c0_12, %c0_13] : memref<512x256xbf16, #tpu.memory_space<vmem>>, vector<512x256xbf16>
    %cst_14 = arith.constant dense<0.000000e+00> : vector<64x256xf32>
    %25 = tpu.matmul %23, %24, %cst_14 {dimension_numbers = #tpu.dot_dimension_numbers<[1], [0], [0], [1], [0, 0, 1, 1], [], []>} : vector<64x512xbf16>, vector<512x256xbf16>, vector<64x256xf32> -> vector<64x256xf32>
    %26 = arith.addf %22, %25 : vector<64x256xf32>
    %c0_15 = arith.constant 0 : index
    %c0_16 = arith.constant 0 : index
    %27 = vector.load %arg13[%c0_15, %c0_16] : memref<64x256xf32, #tpu.memory_space<vmem>>, vector<64x256xf32>
    tpu.vector_store %arg13[%c0_15, %c0_16], %26 {strides = array<i32>} : memref<64x256xf32, #tpu.memory_space<vmem>>, vector<64x256xf32>,
    %c1_i32 = arith.constant 1 : i32
    %28 = arith.cmpi eq, %arg1, %c1_i32 : i32
    %29 = arith.extui %28 : i1 to i32
    %c0_i32_17 = arith.constant 0 : i32
    %30 = arith.cmpi ne, %29, %c0_i32_17 : i32
    scf.if %30 {
      %c0_18 = arith.constant 0 : index
      %c0_19 = arith.constant 0 : index
      %31 = vector.load %arg13[%c0_18, %c0_19] : memref<64x256xf32, #tpu.memory_space<vmem>>, vector<64x256xf32>
      %c0_20 = arith.constant 0 : index
      %c0_21 = arith.constant 0 : index
      %32 = vector.load %arg8[%c0_20, %c0_21] : memref<1x256xf32, #tpu.memory_space<vmem>>, vector<1x256xf32>
      %33 = vector.broadcast %32 : vector<1x256xf32> to vector<64x256xf32>
      %34 = arith.addf %31, %33 : vector<64x256xf32>
      %c0_22 = arith.constant 0 : index
      %c0_23 = arith.constant 0 : index
      %35 = vector.load %arg2[%c0_22, %c0_23] : memref<64x256xbf16, #tpu.memory_space<vmem>>, vector<64x256xbf16>
      %36 = arith.extf %35 : vector<64x256xbf16> to vector<64x256xf32>
      %37 = arith.addf %34, %36 : vector<64x256xf32>
      %38 = arith.truncf %37 : vector<64x256xf32> to vector<64x256xbf16>
      %c0_24 = arith.constant 0 : index
      %c0_25 = arith.constant 0 : index
      %39 = vector.load %arg11[%c0_24, %c0_25] : memref<64x256xbf16, #tpu.memory_space<vmem>>, vector<64x256xbf16>
      tpu.vector_store %arg11[%c0_24, %c0_25], %38 {strides = array<i32>} : memref<64x256xbf16, #tpu.memory_space<vmem>>, vector<64x256xbf16>,
    } else {
    }
    return
  }
  func.func @transform_0(%arg0: i32, %arg1: i32) -> (i32, i32) {
    %c0_i32 = arith.constant 0 : i32
    %c0_i32_0 = arith.constant 0 : i32
    return %arg0, %c0_i32 : i32, i32
  }
  func.func @transform_1(%arg0: i32, %arg1: i32) -> (i32, i32) {
    %c0_i32 = arith.constant 0 : i32
    %c0_i32_0 = arith.constant 0 : i32
    %c0_i32_1 = arith.constant 0 : i32
    return %c0_i32, %c0_i32_0 : i32, i32
  }
  func.func @transform_2(%arg0: i32, %arg1: i32) -> (i32, i32) {
    %c0_i32 = arith.constant 0 : i32
    %c0_i32_0 = arith.constant 0 : i32
    %c0_i32_1 = arith.constant 0 : i32
    return %c0_i32, %c0_i32_0 : i32, i32
  }
  func.func @transform_3(%arg0: i32, %arg1: i32) -> (i32, i32) {
    %c0_i32 = arith.constant 0 : i32
    %c0_i32_0 = arith.constant 0 : i32
    return %c0_i32, %arg1 : i32, i32
  }
  func.func @transform_4(%arg0: i32, %arg1: i32) -> (i32, i32) {
    %c0_i32 = arith.constant 0 : i32
    %c0_i32_0 = arith.constant 0 : i32
    return %c0_i32, %arg1 : i32, i32
  }
  func.func @transform_5(%arg0: i32, %arg1: i32) -> (i32, i32) {
    %c0_i32 = arith.constant 0 : i32
    %c0_i32_0 = arith.constant 0 : i32
    return %arg1, %c0_i32 : i32, i32
  }
  func.func @transform_6(%arg0: i32, %arg1: i32) -> (i32, i32) {
    %c0_i32 = arith.constant 0 : i32
    %c0_i32_0 = arith.constant 0 : i32
    %c0_i32_1 = arith.constant 0 : i32
    return %c0_i32, %c0_i32_0 : i32, i32
  }
  func.func @transform_7(%arg0: i32, %arg1: i32) -> (i32, i32) {
    %c0_i32 = arith.constant 0 : i32
    %c0_i32_0 = arith.constant 0 : i32
    %c0_i32_1 = arith.constant 0 : i32
    return %c0_i32, %c0_i32_0 : i32, i32
  }
  func.func @transform_8(%arg0: i32, %arg1: i32) -> (i32, i32) {
    %c0_i32 = arith.constant 0 : i32
    %c0_i32_0 = arith.constant 0 : i32
    %c0_i32_1 = arith.constant 0 : i32
    return %c0_i32, %c0_i32_0 : i32, i32
  }
  func.func @transform_9(%arg0: i32, %arg1: i32) -> (i32, i32) {
    %c0_i32 = arith.constant 0 : i32
    %c0_i32_0 = arith.constant 0 : i32
    return %arg0, %c0_i32 : i32, i32
  }
}

module attributes {stable_mosaic.version = 11 : i64} {
  func.func @_ln_mlp_residual_kernel(%arg0: i32, %arg1: i32, %arg2: memref<64x256xbf16, #tpu.memory_space<vmem>>, %arg3: memref<1x256xf32, #tpu.memory_space<vmem>>, %arg4: memref<1x256xf32, #tpu.memory_space<vmem>>, %arg5: memref<256x512xbf16, #tpu.memory_space<vmem>>, %arg6: memref<1x512xf32, #tpu.memory_space<vmem>>, %arg7: memref<512x256xbf16, #tpu.memory_space<vmem>>, %arg8: memref<1x256xf32, #tpu.memory_space<vmem>>, %arg9: memref<1x256xf32, #tpu.memory_space<vmem>>, %arg10: memref<1x256xf32, #tpu.memory_space<vmem>>, %arg11: memref<64x256xf32, #tpu.memory_space<vmem>>, %arg12: memref<64x256xbf16, #tpu.memory_space<vmem>>, %arg13: memref<64x256xf32, #tpu.memory_space<vmem>>) attributes {dimension_semantics = [#tpu.dimension_semantics<parallel>, #tpu.dimension_semantics<arbitrary>], iteration_bounds = array<i64: 1, 2>, scalar_prefetch = 0 : i64, scratch_operands = 2 : i64, tpu.core_type = #tpu.core_type<tc>, window_params = [{transform_indices = @transform_0, window_bounds = array<i64: 64, 256>}, {pipeline_mode = #tpu.pipeline_mode<synchronous>, transform_indices = @transform_1, window_bounds = array<i64: 1, 256>}, {pipeline_mode = #tpu.pipeline_mode<synchronous>, transform_indices = @transform_2, window_bounds = array<i64: 1, 256>}, {transform_indices = @transform_3, window_bounds = array<i64: 256, 512>}, {transform_indices = @transform_4, window_bounds = array<i64: 1, 512>}, {transform_indices = @transform_5, window_bounds = array<i64: 512, 256>}, {pipeline_mode = #tpu.pipeline_mode<synchronous>, transform_indices = @transform_6, window_bounds = array<i64: 1, 256>}, {pipeline_mode = #tpu.pipeline_mode<synchronous>, transform_indices = @transform_7, window_bounds = array<i64: 1, 256>}, {pipeline_mode = #tpu.pipeline_mode<synchronous>, transform_indices = @transform_8, window_bounds = array<i64: 1, 256>}, {transform_indices = @transform_9, window_bounds = array<i64: 64, 256>}]} {
    %c0_i32 = arith.constant 0 : i32
    %0 = arith.cmpi eq, %arg1, %c0_i32 : i32
    %1 = arith.extui %0 : i1 to i32
    %c0_i32_0 = arith.constant 0 : i32
    %2 = arith.cmpi ne, %1, %c0_i32_0 : i32
    scf.if %2 {
      %c0_18 = arith.constant 0 : index
      %c0_19 = arith.constant 0 : index
      %31 = vector.load %arg2[%c0_18, %c0_19] : memref<64x256xbf16, #tpu.memory_space<vmem>>, vector<64x256xbf16>
      %32 = arith.extf %31 : vector<64x256xbf16> to vector<64x256xf32>
      %cst_20 = arith.constant dense<0.000000e+00> : vector<64xf32>
      %33 = vector.multi_reduction <add>, %32, %cst_20 [1] : vector<64x256xf32> to vector<64xf32>
      %34 = vector.shape_cast %33 : vector<64xf32> to vector<64x1xf32>
      %cst_21 = arith.constant 2.560000e+02 : f32
      %35 = vector.broadcast %cst_21 : f32 to vector<64x1xf32>
      %36 = arith.divf %34, %35 : vector<64x1xf32>
      %37 = vector.broadcast %36 : vector<64x1xf32> to vector<64x256xf32>
      %38 = arith.subf %32, %37 : vector<64x256xf32>
      %39 = arith.mulf %38, %38 : vector<64x256xf32>
      %cst_22 = arith.constant dense<0.000000e+00> : vector<64xf32>
      %40 = vector.multi_reduction <add>, %39, %cst_22 [1] : vector<64x256xf32> to vector<64xf32>
      %41 = vector.shape_cast %40 : vector<64xf32> to vector<64x1xf32>
      %cst_23 = arith.constant 2.560000e+02 : f32
      %42 = vector.broadcast %cst_23 : f32 to vector<64x1xf32>
      %43 = arith.divf %41, %42 : vector<64x1xf32>
      %44 = vector.broadcast %36 : vector<64x1xf32> to vector<64x256xf32>
      %45 = arith.subf %32, %44 : vector<64x256xf32>
      %cst_24 = arith.constant 9.99999974E-6 : f32
      %46 = vector.broadcast %cst_24 : f32 to vector<64x1xf32>
      %47 = arith.addf %43, %46 : vector<64x1xf32>
      %48 = math.rsqrt %47 : vector<64x1xf32>
      %49 = vector.broadcast %48 : vector<64x1xf32> to vector<64x256xf32>
      %50 = arith.mulf %45, %49 : vector<64x256xf32>
      %c0_25 = arith.constant 0 : index
      %c0_26 = arith.constant 0 : index
      %51 = vector.load %arg3[%c0_25, %c0_26] : memref<1x256xf32, #tpu.memory_space<vmem>>, vector<1x256xf32>
      %52 = vector.broadcast %51 : vector<1x256xf32> to vector<64x256xf32>
      %53 = arith.mulf %50, %52 : vector<64x256xf32>
      %c0_27 = arith.constant 0 : index
      %c0_28 = arith.constant 0 : index
      %54 = vector.load %arg4[%c0_27, %c0_28] : memref<1x256xf32, #tpu.memory_space<vmem>>, vector<1x256xf32>
      %55 = vector.broadcast %54 : vector<1x256xf32> to vector<64x256xf32>
      %56 = arith.addf %53, %55 : vector<64x256xf32>
      %57 = arith.truncf %56 : vector<64x256xf32> to vector<64x256xbf16>
      %c0_29 = arith.constant 0 : index
      %c0_30 = arith.constant 0 : index
      %58 = vector.load %arg12[%c0_29, %c0_30] : memref<64x256xbf16, #tpu.memory_space<vmem>>, vector<64x256xbf16>
      tpu.vector_store %arg12[%c0_29, %c0_30], %57 {strides = array<i32>} : memref<64x256xbf16, #tpu.memory_space<vmem>>, vector<64x256xbf16>,
      %cst_31 = arith.constant 0.000000e+00 : f32
      %59 = vector.broadcast %cst_31 : f32 to vector<64x256xf32>
      %c0_32 = arith.constant 0 : index
      %c0_33 = arith.constant 0 : index
      %60 = vector.load %arg13[%c0_32, %c0_33] : memref<64x256xf32, #tpu.memory_space<vmem>>, vector<64x256xf32>
      tpu.vector_store %arg13[%c0_32, %c0_33], %59 {strides = array<i32>} : memref<64x256xf32, #tpu.memory_space<vmem>>, vector<64x256xf32>,
    } else {
    }
    %c0 = arith.constant 0 : index
    %c0_1 = arith.constant 0 : index
    %3 = vector.load %arg12[%c0, %c0_1] : memref<64x256xbf16, #tpu.memory_space<vmem>>, vector<64x256xbf16>
    %c0_2 = arith.constant 0 : index
    %c0_3 = arith.constant 0 : index
    %4 = vector.load %arg5[%c0_2, %c0_3] : memref<256x512xbf16, #tpu.memory_space<vmem>>, vector<256x512xbf16>
    %cst = arith.constant dense<0.000000e+00> : vector<64x512xf32>
    %5 = tpu.matmul %3, %4, %cst {dimension_numbers = #tpu.dot_dimension_numbers<[1], [0], [0], [1], [0, 0, 1, 1], [], []>} : vector<64x256xbf16>, vector<256x512xbf16>, vector<64x512xf32> -> vector<64x512xf32>
    %c0_4 = arith.constant 0 : index
    %c0_5 = arith.constant 0 : index
    %6 = vector.load %arg6[%c0_4, %c0_5] : memref<1x512xf32, #tpu.memory_space<vmem>>, vector<1x512xf32>
    %7 = vector.broadcast %6 : vector<1x512xf32> to vector<64x512xf32>
    %8 = arith.addf %5, %7 : vector<64x512xf32>
    %9 = arith.mulf %8, %8 : vector<64x512xf32>
    %10 = arith.mulf %8, %9 : vector<64x512xf32>
    %cst_6 = arith.constant 4.471500e-02 : f32
    %11 = vector.broadcast %cst_6 : f32 to vector<64x512xf32>
    %12 = arith.mulf %11, %10 : vector<64x512xf32>
    %13 = arith.addf %8, %12 : vector<64x512xf32>
    %cst_7 = arith.constant 0.797884583 : f32
    %14 = vector.broadcast %cst_7 : f32 to vector<64x512xf32>
    %15 = arith.mulf %14, %13 : vector<64x512xf32>
    %16 = math.tanh %15 : vector<64x512xf32>
    %cst_8 = arith.constant 1.000000e+00 : f32
    %17 = vector.broadcast %cst_8 : f32 to vector<64x512xf32>
    %18 = arith.addf %17, %16 : vector<64x512xf32>
    %cst_9 = arith.constant 5.000000e-01 : f32
    %19 = vector.broadcast %cst_9 : f32 to vector<64x512xf32>
    %20 = arith.mulf %19, %18 : vector<64x512xf32>
    %21 = arith.mulf %8, %20 : vector<64x512xf32>
    %c0_10 = arith.constant 0 : index
    %c0_11 = arith.constant 0 : index
    %22 = vector.load %arg13[%c0_10, %c0_11] : memref<64x256xf32, #tpu.memory_space<vmem>>, vector<64x256xf32>
    %23 = arith.truncf %21 : vector<64x512xf32> to vector<64x512xbf16>
    %c0_12 = arith.constant 0 : index
    %c0_13 = arith.constant 0 : index
    %24 = vector.load %arg7[%c0_12, %c0_13] : memref<512x256xbf16, #tpu.memory_space<vmem>>, vector<512x256xbf16>
    %cst_14 = arith.constant dense<0.000000e+00> : vector<64x256xf32>
    %25 = tpu.matmul %23, %24, %cst_14 {dimension_numbers = #tpu.dot_dimension_numbers<[1], [0], [0], [1], [0, 0, 1, 1], [], []>} : vector<64x512xbf16>, vector<512x256xbf16>, vector<64x256xf32> -> vector<64x256xf32>
    %26 = arith.addf %22, %25 : vector<64x256xf32>
    %c0_15 = arith.constant 0 : index
    %c0_16 = arith.constant 0 : index
    %27 = vector.load %arg13[%c0_15, %c0_16] : memref<64x256xf32, #tpu.memory_space<vmem>>, vector<64x256xf32>
    tpu.vector_store %arg13[%c0_15, %c0_16], %26 {strides = array<i32>} : memref<64x256xf32, #tpu.memory_space<vmem>>, vector<64x256xf32>,
    %c1_i32 = arith.constant 1 : i32
    %28 = arith.cmpi eq, %arg1, %c1_i32 : i32
    %29 = arith.extui %28 : i1 to i32
    %c0_i32_17 = arith.constant 0 : i32
    %30 = arith.cmpi ne, %29, %c0_i32_17 : i32
    scf.if %30 {
      %c0_18 = arith.constant 0 : index
      %c0_19 = arith.constant 0 : index
      %31 = vector.load %arg13[%c0_18, %c0_19] : memref<64x256xf32, #tpu.memory_space<vmem>>, vector<64x256xf32>
      %c0_20 = arith.constant 0 : index
      %c0_21 = arith.constant 0 : index
      %32 = vector.load %arg8[%c0_20, %c0_21] : memref<1x256xf32, #tpu.memory_space<vmem>>, vector<1x256xf32>
      %33 = vector.broadcast %32 : vector<1x256xf32> to vector<64x256xf32>
      %34 = arith.addf %31, %33 : vector<64x256xf32>
      %c0_22 = arith.constant 0 : index
      %c0_23 = arith.constant 0 : index
      %35 = vector.load %arg2[%c0_22, %c0_23] : memref<64x256xbf16, #tpu.memory_space<vmem>>, vector<64x256xbf16>
      %36 = arith.extf %35 : vector<64x256xbf16> to vector<64x256xf32>
      %37 = arith.addf %34, %36 : vector<64x256xf32>
      %cst_24 = arith.constant dense<0.000000e+00> : vector<64xf32>
      %38 = vector.multi_reduction <add>, %37, %cst_24 [1] : vector<64x256xf32> to vector<64xf32>
      %39 = vector.shape_cast %38 : vector<64xf32> to vector<64x1xf32>
      %cst_25 = arith.constant 2.560000e+02 : f32
      %40 = vector.broadcast %cst_25 : f32 to vector<64x1xf32>
      %41 = arith.divf %39, %40 : vector<64x1xf32>
      %42 = vector.broadcast %41 : vector<64x1xf32> to vector<64x256xf32>
      %43 = arith.subf %37, %42 : vector<64x256xf32>
      %44 = arith.mulf %43, %43 : vector<64x256xf32>
      %cst_26 = arith.constant dense<0.000000e+00> : vector<64xf32>
      %45 = vector.multi_reduction <add>, %44, %cst_26 [1] : vector<64x256xf32> to vector<64xf32>
      %46 = vector.shape_cast %45 : vector<64xf32> to vector<64x1xf32>
      %cst_27 = arith.constant 2.560000e+02 : f32
      %47 = vector.broadcast %cst_27 : f32 to vector<64x1xf32>
      %48 = arith.divf %46, %47 : vector<64x1xf32>
      %49 = vector.broadcast %41 : vector<64x1xf32> to vector<64x256xf32>
      %50 = arith.subf %37, %49 : vector<64x256xf32>
      %cst_28 = arith.constant 9.99999974E-6 : f32
      %51 = vector.broadcast %cst_28 : f32 to vector<64x1xf32>
      %52 = arith.addf %48, %51 : vector<64x1xf32>
      %53 = math.rsqrt %52 : vector<64x1xf32>
      %54 = vector.broadcast %53 : vector<64x1xf32> to vector<64x256xf32>
      %55 = arith.mulf %50, %54 : vector<64x256xf32>
      %c0_29 = arith.constant 0 : index
      %c0_30 = arith.constant 0 : index
      %56 = vector.load %arg9[%c0_29, %c0_30] : memref<1x256xf32, #tpu.memory_space<vmem>>, vector<1x256xf32>
      %57 = vector.broadcast %56 : vector<1x256xf32> to vector<64x256xf32>
      %58 = arith.mulf %55, %57 : vector<64x256xf32>
      %c0_31 = arith.constant 0 : index
      %c0_32 = arith.constant 0 : index
      %59 = vector.load %arg10[%c0_31, %c0_32] : memref<1x256xf32, #tpu.memory_space<vmem>>, vector<1x256xf32>
      %60 = vector.broadcast %59 : vector<1x256xf32> to vector<64x256xf32>
      %61 = arith.addf %58, %60 : vector<64x256xf32>
      %c0_33 = arith.constant 0 : index
      %c0_34 = arith.constant 0 : index
      %62 = vector.load %arg11[%c0_33, %c0_34] : memref<64x256xf32, #tpu.memory_space<vmem>>, vector<64x256xf32>
      tpu.vector_store %arg11[%c0_33, %c0_34], %61 {strides = array<i32>} : memref<64x256xf32, #tpu.memory_space<vmem>>, vector<64x256xf32>,
    } else {
    }
    return
  }
  func.func @transform_0(%arg0: i32, %arg1: i32) -> (i32, i32) {
    %c0_i32 = arith.constant 0 : i32
    %c0_i32_0 = arith.constant 0 : i32
    return %arg0, %c0_i32 : i32, i32
  }
  func.func @transform_1(%arg0: i32, %arg1: i32) -> (i32, i32) {
    %c0_i32 = arith.constant 0 : i32
    %c0_i32_0 = arith.constant 0 : i32
    %c0_i32_1 = arith.constant 0 : i32
    return %c0_i32, %c0_i32_0 : i32, i32
  }
  func.func @transform_2(%arg0: i32, %arg1: i32) -> (i32, i32) {
    %c0_i32 = arith.constant 0 : i32
    %c0_i32_0 = arith.constant 0 : i32
    %c0_i32_1 = arith.constant 0 : i32
    return %c0_i32, %c0_i32_0 : i32, i32
  }
  func.func @transform_3(%arg0: i32, %arg1: i32) -> (i32, i32) {
    %c0_i32 = arith.constant 0 : i32
    %c0_i32_0 = arith.constant 0 : i32
    return %c0_i32, %arg1 : i32, i32
  }
  func.func @transform_4(%arg0: i32, %arg1: i32) -> (i32, i32) {
    %c0_i32 = arith.constant 0 : i32
    %c0_i32_0 = arith.constant 0 : i32
    return %c0_i32, %arg1 : i32, i32
  }
  func.func @transform_5(%arg0: i32, %arg1: i32) -> (i32, i32) {
    %c0_i32 = arith.constant 0 : i32
    %c0_i32_0 = arith.constant 0 : i32
    return %arg1, %c0_i32 : i32, i32
  }
  func.func @transform_6(%arg0: i32, %arg1: i32) -> (i32, i32) {
    %c0_i32 = arith.constant 0 : i32
    %c0_i32_0 = arith.constant 0 : i32
    %c0_i32_1 = arith.constant 0 : i32
    return %c0_i32, %c0_i32_0 : i32, i32
  }
  func.func @transform_7(%arg0: i32, %arg1: i32) -> (i32, i32) {
    %c0_i32 = arith.constant 0 : i32
    %c0_i32_0 = arith.constant 0 : i32
    %c0_i32_1 = arith.constant 0 : i32
    return %c0_i32, %c0_i32_0 : i32, i32
  }
  func.func @transform_8(%arg0: i32, %arg1: i32) -> (i32, i32) {
    %c0_i32 = arith.constant 0 : i32
    %c0_i32_0 = arith.constant 0 : i32
    %c0_i32_1 = arith.constant 0 : i32
    return %c0_i32, %c0_i32_0 : i32, i32
  }
  func.func @transform_9(%arg0: i32, %arg1: i32) -> (i32, i32) {
    %c0_i32 = arith.constant 0 : i32
    %c0_i32_0 = arith.constant 0 : i32
    return %arg0, %c0_i32 : i32, i32
  }
}

</mosaic_0001>

<bundles_post_ra>
// kernel: _lambda_.7
= control target key start
LH: loop header
LB: loop body
LE: loop exit
PB: predicated region body
PF: predicated region fallthrough
CT: control target
= control target key end

     0   :  { %s1382_s15 = smov 0   ;;  %s1384_s16 = smov 0   ;;  %s1753_s0 = inlined_call_operand.vmem [shape: bf16[64,384], index: 0, kind: input, shape index: {}]   ;;  %s1754_s1 = inlined_call_operand.vmem [shape: bf16[384,256], index: 1, kind: input, shape index: {}]   ;;  %s1755_s2 = inlined_call_operand.vmem [shape: f32[1,256], index: 2, kind: input, shape index: {}]   ;;  %s1756_s3 = inlined_call_operand.vmem [shape: bf16[32,256], index: 3, kind: input, shape index: {}]   ;;  %s1757_s4 = inlined_call_operand.vmem [shape: bf16[64,256], index: 4, kind: output, shape index: {}]  }
   0x1   :  { %s1386_s17 = smov 0  }
   0x2 LB: > { %s33_s18 = sadd.s32 1, %s1351_s16  ;;  %p1013_p0 = scmp.ge.s32.totalorder %s1355_s17, 1  ;;  %s1355_s17 = sphi %s1386_s17, %s14_s17   ;;  %s1351_s16 = sphi %s1384_s16, %s1759_s16   ;;  %s1347_s15 = sphi %s1382_s15, %s1758_s15  }
   0x3   : > { %p35_p1 = scmp.ge.s32.totalorder %s33_s18, 2  ;;  %p232_p2 = scmp.lt.s32.totalorder %s1355_s17, 3 }
   0x5   : > { %s1761_s18 = smov (%p35_p1, %s33_s18), 0  ;;  %p233_p3 = pnand %p1013_p0, %p232_p2 }
   0x6   : > { %s1014_s13 = sshll.u32 (!%p233_p3), %s1347_s15, 2 }
   0x7   : > { %236 = sbr.rel (%p233_p3) target bundleno = 231 (0xe7), region = 36  ;;  %p289_p4 = scmp.lt.s32.totalorder (!%p233_p3), %s1014_s13, 7 }
   0xc   : > { %v1101_v0 = vld [vmem:[%s1754_s1 + $0x70] sm:$0xf]  ;;  %v1259_v1 = vld [vmem:[%s1754_s1 + $0x74] sm:$0xf0]  ;;  %v1258_v9 = vld [vmem:[%s1754_s1 + $0x74] sm:$0xf] }
   0xd   : > { %v1165_v2 = vld [vmem:[%s1754_s1 + $0xf0] sm:$0xf]  ;;  %v1102_v3 = vor.u32 %v1259_v1, %v1101_v0  ;;  %v1275_v4 = vld [vmem:[%s1754_s1 + $0xf4] sm:$0xf0]  ;;  %v1103_v10 = vld [vmem:[%s1754_s1 + $0x78] sm:$0xf0] }
   0xe   : > { %v1229_v5 = vld [vmem:[%s1754_s1 + $0x170] sm:$0xf]  ;;  %v1291_v6 = vld [vmem:[%s1754_s1 + $0x174] sm:$0xf0]  ;;  %v1166_v7 = vor.u32 %v1275_v4, %v1165_v2  ;;  %v1093_v11 = vld [vmem:[%s1754_s1 + $0x60] sm:$0xf]  ;;  %v1106_v12 = vor.u32 %v1258_v9, %v1103_v10 }
   0xf   : > { %v1230_v8 = vor.u32 %v1291_v6, %v1229_v5  ;;  %682 = vmatpush.bf16.msra.mxu0 %v1102_v3  ;;  %v1257_v13 = vld [vmem:[%s1754_s1 + $0x64] sm:$0xf0]  ;;  %v1157_v14 = vld [vmem:[%s1754_s1 + $0xe0] sm:$0xf]  ;;  %v1256_v20 = vld [vmem:[%s1754_s1 + $0x64] sm:$0xf] }
  0x10   : > { %v1273_v15 = vld [vmem:[%s1754_s1 + $0xe4] sm:$0xf0]  ;;  %701 = vmatpush.bf16.msra.mxu1 %v1166_v7  ;;  %v1094_v16 = vor.u32 %v1257_v13, %v1093_v11  ;;  %v1221_v18 = vld [vmem:[%s1754_s1 + $0x160] sm:$0xf]  ;;  %739 = vmatpush.bf16.msra.mxu3 %v1106_v12  ;;  %v1095_v22 = vld [vmem:[%s1754_s1 + $0x68] sm:$0xf0] }
  0x11   : > { %720 = vmatpush.bf16.msra.mxu2 %v1230_v8  ;;  %v1158_v17 = vor.u32 %v1273_v15, %v1157_v14  ;;  %v1289_v19 = vld [vmem:[%s1754_s1 + $0x164] sm:$0xf0]  ;;  %v1085_v23 = vld [vmem:[%s1754_s1 + $0x50] sm:$0xf]  ;;  %v1255_v24 = vld [vmem:[%s1754_s1 + $0x54] sm:$0xf0]  ;;  %v1098_v25 = vor.u32 %v1256_v20, %v1095_v22 }
  0x12   : > { %v1222_v21 = vor.u32 %v1289_v19, %v1221_v18  ;;  %v1149_v26 = vld [vmem:[%s1754_s1 + $0xd0] sm:$0xf]  ;;  %v1271_v27 = vld [vmem:[%s1754_s1 + $0xd4] sm:$0xf0]  ;;  %v1086_v29 = vor.u32 %v1255_v24, %v1085_v23  ;;  %v1254_v31 = vld [vmem:[%s1754_s1 + $0x54] sm:$0xf] }
  0x13   : > { %v1213_v28 = vld [vmem:[%s1754_s1 + $0x150] sm:$0xf]  ;;  %683 = vmatpush.bf16.msra.mxu0 %v1094_v16  ;;  %v1287_v30 = vld [vmem:[%s1754_s1 + $0x154] sm:$0xf0]  ;;  %v1087_v32 = vld [vmem:[%s1754_s1 + $0x58] sm:$0xf0]  ;;  %v1150_v33 = vor.u32 %v1271_v27, %v1149_v26 }
  0x14   : > { %702 = vmatpush.bf16.msra.mxu1 %v1158_v17  ;;  %v1214_v34 = vor.u32 %v1287_v30, %v1213_v28  ;;  %v1077_v35 = vld [vmem:[%s1754_s1 + $0x40] sm:$0xf]  ;;  %v1253_v36 = vld [vmem:[%s1754_s1 + $0x44] sm:$0xf0]  ;;  %740 = vmatpush.bf16.msra.mxu3 %v1098_v25  ;;  %v1090_v38 = vor.u32 %v1254_v31, %v1087_v32  ;;  %v1252_v42 = vld [vmem:[%s1754_s1 + $0x44] sm:$0xf] }
  0x15   : > { %721 = vmatpush.bf16.msra.mxu2 %v1222_v21  ;;  %v1141_v37 = vld [vmem:[%s1754_s1 + $0xc0] sm:$0xf]  ;;  %v1269_v39 = vld [vmem:[%s1754_s1 + $0xc4] sm:$0xf0]  ;;  %v1079_v43 = vld [vmem:[%s1754_s1 + $0x48] sm:$0xf0]  ;;  %v1078_v44 = vor.u32 %v1253_v36, %v1077_v35 }
  0x16   : > { %v1205_v40 = vld [vmem:[%s1754_s1 + $0x140] sm:$0xf]  ;;  %v1285_v41 = vld [vmem:[%s1754_s1 + $0x144] sm:$0xf0]  ;;  %v1142_v45 = vor.u32 %v1269_v39, %v1141_v37  ;;  %v1069_v47 = vld [vmem:[%s1754_s1 + $0x30] sm:$0xf]  ;;  %v1082_v50 = vor.u32 %v1252_v42, %v1079_v43 }
  0x17   : > { %684 = vmatpush.bf16.msra.mxu0 %v1086_v29  ;;  %v1206_v46 = vor.u32 %v1285_v41, %v1205_v40  ;;  %v1251_v48 = vld [vmem:[%s1754_s1 + $0x34] sm:$0xf0]  ;;  %v1133_v49 = vld [vmem:[%s1754_s1 + $0xb0] sm:$0xf]  ;;  %v1250_v54 = vld [vmem:[%s1754_s1 + $0x34] sm:$0xf] }
  0x18   : > { %703 = vmatpush.bf16.msra.mxu1 %v1150_v33  ;;  %741 = vmatpush.bf16.msra.mxu3 %v1090_v38  ;;  %v1267_v51 = vld [vmem:[%s1754_s1 + $0xb4] sm:$0xf0]  ;;  %v1197_v52 = vld [vmem:[%s1754_s1 + $0x130] sm:$0xf]  ;;  %v1071_v55 = vld [vmem:[%s1754_s1 + $0x38] sm:$0xf0]  ;;  %v1070_v56 = vor.u32 %v1251_v48, %v1069_v47 }
  0x19   : > { %722 = vmatpush.bf16.msra.mxu2 %v1214_v34  ;;  %v1283_v53 = vld [vmem:[%s1754_s1 + $0x134] sm:$0xf0]  ;;  %v1134_v57 = vor.u32 %v1267_v51, %v1133_v49  ;;  %v1061_v59 = vld [vmem:[%s1754_s1 + $0x20] sm:$0xf]  ;;  %v1249_v60 = vld [vmem:[%s1754_s1 + $0x24] sm:$0xf0]  ;;  %v1074_v62 = vor.u32 %v1250_v54, %v1071_v55 }
  0x1a   : > { %v1198_v58 = vor.u32 %v1283_v53, %v1197_v52  ;;  %v1125_v61 = vld [vmem:[%s1754_s1 + $0xa0] sm:$0xf]  ;;  %v1265_v63 = vld [vmem:[%s1754_s1 + $0xa4] sm:$0xf0]  ;;  %v1248_v2 = vld [vmem:[%s1754_s1 + $0x24] sm:$0xf]  ;;  %v1062_v4 = vor.u32 %v1249_v60, %v1061_v59 }
  0x1b   : > { %685 = vmatpush.bf16.msra.mxu0 %v1078_v44  ;;  %v1189_v0 = vld [vmem:[%s1754_s1 + $0x120] sm:$0xf]  ;;  %v1281_v1 = vld [vmem:[%s1754_s1 + $0x124] sm:$0xf0]  ;;  %v1063_v3 = vld [vmem:[%s1754_s1 + $0x28] sm:$0xf0]  ;;  %v1126_v6 = vor.u32 %v1265_v63, %v1125_v61 }
  0x1c   : > { %704 = vmatpush.bf16.msra.mxu1 %v1142_v45  ;;  %742 = vmatpush.bf16.msra.mxu3 %v1082_v50  ;;  %v1053_v5 = vld [vmem:[%s1754_s1 + $0x10] sm:$0xf]  ;;  %v1190_v7 = vor.u32 %v1281_v1, %v1189_v0  ;;  %v1247_v8 = vld [vmem:[%s1754_s1 + $0x14] sm:$0xf0]  ;;  %v1066_v11 = vor.u32 %v1248_v2, %v1063_v3  ;;  %v1246_v14 = vld [vmem:[%s1754_s1 + $0x14] sm:$0xf] }
  0x1d   : > { %723 = vmatpush.bf16.msra.mxu2 %v1206_v46  ;;  %v1117_v9 = vld [vmem:[%s1754_s1 + $0x90] sm:$0xf]  ;;  %v1263_v10 = vld [vmem:[%s1754_s1 + $0x94] sm:$0xf0]  ;;  %v1055_v15 = vld [vmem:[%s1754_s1 + $0x18] sm:$0xf0]  ;;  %v1054_v16 = vor.u32 %v1247_v8, %v1053_v5 }
  0x1e   : > { %v1181_v12 = vld [vmem:[%s1754_s1 + $0x110] sm:$0xf]  ;;  %v1279_v13 = vld [vmem:[%s1754_s1 + $0x114] sm:$0xf0]  ;;  %v1045_v17 = vld [vmem:[%s1754_s1] sm:$0xf]  ;;  %v1118_v20 = vor.u32 %v1263_v10, %v1117_v9  ;;  %v1058_v24 = vor.u32 %v1246_v14, %v1055_v15 }
  0x1f   : > { %686 = vmatpush.bf16.msra.mxu0 %v1070_v56  ;;  %v1245_v18 = vld [vmem:[%s1754_s1 + $0x4] sm:$0xf0]  ;;  %v1109_v19 = vld [vmem:[%s1754_s1 + $0x80] sm:$0xf]  ;;  %v1182_v21 = vor.u32 %v1279_v13, %v1181_v12  ;;  %s1763_s13 = smov (!%p289_p4, %s1014_s13), 7 }
  0x20   : > { %705 = vmatpush.bf16.msra.mxu1 %v1134_v57  ;;  %743 = vmatpush.bf16.msra.mxu3 %v1074_v62  ;;  %v1261_v22 = vld [vmem:[%s1754_s1 + $0x84] sm:$0xf0]  ;;  %v1173_v23 = vld [vmem:[%s1754_s1 + $0x100] sm:$0xf]  ;;  %v1244_v26 = vld [vmem:[%s1754_s1 + $0x4] sm:$0xf]  ;;  %v1046_v30 = vor.u32 %v1245_v18, %v1045_v17 }
  0x21   : > { %724 = vmatpush.bf16.msra.mxu2 %v1198_v58  ;;  %v1277_v25 = vld [vmem:[%s1754_s1 + $0x104] sm:$0xf0]  ;;  %v1047_v27 = vld [vmem:[%s1754_s1 + $0x8] sm:$0xf0]  ;;  %s1308_s11 = smul.u32 12, %s1763_s13  ;;  %v1110_v33 = vor.u32 %v1261_v22, %v1109_v19 }
  0x22   : > { %v1274_v28 = vld [vmem:[%s1754_s1 + $0xf4] sm:$0xf]  ;;  %v1167_v29 = vld [vmem:[%s1754_s1 + $0xf8] sm:$0xf0]  ;;  %v1174_v34 = vor.u32 %v1277_v25, %v1173_v23  ;;  %v1272_v35 = vld [vmem:[%s1754_s1 + $0xe4] sm:$0xf]  ;;  %v1050_v37 = vor.u32 %v1244_v26, %v1047_v27 }
  0x23   : > { %687 = vmatpush.bf16.msra.mxu0 %v1062_v4  ;;  %v1290_v31 = vld [vmem:[%s1754_s1 + $0x174] sm:$0xf]  ;;  %v1231_v32 = vld [vmem:[%s1754_s1 + $0x178] sm:$0xf0]  ;;  %s1613_s26 = scalar_lea.vmem %s1753_s0, %s1308_s11  ;;  %v1159_v36 = vld [vmem:[%s1754_s1 + $0xe8] sm:$0xf0]  ;;  %v1170_v41 = vor.u32 %v1274_v28, %v1167_v29 }
  0x24   : > { %706 = vmatpush.bf16.msra.mxu1 %v1126_v6  ;;  %744 = vmatpush.bf16.msra.mxu3 %v1066_v11  ;;  %v1021_v38 = vld [vmem:[%s1613_s26] sm:$0xf]  ;;  %v1239_v39 = vld [vmem:[%s1613_s26 + $0x8] sm:$0xf0]  ;;  %v1238_v40 = vld [vmem:[%s1613_s26 + $0x4] sm:$0xf]  ;;  %v1234_v46 = vor.u32 %v1290_v31, %v1231_v32  ;;  %v1162_v51 = vor.u32 %v1272_v35, %v1159_v36 }
  0x25   : > { %725 = vmatpush.bf16.msra.mxu2 %v1190_v7  ;;  %v1022_v42 = vor.u32 %v1239_v39, %v1021_v38  ;;  %v1023_v43 = vld [vmem:[%s1613_s26 + $0xc] sm:$0xf0]  ;;  %v1029_v44 = vld [vmem:[%s1613_s26 + $0x8] sm:$0xf]  ;;  %v1240_v45 = vld [vmem:[%s1613_s26 + $0x10] sm:$0xf0] }
  0x26   : > { %v1627_v47 = vor.u32 %v1238_v40, %v1023_v43  ;;  %v1629_v48 = vor.u32 %v1240_v45, %v1029_v44  ;;  %v1288_v49 = vld [vmem:[%s1754_s1 + $0x164] sm:$0xf]  ;;  %v1223_v50 = vld [vmem:[%s1754_s1 + $0x168] sm:$0xf0]  ;;  %v1270_v53 = vld [vmem:[%s1754_s1 + $0xd4] sm:$0xf] }
  0x27   : > { %688 = vmatpush.bf16.msra.mxu0 %v1054_v16  ;;  %v1226_v52 = vor.u32 %v1288_v49, %v1223_v50  ;;  %v1151_v54 = vld [vmem:[%s1754_s1 + $0xd8] sm:$0xf0]  ;;  %v1286_v55 = vld [vmem:[%s1754_s1 + $0x154] sm:$0xf]  ;;  %v1268_v59 = vld [vmem:[%s1754_s1 + $0xc4] sm:$0xf] }
  0x28   : > { %707 = vmatpush.bf16.msra.mxu1 %v1118_v20  ;;  %745 = vmatpush.bf16.msra.mxu3 %v1058_v24  ;;  %v1215_v56 = vld [vmem:[%s1754_s1 + $0x158] sm:$0xf0]  ;;  %v1154_v57 = vor.u32 %v1270_v53, %v1151_v54  ;;  %v1143_v60 = vld [vmem:[%s1754_s1 + $0xc8] sm:$0xf0]  ;;  %v1284_v61 = vld [vmem:[%s1754_s1 + $0x144] sm:$0xf] }
  0x29   : > { %726 = vmatpush.bf16.msra.mxu2 %v1182_v21  ;;  %v1218_v58 = vor.u32 %v1286_v55, %v1215_v56  ;;  %v1207_v62 = vld [vmem:[%s1754_s1 + $0x148] sm:$0xf0]  ;;  %v1146_v63 = vor.u32 %v1268_v59, %v1143_v60  ;;  %v1266_v0 = vld [vmem:[%s1754_s1 + $0xb4] sm:$0xf]  ;;  %v1033_v2 = vld [vmem:[%s1613_s26 + $0x18] sm:$0xf] }
  0x2a   : > { %v1210_v1 = vor.u32 %v1284_v61, %v1207_v62  ;;  %v1135_v3 = vld [vmem:[%s1754_s1 + $0xb8] sm:$0xf0]  ;;  %v1282_v4 = vld [vmem:[%s1754_s1 + $0x134] sm:$0xf]  ;;  %v1242_v5 = vld [vmem:[%s1613_s26 + $0x20] sm:$0xf0] }
  0x2b   : > { %689 = vmatpush.bf16.msra.mxu0 %v1046_v30  ;;  %v1241_v6 = vld [vmem:[%s1613_s26 + $0x1c] sm:$0xf]  ;;  %v1035_v8 = vld [vmem:[%s1613_s26 + $0x24] sm:$0xf0]  ;;  %v1041_v9 = vld [vmem:[%s1613_s26 + $0x20] sm:$0xf]  ;;  %v1138_v11 = vor.u32 %v1266_v0, %v1135_v3  ;;  %v1034_v12 = vor.u32 %v1242_v5, %v1033_v2 }
  0x2c   : > { %708 = vmatpush.bf16.msra.mxu1 %v1110_v33  ;;  %746 = vmatpush.bf16.msra.mxu3 %v1050_v37  ;;  %v1199_v7 = vld [vmem:[%s1754_s1 + $0x138] sm:$0xf0]  ;;  %v1243_v10 = vld [vmem:[%s1613_s26 + $0x28] sm:$0xf0]  ;;  %v1264_v14 = vld [vmem:[%s1754_s1 + $0xa4] sm:$0xf]  ;;  %v1038_v16 = vor.u32 %v1241_v6, %v1035_v8 }
  0x2d   : > { %727 = vmatpush.bf16.msra.mxu2 %v1174_v34  ;;  %v1202_v13 = vor.u32 %v1282_v4, %v1199_v7  ;;  %v1127_v15 = vld [vmem:[%s1754_s1 + $0xa8] sm:$0xf0]  ;;  %v1042_v17 = vor.u32 %v1243_v10, %v1041_v9  ;;  %v1280_v18 = vld [vmem:[%s1754_s1 + $0x124] sm:$0xf]  ;;  %v1262_v22 = vld [vmem:[%s1754_s1 + $0x94] sm:$0xf] }
  0x2e   : > { %690 = vmatmul.bf16.vlgmr.msra.gmra.mxu0 %v1022_v42  ;;  %v1191_v19 = vld [vmem:[%s1754_s1 + $0x128] sm:$0xf0]  ;;  %v1130_v20 = vor.u32 %v1264_v14, %v1127_v15  ;;  %v1119_v23 = vld [vmem:[%s1754_s1 + $0x98] sm:$0xf0]  ;;  %v1278_v24 = vld [vmem:[%s1754_s1 + $0x114] sm:$0xf] }
  0x2f   : > { %709 = vmatmul.bf16.vlgmr.msra.gmra.mxu1 %v1627_v47  ;;  %747 = vmatmul.bf16.vlgmr.msra.gmra.mxu3 %v1022_v42  ;;  %v1194_v21 = vor.u32 %v1280_v18, %v1191_v19  ;;  %v1183_v25 = vld [vmem:[%s1754_s1 + $0x118] sm:$0xf0]  ;;  %v1122_v26 = vor.u32 %v1262_v22, %v1119_v23  ;;  %v1260_v28 = vld [vmem:[%s1754_s1 + $0x84] sm:$0xf]  ;;  %v1111_v29 = vld [vmem:[%s1754_s1 + $0x88] sm:$0xf0] }
  0x30   : > { %777 = vmatpush.bf16.msrb.mxu1 %v1234_v46  ;;  %728 = vmatmul.bf16.vlgmr.msra.gmra.mxu2 %v1629_v48  ;;  %v1186_v27 = vor.u32 %v1278_v24, %v1183_v25  ;;  %v1276_v30 = vld [vmem:[%s1754_s1 + $0x104] sm:$0xf]  ;;  %v1175_v31 = vld [vmem:[%s1754_s1 + $0x108] sm:$0xf0]  ;;  %v1114_v32 = vor.u32 %v1260_v28, %v1111_v29  ;;  %s1237_s26 = sshll.u32 %s1763_s13, 3 }
  0x31   : > { %1292 = vmatpush.bf16.msrb.mxu2 %v1170_v41  ;;  %758 = vmatpush.bf16.msrb.mxu0 %v1170_v41  ;;  %v1178_v33 = vor.u32 %v1276_v30, %v1175_v31  ;;  %v837_v54 = vld [vmem:[%s1756_s3] sm:$0xff]  ;;  %v838_v5 = vld [vmem:[%s1756_s3 + $0x8] sm:$0xff]  ;;  %s1732_s27 = scalar_lea.vmem %s1757_s4, %s1237_s26 }
  0x32   : > { %1300 = vmatpush.bf16.msrb.mxu3 %v1234_v46  ;;  %v841_v60 = vunpack.c.l.bf16 %v837_v54  ;;  %v842_v62 = vunpack.c.h.bf16 %v837_v54  ;;  %v843_v15 = vunpack.c.l.bf16 %v838_v5  ;;  %v844_v18 = vunpack.c.h.bf16 %v838_v5 }
  0x34   : > { %778 = vmatpush.bf16.msrb.mxu1 %v1226_v52 }
  0x35   : > { %1293 = vmatpush.bf16.msrb.mxu2 %v1162_v51  ;;  %759 = vmatpush.bf16.msrb.mxu0 %v1162_v51 }
  0x36   : > { %1301 = vmatpush.bf16.msrb.mxu3 %v1226_v52 }
  0x38   : > { %779 = vmatpush.bf16.msrb.mxu1 %v1218_v58 }
  0x39   : > { %1294 = vmatpush.bf16.msrb.mxu2 %v1154_v57  ;;  %760 = vmatpush.bf16.msrb.mxu0 %v1154_v57 }
  0x3a   : > { %1302 = vmatpush.bf16.msrb.mxu3 %v1218_v58 }
  0x3c   : > { %780 = vmatpush.bf16.msrb.mxu1 %v1210_v1 }
  0x3d   : > { %1295 = vmatpush.bf16.msrb.mxu2 %v1146_v63  ;;  %761 = vmatpush.bf16.msrb.mxu0 %v1146_v63 }
  0x3e   : > { %1303 = vmatpush.bf16.msrb.mxu3 %v1210_v1  ;;  %695 = vmatmul.bf16.gmra.mxu0 %v1034_v12 }
  0x3f   : > { %714 = vmatmul.bf16.gmra.mxu1 %v1038_v16  ;;  %752 = vmatmul.bf16.gmra.mxu3 %v1034_v12 }
  0x40   : > { %781 = vmatpush.bf16.msrb.mxu1 %v1202_v13  ;;  %733 = vmatmul.bf16.gmra.mxu2 %v1042_v17 }
  0x41   : > { %1296 = vmatpush.bf16.msrb.mxu2 %v1138_v11  ;;  %762 = vmatpush.bf16.msrb.mxu0 %v1138_v11  ;;  %v839_v11 = vld [vmem:[%s1756_s3 + $0x10] sm:$0xff] }
  0x42   : > { %1304 = vmatpush.bf16.msrb.mxu3 %v1202_v13  ;;  %v845_v24 = vunpack.c.l.bf16 %v839_v11 }
  0x44   : > { %782 = vmatpush.bf16.msrb.mxu1 %v1194_v21 }
  0x45   : > { %1297 = vmatpush.bf16.msrb.mxu2 %v1130_v20  ;;  %763 = vmatpush.bf16.msrb.mxu0 %v1130_v20 }
  0x46   : > { %1305 = vmatpush.bf16.msrb.mxu3 %v1194_v21 }
  0x48   : > { %783 = vmatpush.bf16.msrb.mxu1 %v1186_v27 }
  0x49   : > { %1298 = vmatpush.bf16.msrb.mxu2 %v1122_v26  ;;  %764 = vmatpush.bf16.msrb.mxu0 %v1122_v26  ;;  %v840_v26 = vld [vmem:[%s1756_s3 + $0x18] sm:$0xff] }
  0x4a   : > { %1306 = vmatpush.bf16.msrb.mxu3 %v1186_v27 }
  0x4c   : > { %784 = vmatpush.bf16.msrb.mxu1 %v1178_v33 }
  0x4d   : > { %1299 = vmatpush.bf16.msrb.mxu2 %v1114_v32  ;;  %765 = vmatpush.bf16.msrb.mxu0 %v1114_v32 }
  0x4e   : > { %1307 = vmatpush.bf16.msrb.mxu3 %v1178_v33 }
  0x4f   : > { %785 = vmatmul.bf16.vlgmr.msrb.gmra.mxu1 %v1629_v48 }
  0x50   : > { %766 = vmatmul.bf16.vlgmr.msrb.gmra.mxu0 %v1627_v47  ;;  %771 = vmatmul.bf16.vlgmr.msrb.gmra.mxu2 %v1038_v16  ;;  %v823_v47 = vld [vmem:[%s1755_s2] sm:$0x3]  ;;  %v846_v16 = vunpack.c.h.bf16 %v839_v11 }
  0x51   : > { %790 = vmatmul.bf16.vlgmr.msrb.gmra.mxu3 %v1042_v17  ;;  %v825_v52 = vperm.slane %v823_v47, 0  ;;  %v826_v58 = vperm.slane %v823_v47, 1 }
  0xab   : > { %v691_v34 = vpop.f32.mrf.mxu0 }
  0xac   : > { %v710_v35 = vpop.f32.mrf.mxu1 }
  0xad   : > { %v711_v50 = vadd.f32 %v710_v35, %v691_v34  ;;  %v847_v34 = vunpack.c.l.bf16 %v840_v26 }
  0xb2   : > { %v748_v37 = vpop.f32.mrf.mxu3 }
  0xb3   : > { %v729_v36 = vpop.f32.mrf.mxu2  ;;  %v693_v38 = vpop.f32.mrf.mxu0 }
  0xb4   : > { %v712_v39 = vpop.f32.mrf.mxu1  ;;  %v730_v51 = vadd.f32 %v729_v36, %v711_v50 }
  0xb5   : > { %v713_v0 = vadd.f32 %v712_v39, %v693_v38  ;;  %v848_v39 = vunpack.c.h.bf16 %v840_v26 }
  0xb6   : > { %v829_v59 = vadd.f32 %v825_v52, %v730_v51 }
  0xb8   : > { %v849_v3 = vadd.f32 %v841_v60, %v829_v59 }
  0xba   : > { %v750_v41 = vpop.f32.mrf.mxu3 }
  0xbb   : > { %v731_v40 = vpop.f32.mrf.mxu2  ;;  %v696_v42 = vpop.f32.mrf.mxu0 }
  0xbc   : > { %v715_v43 = vpop.f32.mrf.mxu1  ;;  %v732_v4 = vadd.f32 %v731_v40, %v713_v0 }
  0xbd   : > { %v716_v63 = vadd.f32 %v715_v43, %v696_v42 }
  0xbe   : > { %v831_v19 = vadd.f32 %v825_v52, %v732_v4 }
  0xc0   : > { %v851_v30 = vadd.f32 %v843_v15, %v831_v19 }
  0xc2   : > { %v753_v45 = vpop.f32.mrf.mxu3 }
  0xc3   : > { %v734_v44 = vpop.f32.mrf.mxu2  ;;  %v698_v46 = vpop.f32.mrf.mxu0 }
  0xc4   : > { %v717_v49 = vpop.f32.mrf.mxu1  ;;  %v735_v9 = vadd.f32 %v734_v44, %v716_v63 }
  0xc5   : > { %v718_v20 = vadd.f32 %v717_v49, %v698_v46 }
  0xc6   : > { %v833_v23 = vadd.f32 %v825_v52, %v735_v9 }
  0xc8   : > { %v853_v33 = vadd.f32 %v845_v24, %v833_v23 }
  0xca   : > { %v755_v53 = vpop.f32.mrf.mxu3 }
  0xcb   : > { %v736_v48 = vpop.f32.mrf.mxu2 }
  0xcc   : > { %v786_v57 = vpop.f32.mrf.mxu1  ;;  %v737_v25 = vadd.f32 %v736_v48, %v718_v20 }
  0xcd   : > { %v767_v55 = vpop.f32.mrf.mxu0 }
  0xce   : > { %v768_v56 = vadd.f32 %v767_v55, %v748_v37  ;;  %v835_v36 = vadd.f32 %v825_v52, %v737_v25 }
  0xd0   : > { %v787_v61 = vadd.f32 %v786_v57, %v768_v56  ;;  %v855_v42 = vadd.f32 %v847_v34, %v835_v36 }
  0xd2   : > { %v830_v1 = vadd.f32 %v826_v58, %v787_v61 }
  0xd3   : > { %v772_v2 = vpop.f32.mrf.mxu2 }
  0xd4   : > { %v850_v6 = vadd.f32 %v842_v62, %v830_v1  ;;  %v773_v7 = vadd.f32 %v772_v2, %v753_v45  ;;  %v791_v8 = vpop.f32.mrf.mxu3  ;;  %v788_v17 = vpop.f32.mrf.mxu1 }
  0xd5   : > { %v769_v10 = vpop.f32.mrf.mxu0 }
  0xd6   : > { %v857_v12 = vpack.c.bf16 %v850_v6, %v849_v3  ;;  %v792_v13 = vadd.f32 %v791_v8, %v773_v7  ;;  %v770_v14 = vadd.f32 %v769_v10, %v750_v41 }
  0xd8   : > { %861 = vst [vmem:[%s1732_s27] sm:$0xff] %v857_v12  ;;  %v834_v21 = vadd.f32 %v826_v58, %v792_v13  ;;  %v789_v22 = vadd.f32 %v788_v17, %v770_v14 }
  0xda   : > { %v832_v27 = vadd.f32 %v826_v58, %v789_v22  ;;  %v854_v28 = vadd.f32 %v846_v16, %v834_v21 }
  0xdb   : > { %v774_v29 = vpop.f32.mrf.mxu2 }
  0xdc   : > { %v852_v31 = vadd.f32 %v844_v18, %v832_v27  ;;  %v775_v32 = vadd.f32 %v774_v29, %v755_v53  ;;  %v793_v35 = vpop.f32.mrf.mxu3  ;;  %v859_v40 = vpack.c.bf16 %v854_v28, %v853_v33 }
  0xde   : > { %v858_v37 = vpack.c.bf16 %v852_v31, %v851_v30  ;;  %v794_v38 = vadd.f32 %v793_v35, %v775_v32  ;;  %863 = vst [vmem:[%s1732_s27 + $0x10] sm:$0xff] %v859_v40 }
  0xe0   : > { %862 = vst [vmem:[%s1732_s27 + $0x8] sm:$0xff] %v858_v37  ;;  %v836_v41 = vadd.f32 %v826_v58, %v794_v38 }
  0xe2   : > { %v856_v43 = vadd.f32 %v848_v39, %v836_v41 }
  0xe4   : > { %v860_v44 = vpack.c.bf16 %v856_v43, %v855_v42 }
  0xe6   : > { %864 = vst [vmem:[%s1732_s27 + $0x18] sm:$0xff] %v860_v44 }
  0xe7 PF: > { %s14_s17 = sadd.s32 1, %s1355_s17   ;;  %s1758_s15 = smov %s1351_s16 }
  0xe8   : > { %p11_p5 = scmp.ge.s32.totalorder %s14_s17, 4   ;;  %s1759_s16 = smov %s1761_s18 }
  0xea   :  { %13 = sbr.rel (!%p11_p5) target bundleno = 2 (0x2), region = 83 }

// kernel: _lambda_.8
= control target key start
LH: loop header
LB: loop body
LE: loop exit
PB: predicated region body
PF: predicated region fallthrough
CT: control target
= control target key end

     0   :  { %s2005_s18 = smov 0   ;;  %s2007_s19 = smov 0   ;;  %s2688_s0 = inlined_call_operand.vmem [shape: bf16[64,256], index: 0, kind: input, shape index: {}]   ;;  %s2689_s1 = inlined_call_operand.vmem [shape: f32[1,256], index: 1, kind: input, shape index: {}]   ;;  %s2690_s2 = inlined_call_operand.vmem [shape: f32[1,256], index: 2, kind: input, shape index: {}]   ;;  %s2691_s3 = inlined_call_operand.vmem [shape: bf16[256,768], index: 3, kind: input, shape index: {}]   ;;  %s2692_s4 = inlined_call_operand.vmem [shape: f32[1,768], index: 4, kind: input, shape index: {}]   ;;  %s2693_s5 = inlined_call_operand.vmem [shape: bf16[64,768], index: 5, kind: output, shape index: {}]  }
   0x1   :  { %s2009_s20 = smov 0   ;;  %s2011_s21 = smov 0  }
   0x2   :  { %s2013_s22 = smov 0  }
   0x3 LB: > { %s24_s23 = sadd.s32 1, %s1968_s21  ;;  %s1483_s24 = sadd.s32 4294967295, %s1972_s22   ;;  %s1972_s22 = sphi %s2013_s22, %s15_s22   ;;  %s1968_s21 = sphi %s2011_s21, %s2698_s21   ;;  %s1964_s20 = sphi %s2009_s20, %s2697_s20   ;;  %s1960_s19 = sphi %s2007_s19, %s2696_s19   ;;  %s1956_s18 = sphi %s2005_s18, %s2695_s18  }
   0x4   : > { %p25_p0 = scmp.ge.s32.totalorder %s24_s23, 2  ;;  %p109_p1 = scmp.ne.s32.totalorder %s1960_s19, %s1956_s18 }
   0x5   : > { %p110_p2 = scmp.eq.s32.totalorder %s1972_s22, 0  ;;  %p167_p4 = scmp.eq.s32.totalorder %s1483_s24, 1 }
   0x6   : > { %s2700_s23 = smov (%p25_p0, %s24_s23), 0  ;;  %s102_s26 = sadd.s32 1, %s1960_s19 }
   0x7   : > { %p111_p3 = por %p110_p2, %p109_p1  ;;  %s99_s25 = ssub.s32 %s1968_s21, %s2700_s23 }
   0x8   : > { %p100_p5 = scmp.eq.s32.totalorder %s99_s25, 0  ;;  %p2040_p6 = por %p167_p4, %p109_p1 }
   0x9   : > { %p1487_p7 = scmp.ge.s32.totalorder %s1972_s22, 2 }
   0xa   : > { %s2045_s28 = scalar_select %p100_p5, %s1960_s19, %s102_s26  }
   0xb   : > { %205 = sbr.rel (%p1487_p7) target bundleno = 85 (0x55), region = 28 }
  0x10   : > { %208 = sbr.rel (!%p111_p3) target bundleno = 85 (0x55), region = 32  ;;  %s210_s29 = sand.u32 (%p111_p3), 1, %s1960_s19  }
  0x11   : > { %s1798_s30 = smul.u32 (%p111_p3), 12, %s1968_s21 }
  0x12   : > { %s1872_s6 = smul.u32 (%p111_p3), 384, %s210_s29 }
  0x13   : > { %s2053_s9 = scalar_lea.vmem (%p111_p3), %s2691_s3, %s1798_s30 }
  0x14   : > { %v230_v0 = vld [vmem:[%s2053_s9] sm:$0xff] (%p111_p3)  ;;  %v232_v1 = vld [vmem:[%s2053_s9 + $0x18] sm:$0xff] (%p111_p3)  ;;  %v234_v2 = vld [vmem:[%s2053_s9 + $0x30] sm:$0xff] (%p111_p3)  ;;  %s2058_s10 = scalar_lea.vmem (%p111_p3), [#allocation3], %s1872_s6 }
  0x15   : > { %231 = vst [vmem:[%s2058_s10] sm:$0xff] %v230_v0  ;;  %v236_v3 = vld [vmem:[%s2053_s9 + $0x48] sm:$0xff]  ;;  %v238_v4 = vld [vmem:[%s2053_s9 + $0x60] sm:$0xff]  ;;  %v240_v5 = vld [vmem:[%s2053_s9 + $0x78] sm:$0xff] }
  0x16   : > { %233 = vst [vmem:[%s2058_s10 + $0xc] sm:$0xff] %v232_v1  ;;  %v242_v6 = vld [vmem:[%s2053_s9 + $0x90] sm:$0xff]  ;;  %v244_v7 = vld [vmem:[%s2053_s9 + $0xa8] sm:$0xff]  ;;  %v246_v8 = vld [vmem:[%s2053_s9 + $0xc0] sm:$0xff] }
  0x17   : > { %235 = vst [vmem:[%s2058_s10 + $0x18] sm:$0xff] %v234_v2  ;;  %v248_v9 = vld [vmem:[%s2053_s9 + $0xd8] sm:$0xff]  ;;  %v250_v10 = vld [vmem:[%s2053_s9 + $0xf0] sm:$0xff]  ;;  %v252_v11 = vld [vmem:[%s2053_s9 + $0x108] sm:$0xff] }
  0x18   : > { %237 = vst [vmem:[%s2058_s10 + $0x24] sm:$0xff] %v236_v3  ;;  %v254_v12 = vld [vmem:[%s2053_s9 + $0x120] sm:$0xff]  ;;  %v256_v13 = vld [vmem:[%s2053_s9 + $0x138] sm:$0xff]  ;;  %v258_v14 = vld [vmem:[%s2053_s9 + $0x150] sm:$0xff] }
  0x19   : > { %239 = vst [vmem:[%s2058_s10 + $0x30] sm:$0xff] %v238_v4  ;;  %v260_v15 = vld [vmem:[%s2053_s9 + $0x168] sm:$0xff]  ;;  %v262_v16 = vld [vmem:[%s2053_s9 + $0x180] sm:$0xff]  ;;  %v264_v17 = vld [vmem:[%s2053_s9 + $0x198] sm:$0xff] }
  0x1a   : > { %241 = vst [vmem:[%s2058_s10 + $0x3c] sm:$0xff] %v240_v5  ;;  %v266_v18 = vld [vmem:[%s2053_s9 + $0x1b0] sm:$0xff]  ;;  %v268_v19 = vld [vmem:[%s2053_s9 + $0x1c8] sm:$0xff]  ;;  %v270_v20 = vld [vmem:[%s2053_s9 + $0x1e0] sm:$0xff] }
  0x1b   : > { %243 = vst [vmem:[%s2058_s10 + $0x48] sm:$0xff] %v242_v6  ;;  %v272_v21 = vld [vmem:[%s2053_s9 + $0x1f8] sm:$0xff]  ;;  %v274_v22 = vld [vmem:[%s2053_s9 + $0x210] sm:$0xff]  ;;  %v276_v23 = vld [vmem:[%s2053_s9 + $0x228] sm:$0xff] }
  0x1c   : > { %245 = vst [vmem:[%s2058_s10 + $0x54] sm:$0xff] %v244_v7  ;;  %v278_v24 = vld [vmem:[%s2053_s9 + $0x240] sm:$0xff]  ;;  %v280_v25 = vld [vmem:[%s2053_s9 + $0x258] sm:$0xff]  ;;  %v282_v26 = vld [vmem:[%s2053_s9 + $0x270] sm:$0xff] }
  0x1d   : > { %247 = vst [vmem:[%s2058_s10 + $0x60] sm:$0xff] %v246_v8  ;;  %v284_v27 = vld [vmem:[%s2053_s9 + $0x288] sm:$0xff]  ;;  %v286_v28 = vld [vmem:[%s2053_s9 + $0x2a0] sm:$0xff]  ;;  %v288_v29 = vld [vmem:[%s2053_s9 + $0x2b8] sm:$0xff] }
  0x1e   : > { %249 = vst [vmem:[%s2058_s10 + $0x6c] sm:$0xff] %v248_v9  ;;  %v290_v30 = vld [vmem:[%s2053_s9 + $0x2d0] sm:$0xff]  ;;  %v292_v31 = vld [vmem:[%s2053_s9 + $0x2e8] sm:$0xff]  ;;  %v1491_v33 = vld [vmem:[%s2053_s9 + $0x20] sm:$0xf] }
  0x1f   : > { %251 = vst [vmem:[%s2058_s10 + $0x78] sm:$0xff] %v250_v10  ;;  %v1489_v32 = vld [vmem:[%s2053_s9 + $0x8] sm:$0xf]  ;;  %v1493_v34 = vld [vmem:[%s2053_s9 + $0x38] sm:$0xf] }
  0x20   : > { %253 = vst [vmem:[%s2058_s10 + $0x84] sm:$0xff] %v252_v11  ;;  %v1495_v35 = vld [vmem:[%s2053_s9 + $0x50] sm:$0xf]  ;;  %v1497_v36 = vld [vmem:[%s2053_s9 + $0x68] sm:$0xf] }
  0x21   : > { %255 = vst [vmem:[%s2058_s10 + $0x90] sm:$0xff] %v254_v12  ;;  %v1499_v37 = vld [vmem:[%s2053_s9 + $0x80] sm:$0xf]  ;;  %v1501_v38 = vld [vmem:[%s2053_s9 + $0x98] sm:$0xf] }
  0x22   : > { %257 = vst [vmem:[%s2058_s10 + $0x9c] sm:$0xff] %v256_v13  ;;  %v1503_v39 = vld [vmem:[%s2053_s9 + $0xb0] sm:$0xf]  ;;  %v1505_v40 = vld [vmem:[%s2053_s9 + $0xc8] sm:$0xf] }
  0x23   : > { %259 = vst [vmem:[%s2058_s10 + $0xa8] sm:$0xff] %v258_v14  ;;  %v1507_v41 = vld [vmem:[%s2053_s9 + $0xe0] sm:$0xf]  ;;  %v1509_v42 = vld [vmem:[%s2053_s9 + $0xf8] sm:$0xf] }
  0x24   : > { %261 = vst [vmem:[%s2058_s10 + $0xb4] sm:$0xff] %v260_v15  ;;  %v1511_v43 = vld [vmem:[%s2053_s9 + $0x110] sm:$0xf]  ;;  %v1513_v44 = vld [vmem:[%s2053_s9 + $0x128] sm:$0xf] }
  0x25   : > { %263 = vst [vmem:[%s2058_s10 + $0xc0] sm:$0xff] %v262_v16  ;;  %v1515_v45 = vld [vmem:[%s2053_s9 + $0x140] sm:$0xf]  ;;  %v1517_v46 = vld [vmem:[%s2053_s9 + $0x158] sm:$0xf] }
  0x26   : > { %265 = vst [vmem:[%s2058_s10 + $0xcc] sm:$0xff] %v264_v17  ;;  %v1519_v47 = vld [vmem:[%s2053_s9 + $0x170] sm:$0xf]  ;;  %v1521_v48 = vld [vmem:[%s2053_s9 + $0x188] sm:$0xf] }
  0x27   : > { %267 = vst [vmem:[%s2058_s10 + $0xd8] sm:$0xff] %v266_v18  ;;  %v1523_v49 = vld [vmem:[%s2053_s9 + $0x1a0] sm:$0xf]  ;;  %v1525_v50 = vld [vmem:[%s2053_s9 + $0x1b8] sm:$0xf] }
  0x28   : > { %269 = vst [vmem:[%s2058_s10 + $0xe4] sm:$0xff] %v268_v19  ;;  %v1527_v51 = vld [vmem:[%s2053_s9 + $0x1d0] sm:$0xf]  ;;  %v1529_v52 = vld [vmem:[%s2053_s9 + $0x1e8] sm:$0xf] }
  0x29   : > { %271 = vst [vmem:[%s2058_s10 + $0xf0] sm:$0xff] %v270_v20  ;;  %v1531_v53 = vld [vmem:[%s2053_s9 + $0x200] sm:$0xf]  ;;  %v1533_v54 = vld [vmem:[%s2053_s9 + $0x218] sm:$0xf] }
  0x2a   : > { %273 = vst [vmem:[%s2058_s10 + $0xfc] sm:$0xff] %v272_v21  ;;  %v1535_v55 = vld [vmem:[%s2053_s9 + $0x230] sm:$0xf]  ;;  %v1537_v56 = vld [vmem:[%s2053_s9 + $0x248] sm:$0xf] }
  0x2b   : > { %275 = vst [vmem:[%s2058_s10 + $0x108] sm:$0xff] %v274_v22  ;;  %v1539_v57 = vld [vmem:[%s2053_s9 + $0x260] sm:$0xf]  ;;  %v1541_v58 = vld [vmem:[%s2053_s9 + $0x278] sm:$0xf] }
  0x2c   : > { %277 = vst [vmem:[%s2058_s10 + $0x114] sm:$0xff] %v276_v23  ;;  %v1543_v59 = vld [vmem:[%s2053_s9 + $0x290] sm:$0xf]  ;;  %v1545_v60 = vld [vmem:[%s2053_s9 + $0x2a8] sm:$0xf] }
  0x2d   : > { %279 = vst [vmem:[%s2058_s10 + $0x120] sm:$0xff] %v278_v24  ;;  %v1547_v61 = vld [vmem:[%s2053_s9 + $0x2c0] sm:$0xf]  ;;  %v1549_v62 = vld [vmem:[%s2053_s9 + $0x2d8] sm:$0xf] }
  0x2e   : > { %281 = vst [vmem:[%s2058_s10 + $0x12c] sm:$0xff] %v280_v25  ;;  %v1551_v63 = vld [vmem:[%s2053_s9 + $0x2f0] sm:$0xf] }
  0x2f   : > { %283 = vst [vmem:[%s2058_s10 + $0x138] sm:$0xff] %v282_v26 }
  0x30   : > { %285 = vst [vmem:[%s2058_s10 + $0x144] sm:$0xff] %v284_v27 }
  0x31   : > { %287 = vst [vmem:[%s2058_s10 + $0x150] sm:$0xff] %v286_v28 }
  0x32   : > { %289 = vst [vmem:[%s2058_s10 + $0x15c] sm:$0xff] %v288_v29 }
  0x33   : > { %291 = vst [vmem:[%s2058_s10 + $0x168] sm:$0xff] %v290_v30 }
  0x34   : > { %293 = vst [vmem:[%s2058_s10 + $0x174] sm:$0xff] %v292_v31 }
  0x35   : > { %1490 = vst [vmem:[%s2058_s10 + $0x8] sm:$0xf] %v1489_v32 }
  0x36   : > { %1492 = vst [vmem:[%s2058_s10 + $0x14] sm:$0xf] %v1491_v33 }
  0x37   : > { %1494 = vst [vmem:[%s2058_s10 + $0x20] sm:$0xf] %v1493_v34 }
  0x38   : > { %1496 = vst [vmem:[%s2058_s10 + $0x2c] sm:$0xf] %v1495_v35 }
  0x39   : > { %1498 = vst [vmem:[%s2058_s10 + $0x38] sm:$0xf] %v1497_v36 }
  0x3a   : > { %1500 = vst [vmem:[%s2058_s10 + $0x44] sm:$0xf] %v1499_v37 }
  0x3b   : > { %1502 = vst [vmem:[%s2058_s10 + $0x50] sm:$0xf] %v1501_v38 }
  0x3c   : > { %1504 = vst [vmem:[%s2058_s10 + $0x5c] sm:$0xf] %v1503_v39 }
  0x3d   : > { %1506 = vst [vmem:[%s2058_s10 + $0x68] sm:$0xf] %v1505_v40 }
  0x3e   : > { %1508 = vst [vmem:[%s2058_s10 + $0x74] sm:$0xf] %v1507_v41 }
  0x3f   : > { %1510 = vst [vmem:[%s2058_s10 + $0x80] sm:$0xf] %v1509_v42 }
  0x40   : > { %1512 = vst [vmem:[%s2058_s10 + $0x8c] sm:$0xf] %v1511_v43 }
  0x41   : > { %1514 = vst [vmem:[%s2058_s10 + $0x98] sm:$0xf] %v1513_v44 }
  0x42   : > { %1516 = vst [vmem:[%s2058_s10 + $0xa4] sm:$0xf] %v1515_v45 }
  0x43   : > { %1518 = vst [vmem:[%s2058_s10 + $0xb0] sm:$0xf] %v1517_v46 }
  0x44   : > { %1520 = vst [vmem:[%s2058_s10 + $0xbc] sm:$0xf] %v1519_v47 }
  0x45   : > { %1522 = vst [vmem:[%s2058_s10 + $0xc8] sm:$0xf] %v1521_v48 }
  0x46   : > { %1524 = vst [vmem:[%s2058_s10 + $0xd4] sm:$0xf] %v1523_v49 }
  0x47   : > { %1526 = vst [vmem:[%s2058_s10 + $0xe0] sm:$0xf] %v1525_v50 }
  0x48   : > { %1528 = vst [vmem:[%s2058_s10 + $0xec] sm:$0xf] %v1527_v51 }
  0x49   : > { %1530 = vst [vmem:[%s2058_s10 + $0xf8] sm:$0xf] %v1529_v52 }
  0x4a   : > { %1532 = vst [vmem:[%s2058_s10 + $0x104] sm:$0xf] %v1531_v53 }
  0x4b   : > { %1534 = vst [vmem:[%s2058_s10 + $0x110] sm:$0xf] %v1533_v54 }
  0x4c   : > { %1536 = vst [vmem:[%s2058_s10 + $0x11c] sm:$0xf] %v1535_v55 }
  0x4d   : > { %1538 = vst [vmem:[%s2058_s10 + $0x128] sm:$0xf] %v1537_v56 }
  0x4e   : > { %1540 = vst [vmem:[%s2058_s10 + $0x134] sm:$0xf] %v1539_v57 }
  0x4f   : > { %1542 = vst [vmem:[%s2058_s10 + $0x140] sm:$0xf] %v1541_v58 }
  0x50   : > { %1544 = vst [vmem:[%s2058_s10 + $0x14c] sm:$0xf] %v1543_v59 }
  0x51   : > { %1546 = vst [vmem:[%s2058_s10 + $0x158] sm:$0xf] %v1545_v60 }
  0x52   : > { %1548 = vst [vmem:[%s2058_s10 + $0x164] sm:$0xf] %v1547_v61 }
  0x53   : > { %1550 = vst [vmem:[%s2058_s10 + $0x170] sm:$0xf] %v1549_v62 }
  0x54   : > { %1552 = vst [vmem:[%s2058_s10 + $0x17c] sm:$0xf] %v1551_v63 }
  0x55 PF: > { %p1553_p8 = scmp.ge.s32.totalorder %s1972_s22, 1  ;;  %p378_p9 = scmp.lt.s32.totalorder %s1972_s22, 3 }
  0x57   : > { %p379_p10 = pnand %p1553_p8, %p378_p9 }
  0x58   : > { %s385_s11 = sand.u32 (!%p379_p10), 1, %s1956_s18   ;;  %s429_s12 = smul.u32 (!%p379_p10), 3, %s1964_s20 }
  0x59   : > { %382 = sbr.rel (%p379_p10) target bundleno = 679 (0x2a7), region = 62  ;;  %p1554_p12 = scmp.ne.s32.totalorder (!%p379_p10), %s1964_s20, 0 }
  0x5a   : > { %s1873_s13 = smul.u32 (!%p379_p10), 384, %s385_s11  ;;  %p430_p11 = scmp.lt.s32.totalorder (!%p379_p10), %s429_s12, 5 }
  0x5b   : > { %s1874_s14 = smul.u32 (!%p379_p10), 96, %s385_s11 }
  0x5c   : > { %s2195_s24 = scalar_lea.vmem (!%p379_p10), [#allocation3], %s1873_s13 }
  0x5d   : > { %s2197_s25 = scalar_lea.vmem (!%p379_p10), [#allocation4], %s1874_s14 }
  0x5e   : > { %s2702_s12 = smov (!%p430_p11, %s429_s12), 5  ;;  %439 = sbr.rel (%p1554_p12) target bundleno = 409 (0x199), region = 70 }
  0x5f   : > { %s432_s17 = scalar_lea.vmem %s2692_s4, %s2702_s12 }
  0x63   : > { %v2203_v0 = vld [vmem:[%s2688_s0 + $0x20] sm:$0xff]  ;;  %v442_v1 = vld [vmem:[%s2688_s0 + $0x10] sm:$0xff]  ;;  %v2216_v9 = vld [vmem:[%s2688_s0 + $0x28] sm:$0xff]  ;;  %v1974_v32 = vmov 256.0  }
  0x64   : > { %v440_v2 = vld [vmem:[%s2688_s0] sm:$0xff]  ;;  %v456_v3 = vunpack.c.l.bf16 %v2203_v0  ;;  %v457_v4 = vunpack.c.h.bf16 %v2203_v0  ;;  %v452_v5 = vunpack.c.l.bf16 %v442_v1  ;;  %v453_v6 = vunpack.c.h.bf16 %v442_v1  ;;  %v2221_v10 = vld [vmem:[%s2688_s0 + $0x18] sm:$0xff]  ;;  %v2230_v13 = vld [vmem:[%s2688_s0 + $0x8] sm:$0xff] }
  0x65   : > { %v448_v7 = vunpack.c.l.bf16 %v440_v2  ;;  %v449_v8 = vunpack.c.h.bf16 %v440_v2  ;;  %v458_v15 = vunpack.c.l.bf16 %v2216_v9  ;;  %v459_v16 = vunpack.c.h.bf16 %v2216_v9  ;;  %v2241_v24 = vld [vmem:[%s2688_s0 + $0x38] sm:$0xff]  ;;  %v2246_v25 = vld [vmem:[%s2688_s0 + $0x30] sm:$0xff] }
  0x66   : > { %v476_v11 = vadd.f32 %v457_v4, %v456_v3  ;;  %v470_v12 = vadd.f32 %v453_v6, %v452_v5  ;;  %v454_v17 = vunpack.c.l.bf16 %v2221_v10  ;;  %v455_v18 = vunpack.c.h.bf16 %v2221_v10 }
  0x67   : > { %v464_v14 = vadd.f32 %v449_v8, %v448_v7  ;;  %v450_v19 = vunpack.c.l.bf16 %v2230_v13  ;;  %v451_v20 = vunpack.c.h.bf16 %v2230_v13  ;;  %v479_v21 = vadd.f32 %v459_v16, %v458_v15 }
  0x68   : > { %477 = vadd.xlane.f32.xlu2 %v476_v11  ;;  %471 = vadd.xlane.f32.xlu1 %v470_v12  ;;  %v473_v22 = vadd.f32 %v455_v18, %v454_v17  ;;  %v462_v26 = vunpack.c.l.bf16 %v2241_v24  ;;  %v463_v27 = vunpack.c.h.bf16 %v2241_v24  ;;  %v460_v28 = vunpack.c.l.bf16 %v2246_v25 }
  0x69   : > { %465 = vadd.xlane.f32.xlu0 %v464_v14  ;;  %v467_v23 = vadd.f32 %v451_v20, %v450_v19  ;;  %v461_v29 = vunpack.c.h.bf16 %v2246_v25  ;;  %1916 = vrcp.f32 %v1974_v32 }
  0x6a   : > { %v485_v30 = vadd.f32 %v463_v27, %v462_v26 }
  0x6b   : > { %v482_v31 = vadd.f32 %v461_v29, %v460_v28 }
  0x6f   : > { %v1917_v33 = vpop.eup %1916 }
  0x70   : > { %480 = vadd.xlane.f32.xlu2 %v479_v21  ;;  %474 = vadd.xlane.f32.xlu1 %v473_v22  ;;  %v489_v34 = vmul.f32 256.0, %v1917_v33  ;;  %vm493_vm0 = vweird.f32 %v1917_v33 }
  0x71   : > { %468 = vadd.xlane.f32.xlu0 %v467_v23 }
  0x72   : > { %v490_v35 = vsub.f32 1.0, %v489_v34 }
  0x74   : > { %v491_v36 = vmul.f32 %v1917_v33, %v490_v35 }
  0x76   : > { %v492_v37 = vadd.f32 %v1917_v33, %v491_v36 }
  0x78   : > { %486 = vadd.xlane.f32.xlu1 %v485_v30  ;;  %v2260_v38 = vsel %vm493_vm0, %v1917_v33, %v492_v37 }
  0x79   : > { %483 = vadd.xlane.f32.xlu0 %v482_v31 }
  0xdb   : > { %v478_v39 = vpop.xlane.xlu2 %477  ;;  %v472_v40 = vpop.xlane.xlu1 %471 }
  0xdc   : > { %v497_v41 = vmul.f32 %v2260_v38, %v472_v40  ;;  %v466_v42 = vpop.xlane.xlu0 %465  ;;  %v499_v53 = vmul.f32 %v2260_v38, %v478_v39 }
  0xdd   : > { %v495_v43 = vmul.f32 %v2260_v38, %v466_v42 }
  0xde   : > { %v2264_v44 = vsub.f32 %v452_v5, %v497_v41  ;;  %v2266_v45 = vsub.f32 %v453_v6, %v497_v41  ;;  %v2294_v2 = vsub.f32 %v456_v3, %v499_v53  ;;  %v2298_v5 = vsub.f32 %v457_v4, %v499_v53 }
  0xdf   : > { %v2268_v46 = vsub.f32 %v448_v7, %v495_v43  ;;  %v2270_v47 = vsub.f32 %v449_v8, %v495_v43 }
  0xe0   : > { %v523_v48 = vmul.f32 %v2264_v44, %v2264_v44  ;;  %v524_v49 = vmul.f32 %v2266_v45, %v2266_v45 }
  0xe1   : > { %v519_v50 = vmul.f32 %v2268_v46, %v2268_v46  ;;  %v520_v51 = vmul.f32 %v2270_v47, %v2270_v47 }
  0xe2   : > { %v541_v52 = vadd.f32 %v524_v49, %v523_v48 }
  0xe3   : > { %v481_v54 = vpop.xlane.xlu2 %480  ;;  %v475_v55 = vpop.xlane.xlu1 %474  ;;  %v535_v56 = vadd.f32 %v520_v51, %v519_v50 }
  0xe4   : > { %v500_v57 = vmul.f32 %v2260_v38, %v481_v54  ;;  %v498_v58 = vmul.f32 %v2260_v38, %v475_v55  ;;  %v469_v59 = vpop.xlane.xlu0 %468  ;;  %542 = vadd.xlane.f32.xlu1 %v541_v52  ;;  %v671_v54 = vld [vmem:[%s2689_s1] sm:$0x3] }
  0xe5   : > { %v496_v60 = vmul.f32 %v2260_v38, %v469_v59  ;;  %536 = vadd.xlane.f32.xlu2 %v535_v56  ;;  %v693_v56 = vld [vmem:[%s2690_s2] sm:$0x3]  ;;  %v2366_v59 = vperm.slane %v671_v54, 0 }
  0xe6   : > { %v2284_v61 = vsub.f32 %v458_v15, %v500_v57  ;;  %v2286_v62 = vsub.f32 %v459_v16, %v500_v57  ;;  %v2288_v63 = vsub.f32 %v454_v17, %v498_v58  ;;  %v2290_v1 = vsub.f32 %v455_v18, %v498_v58 }
  0xe7   : > { %v2300_v6 = vsub.f32 %v450_v19, %v496_v60  ;;  %v2302_v7 = vsub.f32 %v451_v20, %v496_v60  ;;  %v527_v16 = vmul.f32 %v2294_v2, %v2294_v2  ;;  %v528_v17 = vmul.f32 %v2298_v5, %v2298_v5 }
  0xe8   : > { %v529_v8 = vmul.f32 %v2284_v61, %v2284_v61  ;;  %v530_v9 = vmul.f32 %v2286_v62, %v2286_v62  ;;  %v525_v10 = vmul.f32 %v2288_v63, %v2288_v63  ;;  %v526_v3 = vmul.f32 %v2290_v1, %v2290_v1 }
  0xe9   : > { %v521_v0 = vmul.f32 %v2300_v6, %v2300_v6  ;;  %v522_v4 = vmul.f32 %v2302_v7, %v2302_v7  ;;  %v547_v22 = vadd.f32 %v528_v17, %v527_v16  ;;  %v2368_v60 = vperm.slane %v671_v54, 1 }
  0xea   : > { %v550_v11 = vadd.f32 %v530_v9, %v529_v8  ;;  %v544_v12 = vadd.f32 %v526_v3, %v525_v10  ;;  %v2370_v9 = vperm.slane %v693_v56, 0  ;;  %v2372_v10 = vperm.slane %v693_v56, 1 }
  0xeb   : > { %v538_v13 = vadd.f32 %v522_v4, %v521_v0  ;;  %v487_v14 = vpop.xlane.xlu1 %486 }
  0xec   : > { %v484_v15 = vpop.xlane.xlu0 %483  ;;  %551 = vadd.xlane.f32.xlu1 %v550_v11  ;;  %v502_v19 = vmul.f32 %v2260_v38, %v487_v14 }
  0xed   : > { %v501_v18 = vmul.f32 %v2260_v38, %v484_v15  ;;  %545 = vadd.xlane.f32.xlu2 %v544_v12  ;;  %539 = vadd.xlane.f32.xlu0 %v538_v13 }
  0xee   : > { %v2332_v23 = vsub.f32 %v462_v26, %v502_v19  ;;  %v2336_v30 = vsub.f32 %v463_v27, %v502_v19 }
  0xef   : > { %v2324_v20 = vsub.f32 %v460_v28, %v501_v18  ;;  %v2328_v21 = vsub.f32 %v461_v29, %v501_v18 }
  0xf0   : > { %v533_v25 = vmul.f32 %v2332_v23, %v2332_v23  ;;  %v534_v26 = vmul.f32 %v2336_v30, %v2336_v30 }
  0xf1   : > { %v531_v31 = vmul.f32 %v2324_v20, %v2324_v20  ;;  %v532_v28 = vmul.f32 %v2328_v21, %v2328_v21 }
  0xf2   : > { %v556_v29 = vadd.f32 %v534_v26, %v533_v25 }
  0xf3   : > { %v553_v32 = vadd.f32 %v532_v28, %v531_v31 }
  0xf5   : > { %548 = vadd.xlane.f32.xlu0 %v547_v22  ;;  %554 = vadd.xlane.f32.xlu2 %v553_v32 }
  0xfd   : > { %557 = vadd.xlane.f32.xlu0 %v556_v29 }
 0x157   : > { %v543_v24 = vpop.xlane.xlu1 %542 }
 0x158   : > { %v561_v27 = vmul.f32 %v543_v24, %v2260_v38  ;;  %v537_v33 = vpop.xlane.xlu2 %536 }
 0x159   : > { %v559_v34 = vmul.f32 %v537_v33, %v2260_v38 }
 0x15a   : > { %v569_v35 = vadd.f32 1e-05, %v561_v27 }
 0x15b   : > { %v567_v36 = vadd.f32 1e-05, %v559_v34 }
 0x15c   : > { %1918 = vrsqrt.f32 %v569_v35  ;;  %vm601_vm1 = vweird.f32 %v569_v35 }
 0x15d   : > { %1920 = vrsqrt.f32 %v567_v36  ;;  %vm581_vm3 = vweird.f32 %v567_v36 }
 0x15f   : > { %v552_v37 = vpop.xlane.xlu1 %551 }
 0x160   : > { %v564_v39 = vmul.f32 %v552_v37, %v2260_v38  ;;  %v546_v40 = vpop.xlane.xlu2 %545  ;;  %v540_v41 = vpop.xlane.xlu0 %539 }
 0x161   : > { %v562_v42 = vmul.f32 %v546_v40, %v2260_v38  ;;  %v560_v43 = vmul.f32 %v540_v41, %v2260_v38 }
 0x162   : > { %v1919_v48 = vpop.eup %1918  ;;  %v2351_v49 = vadd.f32 1e-05, %v564_v39 }
 0x163   : > { %v1921_v50 = vpop.eup %1920  ;;  %v596_v51 = vmul.f32 %v1919_v48, %v569_v35  ;;  %v2353_v52 = vadd.f32 1e-05, %v562_v42  ;;  %v2355_v53 = vadd.f32 1e-05, %v560_v43  ;;  %vm602_vm2 = vweird.f32 %v1919_v48 }
 0x164   : > { %v576_v55 = vmul.f32 %v1921_v50, %v567_v36  ;;  %1922 = vrsqrt.f32 %v2351_v49  ;;  %vm582_vm4 = vweird.f32 %v1921_v50  ;;  %vm631_vm5 = vweird.f32 %v2351_v49  ;;  %vm603_vm8 = vmor %vm601_vm1, %vm602_vm2 }
 0x165   : > { %v597_v57 = vmul.f32 %v1919_v48, %v596_v51  ;;  %1924 = vrsqrt.f32 %v2353_v52  ;;  %vm611_vm7 = vweird.f32 %v2353_v52  ;;  %vm583_vm10 = vmor %vm581_vm3, %vm582_vm4  ;;  %vm591_vm14 = vweird.f32 %v2355_v53 }
 0x166   : > { %v577_v58 = vmul.f32 %v1921_v50, %v576_v55  ;;  %1926 = vrsqrt.f32 %v2355_v53 }
 0x167   : > { %v598_v8 = vmul.f32 0.5, %v597_v57 }
 0x168   : > { %v578_v3 = vmul.f32 0.5, %v577_v58  ;;  %v555_v0 = vpop.xlane.xlu2 %554  ;;  %v549_v4 = vpop.xlane.xlu0 %548 }
 0x169   : > { %v599_v11 = vsub.f32 1.5, %v598_v8  ;;  %v565_v12 = vmul.f32 %v555_v0, %v2260_v38  ;;  %v563_v13 = vmul.f32 %v549_v4, %v2260_v38 }
 0x16a   : > { %v1923_v14 = vpop.eup %1922  ;;  %v579_v15 = vsub.f32 1.5, %v578_v3 }
 0x16b   : > { %v1925_v16 = vpop.eup %1924  ;;  %v600_v17 = vmul.f32 %v1919_v48, %v599_v11  ;;  %v626_v18 = vmul.f32 %v1923_v14, %v2351_v49  ;;  %vm632_vm6 = vweird.f32 %v1923_v14  ;;  %v2381_v28 = vadd.f32 1e-05, %v565_v12 }
 0x16c   : > { %v1927_v19 = vpop.eup %1926  ;;  %v580_v22 = vmul.f32 %v1921_v50, %v579_v15  ;;  %v606_v31 = vmul.f32 %v1925_v16, %v2353_v52  ;;  %vm612_vm9 = vweird.f32 %v1925_v16  ;;  %v2385_v29 = vadd.f32 1e-05, %v563_v13  ;;  %vm633_vm11 = vmor %vm631_vm5, %vm632_vm6 }
 0x16d   : > { %v604_v32 = vsel %vm603_vm8, %v1919_v48, %v600_v17  ;;  %v627_v25 = vmul.f32 %v1923_v14, %v626_v18  ;;  %v586_v26 = vmul.f32 %v1927_v19, %v2355_v53  ;;  %1928 = vrsqrt.f32 %v2381_v28  ;;  %vm613_vm13 = vmor %vm611_vm7, %vm612_vm9 }
 0x16e   : > { %v659_v24 = vmul.f32 %v604_v32, %v2264_v44  ;;  %v660_v27 = vmul.f32 %v604_v32, %v2266_v45  ;;  %v584_v33 = vsel %vm583_vm10, %v1921_v50, %v580_v22  ;;  %v607_v34 = vmul.f32 %v1925_v16, %v606_v31 }
 0x16f   : > { %v655_v35 = vmul.f32 %v584_v33, %v2268_v46  ;;  %v656_v37 = vmul.f32 %v584_v33, %v2270_v47  ;;  %v628_v39 = vmul.f32 0.5, %v627_v25  ;;  %v587_v40 = vmul.f32 %v1927_v19, %v586_v26 }
 0x170   : > { %v681_v36 = vmul.f32 %v2366_v59, %v659_v24  ;;  %v682_v41 = vmul.f32 %v2368_v60, %v660_v27  ;;  %v608_v42 = vmul.f32 0.5, %v607_v34  ;;  %vm592_vm12 = vweird.f32 %v1927_v19  ;;  %v558_v13 = vpop.xlane.xlu0 %557 }
 0x171   : > { %v677_v43 = vmul.f32 %v2366_v59, %v655_v35  ;;  %v678_v44 = vmul.f32 %v2368_v60, %v656_v37  ;;  %v629_v45 = vsub.f32 1.5, %v628_v39  ;;  %v588_v48 = vmul.f32 0.5, %v587_v40  ;;  %vm593_vm15 = vmor %vm591_vm14, %vm592_vm12 }
 0x172   : > { %v703_v50 = vadd.f32 %v2370_v9, %v681_v36  ;;  %v704_v46 = vadd.f32 %v2372_v10, %v682_v41  ;;  %v609_v47 = vsub.f32 1.5, %v608_v42  ;;  %1930 = vrsqrt.f32 %v2385_v29 }
 0x173   : > { %v699_v51 = vadd.f32 %v2370_v9, %v677_v43  ;;  %v700_v54 = vadd.f32 %v2372_v10, %v678_v44  ;;  %v630_v55 = vmul.f32 %v1923_v14, %v629_v45  ;;  %v589_v56 = vsub.f32 1.5, %v588_v48  ;;  %v1929_v0 = vpop.eup %1928 }
 0x174   : > { %v717_v57 = vpack.c.bf16 %v704_v46, %v703_v50  ;;  %v610_v58 = vmul.f32 %v1925_v16, %v609_v47  ;;  %vm641_vm0 = vweird.f32 %v2381_v28  ;;  %v636_v53 = vmul.f32 %v1929_v0, %v2381_v28 }
 0x175   : > { %v715_v8 = vpack.c.bf16 %v700_v54, %v699_v51  ;;  %v634_v3 = vsel %vm633_vm11, %v1923_v14, %v630_v55  ;;  %v590_v49 = vmul.f32 %v1927_v19, %v589_v56  ;;  %vm642_vm1 = vweird.f32 %v1929_v0 }
 0x176   : > { %725 = vst [vmem:[#allocation2 + $0x10] sm:$0xff] %v717_v57  ;;  %v665_v4 = vmul.f32 %v634_v3, %v2284_v61  ;;  %v666_v11 = vmul.f32 %v634_v3, %v2286_v62  ;;  %v614_v12 = vsel %vm613_vm13, %v1925_v16, %v610_v58  ;;  %v637_v31 = vmul.f32 %v1929_v0, %v636_v53  ;;  %vm643_vm2 = vmor %vm641_vm0, %vm642_vm1 }
 0x177   : > { %723 = vst [vmem:[#allocation2] sm:$0xff] %v715_v8  ;;  %v661_v14 = vmul.f32 %v614_v12, %v2288_v63  ;;  %v662_v52 = vmul.f32 %v614_v12, %v2290_v1  ;;  %v594_v15 = vsel %vm593_vm15, %v1927_v19, %v590_v49  ;;  %v566_v63 = vmul.f32 %v558_v13, %v2260_v38 }
 0x178   : > { %v687_v17 = vmul.f32 %v2366_v59, %v665_v4  ;;  %v688_v61 = vmul.f32 %v2368_v60, %v666_v11  ;;  %v657_v62 = vmul.f32 %v594_v15, %v2300_v6  ;;  %v658_v16 = vmul.f32 %v594_v15, %v2302_v7  ;;  %v1931_v32 = vpop.eup %1930 }
 0x179   : > { %v683_v18 = vmul.f32 %v2366_v59, %v661_v14  ;;  %v684_v22 = vmul.f32 %v2368_v60, %v662_v52  ;;  %v638_v24 = vmul.f32 0.5, %v637_v31  ;;  %v616_v27 = vmul.f32 %v1931_v32, %v2385_v29 }
 0x17a   : > { %v709_v1 = vadd.f32 %v2370_v9, %v687_v17  ;;  %v710_v19 = vadd.f32 %v2372_v10, %v688_v61  ;;  %v679_v25 = vmul.f32 %v2366_v59, %v657_v62  ;;  %v680_v26 = vmul.f32 %v2368_v60, %v658_v16 }
 0x17b   : > { %v705_v6 = vadd.f32 %v2370_v9, %v683_v18  ;;  %v706_v7 = vadd.f32 %v2372_v10, %v684_v22  ;;  %v639_v37 = vsub.f32 1.5, %v638_v24  ;;  %v617_v39 = vmul.f32 %v1931_v32, %v616_v27 }
 0x17c   : > { %v720_v33 = vpack.c.bf16 %v710_v19, %v709_v1  ;;  %v701_v34 = vadd.f32 %v2370_v9, %v679_v25  ;;  %v702_v38 = vadd.f32 %v2372_v10, %v680_v26  ;;  %v574_v40 = vadd.f32 1e-05, %v566_v63 }
 0x17d   : > { %v718_v35 = vpack.c.bf16 %v706_v7, %v705_v6  ;;  %v640_v41 = vmul.f32 %v1929_v0, %v639_v37  ;;  %v618_v42 = vmul.f32 0.5, %v617_v39  ;;  %vm622_vm3 = vweird.f32 %v1931_v32 }
 0x17e   : > { %728 = vst [vmem:[#allocation2 + $0x28] sm:$0xff] %v720_v33  ;;  %v716_v36 = vpack.c.bf16 %v702_v38, %v701_v34  ;;  %1932 = vrsqrt.f32 %v574_v40  ;;  %vm621_vm4 = vweird.f32 %v2385_v29  ;;  %vm651_vm7 = vweird.f32 %v574_v40 }
 0x17f   : > { %726 = vst [vmem:[#allocation2 + $0x18] sm:$0xff] %v718_v35  ;;  %v644_v43 = vsel %vm643_vm2, %v1929_v0, %v640_v41  ;;  %v619_v44 = vsub.f32 1.5, %v618_v42  ;;  %vm623_vm5 = vmor %vm621_vm4, %vm622_vm3 }
 0x180   : > { %724 = vst [vmem:[#allocation2 + $0x8] sm:$0xff] %v716_v36  ;;  %v667_v45 = vmul.f32 %v644_v43, %v2324_v20  ;;  %v668_v48 = vmul.f32 %v644_v43, %v2328_v21 }
 0x181   : > { %v620_v50 = vmul.f32 %v1931_v32, %v619_v44 }
 0x182   : > { %v689_v46 = vmul.f32 %v2366_v59, %v667_v45  ;;  %v690_v47 = vmul.f32 %v2368_v60, %v668_v48 }
 0x183   : > { %v624_v54 = vsel %vm623_vm5, %v1931_v32, %v620_v50 }
 0x184   : > { %v1933_v51 = vpop.eup %1932  ;;  %v711_v28 = vadd.f32 %v2370_v9, %v689_v46  ;;  %v712_v55 = vadd.f32 %v2372_v10, %v690_v47  ;;  %v663_v56 = vmul.f32 %v624_v54, %v2294_v2  ;;  %v664_v20 = vmul.f32 %v624_v54, %v2298_v5 }
 0x185   : > { %v646_v57 = vmul.f32 %v1933_v51, %v574_v40  ;;  %vm652_vm6 = vweird.f32 %v1933_v51 }
 0x186   : > { %v721_v21 = vpack.c.bf16 %v712_v55, %v711_v28  ;;  %v685_v58 = vmul.f32 %v2366_v59, %v663_v56  ;;  %v686_v29 = vmul.f32 %v2368_v60, %v664_v20  ;;  %vm653_vm8 = vmor %vm651_vm7, %vm652_vm6 }
 0x187   : > { %v647_v8 = vmul.f32 %v1933_v51, %v646_v57 }
 0x188   : > { %729 = vst [vmem:[#allocation2 + $0x30] sm:$0xff] %v721_v21  ;;  %v707_v3 = vadd.f32 %v2370_v9, %v685_v58  ;;  %v708_v49 = vadd.f32 %v2372_v10, %v686_v29 }
 0x189   : > { %v648_v0 = vmul.f32 0.5, %v647_v8 }
 0x18a   : > { %v719_v4 = vpack.c.bf16 %v708_v49, %v707_v3 }
 0x18b   : > { %v649_v11 = vsub.f32 1.5, %v648_v0 }
 0x18c   : > { %727 = vst [vmem:[#allocation2 + $0x20] sm:$0xff] %v719_v4 }
 0x18d   : > { %v650_v2 = vmul.f32 %v1933_v51, %v649_v11 }
 0x18f   : > { %v654_v5 = vsel %vm653_vm8, %v1933_v51, %v650_v2 }
 0x190   : > { %v669_v12 = vmul.f32 %v654_v5, %v2332_v23  ;;  %v670_v13 = vmul.f32 %v654_v5, %v2336_v30 }
 0x192   : > { %v691_v14 = vmul.f32 %v2366_v59, %v669_v12  ;;  %v692_v52 = vmul.f32 %v2368_v60, %v670_v13 }
 0x194   : > { %v713_v15 = vadd.f32 %v2370_v9, %v691_v14  ;;  %v714_v53 = vadd.f32 %v2372_v10, %v692_v52 }
 0x196   : > { %v722_v17 = vpack.c.bf16 %v714_v53, %v713_v15 }
 0x198   : > { %730 = vst [vmem:[#allocation2 + $0x38] sm:$0xff] %v722_v17 }
 0x199 PF: > { %v1673_v23 = vld [vmem:[%s2195_s24 + $0xa8] sm:$0xf]  ;;  %v1829_v30 = vld [vmem:[%s2195_s24 + $0xb0] sm:$0xf0]  ;;  %v1661_v10 = vld [vmem:[%s2195_s24 + $0x90] sm:$0xf] }
 0x19a   : > { %v1769_v59 = vld [vmem:[%s2195_s24 + $0x168] sm:$0xf]  ;;  %v1674_v60 = vor.u32 %v1829_v30, %v1673_v23  ;;  %v1853_v9 = vld [vmem:[%s2195_s24 + $0x170] sm:$0xf0]  ;;  %v1826_v61 = vld [vmem:[%s2195_s24 + $0x98] sm:$0xf0] }
 0x19b   : > { %v1770_v62 = vor.u32 %v1853_v9, %v1769_v59  ;;  %v1757_v16 = vld [vmem:[%s2195_s24 + $0x150] sm:$0xf]  ;;  %v1850_v18 = vld [vmem:[%s2195_s24 + $0x158] sm:$0xf0]  ;;  %v1662_v22 = vor.u32 %v1826_v61, %v1661_v10  ;;  %v1649_v63 = vld [vmem:[%s2195_s24 + $0x78] sm:$0xf] }
 0x19c   : > { %1107 = vmatpush.bf16.msra.mxu0 %v1674_v60  ;;  %1856 = vmatpush.bf16.msra.mxu2 %v1674_v60  ;;  %v1758_v31 = vor.u32 %v1850_v18, %v1757_v16  ;;  %v1823_v32 = vld [vmem:[%s2195_s24 + $0x80] sm:$0xf0]  ;;  %v1745_v1 = vld [vmem:[%s2195_s24 + $0x138] sm:$0xf]  ;;  %v1637_v6 = vld [vmem:[%s2195_s24 + $0x60] sm:$0xf] }
 0x19d   : > { %1136 = vmatpush.bf16.msra.mxu1 %v1770_v62  ;;  %1864 = vmatpush.bf16.msra.mxu3 %v1770_v62  ;;  %v1847_v19 = vld [vmem:[%s2195_s24 + $0x140] sm:$0xf0]  ;;  %v1650_v25 = vor.u32 %v1823_v32, %v1649_v63  ;;  %v1820_v7 = vld [vmem:[%s2195_s24 + $0x68] sm:$0xf0]  ;;  %v1733_v24 = vld [vmem:[%s2195_s24 + $0x120] sm:$0xf] }
 0x19e   : > { %v1746_v26 = vor.u32 %v1847_v19, %v1745_v1  ;;  %v1844_v27 = vld [vmem:[%s2195_s24 + $0x128] sm:$0xf0]  ;;  %v1638_v33 = vor.u32 %v1820_v7, %v1637_v6  ;;  %v1625_v38 = vld [vmem:[%s2195_s24 + $0x48] sm:$0xf]  ;;  %v1817_v35 = vld [vmem:[%s2195_s24 + $0x50] sm:$0xf0] }
 0x19f   : > { %v1734_v34 = vor.u32 %v1844_v27, %v1733_v24  ;;  %v1721_v37 = vld [vmem:[%s2195_s24 + $0x108] sm:$0xf]  ;;  %v1841_v39 = vld [vmem:[%s2195_s24 + $0x110] sm:$0xf0]  ;;  %v1626_v40 = vor.u32 %v1817_v35, %v1625_v38  ;;  %v1613_v41 = vld [vmem:[%s2195_s24 + $0x30] sm:$0xf] }
 0x1a0   : > { %1108 = vmatpush.bf16.msra.mxu0 %v1662_v22  ;;  %1857 = vmatpush.bf16.msra.mxu2 %v1662_v22  ;;  %v1722_v36 = vor.u32 %v1841_v39, %v1721_v37  ;;  %v1814_v42 = vld [vmem:[%s2195_s24 + $0x38] sm:$0xf0]  ;;  %v1709_v43 = vld [vmem:[%s2195_s24 + $0xf0] sm:$0xf]  ;;  %v1601_v50 = vld [vmem:[%s2195_s24 + $0x18] sm:$0xf] }
 0x1a1   : > { %1137 = vmatpush.bf16.msra.mxu1 %v1758_v31  ;;  %1865 = vmatpush.bf16.msra.mxu3 %v1758_v31  ;;  %v1838_v44 = vld [vmem:[%s2195_s24 + $0xf8] sm:$0xf0]  ;;  %v1614_v45 = vor.u32 %v1814_v42, %v1613_v41  ;;  %v1811_v46 = vld [vmem:[%s2195_s24 + $0x20] sm:$0xf0]  ;;  %v1697_v47 = vld [vmem:[%s2195_s24 + $0xd8] sm:$0xf] }
 0x1a2   : > { %v1710_v48 = vor.u32 %v1838_v44, %v1709_v43  ;;  %v1835_v51 = vld [vmem:[%s2195_s24 + $0xe0] sm:$0xf0]  ;;  %v1602_v54 = vor.u32 %v1811_v46, %v1601_v50  ;;  %v1589_v28 = vld [vmem:[%s2195_s24] sm:$0xf]  ;;  %v1808_v56 = vld [vmem:[%s2195_s24 + $0x8] sm:$0xf0] }
 0x1a3   : > { %v1698_v55 = vor.u32 %v1835_v51, %v1697_v47  ;;  %v1685_v20 = vld [vmem:[%s2195_s24 + $0xc0] sm:$0xf]  ;;  %v1832_v57 = vld [vmem:[%s2195_s24 + $0xc8] sm:$0xf0]  ;;  %v1800_v58 = vld [vmem:[#allocation2 + $0x4] sm:$0xf0]  ;;  %v1590_v11 = vor.u32 %v1808_v56, %v1589_v28 }
 0x1a4   : > { %1109 = vmatpush.bf16.msra.mxu0 %v1650_v25  ;;  %1858 = vmatpush.bf16.msra.mxu2 %v1650_v25  ;;  %v1557_v21 = vld [vmem:[#allocation2] sm:$0xf]  ;;  %v1804_v8 = vld [vmem:[#allocation2 + $0x24] sm:$0xf0]  ;;  %v1828_v3 = vld [vmem:[%s2195_s24 + $0xac] sm:$0xf]  ;;  %v1686_v13 = vor.u32 %v1832_v57, %v1685_v20 }
 0x1a5   : > { %1138 = vmatpush.bf16.msra.mxu1 %v1746_v26  ;;  %1866 = vmatpush.bf16.msra.mxu3 %v1746_v26  ;;  %v1573_v29 = vld [vmem:[#allocation2 + $0x20] sm:$0xf]  ;;  %v1675_v49 = vld [vmem:[%s2195_s24 + $0xb4] sm:$0xf0]  ;;  %v1852_v0 = vld [vmem:[%s2195_s24 + $0x16c] sm:$0xf]  ;;  %v2493_v60 = vor.u32 %v1800_v58, %v1557_v21 }
 0x1a6   : > { %v1771_v4 = vld [vmem:[%s2195_s24 + $0x174] sm:$0xf0]  ;;  %v1799_v2 = vld [vmem:[#allocation2 + $0x4] sm:$0xf]  ;;  %v1559_v5 = vld [vmem:[#allocation2 + $0x8] sm:$0xf0]  ;;  %v1678_v53 = vor.u32 %v1828_v3, %v1675_v49  ;;  %v2495_v9 = vor.u32 %v1804_v8, %v1573_v29 }
 0x1a7   : > { %v1803_v12 = vld [vmem:[#allocation2 + $0x24] sm:$0xf]  ;;  %v1575_v14 = vld [vmem:[#allocation2 + $0x28] sm:$0xf0]  ;;  %v1681_v52 = vld [vmem:[%s2195_s24 + $0xb0] sm:$0xf]  ;;  %v1774_v17 = vor.u32 %v1852_v0, %v1771_v4  ;;  %v2500_v16 = vor.u32 %v1799_v2, %v1559_v5 }
 0x1a8   : > { %1110 = vmatpush.bf16.msra.mxu0 %v1638_v33  ;;  %1859 = vmatpush.bf16.msra.mxu2 %v1638_v33  ;;  %v1830_v15 = vld [vmem:[%s2195_s24 + $0xb8] sm:$0xf0]  ;;  %v1777_v23 = vld [vmem:[%s2195_s24 + $0x170] sm:$0xf]  ;;  %v1825_v59 = vld [vmem:[%s2195_s24 + $0x94] sm:$0xf]  ;;  %v2502_v18 = vor.u32 %v1803_v12, %v1575_v14 }
 0x1a9   : > { %1139 = vmatpush.bf16.msra.mxu1 %v1734_v34  ;;  %1867 = vmatpush.bf16.msra.mxu3 %v1734_v34  ;;  %v1854_v30 = vld [vmem:[%s2195_s24 + $0x178] sm:$0xf0]  ;;  %v1663_v10 = vld [vmem:[%s2195_s24 + $0x9c] sm:$0xf0]  ;;  %v1849_v61 = vld [vmem:[%s2195_s24 + $0x154] sm:$0xf]  ;;  %v1682_v22 = vor.u32 %v1830_v15, %v1681_v52 }
 0x1aa   : > { %v1759_v62 = vld [vmem:[%s2195_s24 + $0x15c] sm:$0xf0]  ;;  %v1778_v31 = vor.u32 %v1854_v30, %v1777_v23  ;;  %v1669_v63 = vld [vmem:[%s2195_s24 + $0x98] sm:$0xf]  ;;  %v1827_v32 = vld [vmem:[%s2195_s24 + $0xa0] sm:$0xf0]  ;;  %v1666_v1 = vor.u32 %v1825_v59, %v1663_v10 }
 0x1ab   : > { %v1762_v19 = vor.u32 %v1849_v61, %v1759_v62  ;;  %v1765_v25 = vld [vmem:[%s2195_s24 + $0x158] sm:$0xf]  ;;  %v1851_v26 = vld [vmem:[%s2195_s24 + $0x160] sm:$0xf0]  ;;  %v1822_v6 = vld [vmem:[%s2195_s24 + $0x7c] sm:$0xf]  ;;  %v1670_v33 = vor.u32 %v1827_v32, %v1669_v63 }
 0x1ac   : > { %1111 = vmatpush.bf16.msra.mxu0 %v1626_v40  ;;  %1860 = vmatpush.bf16.msra.mxu2 %v1626_v40  ;;  %v1651_v7 = vld [vmem:[%s2195_s24 + $0x84] sm:$0xf0]  ;;  %v1846_v24 = vld [vmem:[%s2195_s24 + $0x13c] sm:$0xf]  ;;  %v1766_v34 = vor.u32 %v1851_v26, %v1765_v25  ;;  %v1657_v38 = vld [vmem:[%s2195_s24 + $0x80] sm:$0xf] }
 0x1ad   : > { %1140 = vmatpush.bf16.msra.mxu1 %v1722_v36  ;;  %1868 = vmatpush.bf16.msra.mxu3 %v1722_v36  ;;  %v1747_v27 = vld [vmem:[%s2195_s24 + $0x144] sm:$0xf0]  ;;  %v1824_v35 = vld [vmem:[%s2195_s24 + $0x88] sm:$0xf0]  ;;  %v1654_v37 = vor.u32 %v1822_v6, %v1651_v7  ;;  %v1753_v40 = vld [vmem:[%s2195_s24 + $0x140] sm:$0xf] }
 0x1ae   : > { %v1750_v39 = vor.u32 %v1846_v24, %v1747_v27  ;;  %v1848_v36 = vld [vmem:[%s2195_s24 + $0x148] sm:$0xf0]  ;;  %v1819_v41 = vld [vmem:[%s2195_s24 + $0x64] sm:$0xf]  ;;  %v1639_v42 = vld [vmem:[%s2195_s24 + $0x6c] sm:$0xf0] }
 0x1af   : > { %v1843_v43 = vld [vmem:[%s2195_s24 + $0x124] sm:$0xf]  ;;  %v1735_v44 = vld [vmem:[%s2195_s24 + $0x12c] sm:$0xf0]  ;;  %v1754_v50 = vor.u32 %v1848_v36, %v1753_v40  ;;  %v1821_v46 = vld [vmem:[%s2195_s24 + $0x70] sm:$0xf0] }
 0x1b0   : > { %1112 = vmatpush.bf16.msra.mxu0 %v1614_v45  ;;  %1861 = vmatpush.bf16.msra.mxu2 %v1614_v45  ;;  %v1645_v45 = vld [vmem:[%s2195_s24 + $0x68] sm:$0xf]  ;;  %v1845_v51 = vld [vmem:[%s2195_s24 + $0x130] sm:$0xf0]  ;;  %v1738_v28 = vor.u32 %v1843_v43, %v1735_v44  ;;  %v1802_v56 = vld [vmem:[#allocation2 + $0x14] sm:$0xf0] }
 0x1b1   : > { %1141 = vmatpush.bf16.msra.mxu1 %v1710_v48  ;;  %1869 = vmatpush.bf16.msra.mxu3 %v1710_v48  ;;  %v1658_v48 = vor.u32 %v1824_v35, %v1657_v38  ;;  %v1741_v47 = vld [vmem:[%s2195_s24 + $0x128] sm:$0xf]  ;;  %v1581_v20 = vld [vmem:[#allocation2 + $0x30] sm:$0xf]  ;;  %v1806_v57 = vld [vmem:[#allocation2 + $0x34] sm:$0xf0]  ;;  %v1646_v4 = vor.u32 %v1821_v46, %v1645_v45 }
 0x1b2   : > { %v1816_v21 = vld [vmem:[%s2195_s24 + $0x4c] sm:$0xf]  ;;  %v1627_v58 = vld [vmem:[%s2195_s24 + $0x54] sm:$0xf0]  ;;  %v1801_v3 = vld [vmem:[#allocation2 + $0x14] sm:$0xf]  ;;  %v2539_v23 = vor.u32 %v1806_v57, %v1581_v20 }
 0x1b3   : > { %v1840_v29 = vld [vmem:[%s2195_s24 + $0x10c] sm:$0xf]  ;;  %v1723_v8 = vld [vmem:[%s2195_s24 + $0x114] sm:$0xf0]  ;;  %v1567_v49 = vld [vmem:[#allocation2 + $0x18] sm:$0xf0] }
 0x1b4   : > { %1113 = vmatpush.bf16.msra.mxu0 %v1602_v54  ;;  %1862 = vmatpush.bf16.msra.mxu2 %v1602_v54  ;;  %v1642_v54 = vor.u32 %v1819_v41, %v1639_v42  ;;  %v1805_v0 = vld [vmem:[#allocation2 + $0x34] sm:$0xf]  ;;  %v1583_v2 = vld [vmem:[#allocation2 + $0x38] sm:$0xf0]  ;;  %v1633_v5 = vld [vmem:[%s2195_s24 + $0x50] sm:$0xf]  ;;  %v1726_v14 = vor.u32 %v1840_v29, %v1723_v8  ;;  %v2544_v61 = vor.u32 %v1801_v3, %v1567_v49 }
 0x1b5   : > { %1142 = vmatpush.bf16.msra.mxu1 %v1698_v55  ;;  %1870 = vmatpush.bf16.msra.mxu3 %v1698_v55  ;;  %v1565_v55 = vld [vmem:[#allocation2 + $0x10] sm:$0xf]  ;;  %v1818_v12 = vld [vmem:[%s2195_s24 + $0x58] sm:$0xf0]  ;;  %v1615_v30 = vld [vmem:[%s2195_s24 + $0x3c] sm:$0xf0]  ;;  %v2546_v62 = vor.u32 %v1805_v0, %v1583_v2 }
 0x1b6   : > { %v1729_v52 = vld [vmem:[%s2195_s24 + $0x110] sm:$0xf]  ;;  %v1842_v15 = vld [vmem:[%s2195_s24 + $0x118] sm:$0xf0]  ;;  %v1837_v59 = vld [vmem:[%s2195_s24 + $0xf4] sm:$0xf] }
 0x1b7   : > { %v1711_v10 = vld [vmem:[%s2195_s24 + $0xfc] sm:$0xf0]  ;;  %v1621_v63 = vld [vmem:[%s2195_s24 + $0x38] sm:$0xf]  ;;  %v1815_v32 = vld [vmem:[%s2195_s24 + $0x40] sm:$0xf0] }
 0x1b8   : > { %1114 = vmatpush.bf16.msra.mxu0 %v1590_v11  ;;  %1863 = vmatpush.bf16.msra.mxu2 %v1590_v11  ;;  %v1742_v11 = vor.u32 %v1845_v51, %v1741_v47  ;;  %v1717_v25 = vld [vmem:[%s2195_s24 + $0xf8] sm:$0xf]  ;;  %v1839_v26 = vld [vmem:[%s2195_s24 + $0x100] sm:$0xf0]  ;;  %v1810_v6 = vld [vmem:[%s2195_s24 + $0x1c] sm:$0xf] }
 0x1b9   : > { %1143 = vmatpush.bf16.msra.mxu1 %v1686_v13  ;;  %1871 = vmatpush.bf16.msra.mxu3 %v1686_v13  ;;  %v1630_v13 = vor.u32 %v1816_v21, %v1627_v58  ;;  %v1603_v7 = vld [vmem:[%s2195_s24 + $0x24] sm:$0xf0]  ;;  %v1834_v24 = vld [vmem:[%s2195_s24 + $0xdc] sm:$0xf]  ;;  %v1609_v38 = vld [vmem:[%s2195_s24 + $0x20] sm:$0xf] }
 0x1ba   : > { %v1699_v27 = vld [vmem:[%s2195_s24 + $0xe4] sm:$0xf0]  ;;  %v1812_v35 = vld [vmem:[%s2195_s24 + $0x28] sm:$0xf0]  ;;  %v1705_v40 = vld [vmem:[%s2195_s24 + $0xe0] sm:$0xf] }
 0x1bb   : > { %1115 = vmatmul.bf16.vlgmr.msra.gmra.mxu0 %v2493_v60  ;;  %1125 = vmatmul.bf16.vlgmr.msra.gmra.mxu2 %v2495_v9  ;;  %v1836_v36 = vld [vmem:[%s2195_s24 + $0xe8] sm:$0xf0]  ;;  %v1807_v41 = vld [vmem:[%s2195_s24 + $0x4] sm:$0xf]  ;;  %v1591_v42 = vld [vmem:[%s2195_s24 + $0xc] sm:$0xf0]  ;;  %v1610_v45 = vor.u32 %v1812_v35, %v1609_v38 }
 0x1bc   : > { %1165 = vmatpush.bf16.msrb.mxu2 %v1678_v53  ;;  %1144 = vmatmul.bf16.vlgmr.msra.gmra.mxu1 %v2500_v16  ;;  %v1813_v53 = vld [vmem:[%s2195_s24 + $0x34] sm:$0xf]  ;;  %v1831_v43 = vld [vmem:[%s2195_s24 + $0xc4] sm:$0xf]  ;;  %v1687_v44 = vld [vmem:[%s2195_s24 + $0xcc] sm:$0xf0]  ;;  %v1594_v46 = vor.u32 %v1807_v41, %v1591_v42 }
 0x1bd   : > { %1194 = vmatpush.bf16.msrb.mxu3 %v1774_v17  ;;  %1223 = vmatpush.bf16.msrb.mxu0 %v1682_v22  ;;  %v2537_v17 = vor.u32 %v1802_v56, %v1565_v55  ;;  %v1634_v22 = vor.u32 %v1818_v12, %v1633_v5  ;;  %v1690_v47 = vor.u32 %v1831_v43, %v1687_v44  ;;  %v1809_v51 = vld [vmem:[%s2195_s24 + $0x10] sm:$0xf0]  ;;  %s1855_s12 = smul.u32 (%p2040_p6), 12, %s1964_s20 }
 0x1be   : > { %1154 = vmatmul.bf16.vlgmr.msra.gmra.mxu3 %v2502_v18  ;;  %1252 = vmatpush.bf16.msrb.mxu1 %v1778_v31  ;;  %v1730_v31 = vor.u32 %v1842_v15, %v1729_v52 }
 0x1bf   : > { %s1325_s10 = scalar_lea.vmem (%p2040_p6), %s2693_s5, %s1855_s12 }
 0x1c0   : > { %1166 = vmatpush.bf16.msrb.mxu2 %v1666_v1  ;;  %v1618_v1 = vor.u32 %v1813_v53, %v1615_v30 }
 0x1c1   : > { %1195 = vmatpush.bf16.msrb.mxu3 %v1762_v19  ;;  %1224 = vmatpush.bf16.msrb.mxu0 %v1670_v33  ;;  %v1714_v19 = vor.u32 %v1837_v59, %v1711_v10  ;;  %v1622_v33 = vor.u32 %v1815_v32, %v1621_v63 }
 0x1c2   : > { %1253 = vmatpush.bf16.msrb.mxu1 %v1766_v34  ;;  %v1718_v34 = vor.u32 %v1839_v26, %v1717_v25 }
 0x1c4   : > { %1167 = vmatpush.bf16.msrb.mxu2 %v1654_v37  ;;  %v1606_v37 = vor.u32 %v1810_v6, %v1603_v7 }
 0x1c5   : > { %1196 = vmatpush.bf16.msrb.mxu3 %v1750_v39  ;;  %1225 = vmatpush.bf16.msrb.mxu0 %v1658_v48  ;;  %v1702_v39 = vor.u32 %v1834_v24, %v1699_v27  ;;  %v1706_v48 = vor.u32 %v1836_v36, %v1705_v40 }
 0x1c6   : > { %1254 = vmatpush.bf16.msrb.mxu1 %v1754_v50  ;;  %v1597_v50 = vld [vmem:[%s2195_s24 + $0x8] sm:$0xf] }
 0x1c7   : > { %v1598_v55 = vor.u32 %v1809_v51, %v1597_v50 }
 0x1c8   : > { %1168 = vmatpush.bf16.msrb.mxu2 %v1642_v54  ;;  %v1693_v54 = vld [vmem:[%s2195_s24 + $0xc8] sm:$0xf] }
 0x1c9   : > { %1197 = vmatpush.bf16.msrb.mxu3 %v1738_v28  ;;  %1226 = vmatpush.bf16.msrb.mxu0 %v1646_v4  ;;  %v1833_v28 = vld [vmem:[%s2195_s24 + $0xd0] sm:$0xf0] }
 0x1ca   : > { %1255 = vmatpush.bf16.msrb.mxu1 %v1742_v11  ;;  %v1694_v56 = vor.u32 %v1833_v28, %v1693_v54 }
 0x1cb   : > { %1120 = vmatmul.bf16.gmra.mxu0 %v2537_v17  ;;  %1130 = vmatmul.bf16.gmra.mxu2 %v2539_v23 }
 0x1cc   : > { %1169 = vmatpush.bf16.msrb.mxu2 %v1630_v13  ;;  %1149 = vmatmul.bf16.gmra.mxu1 %v2544_v61 }
 0x1cd   : > { %1198 = vmatpush.bf16.msrb.mxu3 %v1726_v14  ;;  %1227 = vmatpush.bf16.msrb.mxu0 %v1634_v22 }
 0x1ce   : > { %1159 = vmatmul.bf16.gmra.mxu3 %v2546_v62  ;;  %1256 = vmatpush.bf16.msrb.mxu1 %v1730_v31 }
 0x1d0   : > { %1170 = vmatpush.bf16.msrb.mxu2 %v1618_v1 }
 0x1d1   : > { %1199 = vmatpush.bf16.msrb.mxu3 %v1714_v19  ;;  %1228 = vmatpush.bf16.msrb.mxu0 %v1622_v33 }
 0x1d2   : > { %1257 = vmatpush.bf16.msrb.mxu1 %v1718_v34 }
 0x1d4   : > { %1171 = vmatpush.bf16.msrb.mxu2 %v1606_v37 }
 0x1d5   : > { %1200 = vmatpush.bf16.msrb.mxu3 %v1702_v39  ;;  %1229 = vmatpush.bf16.msrb.mxu0 %v1610_v45 }
 0x1d6   : > { %1258 = vmatpush.bf16.msrb.mxu1 %v1706_v48 }
 0x1d8   : > { %1172 = vmatpush.bf16.msrb.mxu2 %v1594_v46 }
 0x1d9   : > { %1201 = vmatpush.bf16.msrb.mxu3 %v1690_v47  ;;  %1230 = vmatpush.bf16.msrb.mxu0 %v1598_v55 }
 0x1da   : > { %1259 = vmatpush.bf16.msrb.mxu1 %v1694_v56 }
 0x1db   : > { %1173 = vmatmul.bf16.vlgmr.msrb.gmra.mxu2 %v2493_v60 }
 0x1dc   : > { %1231 = vmatmul.bf16.vlgmr.msrb.gmra.mxu0 %v2493_v60  ;;  %v803_v60 = vld [vmem:[%s432_s17] sm:$0x7] }
 0x1dd   : > { %1260 = vmatmul.bf16.vlgmr.msrb.gmra.mxu1 %v2500_v16  ;;  %v2593_v57 = vperm.slane %v803_v60, 0  ;;  %v2610_v22 = vperm.slane %v803_v60, 1 }
 0x1de   : > { %1202 = vmatmul.bf16.vlgmr.msrb.gmra.mxu3 %v2500_v16 }
 0x1eb   : > { %1178 = vmatmul.bf16.gmra.mxu2 %v2537_v17 }
 0x1ec   : > { %1236 = vmatmul.bf16.gmra.mxu0 %v2537_v17  ;;  %v2604_v17 = vperm.slane %v803_v60, 2 }
 0x1ed   : > { %1265 = vmatmul.bf16.gmra.mxu1 %v2544_v61 }
 0x1ee   : > { %1207 = vmatmul.bf16.gmra.mxu3 %v2544_v61 }
 0x1fb   : > { %1183 = vmatmul.bf16.gmra.mxu2 %v2495_v9 }
 0x1fc   : > { %1241 = vmatmul.bf16.gmra.mxu0 %v2495_v9 }
 0x1fd   : > { %1270 = vmatmul.bf16.gmra.mxu1 %v2502_v18 }
 0x1fe   : > { %1212 = vmatmul.bf16.gmra.mxu3 %v2502_v18 }
 0x20b   : > { %1188 = vmatmul.bf16.gmra.mxu2 %v2539_v23 }
 0x20c   : > { %1246 = vmatmul.bf16.gmra.mxu0 %v2539_v23 }
 0x20d   : > { %1275 = vmatmul.bf16.gmra.mxu1 %v2546_v62 }
 0x20e   : > { %1217 = vmatmul.bf16.gmra.mxu3 %v2546_v62 }
 0x238   : > { %v1116_v16 = vpop.f32.mrf.mxu0 }
 0x239   : > { %v1145_v20 = vpop.f32.mrf.mxu1  ;;  %v1117_v63 = vadd.f32 %v1116_v16, %v2593_v57 }
 0x23b   : > { %v1146_v26 = vadd.f32 %v1145_v20, %v1117_v63 }
 0x23e   : > { %v1126_v9 = vpop.f32.mrf.mxu2 }
 0x23f   : > { %v1127_v18 = vadd.f32 %v1126_v9, %v2593_v57 }
 0x240   : > { %v1118_v58 = vpop.f32.mrf.mxu0 }
 0x241   : > { %v1155_v21 = vpop.f32.mrf.mxu3  ;;  %v1147_v8 = vpop.f32.mrf.mxu1  ;;  %v1119_v38 = vadd.f32 %v1118_v58, %v2593_v57 }
 0x242   : > { %v2596_v29 = vadd.f32 %v1155_v21, %v1127_v18 }
 0x243   : > { %v1148_v36 = vadd.f32 %v1147_v8, %v1119_v38 }
 0x246   : > { %v1128_v3 = vpop.f32.mrf.mxu2 }
 0x247   : > { %v1129_v49 = vadd.f32 %v1128_v3, %v2593_v57 }
 0x248   : > { %v1121_v4 = vpop.f32.mrf.mxu0 }
 0x249   : > { %v1157_v0 = vpop.f32.mrf.mxu3  ;;  %v1150_v2 = vpop.f32.mrf.mxu1  ;;  %v1122_v50 = vadd.f32 %v1121_v4, %v2593_v57 }
 0x24a   : > { %v2599_v11 = vadd.f32 %v1157_v0, %v1129_v49 }
 0x24b   : > { %v1151_v28 = vadd.f32 %v1150_v2, %v1122_v50 }
 0x24e   : > { %v1131_v5 = vpop.f32.mrf.mxu2 }
 0x24f   : > { %v1132_v12 = vadd.f32 %v1131_v5, %v2593_v57 }
 0x250   : > { %v1123_v14 = vpop.f32.mrf.mxu0 }
 0x251   : > { %v1160_v13 = vpop.f32.mrf.mxu3  ;;  %v1152_v15 = vpop.f32.mrf.mxu1  ;;  %v1124_v18 = vadd.f32 %v1123_v14, %v2593_v57 }
 0x252   : > { %v2602_v52 = vadd.f32 %v1160_v13, %v1132_v12 }
 0x253   : > { %v1153_v49 = vadd.f32 %v1152_v15, %v1124_v18 }
 0x256   : > { %v1133_v53 = vpop.f32.mrf.mxu2 }
 0x257   : > { %v1134_v23 = vadd.f32 %v1133_v53, %v2593_v57 }
 0x259   : > { %v1162_v30 = vpop.f32.mrf.mxu3  ;;  %v1232_v10 = vpop.f32.mrf.mxu0 }
 0x25a   : > { %v2607_v59 = vadd.f32 %v1162_v30, %v1134_v23  ;;  %v1233_v61 = vadd.f32 %v1232_v10, %v2604_v17  ;;  %v1261_v62 = vpop.f32.mrf.mxu1 }
 0x25c   : > { %v1262_v31 = vadd.f32 %v1261_v62, %v1233_v61 }
 0x25e   : > { %v1282_v32 = vpack.c.bf16 %v1262_v31, %v1262_v31  ;;  %v1174_v1 = vpop.f32.mrf.mxu2 }
 0x25f   : > { %v1175_v19 = vadd.f32 %v1174_v1, %v2610_v22 }
 0x260   : > { %1298 = vst [vmem:[%s2197_s25 + $0x8] sm:$0xf] %v1282_v32 }
 0x261   : > { %v1203_v25 = vpop.f32.mrf.mxu3  ;;  %v1234_v7 = vpop.f32.mrf.mxu0 }
 0x262   : > { %v1204_v6 = vadd.f32 %v1203_v25, %v1175_v19  ;;  %v1235_v24 = vadd.f32 %v1234_v7, %v2604_v17  ;;  %v1263_v27 = vpop.f32.mrf.mxu1 }
 0x264   : > { %v1281_v33 = vpack.c.bf16 %v1204_v6, %v1146_v26  ;;  %v1264_v34 = vadd.f32 %v1263_v27, %v1235_v24 }
 0x266   : > { %1297 = vst [vmem:[%s2197_s25] sm:$0xff] %v1281_v33  ;;  %v1284_v35 = vpack.c.bf16 %v1264_v34, %v1264_v34  ;;  %v1176_v37 = vpop.f32.mrf.mxu2 }
 0x267   : > { %v1177_v39 = vadd.f32 %v1176_v37, %v2610_v22 }
 0x268   : > { %1300 = vst [vmem:[%s2197_s25 + $0x14] sm:$0xf] %v1284_v35 }
 0x269   : > { %v1205_v40 = vpop.f32.mrf.mxu3  ;;  %v1237_v42 = vpop.f32.mrf.mxu0 }
 0x26a   : > { %v1206_v41 = vadd.f32 %v1205_v40, %v1177_v39  ;;  %v1238_v43 = vadd.f32 %v1237_v42, %v2604_v17  ;;  %v1266_v44 = vpop.f32.mrf.mxu1 }
 0x26c   : > { %v1283_v45 = vpack.c.bf16 %v1206_v41, %v1148_v36  ;;  %v1267_v48 = vadd.f32 %v1266_v44, %v1238_v43 }
 0x26e   : > { %1299 = vst [vmem:[%s2197_s25 + $0xc] sm:$0xff] %v1283_v45  ;;  %v1286_v46 = vpack.c.bf16 %v1267_v48, %v1267_v48  ;;  %v1179_v47 = vpop.f32.mrf.mxu2 }
 0x26f   : > { %v1180_v51 = vadd.f32 %v1179_v47, %v2610_v22 }
 0x270   : > { %1302 = vst [vmem:[%s2197_s25 + $0x20] sm:$0xf] %v1286_v46 }
 0x271   : > { %v1208_v54 = vpop.f32.mrf.mxu3  ;;  %v1239_v56 = vpop.f32.mrf.mxu0 }
 0x272   : > { %v1209_v55 = vadd.f32 %v1208_v54, %v1180_v51  ;;  %v1240_v60 = vadd.f32 %v1239_v56, %v2604_v17  ;;  %v1268_v16 = vpop.f32.mrf.mxu1  ;;  %v1780_v54 = vld [vmem:[%s2197_s25 + $0x8] sm:$0xf] (%p2040_p6) }
 0x273   : > { %1781 = vst [vmem:[%s1325_s10 + $0x8] sm:$0xf] (%p2040_p6), %v1780_v54 }
 0x274   : > { %v1285_v20 = vpack.c.bf16 %v1209_v55, %v1151_v28  ;;  %v1269_v9 = vadd.f32 %v1268_v16, %v1240_v60  ;;  %v1782_v28 = vld [vmem:[%s2197_s25 + $0x14] sm:$0xf] (%p2040_p6) }
 0x275   : > { %1783 = vst [vmem:[%s1325_s10 + $0x20] sm:$0xf] (%p2040_p6), %v1782_v28 }
 0x276   : > { %1301 = vst [vmem:[%s2197_s25 + $0x18] sm:$0xff] %v1285_v20  ;;  %v1288_v21 = vpack.c.bf16 %v1269_v9, %v1269_v9  ;;  %v1181_v58 = vpop.f32.mrf.mxu2 }
 0x277   : > { %v1182_v8 = vadd.f32 %v1181_v58, %v2610_v22  ;;  %v1784_v55 = vld [vmem:[%s2197_s25 + $0x20] sm:$0xf] (%p2040_p6) }
 0x278   : > { %1304 = vst [vmem:[%s2197_s25 + $0x2c] sm:$0xf] %v1288_v21 }
 0x279   : > { %v1210_v3 = vpop.f32.mrf.mxu3  ;;  %v1242_v4 = vpop.f32.mrf.mxu0  ;;  %1785 = vst [vmem:[%s1325_s10 + $0x38] sm:$0xf] (%p2040_p6), %v1784_v55 }
 0x27a   : > { %v1211_v0 = vadd.f32 %v1210_v3, %v1182_v8  ;;  %v1243_v2 = vadd.f32 %v1242_v4, %v2604_v17  ;;  %v1271_v5 = vpop.f32.mrf.mxu1 }
 0x27c   : > { %v1287_v12 = vpack.c.bf16 %v1211_v0, %v1153_v49  ;;  %v1272_v13 = vadd.f32 %v1271_v5, %v1243_v2 }
 0x27e   : > { %1303 = vst [vmem:[%s2197_s25 + $0x24] sm:$0xff] %v1287_v12  ;;  %v1290_v53 = vpack.c.bf16 %v1272_v13, %v1272_v13  ;;  %v1184_v57 = vpop.f32.mrf.mxu2 }
 0x27f   : > { %v1185_v14 = vadd.f32 %v1184_v57, %v2610_v22  ;;  %v1786_v56 = vld [vmem:[%s2197_s25 + $0x2c] sm:$0xf] (%p2040_p6) }
 0x280   : > { %1306 = vst [vmem:[%s2197_s25 + $0x38] sm:$0xf] %v1290_v53 }
 0x281   : > { %v1213_v23 = vpop.f32.mrf.mxu3  ;;  %v1244_v10 = vpop.f32.mrf.mxu0  ;;  %1787 = vst [vmem:[%s1325_s10 + $0x50] sm:$0xf] (%p2040_p6), %v1786_v56 }
 0x282   : > { %v1214_v30 = vadd.f32 %v1213_v23, %v1185_v14  ;;  %v1245_v15 = vadd.f32 %v1244_v10, %v2604_v17  ;;  %v1273_v61 = vpop.f32.mrf.mxu1 }
 0x284   : > { %v1289_v62 = vpack.c.bf16 %v1214_v30, %v2596_v29  ;;  %v1274_v31 = vadd.f32 %v1273_v61, %v1245_v15 }
 0x286   : > { %1305 = vst [vmem:[%s2197_s25 + $0x30] sm:$0xff] %v1289_v62  ;;  %v1292_v63 = vpack.c.bf16 %v1274_v31, %v1274_v31  ;;  %v1186_v32 = vpop.f32.mrf.mxu2 }
 0x287   : > { %v1187_v1 = vadd.f32 %v1186_v32, %v2610_v22  ;;  %v1788_v60 = vld [vmem:[%s2197_s25 + $0x38] sm:$0xf] (%p2040_p6) }
 0x288   : > { %1308 = vst [vmem:[%s2197_s25 + $0x44] sm:$0xf] %v1292_v63 }
 0x289   : > { %v1215_v19 = vpop.f32.mrf.mxu3  ;;  %v1247_v26 = vpop.f32.mrf.mxu0  ;;  %1789 = vst [vmem:[%s1325_s10 + $0x68] sm:$0xf] (%p2040_p6), %v1788_v60 }
 0x28a   : > { %v1216_v25 = vadd.f32 %v1215_v19, %v1187_v1  ;;  %v1248_v6 = vadd.f32 %v1247_v26, %v2604_v17  ;;  %v1276_v7 = vpop.f32.mrf.mxu1 }
 0x28c   : > { %v1291_v24 = vpack.c.bf16 %v1216_v25, %v2599_v11  ;;  %v1277_v27 = vadd.f32 %v1276_v7, %v1248_v6 }
 0x28d   : > { %v1348_v50 = vld [vmem:[%s2197_s25 + $0x30] sm:$0xff] (%p2040_p6) }
 0x28e   : > { %1307 = vst [vmem:[%s2197_s25 + $0x3c] sm:$0xff] %v1291_v24  ;;  %v1294_v29 = vpack.c.bf16 %v1277_v27, %v1277_v27  ;;  %v1189_v33 = vpop.f32.mrf.mxu2 }
 0x28f   : > { %v1190_v34 = vadd.f32 %v1189_v33, %v2610_v22  ;;  %1349 = vst [vmem:[%s1325_s10 + $0x60] sm:$0xff] (%p2040_p6), %v1348_v50  ;;  %v1790_v16 = vld [vmem:[%s2197_s25 + $0x44] sm:$0xf] (%p2040_p6) }
 0x290   : > { %1310 = vst [vmem:[%s2197_s25 + $0x50] sm:$0xf] %v1294_v29 }
 0x291   : > { %v1218_v38 = vpop.f32.mrf.mxu3  ;;  %v1249_v37 = vpop.f32.mrf.mxu0  ;;  %1791 = vst [vmem:[%s1325_s10 + $0x80] sm:$0xf] (%p2040_p6), %v1790_v16 }
 0x292   : > { %v1219_v35 = vadd.f32 %v1218_v38, %v1190_v34  ;;  %v1250_v39 = vadd.f32 %v1249_v37, %v2604_v17  ;;  %v1278_v36 = vpop.f32.mrf.mxu1  ;;  %v1342_v17 = vld [vmem:[%s2197_s25 + $0xc] sm:$0xff] (%p2040_p6) }
 0x293   : > { %1343 = vst [vmem:[%s1325_s10 + $0x18] sm:$0xff] (%p2040_p6), %v1342_v17 }
 0x294   : > { %v1293_v40 = vpack.c.bf16 %v1219_v35, %v2602_v52  ;;  %v1279_v41 = vadd.f32 %v1278_v36, %v1250_v39  ;;  %v1340_v52 = vld [vmem:[%s2197_s25] sm:$0xff] (%p2040_p6) }
 0x295   : > { %1341 = vst [vmem:[%s1325_s10] sm:$0xff] (%p2040_p6), %v1340_v52  ;;  %v1350_v46 = vld [vmem:[%s2197_s25 + $0x3c] sm:$0xff] (%p2040_p6) }
 0x296   : > { %1309 = vst [vmem:[%s2197_s25 + $0x48] sm:$0xff] %v1293_v40  ;;  %v1296_v11 = vpack.c.bf16 %v1279_v41, %v1279_v41  ;;  %v1191_v42 = vpop.f32.mrf.mxu2 }
 0x297   : > { %v1192_v43 = vadd.f32 %v1191_v42, %v2610_v22  ;;  %v1346_v22 = vld [vmem:[%s2197_s25 + $0x24] sm:$0xff] (%p2040_p6)  ;;  %1351 = vst [vmem:[%s1325_s10 + $0x78] sm:$0xff] (%p2040_p6), %v1350_v46  ;;  %v1792_v20 = vld [vmem:[%s2197_s25 + $0x50] sm:$0xf] (%p2040_p6) }
 0x298   : > { %1312 = vst [vmem:[%s2197_s25 + $0x5c] sm:$0xf] %v1296_v11 }
 0x299   : > { %v1220_v44 = vpop.f32.mrf.mxu3  ;;  %1347 = vst [vmem:[%s1325_s10 + $0x48] sm:$0xff] (%p2040_p6), %v1346_v22 }
 0x29a   : > { %v1221_v45 = vadd.f32 %v1220_v44, %v1192_v43  ;;  %1319 = sbr.rel (!%p2040_p6) target bundleno = 679 (0x2a7), region = 74  ;;  %1793 = vst [vmem:[%s1325_s10 + $0x98] sm:$0xf] (%p2040_p6), %v1792_v20 }
 0x29c   : > { %v1295_v48 = vpack.c.bf16 %v1221_v45, %v2607_v59  ;;  %v1344_v59 = vld [vmem:[%s2197_s25 + $0x18] sm:$0xff] (%p2040_p6) }
 0x29d   : > { %1345 = vst [vmem:[%s1325_s10 + $0x30] sm:$0xff] (%p2040_p6), %v1344_v59  ;;  %v1352_v47 = vld [vmem:[%s2197_s25 + $0x48] sm:$0xff] (%p2040_p6) }
 0x29e   : > { %1311 = vst [vmem:[%s2197_s25 + $0x54] sm:$0xff] %v1295_v48 }
 0x29f   : > { %1353 = vst [vmem:[%s1325_s10 + $0x90] sm:$0xff] %v1352_v47  ;;  %v1794_v9 = vld [vmem:[%s2197_s25 + $0x5c] sm:$0xf] }
 0x2a0   : > { %1795 = vst [vmem:[%s1325_s10 + $0xb0] sm:$0xf] %v1794_v9 }
 0x2a5   : > { %v1354_v51 = vld [vmem:[%s2197_s25 + $0x54] sm:$0xff] }
 0x2a6   : > { %1355 = vst [vmem:[%s1325_s10 + $0xa8] sm:$0xff] %v1354_v51 }
 0x2a7 PF: > { %s15_s22 = sadd.s32 1, %s1972_s22   ;;  %s2695_s18 = smov %s1960_s19 }
 0x2a8   : > { %p12_p13 = scmp.ge.s32.totalorder %s15_s22, 4   ;;  %s2696_s19 = smov %s2045_s28 }
 0x2a9   : > { %s2697_s20 = smov %s1968_s21  ;;  %s2698_s21 = smov %s2700_s23 }
 0x2aa   :  { %14 = sbr.rel (!%p12_p13) target bundleno = 3 (0x3), region = 149 }

// kernel: _lambda_.9
= control target key start
LH: loop header
LB: loop body
LE: loop exit
PB: predicated region body
PF: predicated region fallthrough
CT: control target
= control target key end

     0   :  { %s1995_s0 = inlined_call_operand.vmem [shape: bf16[2,32,768], index: 0, kind: input, shape index: {}, may-alias: {0,1,2}]   ;;  %s1996_s1 = inlined_call_operand.vmem [shape: bf16[2,32,768], index: 1, kind: input, shape index: {}, may-alias: {0,1,2}]   ;;  %s1997_s2 = inlined_call_operand.vmem [shape: bf16[2,32,768], index: 2, kind: input, shape index: {}, may-alias: {0,1,2}]   ;;  %s1998_s3 = inlined_call_operand.vmem [shape: bf16[256,256], index: 3, kind: input, shape index: {}]   ;;  %s1999_s4 = inlined_call_operand.vmem [shape: f32[1,256], index: 4, kind: input, shape index: {}]   ;;  %s2000_s5 = inlined_call_operand.vmem [shape: bf16[2,32,256], index: 5, kind: input, shape index: {}]   ;;  %s2001_s6 = inlined_call_operand.vmem [shape: bf16[2,32,256], index: 6, kind: output, shape index: {}]  }
   0x1   :  { %2005 = sst [smem:[#allocation12_spill]] %s1995_s0 }
   0x2   :  { %2006 = sst [smem:[#allocation13_spill]] %s1996_s1 }
   0x3   :  { %2007 = sst [smem:[#allocation14_spill]] %s1997_s2 }
   0x4   :  { %2008 = sst [smem:[#allocation15_spill]] %s1998_s3 }
   0x5   :  { %2009 = sst [smem:[#allocation16_spill]] %s1999_s4 }
   0x6   :  { %2010 = sst [smem:[#allocation17_spill]] %s2000_s5 }
   0x7   :  { %2011 = sst [smem:[#allocation18_spill]] %s2001_s6 }
   0x8   :  { %s1698_s21 = smov 0   ;;  %s1700_s22 = smov 0  }
   0x9   :  { %s1702_s23 = smov 0   ;;  %s1704_s24 = smov 0  }
   0xa   :  { %s1706_s25 = smov 0   ;;  %s1708_s26 = smov 0  }
   0xb   :  { %s1710_s27 = smov 0   ;;  %s1712_s28 = smov 0  }
   0xc   :  { %s1714_s29 = smov 0   ;;  %s1716_s30 = smov 0  }
   0xd   :  { %s1718_s7 = smov 0  }
   0xe LB: > { %2012 = sst [smem:[#allocation9_spill]] %s1645_s28  ;;  %s34_s8 = sadd.s32 1, %s1649_s29  ;;  %s1657_s7 = sphi %s1718_s7, %s16_s7   ;;  %s1653_s30 = sphi %s1716_s30, %s2037_s30   ;;  %s1649_s29 = sphi %s1714_s29, %s2036_s29   ;;  %s1645_s28 = sphi %s1712_s28, %s2035_s28   ;;  %s1641_s27 = sphi %s1710_s27, %s2034_s27   ;;  %s1637_s26 = sphi %s1708_s26, %s2033_s26   ;;  %s1633_s25 = sphi %s1706_s25, %s2032_s25   ;;  %s1629_s24 = sphi %s1704_s24, %s2031_s24   ;;  %s1625_s23 = sphi %s1702_s23, %s2030_s23   ;;  %s1621_s22 = sphi %s1700_s22, %s2029_s22   ;;  %s1617_s21 = sphi %s1698_s21, %s2028_s21  }
   0xf   : > { %s42_s9 = sadd.s32 1, %s1653_s30  ;;  %p36_p0 = scmp.ge.s32.totalorder %s34_s8, 2 }
  0x10   : > { %s53_s10 = sadd.s32 1, %s1637_s26  ;;  %p60_p1 = scmp.ne.s32.totalorder %s1637_s26, %s1633_s25 }
  0x11   : > { %p61_p2 = scmp.eq.s32.totalorder %s1657_s7, 0  ;;  %s2039_s8 = smov (%p36_p0, %s34_s8), 0 }
  0x12   : > { %2013 = sst [smem:[#allocation10_spill]] %s2039_s8  ;;  %s2041_s9 = smov (!%p36_p0, %s42_s9), %s1653_s30 }
  0x13   : > { %s49_s11 = ssub.s32 %s1649_s29, %s2039_s8  ;;  %p1766_p3 = por %p61_p2, %p60_p1 }
  0x14   : > { %p44_p4 = scmp.ge.s32.totalorder %s2041_s9, 2  ;;  %s76_s13 = sadd.s32 2, %s1649_s29 }
  0x15   : > { %s77_s14 = sadd.s32 2, %s2039_s8  ;;  %s85_s15 = sadd.s32 1, %s1629_s24 }
  0x16   : > { %s2043_s9 = smov (%p44_p4, %s2041_s9), 0  ;;  %s81_s16 = ssub.s32 %s76_s13, %s77_s14 }
  0x17   : > { %2015 = sst [smem:[#allocation11_spill]] %s2043_s9  ;;  %p92_p5 = scmp.ne.s32.totalorder %s1629_s24, %s1625_s23 }
  0x18   : > { %s46_s17 = ssub.s32 %s1653_s30, %s2043_s9  ;;  %s108_s18 = sadd.s32 4, %s1649_s29 }
  0x19   : > { %s50_s19 = sor.u32 %s49_s11, %s46_s17  ;;  %s82_s20 = sor.u32 %s81_s16, %s46_s17 }
  0x1a   : > { %p51_p6 = scmp.eq.s32.totalorder %s50_s19, 0  ;;  %p83_p7 = scmp.eq.s32.totalorder %s82_s20, 0 }
  0x1b   : > { %p1782_p8 = por %p92_p5, %p61_p2  ;;  %s109_s6 = sadd.s32 4, %s2039_s8 }
  0x1c   : > { %s1788_s5 = scalar_select %p51_p6, %s1637_s26, %s53_s10  }
  0x1d   : > { %s1791_s3 = scalar_select %p83_p7, %s1629_s24, %s85_s15  }
  0x1e   : > { %s113_s13 = ssub.s32 %s108_s18, %s109_s6  ;;  %s117_s14 = sadd.s32 1, %s1621_s22 }
  0x1f   : > { %s114_s28 = sor.u32 %s113_s13, %s46_s17  ;;  %p124_p9 = scmp.ne.s32.totalorder %s1621_s22, %s1617_s21 }
  0x20   : > { %p115_p10 = scmp.eq.s32.totalorder %s114_s28, 0  ;;  %p1297_p12 = scmp.ge.s32.totalorder %s1657_s7, 4 }
  0x21   : > { %p1798_p11 = por %p124_p9, %p61_p2 }
  0x22   : > { %s1803_s16 = scalar_select %p115_p10, %s1621_s22, %s117_s14  }
  0x23   : > { %256 = sbr.rel (%p1297_p12) target bundleno = 82 (0x52), region = 20 }
  0x28   : > { %259 = sbr.rel (!%p1766_p3) target bundleno = 54 (0x36), region = 24  ;;  %s261_s6 = sand.u32 (%p1766_p3), 1, %s1637_s26  }
  0x29   : > { %s1451_s10 = smul.u32 (%p1766_p3), 24, %s1653_s30  ;;  %s1298_s15 = sshll.u32 (%p1766_p3), %s261_s6, 4 }
  0x2a   : > { %s2018_s0 = sld [smem:[#allocation12_spill]] (%p1766_p3)  ;;  %s263_s13 = scalar_lea.vmem (%p1766_p3), [#allocation6], %s1298_s15 }
  0x2b   : > { %s268_s28 = sadd.s32 (%p1766_p3), %s1649_s29, %s1451_s10 }
  0x2c   : > { %s1299_s17 = sshll.u32 (%p1766_p3), %s268_s28, 2 }
  0x30   : > { %s270_s20 = scalar_lea.vmem %s2018_s0, %s1299_s17 }
  0x31   : > { %v287_v0 = vld [vmem:[%s270_s20] sm:$0xf]  ;;  %v289_v1 = vld [vmem:[%s270_s20 + $0x18] sm:$0xf]  ;;  %v291_v2 = vld [vmem:[%s270_s20 + $0x30] sm:$0xf] }
  0x32   : > { %288 = vst [vmem:[%s263_s13] sm:$0xf] %v287_v0  ;;  %v293_v3 = vld [vmem:[%s270_s20 + $0x48] sm:$0xf] }
  0x33   : > { %290 = vst [vmem:[%s263_s13 + $0x4] sm:$0xf] %v289_v1 }
  0x34   : > { %292 = vst [vmem:[%s263_s13 + $0x8] sm:$0xf] %v291_v2 }
  0x35   : > { %294 = vst [vmem:[%s263_s13 + $0xc] sm:$0xf] %v293_v3 }
  0x36 PF: > { %326 = sbr.rel (!%p1782_p8) target bundleno = 68 (0x44), region = 65  ;;  %s328_s12 = sand.u32 (%p1782_p8), 1, %s1629_s24  }
  0x37   : > { %s1153_s14 = smul.u32 (%p1782_p8), 24, %s1653_s30  ;;  %s1300_s6 = sshll.u32 (%p1782_p8), %s328_s12, 4 }
  0x38   : > { %s2019_s1 = sld [smem:[#allocation13_spill]] (%p1782_p8)  ;;  %s330_s19 = scalar_lea.vmem (%p1782_p8), [#allocation7], %s1300_s6 }
  0x39   : > { %s1154_s10 = sadd.s32 (%p1782_p8), %s1649_s29, %s1153_s14 }
  0x3a   : > { %s1301_s28 = sshll.u32 (%p1782_p8), %s1154_s10, 2 }
  0x3e   : > { %s1156_s15 = scalar_lea.vmem %s2019_s1, %s1301_s28 }
  0x3f   : > { %v1302_v4 = vld [vmem:[%s1156_s15 + $0x8] sm:$0xf]  ;;  %v1303_v5 = vld [vmem:[%s1156_s15 + $0x20] sm:$0xf]  ;;  %v1304_v6 = vld [vmem:[%s1156_s15 + $0x38] sm:$0xf] }
  0x40   : > { %356 = vst [vmem:[%s330_s19] sm:$0xf] %v1302_v4  ;;  %v1305_v7 = vld [vmem:[%s1156_s15 + $0x50] sm:$0xf] }
  0x41   : > { %358 = vst [vmem:[%s330_s19 + $0x4] sm:$0xf] %v1303_v5 }
  0x42   : > { %360 = vst [vmem:[%s330_s19 + $0x8] sm:$0xf] %v1304_v6 }
  0x43   : > { %362 = vst [vmem:[%s330_s19 + $0xc] sm:$0xf] %v1305_v7 }
  0x44 PF: > { %394 = sbr.rel (!%p1798_p11) target bundleno = 82 (0x52), region = 106  ;;  %s396_s4 = sand.u32 (%p1798_p11), 1, %s1621_s22  }
  0x45   : > { %s1162_s20 = smul.u32 (%p1798_p11), 24, %s1653_s30  ;;  %s1306_s13 = sshll.u32 (%p1798_p11), %s396_s4, 4 }
  0x46   : > { %s2020_s2 = sld [smem:[#allocation14_spill]] (%p1798_p11)  ;;  %s398_s17 = scalar_lea.vmem (%p1798_p11), [#allocation8], %s1306_s13 }
  0x47   : > { %s1163_s12 = sadd.s32 (%p1798_p11), %s1649_s29, %s1162_s20 }
  0x48   : > { %s1307_s14 = sshll.u32 (%p1798_p11), %s1163_s12, 2 }
  0x4c   : > { %s1165_s6 = scalar_lea.vmem %s2020_s2, %s1307_s14 }
  0x4d   : > { %v1308_v8 = vld [vmem:[%s1165_s6 + $0x10] sm:$0xf]  ;;  %v1309_v9 = vld [vmem:[%s1165_s6 + $0x28] sm:$0xf]  ;;  %v1310_v10 = vld [vmem:[%s1165_s6 + $0x40] sm:$0xf] }
  0x4e   : > { %424 = vst [vmem:[%s398_s17] sm:$0xf] %v1308_v8  ;;  %v1311_v11 = vld [vmem:[%s1165_s6 + $0x58] sm:$0xf] }
  0x4f   : > { %426 = vst [vmem:[%s398_s17 + $0x4] sm:$0xf] %v1309_v9 }
  0x50   : > { %428 = vst [vmem:[%s398_s17 + $0x8] sm:$0xf] %v1310_v10 }
  0x51   : > { %430 = vst [vmem:[%s398_s17 + $0xc] sm:$0xf] %v1311_v11 }
  0x52 PF: > { %p1312_p13 = scmp.ge.s32.totalorder %s1657_s7, 1  ;;  %p485_p0 = scmp.lt.s32.totalorder %s1657_s7, 5 }
  0x54   : > { %p486_p1 = pnand %p1312_p13, %p485_p0 }
  0x55   : > { %s2021_s11 = sld [smem:[#allocation9_spill]] (!%p486_p1)  ;;  %s492_s18 = sand.u32 (!%p486_p1), 1, %s1633_s25  }
  0x56   : > { %489 = sbr.rel (%p486_p1) target bundleno = 916 (0x394), region = 155  ;;  %s499_s15 = sand.u32 (!%p486_p1), 1, %s1625_s23  }
  0x57   : > { %s1834_s19 = sshll.u32 (!%p486_p1), %s492_s18, 4  ;;  %s1836_s4 = sshll.u32 (!%p486_p1), %s499_s15, 4 }
  0x58   : > { %s506_s20 = sand.u32 (!%p486_p1), 1, %s1617_s21   ;;  %s1316_s13 = sshll.u32 (!%p486_p1), %s1641_s27, 4 }
  0x59   : > { %s1840_s12 = sshll.u32 (!%p486_p1), %s506_s20, 4  ;;  %p570_p2 = scmp.lt.s32.totalorder (!%p486_p1), %s1316_s13, 31 }
  0x5a   : > { %p599_p4 = scmp.eq.s32.totalorder (!%p486_p1), %s1641_s27, 0  ;;  %s2022_s23 = sld [smem:[#allocation15_spill]] (!%p486_p1) }
  0x5b   : > { %p577_p3 = scmp.lt.s32.totalorder %s2021_s11, 1  ;;  %s2045_s13 = smov (!%p570_p2, %s1316_s13), 31  ;;  %v1659_v12 = vmov (%p599_p4), 0.0  }
  0x5c   : > { %s1409_s14 = sshll.u32 %s2045_s13, 3  ;;  %s2023_s15 = sld [smem:[#allocation17_spill]]  ;;  %605 = vst [vmem:[#allocation5 + $0x30] sm:$0xff] (%p599_p4), %v1659_v12 }
  0x5d   : > { %s2047_s11 = smov (!%p577_p3, %s2021_s11), 1  ;;  %s2024_s1 = sld [smem:[#allocation18_spill]]  ;;  %606 = vst [vmem:[#allocation5] sm:$0xff] (%p599_p4), %v1659_v12 }
  0x5e   : > { %s1410_s6 = sshll.u32 %s2047_s11, 5  ;;  %s494_s9 = scalar_lea.vmem [#allocation6], %s1834_s19  ;;  %607 = vst [vmem:[#allocation5 + $0x18] sm:$0xff] (%p599_p4), %v1659_v12 }
  0x5f   : > { %s501_s8 = scalar_lea.vmem [#allocation7], %s1836_s4  ;;  %s508_s13 = scalar_lea.vmem [#allocation8], %s1840_s12  ;;  %608 = vst [vmem:[#allocation5 + $0x10] sm:$0xff] (%p599_p4), %v1659_v12 }
  0x60   : > { %s1848_s28 = scalar_lea.vmem %s2022_s23, %s1409_s14  ;;  %604 = sbr.rel (!%p599_p4) target bundleno = 101 (0x65), region = 171  ;;  %609 = vst [vmem:[#allocation5 + $0x8] sm:$0xff] (%p599_p4), %v1659_v12 }
  0x61   : > { %610 = vst [vmem:[#allocation5 + $0x20] sm:$0xff] (%p599_p4), %v1659_v12 }
  0x62   : > { %s1853_s21 = scalar_lea.vmem %s2023_s15, %s1410_s6  ;;  %611 = vst [vmem:[#allocation5 + $0x28] sm:$0xff] (%p599_p4), %v1659_v12 }
  0x63   : > { %s1858_s2 = scalar_lea.vmem %s2024_s1, %s1410_s6  ;;  %612 = vst [vmem:[#allocation5 + $0x38] sm:$0xff] (%p599_p4), %v1659_v12 }
  0x65 PF: > { %v1414_v13 = vld [vmem:[%s501_s8 + $0x8] sm:$0xff]  ;;  %v1435_v14 = vld [vmem:[%s494_s9] sm:$0xff]   ;;  %vm682_vm0 = vcmask 261120   ;;  %vm616_vm1 = vcmask 7168   ;;  %v1660_v35 = vmov -inf   ;;  %v1661_v36 = vmov 0  }
  0x66   : > { %665 = vmatpush.bf16.xpose.msra.mxu0 %v1414_v13  ;;  %v1436_v15 = vunpack.c.l.bf16 %v1435_v14  ;;  %v1437_v16 = vunpack.c.h.bf16 %v1435_v14  ;;  %v1413_v17 = vld [vmem:[%s501_s8] sm:$0xff]  ;;  %v1442_v21 = vld [vmem:[%s494_s9 + $0x8] sm:$0xff]   ;;  %617 = vst.msk [vmem:[#allocation2] sm:$0xff] %vm616_vm1, %v1660_v35  ;;  %1544 = vset.pattern.permute.xlu2 %v1661_v36  ;;  %v1662_v37 = vmov 0.0   ;;  %p1054_p5 = scmp.eq.s32.totalorder %s1641_s27, 1 }
  0x67   : > { %v1440_v22 = vunpack.c.l.bf16 %v1442_v21  ;;  %v1441_v23 = vunpack.c.h.bf16 %v1442_v21  ;;  %618 = vst.msk [vmem:[#allocation2 + $0x8] sm:$0xff] %vm616_vm1, %v1660_v35  ;;  %1545 = vset.pattern.permute.xlu0 %v1661_v36  ;;  %1546 = vset.pattern.permute.xlu1 %v1661_v36  ;;  %v1416_v54 = vld [vmem:[%s508_s13 + $0x8] sm:$0xff]  ;;  %v1415_v55 = vld [vmem:[%s508_s13] sm:$0xff]  ;;  %s2025_s8 = sld [smem:[#allocation16_spill]] (%p1054_p5) }
  0x68   : > { %v637_v18 = vmul.f32 0.088378906, %v1436_v15  ;;  %v638_v19 = vmul.f32 0.088378906, %v1437_v16  ;;  %619 = vst.msk [vmem:[#allocation2 + $0x10] sm:$0xff] %vm616_vm1, %v1660_v35  ;;  %830 = vmatpush.bf16.msra.mxu1 %v1416_v54  ;;  %v1386_v54 = vld [vmem:[%s1848_s28 + $0x58] sm:$0xf0] }
  0x69   : > { %v639_v24 = vmul.f32 0.088378906, %v1440_v22  ;;  %v640_v25 = vmul.f32 0.088378906, %v1441_v23  ;;  %620 = vst.msk [vmem:[#allocation2 + $0x18] sm:$0xff] %vm616_vm1, %v1660_v35 }
  0x6a   : > { %v641_v20 = vpack.c.bf16 %v638_v19, %v637_v18  ;;  %621 = vst.msk [vmem:[#allocation3] sm:$0xff] %vm616_vm1, %v1662_v37 }
  0x6b   : > { %v642_v26 = vpack.c.bf16 %v640_v25, %v639_v24  ;;  %622 = vst.msk [vmem:[#allocation3 + $0x8] sm:$0xff] %vm616_vm1, %v1662_v37 }
  0x6c   : > { %623 = vst.msk [vmem:[#allocation3 + $0x10] sm:$0xff] %vm616_vm1, %v1662_v37  ;;  %831 = vmatpush.bf16.msra.mxu1 %v1415_v55 }
  0x6d   : > { %624 = vst.msk [vmem:[#allocation3 + $0x18] sm:$0xff] %vm616_vm1, %v1662_v37  ;;  %v678_v38 = vld [vmem:[#allocation2] sm:$0xff] }
  0x6e   : > { %666 = vmatpush.bf16.xpose.msra.mxu0 %v1413_v17  ;;  %v679_v42 = vld [vmem:[#allocation2 + $0x8] sm:$0xff] }
  0x6f   : > { %v680_v46 = vld [vmem:[#allocation2 + $0x10] sm:$0xff] }
  0x70   : > { %v1884_v50 = vld [vmem:[#allocation2 + $0x18] sm:$0xff] }
  0x72   : > { %v744_v24 = vld [vmem:[#allocation3 + $0x8] sm:$0xff] }
  0x75   : > { %667 = vmatmul.bf16.vlgmr.msra.gmra.mxu0 %v641_v20  ;;  %v743_v20 = vld [vmem:[#allocation3] sm:$0xff] }
  0x85   : > { %672 = vmatmul.bf16.gmra.mxu0 %v642_v26 }
  0xf2   : > { %v668_v27 = vpop.f32.mrf.mxu0 }
  0xf3   : > { %v683_v28 = vsel %vm682_vm0, %v668_v27, -inf }
  0xf4   : > { %684 = vmax.xlane.f32.xlu0 %v683_v28 }
  0xfa   : > { %v670_v29 = vpop.f32.mrf.mxu0 }
  0xfb   : > { %v686_v30 = vsel %vm682_vm0, %v670_v29, -inf }
  0xfc   : > { %687 = vmax.xlane.f32.xlu0 %v686_v30 }
 0x102   : > { %v1865_v31 = vpop.f32.mrf.mxu0 }
 0x103   : > { %v689_v32 = vsel %vm682_vm0, %v1865_v31, -inf }
 0x104   : > { %690 = vmax.xlane.f32.xlu1 %v689_v32 }
 0x10a   : > { %v1869_v33 = vpop.f32.mrf.mxu0 }
 0x10b   : > { %v692_v34 = vsel %vm682_vm0, %v1869_v33, -inf }
 0x10c   : > { %693 = vmax.xlane.f32.xlu1 %v692_v34  ;;  %v745_v34 = vld [vmem:[#allocation3 + $0x10] sm:$0xff] }
 0x167   : > { %v685_v39 = vpop.xlane.xlu0 %684 }
 0x168   : > { %v695_v40 = vmax.f32 %v678_v38, %v685_v39  ;;  %v1400_v39 = vld [vmem:[%s1848_s28 + $0x70] sm:$0xf] }
 0x16a   : > { %v699_v41 = vsub.f32 %v678_v38, %v695_v40  ;;  %851 = vst.msk [vmem:[#allocation2] sm:$0xff] %vm616_vm1, %v695_v40  ;;  %713 = vperm.xlu2 %1544, %v695_v40   ;;  %v1432_v40 = vld [vmem:[%s1848_s28 + $0x74] sm:$0xf0] }
 0x16c   : > { %v703_v3 = vmul.f32 1.442695, %v699_v41  ;;  %v1431_v41 = vld [vmem:[%s1848_s28 + $0x74] sm:$0xf] }
 0x16f   : > { %v688_v43 = vpop.xlane.xlu0 %687 }
 0x170   : > { %v696_v44 = vmax.f32 %v679_v42, %v688_v43  ;;  %v1402_v43 = vld [vmem:[%s1848_s28 + $0x78] sm:$0xf0] }
 0x172   : > { %v700_v45 = vsub.f32 %v679_v42, %v696_v44  ;;  %852 = vst.msk [vmem:[#allocation2 + $0x8] sm:$0xff] %vm616_vm1, %v696_v44  ;;  %718 = vperm.xlu2 %1544, %v696_v44   ;;  %v1401_v42 = vor.u32 %v1432_v40, %v1400_v39  ;;  %v1392_v44 = vld [vmem:[%s1848_s28 + $0x60] sm:$0xf] }
 0x174   : > { %v705_v4 = vmul.f32 1.442695, %v700_v45  ;;  %v1430_v45 = vld [vmem:[%s1848_s28 + $0x64] sm:$0xf0]  ;;  %1000 = vmatpush.bf16.msrb.mxu1 %v1401_v42  ;;  %1443 = vmatpush.bf16.msra.mxu2 %v1401_v42 }
 0x177   : > { %v691_v47 = vpop.xlane.xlu1 %690 }
 0x178   : > { %v697_v48 = vmax.f32 %v680_v46, %v691_v47  ;;  %v1429_v47 = vld [vmem:[%s1848_s28 + $0x64] sm:$0xf] }
 0x17a   : > { %v701_v49 = vsub.f32 %v680_v46, %v697_v48  ;;  %853 = vst.msk [vmem:[#allocation2 + $0x10] sm:$0xff] %vm616_vm1, %v697_v48  ;;  %723 = vperm.xlu0 %1545, %v697_v48   ;;  %v1405_v46 = vor.u32 %v1431_v41, %v1402_v43  ;;  %v1394_v48 = vld [vmem:[%s1848_s28 + $0x68] sm:$0xf0] }
 0x17c   : > { %v707_v17 = vmul.f32 1.442695, %v701_v49  ;;  %v1393_v49 = vor.u32 %v1430_v45, %v1392_v44  ;;  %1019 = vmatpush.bf16.msra.mxu3 %v1405_v46 }
 0x17e   : > { %1001 = vmatpush.bf16.msrb.mxu1 %v1393_v49  ;;  %1444 = vmatpush.bf16.msra.mxu2 %v1393_v49 }
 0x17f   : > { %v694_v51 = vpop.xlane.xlu1 %693 }
 0x180   : > { %v1887_v52 = vmax.f32 %v1884_v50, %v694_v51  ;;  %v1384_v51 = vld [vmem:[%s1848_s28 + $0x50] sm:$0xf] }
 0x182   : > { %v702_v53 = vsub.f32 %v1884_v50, %v1887_v52  ;;  %854 = vst.msk [vmem:[#allocation2 + $0x18] sm:$0xff] %vm616_vm1, %v1887_v52  ;;  %728 = vperm.xlu1 %1546, %v1887_v52   ;;  %v1397_v50 = vor.u32 %v1429_v47, %v1394_v48  ;;  %v1428_v52 = vld [vmem:[%s1848_s28 + $0x54] sm:$0xf0] }
 0x184   : > { %1020 = vmatpush.bf16.msra.mxu3 %v1397_v50 }
 0x1c4   : > { %v714_v56 = vpop.permute.xlu2 %713 }
 0x1c5   : > { %v731_v57 = vsub.f32 %v668_v27, %v714_v56 }
 0x1c7   : > { %v735_v58 = vmul.f32 1.442695, %v731_v57  ;;  %v1385_v57 = vor.u32 %v1428_v52, %v1384_v51 }
 0x1c9   : > { %1547 = vpow2.f32 %v735_v58  ;;  %1002 = vmatpush.bf16.msrb.mxu1 %v1385_v57  ;;  %1445 = vmatpush.bf16.msra.mxu2 %v1385_v57 }
 0x1cc   : > { %v719_v59 = vpop.permute.xlu2 %718 }
 0x1cd   : > { %v732_v60 = vsub.f32 %v670_v29, %v719_v59  ;;  %v1376_v59 = vld [vmem:[%s1848_s28 + $0x40] sm:$0xf] }
 0x1cf   : > { %v1548_v61 = vpop.eup %1547  ;;  %v737_v62 = vmul.f32 1.442695, %v732_v60  ;;  %v1426_v60 = vld [vmem:[%s1848_s28 + $0x44] sm:$0xf0] }
 0x1d0   : > { %v751_v63 = vsel %vm682_vm0, %v1548_v61, 0.0 }
 0x1d1   : > { %1549 = vpow2.f32 %v737_v62  ;;  %752 = vadd.xlane.f32.xlu2 %v751_v63  ;;  %v1378_v62 = vld [vmem:[%s1848_s28 + $0x48] sm:$0xf0]  ;;  %v746_v63 = vld [vmem:[#allocation3 + $0x18] sm:$0xff] }
 0x1d2   : > { %1551 = vpow2.f32 %v703_v3  ;;  %v1424_v3 = vld [vmem:[%s1848_s28 + $0x34] sm:$0xf0] }
 0x1d3   : > { %1553 = vpow2.f32 %v705_v4 }
 0x1d7   : > { %v1550_v0 = vpop.eup %1549 }
 0x1d8   : > { %v754_v1 = vsel %vm682_vm0, %v1550_v0, 0.0  ;;  %v800_v2 = vpack.c.bf16 %v1550_v0, %v1548_v61  ;;  %v1552_v5 = vpop.eup %1551  ;;  %v1425_v61 = vld [vmem:[%s1848_s28 + $0x44] sm:$0xf]  ;;  %v1377_v0 = vor.u32 %v1426_v60, %v1376_v59 }
 0x1d9   : > { %755 = vadd.xlane.f32.xlu1 %v754_v1  ;;  %v1554_v9 = vpop.eup %1553  ;;  %v747_v21 = vmul.f32 %v1552_v5, %v743_v20  ;;  %v1381_v1 = vor.u32 %v1425_v61, %v1378_v62  ;;  %v1419_v20 = vld [vmem:[%s1848_s28 + $0x14] sm:$0xf]  ;;  %v895_v59 = vld [vmem:[#allocation5] sm:$0xff]  ;;  %v896_v61 = vld [vmem:[#allocation5 + $0x18] sm:$0xff] }
 0x1da   : > { %1340 = vmatmul.msk.bf16.vlgmr.msra.gmra.mxu1 %vm682_vm0, %v800_v2  ;;  %v748_v25 = vmul.f32 %v1554_v9, %v744_v24  ;;  %v1368_v2 = vld [vmem:[%s1848_s28 + $0x30] sm:$0xf]  ;;  %1446 = vmatpush.bf16.msra.mxu2 %v1377_v0 }
 0x1db   : > { %1003 = vmatpush.bf16.msrb.mxu1 %v1377_v0 }
 0x1e9   : > { %778 = vperm.xlu2 %1544, %v1552_v5   ;;  %v1423_v5 = vld [vmem:[%s1848_s28 + $0x34] sm:$0xf] }
 0x1ec   : > { %v724_v6 = vpop.permute.xlu0 %723 }
 0x1ed   : > { %v733_v7 = vsub.f32 %v1865_v31, %v724_v6  ;;  %v709_v31 = vmul.f32 1.442695, %v702_v53  ;;  %v1427_v53 = vld [vmem:[%s1848_s28 + $0x54] sm:$0xf]  ;;  %v1370_v6 = vld [vmem:[%s1848_s28 + $0x38] sm:$0xf0] }
 0x1ee   : > { %v1389_v58 = vor.u32 %v1427_v53, %v1386_v54 }
 0x1ef   : > { %v739_v8 = vmul.f32 1.442695, %v733_v7 }
 0x1f0   : > { %1021 = vmatpush.bf16.msra.mxu3 %v1389_v58 }
 0x1f1   : > { %1555 = vpow2.f32 %v739_v8 }
 0x1f2   : > { %783 = vperm.xlu1 %1546, %v1554_v9   ;;  %v1369_v9 = vor.u32 %v1424_v3, %v1368_v2 }
 0x1f4   : > { %v729_v10 = vpop.permute.xlu1 %728  ;;  %1022 = vmatpush.bf16.msra.mxu3 %v1381_v1  ;;  %1004 = vmatpush.bf16.msrb.mxu1 %v1369_v9  ;;  %v897_v1 = vld [vmem:[#allocation5 + $0x10] sm:$0xff] }
 0x1f5   : > { %v734_v11 = vsub.f32 %v1869_v33, %v729_v10  ;;  %v1373_v10 = vor.u32 %v1423_v5, %v1370_v6  ;;  %1447 = vmatpush.bf16.msra.mxu2 %v1369_v9  ;;  %v899_v5 = vld [vmem:[#allocation5 + $0x20] sm:$0xff] }
 0x1f7   : > { %v1556_v12 = vpop.eup %1555  ;;  %v741_v13 = vmul.f32 1.442695, %v734_v11 }
 0x1f8   : > { %v757_v14 = vsel %vm682_vm0, %v1556_v12, 0.0  ;;  %1023 = vmatpush.bf16.msra.mxu3 %v1373_v10  ;;  %v900_v10 = vld [vmem:[#allocation5 + $0x28] sm:$0xff] }
 0x1f9   : > { %1557 = vpow2.f32 %v741_v13  ;;  %758 = vadd.xlane.f32.xlu0 %v757_v14  ;;  %v1422_v13 = vld [vmem:[%s1848_s28 + $0x24] sm:$0xf0] }
 0x1fa   : > { %1559 = vpow2.f32 %v707_v17 }
 0x1ff   : > { %v1558_v15 = vpop.eup %1557 }
 0x200   : > { %v801_v16 = vpack.c.bf16 %v1558_v15, %v1556_v12  ;;  %v1560_v18 = vpop.eup %1559  ;;  %v760_v19 = vsel %vm682_vm0, %v1558_v15, 0.0  ;;  %v1360_v12 = vld [vmem:[%s1848_s28 + $0x20] sm:$0xf]  ;;  %v1421_v15 = vld [vmem:[%s1848_s28 + $0x24] sm:$0xf] }
 0x201   : > { %v749_v35 = vmul.f32 %v1560_v18, %v745_v34  ;;  %v1361_v14 = vor.u32 %v1422_v13, %v1360_v12 }
 0x202   : > { %1341 = vmatmul.msk.bf16.gmra.mxu1 %vm682_vm0, %v801_v16  ;;  %v1362_v16 = vld [vmem:[%s1848_s28 + $0x28] sm:$0xf0] }
 0x203   : > { %v1365_v17 = vor.u32 %v1421_v15, %v1362_v16  ;;  %1005 = vmatpush.bf16.msrb.mxu1 %v1361_v14  ;;  %1448 = vmatpush.bf16.msra.mxu2 %v1361_v14 }
 0x205   : > { %1024 = vmatpush.bf16.msra.mxu3 %v1365_v17 }
 0x20d   : > { %788 = vperm.xlu0 %1545, %v1560_v18   ;;  %v1352_v18 = vld [vmem:[%s1848_s28 + $0x10] sm:$0xf] }
 0x212   : > { %761 = vadd.xlane.f32.xlu2 %v760_v19  ;;  %v1420_v19 = vld [vmem:[%s1848_s28 + $0x14] sm:$0xf0] }
 0x244   : > { %v753_v22 = vpop.xlane.xlu2 %752 }
 0x245   : > { %v763_v23 = vadd.f32 %v753_v22, %v747_v21  ;;  %v1353_v21 = vor.u32 %v1420_v19, %v1352_v18  ;;  %v1354_v22 = vld [vmem:[%s1848_s28 + $0x18] sm:$0xf0]  ;;  %v1067_v18 = vld [vmem:[%s2025_s8] sm:$0x3] (%p1054_p5) }
 0x246   : > { %v1069_v19 = vperm.slane (%p1054_p5), %v1067_v18, 0 }
 0x247   : > { %768 = vst.msk [vmem:[#allocation3] sm:$0xff] %vm616_vm1, %v763_v23  ;;  %v1357_v23 = vor.u32 %v1419_v20, %v1354_v22  ;;  %1006 = vmatpush.bf16.msrb.mxu1 %v1353_v21  ;;  %1449 = vmatpush.bf16.msra.mxu2 %v1353_v21  ;;  %v1070_v20 = vperm.slane (%p1054_p5), %v1067_v18, 1  ;;  %v1081_v21 = vld [vmem:[%s1853_s21] sm:$0xff] (%p1054_p5) }
 0x249   : > { %1025 = vmatpush.bf16.msra.mxu3 %v1357_v23 }
 0x24c   : > { %v756_v26 = vpop.xlane.xlu1 %755  ;;  %v1924_v56 = vpop.permute.xlu2 %778 }
 0x24d   : > { %v764_v27 = vadd.f32 %v756_v26, %v748_v25  ;;  %v1344_v25 = vld [vmem:[%s1848_s28] sm:$0xf]  ;;  %v1418_v26 = vld [vmem:[%s1848_s28 + $0x4] sm:$0xf0] }
 0x24e   : > { %v862_v28 = vld [vmem:[#allocation3] sm:$0xff] }
 0x24f   : > { %769 = vst.msk [vmem:[#allocation3 + $0x8] sm:$0xff] %vm616_vm1, %v764_v27  ;;  %1561 = vrcp.f32 %v862_v28  ;;  %v1417_v27 = vld [vmem:[%s1848_s28 + $0x4] sm:$0xf]  ;;  %v1345_v28 = vor.u32 %v1418_v26, %v1344_v25  ;;  %v1086_v25 = vunpack.c.h.bf16 (%p1054_p5), %v1081_v21  ;;  %v1082_v26 = vld [vmem:[%s1853_s21 + $0x8] sm:$0xff] (%p1054_p5) }
 0x251   : > { %1007 = vmatpush.bf16.msrb.mxu1 %v1345_v28  ;;  %1450 = vmatpush.bf16.msra.mxu2 %v1345_v28 }
 0x255   : > { %v1562_v29 = vpop.eup %1561 }
 0x256   : > { %872 = vperm.xlu2 %1544, %v1562_v29   ;;  %v863_v30 = vld [vmem:[#allocation3 + $0x8] sm:$0xff] }
 0x257   : > { %1563 = vrcp.f32 %v863_v30  ;;  %v1346_v29 = vld [vmem:[%s1848_s28 + $0x8] sm:$0xf0] }
 0x258   : > { %1565 = vpow2.f32 %v709_v31  ;;  %v1349_v30 = vor.u32 %v1417_v27, %v1346_v29  ;;  %v833_v31 = vpop.f32.mrf.mxu1 }
 0x25a   : > { %1026 = vmatpush.bf16.msra.mxu3 %v1349_v30 }
 0x25d   : > { %v1564_v32 = vpop.eup %1563 }
 0x25e   : > { %877 = vperm.xlu2 %1544, %v1564_v32   ;;  %v1566_v33 = vpop.eup %1565 }
 0x25f   : > { %v750_v4 = vmul.f32 %v1566_v33, %v746_v63 }
 0x264   : > { %v784_v32 = vpop.permute.xlu1 %783 }
 0x265   : > { %v797_v34 = vmul.f32 0.0, %v784_v32 }
 0x266   : > { %793 = vperm.xlu2 %1544, %v1566_v33  }
 0x26c   : > { %v759_v36 = vpop.xlane.xlu0 %758 }
 0x26d   : > { %v765_v37 = vadd.f32 %v759_v36, %v749_v35  ;;  %v796_v35 = vmul.f32 0.0, %v1924_v56  ;;  %v835_v36 = vpop.f32.mrf.mxu1  ;;  %v894_v56 = vld [vmem:[#allocation5 + $0x30] sm:$0xff] }
 0x26f   : > { %770 = vst.msk [vmem:[#allocation3 + $0x10] sm:$0xff] %vm616_vm1, %v765_v37  ;;  %v843_v37 = vadd.f32 %v833_v31, %v796_v35 }
 0x276   : > { %v864_v38 = vld [vmem:[#allocation3 + $0x10] sm:$0xff] }
 0x277   : > { %1567 = vrcp.f32 %v864_v38  ;;  %v844_v38 = vadd.f32 %v835_v36, %v797_v34  ;;  %v1087_v36 = vunpack.c.l.bf16 (%p1054_p5), %v1082_v26 }
 0x27d   : > { %v1568_v55 = vpop.eup %1567 }
 0x27e   : > { %882 = vperm.xlu1 %1546, %v1568_v55  }
 0x27f   : > { %v838_v43 = vpop.f32.mrf.mxu1  ;;  %v789_v44 = vpop.permute.xlu0 %788 }
 0x280   : > { %v798_v46 = vmul.f32 0.0, %v789_v44 }
 0x282   : > { %v845_v48 = vadd.f32 %v838_v43, %v798_v46 }
 0x285   : > { %v762_v7 = vpop.xlane.xlu2 %761 }
 0x286   : > { %v766_v8 = vadd.f32 %v762_v7, %v750_v4  ;;  %v898_v4 = vld [vmem:[#allocation5 + $0x8] sm:$0xff] }
 0x287   : > { %v840_v49 = vpop.f32.mrf.mxu1 }
 0x288   : > { %771 = vst.msk [vmem:[#allocation3 + $0x18] sm:$0xff] %vm616_vm1, %v766_v8 }
 0x28f   : > { %v865_v11 = vld [vmem:[#allocation3 + $0x18] sm:$0xff] }
 0x290   : > { %1569 = vrcp.f32 %v865_v11  ;;  %v901_v11 = vld [vmem:[#allocation5 + $0x38] sm:$0xff] }
 0x296   : > { %v1570_v24 = vpop.eup %1569 }
 0x297   : > { %887 = vperm.xlu2 %1544, %v1570_v24   ;;  %v1085_v24 = vunpack.c.l.bf16 (%p1054_p5), %v1081_v21 }
 0x2b0   : > { %v873_v33 = vpop.permute.xlu2 %872 }
 0x2b1   : > { %v890_v40 = vmul.f32 %v873_v33, %v843_v37  ;;  %v1083_v33 = vld [vmem:[%s1853_s21 + $0x10] sm:$0xff] (%p1054_p5)  ;;  %v1088_v37 = vunpack.c.h.bf16 (%p1054_p5), %v1082_v26 }
 0x2b2   : > { %v1089_v43 = vunpack.c.l.bf16 (%p1054_p5), %v1083_v33  ;;  %v1090_v44 = vunpack.c.h.bf16 (%p1054_p5), %v1083_v33 }
 0x2b8   : > { %v878_v39 = vpop.permute.xlu2 %877 }
 0x2b9   : > { %v891_v41 = vmul.f32 %v878_v39, %v844_v38 }
 0x2bb   : > { %v902_v42 = vpack.c.bf16 %v891_v41, %v890_v40  ;;  %v1084_v40 = vld [vmem:[%s1853_s21 + $0x18] sm:$0xff] (%p1054_p5) }
 0x2bd   : > { %1008 = vmatmul.bf16.vlgmr.msrb.gmra.mxu1 %v902_v42  ;;  %1027 = vmatmul.bf16.vlgmr.msra.gmra.mxu3 %v902_v42 }
 0x2c0   : > { %v794_v45 = vpop.permute.xlu2 %793 }
 0x2c1   : > { %v799_v47 = vmul.f32 0.0, %v794_v45 }
 0x2c3   : > { %v846_v51 = vadd.f32 %v840_v49, %v799_v47 }
 0x2f0   : > { %v883_v50 = vpop.permute.xlu1 %882 }
 0x2f1   : > { %v892_v52 = vmul.f32 %v883_v50, %v845_v48  ;;  %v888_v53 = vpop.permute.xlu2 %887 }
 0x2f2   : > { %v893_v54 = vmul.f32 %v888_v53, %v846_v51 }
 0x2f4   : > { %v903_v55 = vpack.c.bf16 %v893_v54, %v892_v52  ;;  %v1091_v52 = vunpack.c.l.bf16 (%p1054_p5), %v1084_v40  ;;  %v1092_v54 = vunpack.c.h.bf16 (%p1054_p5), %v1084_v40 }
 0x2f6   : > { %1013 = vmatmul.bf16.vlgmr.msra.gmra.mxu2 %v903_v55  ;;  %1032 = vmatmul.bf16.gmra.mxu3 %v903_v55 }
 0x33a   : > { %v1009_v57 = vpop.f32.mrf.mxu1 }
 0x33b   : > { %v1038_v58 = vadd.f32 %v1009_v57, %v894_v56 }
 0x33d   : > { %1046 = vst [vmem:[#allocation5 + $0x30] sm:$0xff] %v1038_v58 }
 0x340   : > { %v1028_v60 = vpop.f32.mrf.mxu3 }
 0x341   : > { %v1039_v62 = vadd.f32 %v1028_v60, %v895_v59 }
 0x342   : > { %v1011_v63 = vpop.f32.mrf.mxu1 }
 0x343   : > { %1047 = vst [vmem:[#allocation5] sm:$0xff] %v1039_v62  ;;  %v1040_v0 = vadd.f32 %v1011_v63, %v896_v61 }
 0x344   : > { %v1059_v16 = vld [vmem:[#allocation5 + $0x30] sm:$0xff] (%p1054_p5) }
 0x345   : > { %1048 = vst [vmem:[#allocation5 + $0x18] sm:$0xff] %v1040_v0  ;;  %v1073_v29 = vadd.f32 (%p1054_p5), %v1069_v19, %v1059_v16 }
 0x347   : > { %v1093_v41 = vadd.f32 (%p1054_p5), %v1085_v24, %v1073_v29 }
 0x348   : > { %v1030_v2 = vpop.f32.mrf.mxu3 }
 0x349   : > { %v1041_v3 = vadd.f32 %v1030_v2, %v897_v1 }
 0x34a   : > { %v1060_v17 = vld [vmem:[#allocation5] sm:$0xff] (%p1054_p5) }
 0x34b   : > { %1049 = vst [vmem:[#allocation5 + $0x10] sm:$0xff] %v1041_v3  ;;  %v1074_v30 = vadd.f32 (%p1054_p5), %v1070_v20, %v1060_v17 }
 0x34c   : > { %v1061_v22 = vld [vmem:[#allocation5 + $0x18] sm:$0xff] (%p1054_p5) }
 0x34d   : > { %v1075_v31 = vadd.f32 (%p1054_p5), %v1069_v19, %v1061_v22  ;;  %v1094_v42 = vadd.f32 (%p1054_p5), %v1086_v25, %v1074_v30 }
 0x34f   : > { %v1095_v45 = vadd.f32 (%p1054_p5), %v1087_v36, %v1075_v31  ;;  %v1101_v49 = vpack.c.bf16 (%p1054_p5), %v1094_v42, %v1093_v41 }
 0x351   : > { %1105 = vst [vmem:[%s1858_s2] sm:$0xff] (%p1054_p5), %v1101_v49 }
 0x352   : > { %v1062_v23 = vld [vmem:[#allocation5 + $0x10] sm:$0xff] (%p1054_p5) }
 0x353   : > { %v1076_v32 = vadd.f32 (%p1054_p5), %v1070_v20, %v1062_v23 }
 0x355   : > { %v1096_v46 = vadd.f32 (%p1054_p5), %v1088_v37, %v1076_v32 }
 0x357   : > { %v1102_v53 = vpack.c.bf16 (%p1054_p5), %v1096_v46, %v1095_v45 }
 0x359   : > { %1106 = vst [vmem:[%s1858_s2 + $0x8] sm:$0xff] (%p1054_p5), %v1102_v53 }
 0x379   : > { %v1014_v6 = vpop.f32.mrf.mxu2  ;;  %v1033_v7 = vpop.f32.mrf.mxu3 }
 0x37a   : > { %v1042_v8 = vadd.f32 %v1014_v6, %v898_v4  ;;  %v1043_v9 = vadd.f32 %v1033_v7, %v899_v5 }
 0x37c   : > { %1050 = vst [vmem:[#allocation5 + $0x8] sm:$0xff] %v1042_v8 }
 0x37d   : > { %1051 = vst [vmem:[#allocation5 + $0x20] sm:$0xff] %v1043_v9 }
 0x381   : > { %v1016_v12 = vpop.f32.mrf.mxu2  ;;  %v1035_v13 = vpop.f32.mrf.mxu3  ;;  %1058 = sbr.rel (!%p1054_p5) target bundleno = 916 (0x394), region = 183 }
 0x382   : > { %v1044_v14 = vadd.f32 %v1016_v12, %v900_v10  ;;  %v1045_v15 = vadd.f32 %v1035_v13, %v901_v11 }
 0x383   : > { %v1063_v27 = vld [vmem:[#allocation5 + $0x8] sm:$0xff] (%p1054_p5) }
 0x384   : > { %1052 = vst [vmem:[#allocation5 + $0x28] sm:$0xff] %v1044_v14  ;;  %v1064_v28 = vld [vmem:[#allocation5 + $0x20] sm:$0xff] (%p1054_p5)  ;;  %v1077_v38 = vadd.f32 (%p1054_p5), %v1069_v19, %v1063_v27 }
 0x385   : > { %1053 = vst [vmem:[#allocation5 + $0x38] sm:$0xff] %v1045_v15  ;;  %v1078_v39 = vadd.f32 (%p1054_p5), %v1070_v20, %v1064_v28 }
 0x386   : > { %v1097_v50 = vadd.f32 %v1089_v43, %v1077_v38 }
 0x387   : > { %v1098_v51 = vadd.f32 %v1090_v44, %v1078_v39 }
 0x389   : > { %v1103_v55 = vpack.c.bf16 %v1098_v51, %v1097_v50 }
 0x38b   : > { %v1065_v34 = vld [vmem:[#allocation5 + $0x28] sm:$0xff]  ;;  %1107 = vst [vmem:[%s1858_s2 + $0x10] sm:$0xff] %v1103_v55 }
 0x38c   : > { %v1066_v35 = vld [vmem:[#allocation5 + $0x38] sm:$0xff]  ;;  %v1079_v47 = vadd.f32 %v1069_v19, %v1065_v34 }
 0x38d   : > { %v1080_v48 = vadd.f32 %v1070_v20, %v1066_v35 }
 0x38e   : > { %v1099_v56 = vadd.f32 %v1091_v52, %v1079_v47 }
 0x38f   : > { %v1100_v57 = vadd.f32 %v1092_v54, %v1080_v48 }
 0x391   : > { %v1104_v58 = vpack.c.bf16 %v1100_v57, %v1099_v56 }
 0x393   : > { %1108 = vst [vmem:[%s1858_s2 + $0x18] sm:$0xff] %v1104_v58 }
 0x394 PF: > { %s16_s7 = sadd.s32 1, %s1657_s7   ;;  %s2026_s9 = sld [smem:[#allocation10_spill]] }
 0x395   : > { %p13_p6 = scmp.ge.s32.totalorder %s16_s7, 6   ;;  %s2027_s11 = sld [smem:[#allocation11_spill]] }
 0x396   : > { %s2028_s21 = smov %s1621_s22  ;;  %s2029_s22 = smov %s1803_s16 }
 0x397   : > { %s2030_s23 = smov %s1629_s24  ;;  %s2031_s24 = smov %s1791_s3 }
 0x398   : > { %s2032_s25 = smov %s1637_s26  ;;  %s2033_s26 = smov %s1788_s5 }
 0x399   : > { %s2034_s27 = smov %s1649_s29  ;;  %s2035_s28 = smov %s1653_s30 }
 0x39a   : > { %s2036_s29 = smov %s2026_s9  ;;  %15 = sbr.rel (!%p13_p6) target bundleno = 14 (0xe), region = 240 }
 0x39b   : > { %s2037_s30 = smov %s2027_s11 }

// kernel: _lambda_.13
= control target key start
LH: loop header
LB: loop body
LE: loop exit
PB: predicated region body
PF: predicated region fallthrough
CT: control target
= control target key end

     0   :  { %14 = vsyncpa [#allocation6], 0  ;;  %s3943_s30 = smov 0   ;;  %s3945_s10 = smov 0   ;;  %s5300_s0 = inlined_call_operand.vmem [shape: bf16[64,256], index: 0, kind: input, shape index: {}]   ;;  %s5301_s1 = inlined_call_operand.vmem [shape: f32[1,256], index: 1, kind: input, shape index: {}, may-alias: {1,7}]   ;;  %s5302_s2 = inlined_call_operand.vmem [shape: f32[1,256], index: 2, kind: input, shape index: {}, may-alias: {2,6,8}]   ;;  %s5303_s3 = inlined_call_operand.vmem [shape: bf16[256,1024], index: 3, kind: input, shape index: {}]   ;;  %s5304_s4 = inlined_call_operand.vmem [shape: f32[1,1024], index: 4, kind: input, shape index: {}]   ;;  %s5305_s5 = inlined_call_operand.vmem [shape: bf16[1024,256], index: 5, kind: input, shape index: {}]   ;;  %s5306_s6 = inlined_call_operand.vmem [shape: f32[1,256], index: 6, kind: input, shape index: {}, may-alias: {2,6,8}]   ;;  %s5307_s7 = inlined_call_operand.vmem [shape: f32[1,256], index: 7, kind: input, shape index: {}, may-alias: {1,7}]   ;;  %s5308_s8 = inlined_call_operand.vmem [shape: f32[1,256], index: 8, kind: input, shape index: {}, may-alias: {2,6,8}]   ;;  %s5309_s9 = inlined_call_operand.hbm [shape: f32[64,256], index: 9, kind: output, shape index: {}]  }
   0x1   :  { %s3947_s11 = smov 0   ;;  %s3949_s12 = smov 0  }
   0x2   :  { %s3951_s13 = smov 0  }
   0x3 LB: > { %s2962_s14 = sadd.s32 4294967295, %s3885_s13   ;;  %s29_s15 = sadd.s32 1, %s3881_s12  ;;  %s3885_s13 = sphi %s3951_s13, %s20_s13   ;;  %s3881_s12 = sphi %s3949_s12, %s5313_s12   ;;  %s3877_s11 = sphi %s3947_s11, %s5312_s11   ;;  %s3873_s10 = sphi %s3945_s10, %s5311_s10   ;;  %s3869_s30 = sphi %s3943_s30, %s5310_s30  }
   0x4   : > { %p30_p0 = scmp.ge.s32.totalorder %s29_s15, 2  ;;  %p114_p1 = scmp.ne.s32.totalorder %s3873_s10, %s3869_s30 }
   0x5   : > { %p115_p2 = scmp.eq.s32.totalorder %s3885_s13, 0  ;;  %s107_s17 = sadd.s32 1, %s3873_s10 }
   0x6   : > { %s5315_s15 = smov (%p30_p0, %s29_s15), 0  ;;  %p2965_p5 = scmp.ge.s32.totalorder %s3885_s13, 2 }
   0x7   : > { %p116_p3 = por %p115_p2, %p114_p1  ;;  %s104_s16 = ssub.s32 %s3881_s12, %s5315_s15 }
   0x8   : > { %p105_p4 = scmp.eq.s32.totalorder %s104_s16, 0  ;;  %306 = sbr.rel (%p2965_p5) target bundleno = 81 (0x51), region = 40 }
   0xa   : > { %s3979_s18 = scalar_select %p105_p4, %s3873_s10, %s107_s17  }
   0xd   : > { %309 = sbr.rel (!%p116_p3) target bundleno = 81 (0x51), region = 44  ;;  %s311_s19 = sand.u32 (%p116_p3), 1, %s3873_s10  }
   0xe   : > { %s3525_s20 = sshll.u32 (%p116_p3), %s3881_s12, 4  ;;  %s2966_s21 = sshll.u32 (%p116_p3), %s311_s19, 9 }
   0xf   : > { %s3987_s24 = scalar_lea.vmem (%p116_p3), %s5303_s3, %s3525_s20  ;;  %s3992_s25 = scalar_lea.vmem (%p116_p3), [#allocation4], %s2966_s21 }
  0x10   : > { %v329_v0 = vld [vmem:[%s3987_s24] sm:$0xff] (%p116_p3)  ;;  %v331_v1 = vld [vmem:[%s3987_s24 + $0x8] sm:$0xff] (%p116_p3) }
  0x11   : > { %v333_v2 = vld [vmem:[%s3987_s24 + $0x20] sm:$0xff] (%p116_p3)  ;;  %330 = vst [vmem:[%s3992_s25] sm:$0xff] (%p116_p3), %v329_v0  ;;  %v335_v3 = vld [vmem:[%s3987_s24 + $0x28] sm:$0xff] (%p116_p3) }
  0x12   : > { %332 = vst [vmem:[%s3992_s25 + $0x8] sm:$0xff] %v331_v1  ;;  %v337_v4 = vld [vmem:[%s3987_s24 + $0x40] sm:$0xff]  ;;  %v339_v5 = vld [vmem:[%s3987_s24 + $0x48] sm:$0xff] }
  0x13   : > { %334 = vst [vmem:[%s3992_s25 + $0x10] sm:$0xff] %v333_v2  ;;  %v341_v6 = vld [vmem:[%s3987_s24 + $0x60] sm:$0xff]  ;;  %v343_v7 = vld [vmem:[%s3987_s24 + $0x68] sm:$0xff] }
  0x14   : > { %336 = vst [vmem:[%s3992_s25 + $0x18] sm:$0xff] %v335_v3  ;;  %v345_v8 = vld [vmem:[%s3987_s24 + $0x80] sm:$0xff]  ;;  %v347_v9 = vld [vmem:[%s3987_s24 + $0x88] sm:$0xff] }
  0x15   : > { %338 = vst [vmem:[%s3992_s25 + $0x20] sm:$0xff] %v337_v4  ;;  %v349_v10 = vld [vmem:[%s3987_s24 + $0xa0] sm:$0xff]  ;;  %v351_v11 = vld [vmem:[%s3987_s24 + $0xa8] sm:$0xff] }
  0x16   : > { %340 = vst [vmem:[%s3992_s25 + $0x28] sm:$0xff] %v339_v5  ;;  %v353_v12 = vld [vmem:[%s3987_s24 + $0xc0] sm:$0xff]  ;;  %v355_v13 = vld [vmem:[%s3987_s24 + $0xc8] sm:$0xff] }
  0x17   : > { %342 = vst [vmem:[%s3992_s25 + $0x30] sm:$0xff] %v341_v6  ;;  %v357_v14 = vld [vmem:[%s3987_s24 + $0xe0] sm:$0xff]  ;;  %v359_v15 = vld [vmem:[%s3987_s24 + $0xe8] sm:$0xff] }
  0x18   : > { %344 = vst [vmem:[%s3992_s25 + $0x38] sm:$0xff] %v343_v7  ;;  %v361_v16 = vld [vmem:[%s3987_s24 + $0x100] sm:$0xff]  ;;  %v363_v17 = vld [vmem:[%s3987_s24 + $0x108] sm:$0xff] }
  0x19   : > { %346 = vst [vmem:[%s3992_s25 + $0x40] sm:$0xff] %v345_v8  ;;  %v365_v18 = vld [vmem:[%s3987_s24 + $0x120] sm:$0xff]  ;;  %v367_v19 = vld [vmem:[%s3987_s24 + $0x128] sm:$0xff] }
  0x1a   : > { %348 = vst [vmem:[%s3992_s25 + $0x48] sm:$0xff] %v347_v9  ;;  %v369_v20 = vld [vmem:[%s3987_s24 + $0x140] sm:$0xff]  ;;  %v371_v21 = vld [vmem:[%s3987_s24 + $0x148] sm:$0xff] }
  0x1b   : > { %350 = vst [vmem:[%s3992_s25 + $0x50] sm:$0xff] %v349_v10  ;;  %v373_v22 = vld [vmem:[%s3987_s24 + $0x160] sm:$0xff]  ;;  %v375_v23 = vld [vmem:[%s3987_s24 + $0x168] sm:$0xff] }
  0x1c   : > { %352 = vst [vmem:[%s3992_s25 + $0x58] sm:$0xff] %v351_v11  ;;  %v377_v24 = vld [vmem:[%s3987_s24 + $0x180] sm:$0xff]  ;;  %v379_v25 = vld [vmem:[%s3987_s24 + $0x188] sm:$0xff] }
  0x1d   : > { %354 = vst [vmem:[%s3992_s25 + $0x60] sm:$0xff] %v353_v12  ;;  %v381_v26 = vld [vmem:[%s3987_s24 + $0x1a0] sm:$0xff]  ;;  %v383_v27 = vld [vmem:[%s3987_s24 + $0x1a8] sm:$0xff] }
  0x1e   : > { %356 = vst [vmem:[%s3992_s25 + $0x68] sm:$0xff] %v355_v13  ;;  %v385_v28 = vld [vmem:[%s3987_s24 + $0x1c0] sm:$0xff]  ;;  %v387_v29 = vld [vmem:[%s3987_s24 + $0x1c8] sm:$0xff] }
  0x1f   : > { %358 = vst [vmem:[%s3992_s25 + $0x70] sm:$0xff] %v357_v14  ;;  %v389_v30 = vld [vmem:[%s3987_s24 + $0x1e0] sm:$0xff]  ;;  %v391_v31 = vld [vmem:[%s3987_s24 + $0x1e8] sm:$0xff] }
  0x20   : > { %360 = vst [vmem:[%s3992_s25 + $0x78] sm:$0xff] %v359_v15  ;;  %v393_v32 = vld [vmem:[%s3987_s24 + $0x200] sm:$0xff]  ;;  %v395_v33 = vld [vmem:[%s3987_s24 + $0x208] sm:$0xff] }
  0x21   : > { %362 = vst [vmem:[%s3992_s25 + $0x80] sm:$0xff] %v361_v16  ;;  %v397_v34 = vld [vmem:[%s3987_s24 + $0x220] sm:$0xff]  ;;  %v399_v35 = vld [vmem:[%s3987_s24 + $0x228] sm:$0xff] }
  0x22   : > { %364 = vst [vmem:[%s3992_s25 + $0x88] sm:$0xff] %v363_v17  ;;  %v401_v36 = vld [vmem:[%s3987_s24 + $0x240] sm:$0xff]  ;;  %v403_v37 = vld [vmem:[%s3987_s24 + $0x248] sm:$0xff] }
  0x23   : > { %366 = vst [vmem:[%s3992_s25 + $0x90] sm:$0xff] %v365_v18  ;;  %v405_v38 = vld [vmem:[%s3987_s24 + $0x260] sm:$0xff]  ;;  %v407_v39 = vld [vmem:[%s3987_s24 + $0x268] sm:$0xff] }
  0x24   : > { %368 = vst [vmem:[%s3992_s25 + $0x98] sm:$0xff] %v367_v19  ;;  %v409_v40 = vld [vmem:[%s3987_s24 + $0x280] sm:$0xff]  ;;  %v411_v41 = vld [vmem:[%s3987_s24 + $0x288] sm:$0xff] }
  0x25   : > { %370 = vst [vmem:[%s3992_s25 + $0xa0] sm:$0xff] %v369_v20  ;;  %v413_v42 = vld [vmem:[%s3987_s24 + $0x2a0] sm:$0xff]  ;;  %v415_v43 = vld [vmem:[%s3987_s24 + $0x2a8] sm:$0xff] }
  0x26   : > { %372 = vst [vmem:[%s3992_s25 + $0xa8] sm:$0xff] %v371_v21  ;;  %v417_v44 = vld [vmem:[%s3987_s24 + $0x2c0] sm:$0xff]  ;;  %v419_v45 = vld [vmem:[%s3987_s24 + $0x2c8] sm:$0xff] }
  0x27   : > { %374 = vst [vmem:[%s3992_s25 + $0xb0] sm:$0xff] %v373_v22  ;;  %v421_v46 = vld [vmem:[%s3987_s24 + $0x2e0] sm:$0xff]  ;;  %v423_v47 = vld [vmem:[%s3987_s24 + $0x2e8] sm:$0xff] }
  0x28   : > { %376 = vst [vmem:[%s3992_s25 + $0xb8] sm:$0xff] %v375_v23  ;;  %v425_v48 = vld [vmem:[%s3987_s24 + $0x300] sm:$0xff]  ;;  %v427_v49 = vld [vmem:[%s3987_s24 + $0x308] sm:$0xff] }
  0x29   : > { %378 = vst [vmem:[%s3992_s25 + $0xc0] sm:$0xff] %v377_v24  ;;  %v429_v50 = vld [vmem:[%s3987_s24 + $0x320] sm:$0xff]  ;;  %v431_v51 = vld [vmem:[%s3987_s24 + $0x328] sm:$0xff] }
  0x2a   : > { %380 = vst [vmem:[%s3992_s25 + $0xc8] sm:$0xff] %v379_v25  ;;  %v433_v52 = vld [vmem:[%s3987_s24 + $0x340] sm:$0xff]  ;;  %v435_v53 = vld [vmem:[%s3987_s24 + $0x348] sm:$0xff] }
  0x2b   : > { %382 = vst [vmem:[%s3992_s25 + $0xd0] sm:$0xff] %v381_v26  ;;  %v437_v54 = vld [vmem:[%s3987_s24 + $0x360] sm:$0xff]  ;;  %v439_v55 = vld [vmem:[%s3987_s24 + $0x368] sm:$0xff] }
  0x2c   : > { %384 = vst [vmem:[%s3992_s25 + $0xd8] sm:$0xff] %v383_v27  ;;  %v441_v56 = vld [vmem:[%s3987_s24 + $0x380] sm:$0xff]  ;;  %v443_v57 = vld [vmem:[%s3987_s24 + $0x388] sm:$0xff] }
  0x2d   : > { %386 = vst [vmem:[%s3992_s25 + $0xe0] sm:$0xff] %v385_v28  ;;  %v445_v58 = vld [vmem:[%s3987_s24 + $0x3a0] sm:$0xff]  ;;  %v447_v59 = vld [vmem:[%s3987_s24 + $0x3a8] sm:$0xff] }
  0x2e   : > { %388 = vst [vmem:[%s3992_s25 + $0xe8] sm:$0xff] %v387_v29  ;;  %v449_v60 = vld [vmem:[%s3987_s24 + $0x3c0] sm:$0xff]  ;;  %v451_v61 = vld [vmem:[%s3987_s24 + $0x3c8] sm:$0xff] }
  0x2f   : > { %390 = vst [vmem:[%s3992_s25 + $0xf0] sm:$0xff] %v389_v30  ;;  %v453_v62 = vld [vmem:[%s3987_s24 + $0x3e0] sm:$0xff]  ;;  %v455_v63 = vld [vmem:[%s3987_s24 + $0x3e8] sm:$0xff] }
  0x30   : > { %392 = vst [vmem:[%s3992_s25 + $0xf8] sm:$0xff] %v391_v31 }
  0x31   : > { %394 = vst [vmem:[%s3992_s25 + $0x100] sm:$0xff] %v393_v32 }
  0x32   : > { %396 = vst [vmem:[%s3992_s25 + $0x108] sm:$0xff] %v395_v33 }
  0x33   : > { %398 = vst [vmem:[%s3992_s25 + $0x110] sm:$0xff] %v397_v34 }
  0x34   : > { %400 = vst [vmem:[%s3992_s25 + $0x118] sm:$0xff] %v399_v35 }
  0x35   : > { %402 = vst [vmem:[%s3992_s25 + $0x120] sm:$0xff] %v401_v36 }
  0x36   : > { %404 = vst [vmem:[%s3992_s25 + $0x128] sm:$0xff] %v403_v37 }
  0x37   : > { %406 = vst [vmem:[%s3992_s25 + $0x130] sm:$0xff] %v405_v38 }
  0x38   : > { %408 = vst [vmem:[%s3992_s25 + $0x138] sm:$0xff] %v407_v39 }
  0x39   : > { %410 = vst [vmem:[%s3992_s25 + $0x140] sm:$0xff] %v409_v40 }
  0x3a   : > { %412 = vst [vmem:[%s3992_s25 + $0x148] sm:$0xff] %v411_v41 }
  0x3b   : > { %414 = vst [vmem:[%s3992_s25 + $0x150] sm:$0xff] %v413_v42 }
  0x3c   : > { %416 = vst [vmem:[%s3992_s25 + $0x158] sm:$0xff] %v415_v43 }
  0x3d   : > { %418 = vst [vmem:[%s3992_s25 + $0x160] sm:$0xff] %v417_v44 }
  0x3e   : > { %420 = vst [vmem:[%s3992_s25 + $0x168] sm:$0xff] %v419_v45 }
  0x3f   : > { %422 = vst [vmem:[%s3992_s25 + $0x170] sm:$0xff] %v421_v46 }
  0x40   : > { %424 = vst [vmem:[%s3992_s25 + $0x178] sm:$0xff] %v423_v47 }
  0x41   : > { %426 = vst [vmem:[%s3992_s25 + $0x180] sm:$0xff] %v425_v48 }
  0x42   : > { %428 = vst [vmem:[%s3992_s25 + $0x188] sm:$0xff] %v427_v49 }
  0x43   : > { %430 = vst [vmem:[%s3992_s25 + $0x190] sm:$0xff] %v429_v50 }
  0x44   : > { %432 = vst [vmem:[%s3992_s25 + $0x198] sm:$0xff] %v431_v51 }
  0x45   : > { %434 = vst [vmem:[%s3992_s25 + $0x1a0] sm:$0xff] %v433_v52 }
  0x46   : > { %436 = vst [vmem:[%s3992_s25 + $0x1a8] sm:$0xff] %v435_v53 }
  0x47   : > { %438 = vst [vmem:[%s3992_s25 + $0x1b0] sm:$0xff] %v437_v54 }
  0x48   : > { %440 = vst [vmem:[%s3992_s25 + $0x1b8] sm:$0xff] %v439_v55 }
  0x49   : > { %442 = vst [vmem:[%s3992_s25 + $0x1c0] sm:$0xff] %v441_v56 }
  0x4a   : > { %444 = vst [vmem:[%s3992_s25 + $0x1c8] sm:$0xff] %v443_v57 }
  0x4b   : > { %446 = vst [vmem:[%s3992_s25 + $0x1d0] sm:$0xff] %v445_v58 }
  0x4c   : > { %448 = vst [vmem:[%s3992_s25 + $0x1d8] sm:$0xff] %v447_v59 }
  0x4d   : > { %450 = vst [vmem:[%s3992_s25 + $0x1e0] sm:$0xff] %v449_v60 }
  0x4e   : > { %452 = vst [vmem:[%s3992_s25 + $0x1e8] sm:$0xff] %v451_v61 }
  0x4f   : > { %454 = vst [vmem:[%s3992_s25 + $0x1f0] sm:$0xff] %v453_v62 }
  0x50   : > { %456 = vst [vmem:[%s3992_s25 + $0x1f8] sm:$0xff] %v455_v63 }
  0x51 PF: > { %p2969_p6 = scmp.ge.s32.totalorder %s3885_s13, 1  ;;  %p479_p7 = scmp.lt.s32.totalorder %s3885_s13, 3 }
  0x53   : > { %p480_p8 = pnand %p2969_p6, %p479_p7 }
  0x54   : > { %s486_s26 = sand.u32 (!%p480_p8), 1, %s3869_s30   ;;  %s2971_s27 = sshll.u32 (!%p480_p8), %s3877_s11, 2 }
  0x55   : > { %483 = sbr.rel (%p480_p8) target bundleno = 1250 (0x4e2), region = 75  ;;  %s2970_s28 = sshll.u32 (!%p480_p8), %s486_s26, 9 }
  0x56   : > { %p541_p9 = scmp.lt.s32.totalorder (!%p480_p8), %s2971_s27, 7  ;;  %s2972_s29 = sshll.u32 (!%p480_p8), %s3877_s11, 6 }
  0x57   : > { %p546_p10 = scmp.lt.s32.totalorder (!%p480_p8), %s2972_s29, 127  ;;  %s4135_s30 = scalar_lea.vmem (!%p480_p8), [#allocation4], %s2970_s28 }
  0x58   : > { %p2975_p11 = scmp.ne.s32.totalorder (!%p480_p8), %s3877_s11, 0 }
  0x5a   : > { %s5317_s27 = smov (!%p541_p9, %s2971_s27), 7  ;;  %s5319_s29 = smov (!%p546_p10, %s2972_s29), 127 }
  0x5b   : > { %s543_s19 = scalar_lea.vmem %s5304_s4, %s5317_s27  ;;  %s3526_s20 = sshll.u32 %s5319_s29, 3 }
  0x5c   : > { %s4133_s23 = scalar_lea.vmem %s5305_s5, %s3526_s20  ;;  %556 = sbr.rel (%p2975_p11) target bundleno = 407 (0x197), region = 83 }
  0x61   : > { %v4141_v0 = vld [vmem:[%s5300_s0 + $0x20] sm:$0xff]  ;;  %v559_v1 = vld [vmem:[%s5300_s0 + $0x10] sm:$0xff]  ;;  %v4154_v9 = vld [vmem:[%s5300_s0 + $0x28] sm:$0xff]  ;;  %v3887_v32 = vmov 256.0  }
  0x62   : > { %v557_v2 = vld [vmem:[%s5300_s0] sm:$0xff]  ;;  %v573_v3 = vunpack.c.l.bf16 %v4141_v0  ;;  %v574_v4 = vunpack.c.h.bf16 %v4141_v0  ;;  %v569_v5 = vunpack.c.l.bf16 %v559_v1  ;;  %v570_v6 = vunpack.c.h.bf16 %v559_v1  ;;  %v4159_v10 = vld [vmem:[%s5300_s0 + $0x18] sm:$0xff]  ;;  %v4168_v13 = vld [vmem:[%s5300_s0 + $0x8] sm:$0xff] }
  0x63   : > { %v565_v7 = vunpack.c.l.bf16 %v557_v2  ;;  %v566_v8 = vunpack.c.h.bf16 %v557_v2  ;;  %v575_v15 = vunpack.c.l.bf16 %v4154_v9  ;;  %v576_v16 = vunpack.c.h.bf16 %v4154_v9  ;;  %v4179_v24 = vld [vmem:[%s5300_s0 + $0x38] sm:$0xff]  ;;  %v4184_v25 = vld [vmem:[%s5300_s0 + $0x30] sm:$0xff] }
  0x64   : > { %v593_v11 = vadd.f32 %v574_v4, %v573_v3  ;;  %v587_v12 = vadd.f32 %v570_v6, %v569_v5  ;;  %v571_v17 = vunpack.c.l.bf16 %v4159_v10  ;;  %v572_v18 = vunpack.c.h.bf16 %v4159_v10 }
  0x65   : > { %v581_v14 = vadd.f32 %v566_v8, %v565_v7  ;;  %v567_v19 = vunpack.c.l.bf16 %v4168_v13  ;;  %v568_v20 = vunpack.c.h.bf16 %v4168_v13  ;;  %v596_v21 = vadd.f32 %v576_v16, %v575_v15 }
  0x66   : > { %594 = vadd.xlane.f32.xlu2 %v593_v11  ;;  %588 = vadd.xlane.f32.xlu1 %v587_v12  ;;  %v590_v22 = vadd.f32 %v572_v18, %v571_v17  ;;  %v579_v26 = vunpack.c.l.bf16 %v4179_v24  ;;  %v580_v27 = vunpack.c.h.bf16 %v4179_v24  ;;  %v577_v28 = vunpack.c.l.bf16 %v4184_v25 }
  0x67   : > { %582 = vadd.xlane.f32.xlu0 %v581_v14  ;;  %v584_v23 = vadd.f32 %v568_v20, %v567_v19  ;;  %v578_v29 = vunpack.c.h.bf16 %v4184_v25  ;;  %3715 = vrcp.f32 %v3887_v32 }
  0x68   : > { %v602_v30 = vadd.f32 %v580_v27, %v579_v26 }
  0x69   : > { %v599_v31 = vadd.f32 %v578_v29, %v577_v28 }
  0x6d   : > { %v3716_v33 = vpop.eup %3715 }
  0x6e   : > { %597 = vadd.xlane.f32.xlu2 %v596_v21  ;;  %591 = vadd.xlane.f32.xlu1 %v590_v22  ;;  %v606_v34 = vmul.f32 256.0, %v3716_v33  ;;  %vm610_vm0 = vweird.f32 %v3716_v33 }
  0x6f   : > { %585 = vadd.xlane.f32.xlu0 %v584_v23 }
  0x70   : > { %v607_v35 = vsub.f32 1.0, %v606_v34 }
  0x72   : > { %v608_v36 = vmul.f32 %v3716_v33, %v607_v35 }
  0x74   : > { %v609_v37 = vadd.f32 %v3716_v33, %v608_v36 }
  0x76   : > { %603 = vadd.xlane.f32.xlu1 %v602_v30  ;;  %v4198_v38 = vsel %vm610_vm0, %v3716_v33, %v609_v37 }
  0x77   : > { %600 = vadd.xlane.f32.xlu0 %v599_v31 }
  0xd9   : > { %v595_v39 = vpop.xlane.xlu2 %594  ;;  %v589_v40 = vpop.xlane.xlu1 %588 }
  0xda   : > { %v614_v41 = vmul.f32 %v4198_v38, %v589_v40  ;;  %v583_v42 = vpop.xlane.xlu0 %582  ;;  %v616_v53 = vmul.f32 %v4198_v38, %v595_v39 }
  0xdb   : > { %v612_v43 = vmul.f32 %v4198_v38, %v583_v42 }
  0xdc   : > { %v4202_v44 = vsub.f32 %v569_v5, %v614_v41  ;;  %v4204_v45 = vsub.f32 %v570_v6, %v614_v41  ;;  %v4232_v2 = vsub.f32 %v573_v3, %v616_v53  ;;  %v4236_v5 = vsub.f32 %v574_v4, %v616_v53 }
  0xdd   : > { %v4206_v46 = vsub.f32 %v565_v7, %v612_v43  ;;  %v4208_v47 = vsub.f32 %v566_v8, %v612_v43 }
  0xde   : > { %v640_v48 = vmul.f32 %v4202_v44, %v4202_v44  ;;  %v641_v49 = vmul.f32 %v4204_v45, %v4204_v45 }
  0xdf   : > { %v636_v50 = vmul.f32 %v4206_v46, %v4206_v46  ;;  %v637_v51 = vmul.f32 %v4208_v47, %v4208_v47 }
  0xe0   : > { %v658_v52 = vadd.f32 %v641_v49, %v640_v48 }
  0xe1   : > { %v598_v54 = vpop.xlane.xlu2 %597  ;;  %v592_v55 = vpop.xlane.xlu1 %591  ;;  %v652_v56 = vadd.f32 %v637_v51, %v636_v50 }
  0xe2   : > { %v617_v57 = vmul.f32 %v4198_v38, %v598_v54  ;;  %v615_v58 = vmul.f32 %v4198_v38, %v592_v55  ;;  %v586_v59 = vpop.xlane.xlu0 %585  ;;  %659 = vadd.xlane.f32.xlu1 %v658_v52  ;;  %v788_v54 = vld [vmem:[%s5301_s1] sm:$0x3] }
  0xe3   : > { %v613_v60 = vmul.f32 %v4198_v38, %v586_v59  ;;  %653 = vadd.xlane.f32.xlu2 %v652_v56  ;;  %v810_v56 = vld [vmem:[%s5302_s2] sm:$0x3]  ;;  %v4304_v59 = vperm.slane %v788_v54, 0 }
  0xe4   : > { %v4222_v61 = vsub.f32 %v575_v15, %v617_v57  ;;  %v4224_v62 = vsub.f32 %v576_v16, %v617_v57  ;;  %v4226_v63 = vsub.f32 %v571_v17, %v615_v58  ;;  %v4228_v1 = vsub.f32 %v572_v18, %v615_v58 }
  0xe5   : > { %v4238_v6 = vsub.f32 %v567_v19, %v613_v60  ;;  %v4240_v7 = vsub.f32 %v568_v20, %v613_v60  ;;  %v644_v16 = vmul.f32 %v4232_v2, %v4232_v2  ;;  %v645_v17 = vmul.f32 %v4236_v5, %v4236_v5 }
  0xe6   : > { %v646_v8 = vmul.f32 %v4222_v61, %v4222_v61  ;;  %v647_v9 = vmul.f32 %v4224_v62, %v4224_v62  ;;  %v642_v10 = vmul.f32 %v4226_v63, %v4226_v63  ;;  %v643_v3 = vmul.f32 %v4228_v1, %v4228_v1 }
  0xe7   : > { %v638_v0 = vmul.f32 %v4238_v6, %v4238_v6  ;;  %v639_v4 = vmul.f32 %v4240_v7, %v4240_v7  ;;  %v664_v22 = vadd.f32 %v645_v17, %v644_v16  ;;  %v4306_v60 = vperm.slane %v788_v54, 1 }
  0xe8   : > { %v667_v11 = vadd.f32 %v647_v9, %v646_v8  ;;  %v661_v12 = vadd.f32 %v643_v3, %v642_v10  ;;  %v4308_v9 = vperm.slane %v810_v56, 0  ;;  %v4310_v10 = vperm.slane %v810_v56, 1 }
  0xe9   : > { %v655_v13 = vadd.f32 %v639_v4, %v638_v0  ;;  %v604_v14 = vpop.xlane.xlu1 %603 }
  0xea   : > { %v601_v15 = vpop.xlane.xlu0 %600  ;;  %668 = vadd.xlane.f32.xlu1 %v667_v11  ;;  %v619_v19 = vmul.f32 %v4198_v38, %v604_v14 }
  0xeb   : > { %v618_v18 = vmul.f32 %v4198_v38, %v601_v15  ;;  %662 = vadd.xlane.f32.xlu2 %v661_v12  ;;  %656 = vadd.xlane.f32.xlu0 %v655_v13 }
  0xec   : > { %v4270_v23 = vsub.f32 %v579_v26, %v619_v19  ;;  %v4274_v30 = vsub.f32 %v580_v27, %v619_v19 }
  0xed   : > { %v4262_v20 = vsub.f32 %v577_v28, %v618_v18  ;;  %v4266_v21 = vsub.f32 %v578_v29, %v618_v18 }
  0xee   : > { %v650_v25 = vmul.f32 %v4270_v23, %v4270_v23  ;;  %v651_v26 = vmul.f32 %v4274_v30, %v4274_v30 }
  0xef   : > { %v648_v31 = vmul.f32 %v4262_v20, %v4262_v20  ;;  %v649_v28 = vmul.f32 %v4266_v21, %v4266_v21 }
  0xf0   : > { %v673_v29 = vadd.f32 %v651_v26, %v650_v25 }
  0xf1   : > { %v670_v32 = vadd.f32 %v649_v28, %v648_v31 }
  0xf3   : > { %665 = vadd.xlane.f32.xlu0 %v664_v22  ;;  %671 = vadd.xlane.f32.xlu2 %v670_v32 }
  0xfb   : > { %674 = vadd.xlane.f32.xlu0 %v673_v29 }
 0x155   : > { %v660_v24 = vpop.xlane.xlu1 %659 }
 0x156   : > { %v678_v27 = vmul.f32 %v660_v24, %v4198_v38  ;;  %v654_v33 = vpop.xlane.xlu2 %653 }
 0x157   : > { %v676_v34 = vmul.f32 %v654_v33, %v4198_v38 }
 0x158   : > { %v686_v35 = vadd.f32 1e-05, %v678_v27 }
 0x159   : > { %v684_v36 = vadd.f32 1e-05, %v676_v34 }
 0x15a   : > { %3717 = vrsqrt.f32 %v686_v35  ;;  %vm718_vm1 = vweird.f32 %v686_v35 }
 0x15b   : > { %3719 = vrsqrt.f32 %v684_v36  ;;  %vm698_vm3 = vweird.f32 %v684_v36 }
 0x15d   : > { %v669_v37 = vpop.xlane.xlu1 %668 }
 0x15e   : > { %v681_v39 = vmul.f32 %v669_v37, %v4198_v38  ;;  %v663_v40 = vpop.xlane.xlu2 %662  ;;  %v657_v41 = vpop.xlane.xlu0 %656 }
 0x15f   : > { %v679_v42 = vmul.f32 %v663_v40, %v4198_v38  ;;  %v677_v43 = vmul.f32 %v657_v41, %v4198_v38 }
 0x160   : > { %v3718_v48 = vpop.eup %3717  ;;  %v4289_v49 = vadd.f32 1e-05, %v681_v39 }
 0x161   : > { %v3720_v50 = vpop.eup %3719  ;;  %v713_v51 = vmul.f32 %v3718_v48, %v686_v35  ;;  %v4291_v52 = vadd.f32 1e-05, %v679_v42  ;;  %v4293_v53 = vadd.f32 1e-05, %v677_v43  ;;  %vm719_vm2 = vweird.f32 %v3718_v48 }
 0x162   : > { %v693_v55 = vmul.f32 %v3720_v50, %v684_v36  ;;  %3721 = vrsqrt.f32 %v4289_v49  ;;  %vm699_vm4 = vweird.f32 %v3720_v50  ;;  %vm748_vm5 = vweird.f32 %v4289_v49  ;;  %vm720_vm8 = vmor %vm718_vm1, %vm719_vm2 }
 0x163   : > { %v714_v57 = vmul.f32 %v3718_v48, %v713_v51  ;;  %3723 = vrsqrt.f32 %v4291_v52  ;;  %vm728_vm7 = vweird.f32 %v4291_v52  ;;  %vm700_vm10 = vmor %vm698_vm3, %vm699_vm4  ;;  %vm708_vm14 = vweird.f32 %v4293_v53 }
 0x164   : > { %v694_v58 = vmul.f32 %v3720_v50, %v693_v55  ;;  %3725 = vrsqrt.f32 %v4293_v53 }
 0x165   : > { %v715_v8 = vmul.f32 0.5, %v714_v57 }
 0x166   : > { %v695_v3 = vmul.f32 0.5, %v694_v58  ;;  %v672_v0 = vpop.xlane.xlu2 %671  ;;  %v666_v4 = vpop.xlane.xlu0 %665 }
 0x167   : > { %v716_v11 = vsub.f32 1.5, %v715_v8  ;;  %v682_v12 = vmul.f32 %v672_v0, %v4198_v38  ;;  %v680_v13 = vmul.f32 %v666_v4, %v4198_v38 }
 0x168   : > { %v3722_v14 = vpop.eup %3721  ;;  %v696_v15 = vsub.f32 1.5, %v695_v3 }
 0x169   : > { %v3724_v16 = vpop.eup %3723  ;;  %v717_v17 = vmul.f32 %v3718_v48, %v716_v11  ;;  %v743_v18 = vmul.f32 %v3722_v14, %v4289_v49  ;;  %vm749_vm6 = vweird.f32 %v3722_v14  ;;  %v4319_v28 = vadd.f32 1e-05, %v682_v12 }
 0x16a   : > { %v3726_v19 = vpop.eup %3725  ;;  %v697_v22 = vmul.f32 %v3720_v50, %v696_v15  ;;  %v723_v31 = vmul.f32 %v3724_v16, %v4291_v52  ;;  %vm729_vm9 = vweird.f32 %v3724_v16  ;;  %v4323_v29 = vadd.f32 1e-05, %v680_v13  ;;  %vm750_vm11 = vmor %vm748_vm5, %vm749_vm6 }
 0x16b   : > { %v721_v32 = vsel %vm720_vm8, %v3718_v48, %v717_v17  ;;  %v744_v25 = vmul.f32 %v3722_v14, %v743_v18  ;;  %v703_v26 = vmul.f32 %v3726_v19, %v4293_v53  ;;  %3727 = vrsqrt.f32 %v4319_v28  ;;  %vm730_vm13 = vmor %vm728_vm7, %vm729_vm9 }
 0x16c   : > { %v776_v24 = vmul.f32 %v721_v32, %v4202_v44  ;;  %v777_v27 = vmul.f32 %v721_v32, %v4204_v45  ;;  %v701_v33 = vsel %vm700_vm10, %v3720_v50, %v697_v22  ;;  %v724_v34 = vmul.f32 %v3724_v16, %v723_v31 }
 0x16d   : > { %v772_v35 = vmul.f32 %v701_v33, %v4206_v46  ;;  %v773_v37 = vmul.f32 %v701_v33, %v4208_v47  ;;  %v745_v39 = vmul.f32 0.5, %v744_v25  ;;  %v704_v40 = vmul.f32 %v3726_v19, %v703_v26 }
 0x16e   : > { %v798_v36 = vmul.f32 %v4304_v59, %v776_v24  ;;  %v799_v41 = vmul.f32 %v4306_v60, %v777_v27  ;;  %v725_v42 = vmul.f32 0.5, %v724_v34  ;;  %vm709_vm12 = vweird.f32 %v3726_v19  ;;  %v675_v13 = vpop.xlane.xlu0 %674 }
 0x16f   : > { %v794_v43 = vmul.f32 %v4304_v59, %v772_v35  ;;  %v795_v44 = vmul.f32 %v4306_v60, %v773_v37  ;;  %v746_v45 = vsub.f32 1.5, %v745_v39  ;;  %v705_v48 = vmul.f32 0.5, %v704_v40  ;;  %vm710_vm15 = vmor %vm708_vm14, %vm709_vm12 }
 0x170   : > { %v820_v50 = vadd.f32 %v4308_v9, %v798_v36  ;;  %v821_v46 = vadd.f32 %v4310_v10, %v799_v41  ;;  %v726_v47 = vsub.f32 1.5, %v725_v42  ;;  %3729 = vrsqrt.f32 %v4323_v29 }
 0x171   : > { %v816_v51 = vadd.f32 %v4308_v9, %v794_v43  ;;  %v817_v54 = vadd.f32 %v4310_v10, %v795_v44  ;;  %v747_v55 = vmul.f32 %v3722_v14, %v746_v45  ;;  %v706_v56 = vsub.f32 1.5, %v705_v48  ;;  %v3728_v0 = vpop.eup %3727 }
 0x172   : > { %v834_v57 = vpack.c.bf16 %v821_v46, %v820_v50  ;;  %v727_v58 = vmul.f32 %v3724_v16, %v726_v47  ;;  %vm758_vm0 = vweird.f32 %v4319_v28  ;;  %v753_v53 = vmul.f32 %v3728_v0, %v4319_v28 }
 0x173   : > { %v832_v8 = vpack.c.bf16 %v817_v54, %v816_v51  ;;  %v751_v3 = vsel %vm750_vm11, %v3722_v14, %v747_v55  ;;  %v707_v49 = vmul.f32 %v3726_v19, %v706_v56  ;;  %vm759_vm1 = vweird.f32 %v3728_v0 }
 0x174   : > { %842 = vst [vmem:[#allocation2 + $0x10] sm:$0xff] %v834_v57  ;;  %v782_v4 = vmul.f32 %v751_v3, %v4222_v61  ;;  %v783_v11 = vmul.f32 %v751_v3, %v4224_v62  ;;  %v731_v12 = vsel %vm730_vm13, %v3724_v16, %v727_v58  ;;  %v754_v31 = vmul.f32 %v3728_v0, %v753_v53  ;;  %vm760_vm2 = vmor %vm758_vm0, %vm759_vm1 }
 0x175   : > { %840 = vst [vmem:[#allocation2] sm:$0xff] %v832_v8  ;;  %v778_v14 = vmul.f32 %v731_v12, %v4226_v63  ;;  %v779_v52 = vmul.f32 %v731_v12, %v4228_v1  ;;  %v711_v15 = vsel %vm710_vm15, %v3726_v19, %v707_v49  ;;  %v683_v63 = vmul.f32 %v675_v13, %v4198_v38 }
 0x176   : > { %v804_v17 = vmul.f32 %v4304_v59, %v782_v4  ;;  %v805_v61 = vmul.f32 %v4306_v60, %v783_v11  ;;  %v774_v62 = vmul.f32 %v711_v15, %v4238_v6  ;;  %v775_v16 = vmul.f32 %v711_v15, %v4240_v7  ;;  %v3730_v32 = vpop.eup %3729 }
 0x177   : > { %v800_v18 = vmul.f32 %v4304_v59, %v778_v14  ;;  %v801_v22 = vmul.f32 %v4306_v60, %v779_v52  ;;  %v755_v24 = vmul.f32 0.5, %v754_v31  ;;  %v733_v27 = vmul.f32 %v3730_v32, %v4323_v29 }
 0x178   : > { %v826_v1 = vadd.f32 %v4308_v9, %v804_v17  ;;  %v827_v19 = vadd.f32 %v4310_v10, %v805_v61  ;;  %v796_v25 = vmul.f32 %v4304_v59, %v774_v62  ;;  %v797_v26 = vmul.f32 %v4306_v60, %v775_v16 }
 0x179   : > { %v822_v6 = vadd.f32 %v4308_v9, %v800_v18  ;;  %v823_v7 = vadd.f32 %v4310_v10, %v801_v22  ;;  %v756_v37 = vsub.f32 1.5, %v755_v24  ;;  %v734_v39 = vmul.f32 %v3730_v32, %v733_v27 }
 0x17a   : > { %v837_v33 = vpack.c.bf16 %v827_v19, %v826_v1  ;;  %v818_v34 = vadd.f32 %v4308_v9, %v796_v25  ;;  %v819_v38 = vadd.f32 %v4310_v10, %v797_v26  ;;  %v691_v40 = vadd.f32 1e-05, %v683_v63 }
 0x17b   : > { %v835_v35 = vpack.c.bf16 %v823_v7, %v822_v6  ;;  %v757_v41 = vmul.f32 %v3728_v0, %v756_v37  ;;  %v735_v42 = vmul.f32 0.5, %v734_v39  ;;  %vm739_vm3 = vweird.f32 %v3730_v32 }
 0x17c   : > { %845 = vst [vmem:[#allocation2 + $0x28] sm:$0xff] %v837_v33  ;;  %v833_v36 = vpack.c.bf16 %v819_v38, %v818_v34  ;;  %3731 = vrsqrt.f32 %v691_v40  ;;  %v3888_v45 = vmov 0.0   ;;  %vm738_vm4 = vweird.f32 %v4323_v29 }
 0x17d   : > { %843 = vst [vmem:[#allocation2 + $0x18] sm:$0xff] %v835_v35  ;;  %v761_v43 = vsel %vm760_vm2, %v3728_v0, %v757_v41  ;;  %v736_v44 = vsub.f32 1.5, %v735_v42  ;;  %vm740_vm5 = vmor %vm738_vm4, %vm739_vm3  ;;  %vm768_vm7 = vweird.f32 %v691_v40 }
 0x17e   : > { %841 = vst [vmem:[#allocation2 + $0x8] sm:$0xff] %v833_v36  ;;  %v784_v48 = vmul.f32 %v761_v43, %v4262_v20  ;;  %v785_v50 = vmul.f32 %v761_v43, %v4266_v21 }
 0x17f   : > { %848 = vst [vmem:[#allocation3 + $0x30] sm:$0xff] %v3888_v45  ;;  %v737_v46 = vmul.f32 %v3730_v32, %v736_v44 }
 0x180   : > { %849 = vst [vmem:[#allocation3] sm:$0xff] %v3888_v45  ;;  %v806_v47 = vmul.f32 %v4304_v59, %v784_v48  ;;  %v807_v51 = vmul.f32 %v4306_v60, %v785_v50 }
 0x181   : > { %850 = vst [vmem:[#allocation3 + $0x58] sm:$0xff] %v3888_v45  ;;  %v741_v54 = vsel %vm740_vm5, %v3730_v32, %v737_v46 }
 0x182   : > { %851 = vst [vmem:[#allocation3 + $0x18] sm:$0xff] %v3888_v45  ;;  %v3732_v28 = vpop.eup %3731  ;;  %v828_v55 = vadd.f32 %v4308_v9, %v806_v47  ;;  %v829_v20 = vadd.f32 %v4310_v10, %v807_v51  ;;  %v780_v21 = vmul.f32 %v741_v54, %v4232_v2  ;;  %v781_v56 = vmul.f32 %v741_v54, %v4236_v5 }
 0x183   : > { %852 = vst [vmem:[#allocation3 + $0x50] sm:$0xff] %v3888_v45  ;;  %v763_v29 = vmul.f32 %v3732_v28, %v691_v40  ;;  %vm769_vm6 = vweird.f32 %v3732_v28 }
 0x184   : > { %853 = vst [vmem:[#allocation3 + $0x68] sm:$0xff] %v3888_v45  ;;  %v838_v57 = vpack.c.bf16 %v829_v20, %v828_v55  ;;  %v802_v58 = vmul.f32 %v4304_v59, %v780_v21  ;;  %v803_v8 = vmul.f32 %v4306_v60, %v781_v56  ;;  %vm770_vm8 = vmor %vm768_vm7, %vm769_vm6 }
 0x185   : > { %854 = vst [vmem:[#allocation3 + $0x8] sm:$0xff] %v3888_v45  ;;  %v764_v3 = vmul.f32 %v3732_v28, %v763_v29 }
 0x186   : > { %855 = vst [vmem:[#allocation3 + $0x48] sm:$0xff] %v3888_v45  ;;  %v824_v49 = vadd.f32 %v4308_v9, %v802_v58  ;;  %v825_v0 = vadd.f32 %v4310_v10, %v803_v8 }
 0x187   : > { %856 = vst [vmem:[#allocation3 + $0x40] sm:$0xff] %v3888_v45  ;;  %v765_v4 = vmul.f32 0.5, %v764_v3 }
 0x188   : > { %846 = vst [vmem:[#allocation2 + $0x30] sm:$0xff] %v838_v57  ;;  %v836_v2 = vpack.c.bf16 %v825_v0, %v824_v49 }
 0x189   : > { %857 = vst [vmem:[#allocation3 + $0x20] sm:$0xff] %v3888_v45  ;;  %v766_v5 = vsub.f32 1.5, %v765_v4 }
 0x18a   : > { %858 = vst [vmem:[#allocation3 + $0x10] sm:$0xff] %v3888_v45 }
 0x18b   : > { %859 = vst [vmem:[#allocation3 + $0x38] sm:$0xff] %v3888_v45  ;;  %v767_v11 = vmul.f32 %v3732_v28, %v766_v5 }
 0x18c   : > { %844 = vst [vmem:[#allocation2 + $0x20] sm:$0xff] %v836_v2 }
 0x18d   : > { %860 = vst [vmem:[#allocation3 + $0x60] sm:$0xff] %v3888_v45  ;;  %v771_v12 = vsel %vm770_vm8, %v3732_v28, %v767_v11 }
 0x18e   : > { %861 = vst [vmem:[#allocation3 + $0x70] sm:$0xff] %v3888_v45  ;;  %v786_v13 = vmul.f32 %v771_v12, %v4270_v23  ;;  %v787_v14 = vmul.f32 %v771_v12, %v4274_v30 }
 0x18f   : > { %862 = vst [vmem:[#allocation3 + $0x78] sm:$0xff] %v3888_v45 }
 0x190   : > { %863 = vst [vmem:[#allocation3 + $0x28] sm:$0xff] %v3888_v45  ;;  %v808_v52 = vmul.f32 %v4304_v59, %v786_v13  ;;  %v809_v15 = vmul.f32 %v4306_v60, %v787_v14 }
 0x192   : > { %v830_v53 = vadd.f32 %v4308_v9, %v808_v52  ;;  %v831_v17 = vadd.f32 %v4310_v10, %v809_v15 }
 0x194   : > { %v839_v61 = vpack.c.bf16 %v831_v17, %v830_v53 }
 0x196   : > { %847 = vst [vmem:[#allocation2 + $0x38] sm:$0xff] %v839_v61 }
 0x197 PF: > { %v3122_v23 = vld [vmem:[%s4135_s30 + $0xe0] sm:$0xf]  ;;  %v3565_v30 = vld [vmem:[%s4135_s30 + $0xec] sm:$0xf0]  ;;  %v3563_v10 = vld [vmem:[%s4135_s30 + $0xe4] sm:$0xf] }
 0x198   : > { %v3250_v59 = vld [vmem:[%s4135_s30 + $0x1e0] sm:$0xf]  ;;  %v3123_v60 = vor.u32 %v3565_v30, %v3122_v23  ;;  %v3597_v9 = vld [vmem:[%s4135_s30 + $0x1ec] sm:$0xf0]  ;;  %v3124_v62 = vld [vmem:[%s4135_s30 + $0xf0] sm:$0xf0] }
 0x199   : > { %v3251_v16 = vor.u32 %v3597_v9, %v3250_v59  ;;  %v3127_v18 = vor.u32 %v3563_v10, %v3124_v62  ;;  %v3595_v22 = vld [vmem:[%s4135_s30 + $0x1e4] sm:$0xf]  ;;  %v3252_v31 = vld [vmem:[%s4135_s30 + $0x1f0] sm:$0xf0]  ;;  %v3106_v63 = vld [vmem:[%s4135_s30 + $0xc0] sm:$0xf] }
 0x19a   : > { %1306 = vmatpush.bf16.msra.mxu0 %v3123_v60  ;;  %v3255_v32 = vor.u32 %v3595_v22, %v3252_v31  ;;  %v3561_v1 = vld [vmem:[%s4135_s30 + $0xcc] sm:$0xf0]  ;;  %v3234_v19 = vld [vmem:[%s4135_s30 + $0x1c0] sm:$0xf]  ;;  %v3559_v7 = vld [vmem:[%s4135_s30 + $0xc4] sm:$0xf] }
 0x19b   : > { %v3593_v25 = vld [vmem:[%s4135_s30 + $0x1cc] sm:$0xf0]  ;;  %1335 = vmatpush.bf16.msra.mxu1 %v3251_v16  ;;  %1364 = vmatpush.bf16.msra.mxu2 %v3127_v18  ;;  %v3107_v26 = vor.u32 %v3561_v1, %v3106_v63  ;;  %v3108_v24 = vld [vmem:[%s4135_s30 + $0xd0] sm:$0xf0]  ;;  %v3591_v27 = vld [vmem:[%s4135_s30 + $0x1c4] sm:$0xf] }
 0x19c   : > { %v3235_v6 = vor.u32 %v3593_v25, %v3234_v19  ;;  %1393 = vmatpush.bf16.msra.mxu3 %v3255_v32  ;;  %v3111_v33 = vor.u32 %v3559_v7, %v3108_v24  ;;  %v3236_v34 = vld [vmem:[%s4135_s30 + $0x1d0] sm:$0xf0]  ;;  %v3090_v38 = vld [vmem:[%s4135_s30 + $0xa0] sm:$0xf]  ;;  %v3557_v35 = vld [vmem:[%s4135_s30 + $0xac] sm:$0xf0] }
 0x19d   : > { %v3239_v37 = vor.u32 %v3591_v27, %v3236_v34  ;;  %v3218_v39 = vld [vmem:[%s4135_s30 + $0x1a0] sm:$0xf]  ;;  %v3589_v40 = vld [vmem:[%s4135_s30 + $0x1ac] sm:$0xf0]  ;;  %v3555_v36 = vld [vmem:[%s4135_s30 + $0xa4] sm:$0xf]  ;;  %v3091_v41 = vor.u32 %v3557_v35, %v3090_v38 }
 0x19e   : > { %1307 = vmatpush.bf16.msra.mxu0 %v3107_v26  ;;  %v3092_v42 = vld [vmem:[%s4135_s30 + $0xb0] sm:$0xf0]  ;;  %v3587_v43 = vld [vmem:[%s4135_s30 + $0x1a4] sm:$0xf]  ;;  %v3219_v45 = vor.u32 %v3589_v40, %v3218_v39  ;;  %v3074_v50 = vld [vmem:[%s4135_s30 + $0x80] sm:$0xf] }
 0x19f   : > { %v3220_v44 = vld [vmem:[%s4135_s30 + $0x1b0] sm:$0xf0]  ;;  %1336 = vmatpush.bf16.msra.mxu1 %v3235_v6  ;;  %1365 = vmatpush.bf16.msra.mxu2 %v3111_v33  ;;  %v3095_v48 = vor.u32 %v3555_v36, %v3092_v42  ;;  %v3553_v46 = vld [vmem:[%s4135_s30 + $0x8c] sm:$0xf0]  ;;  %v3202_v47 = vld [vmem:[%s4135_s30 + $0x180] sm:$0xf] }
 0x1a0   : > { %1394 = vmatpush.bf16.msra.mxu3 %v3239_v37  ;;  %v3223_v51 = vor.u32 %v3587_v43, %v3220_v44  ;;  %v3585_v28 = vld [vmem:[%s4135_s30 + $0x18c] sm:$0xf0]  ;;  %v3551_v54 = vld [vmem:[%s4135_s30 + $0x84] sm:$0xf]  ;;  %v3076_v55 = vld [vmem:[%s4135_s30 + $0x90] sm:$0xf0]  ;;  %v3075_v56 = vor.u32 %v3553_v46, %v3074_v50 }
 0x1a1   : > { %v3583_v20 = vld [vmem:[%s4135_s30 + $0x184] sm:$0xf]  ;;  %v3204_v21 = vld [vmem:[%s4135_s30 + $0x190] sm:$0xf0]  ;;  %v3203_v29 = vor.u32 %v3585_v28, %v3202_v47  ;;  %v3079_v57 = vor.u32 %v3551_v54, %v3076_v55  ;;  %v3058_v58 = vld [vmem:[%s4135_s30 + $0x60] sm:$0xf] }
 0x1a2   : > { %1308 = vmatpush.bf16.msra.mxu0 %v3091_v41  ;;  %v3549_v8 = vld [vmem:[%s4135_s30 + $0x6c] sm:$0xf0]  ;;  %v3186_v3 = vld [vmem:[%s4135_s30 + $0x160] sm:$0xf]  ;;  %v3207_v49 = vor.u32 %v3583_v20, %v3204_v21  ;;  %v3547_v4 = vld [vmem:[%s4135_s30 + $0x64] sm:$0xf] }
 0x1a3   : > { %1337 = vmatpush.bf16.msra.mxu1 %v3219_v45  ;;  %1366 = vmatpush.bf16.msra.mxu2 %v3095_v48  ;;  %v3581_v0 = vld [vmem:[%s4135_s30 + $0x16c] sm:$0xf0]  ;;  %v3060_v2 = vld [vmem:[%s4135_s30 + $0x70] sm:$0xf0]  ;;  %v3579_v5 = vld [vmem:[%s4135_s30 + $0x164] sm:$0xf]  ;;  %v3059_v12 = vor.u32 %v3549_v8, %v3058_v58 }
 0x1a4   : > { %1395 = vmatpush.bf16.msra.mxu3 %v3223_v51  ;;  %v3188_v11 = vld [vmem:[%s4135_s30 + $0x170] sm:$0xf0]  ;;  %v3187_v13 = vor.u32 %v3581_v0, %v3186_v3  ;;  %v3063_v14 = vor.u32 %v3547_v4, %v3060_v2  ;;  %v3042_v52 = vld [vmem:[%s4135_s30 + $0x40] sm:$0xf]  ;;  %v3545_v15 = vld [vmem:[%s4135_s30 + $0x4c] sm:$0xf0] }
 0x1a5   : > { %v3170_v53 = vld [vmem:[%s4135_s30 + $0x140] sm:$0xf]  ;;  %v3191_v17 = vor.u32 %v3579_v5, %v3188_v11  ;;  %v3577_v61 = vld [vmem:[%s4135_s30 + $0x14c] sm:$0xf0]  ;;  %v3543_v23 = vld [vmem:[%s4135_s30 + $0x44] sm:$0xf]  ;;  %v3043_v9 = vor.u32 %v3545_v15, %v3042_v52 }
 0x1a6   : > { %1309 = vmatpush.bf16.msra.mxu0 %v3075_v56  ;;  %v3044_v30 = vld [vmem:[%s4135_s30 + $0x50] sm:$0xf0]  ;;  %v3575_v59 = vld [vmem:[%s4135_s30 + $0x144] sm:$0xf]  ;;  %v3171_v10 = vor.u32 %v3577_v61, %v3170_v53  ;;  %v3026_v16 = vld [vmem:[%s4135_s30 + $0x20] sm:$0xf] }
 0x1a7   : > { %1338 = vmatpush.bf16.msra.mxu1 %v3203_v29  ;;  %1367 = vmatpush.bf16.msra.mxu2 %v3079_v57  ;;  %v3172_v60 = vld [vmem:[%s4135_s30 + $0x150] sm:$0xf0]  ;;  %v3047_v62 = vor.u32 %v3543_v23, %v3044_v30  ;;  %v3541_v18 = vld [vmem:[%s4135_s30 + $0x2c] sm:$0xf0]  ;;  %v3154_v22 = vld [vmem:[%s4135_s30 + $0x120] sm:$0xf] }
 0x1a8   : > { %1396 = vmatpush.bf16.msra.mxu3 %v3207_v49  ;;  %v3175_v31 = vor.u32 %v3575_v59, %v3172_v60  ;;  %v3573_v63 = vld [vmem:[%s4135_s30 + $0x12c] sm:$0xf0]  ;;  %v3539_v32 = vld [vmem:[%s4135_s30 + $0x24] sm:$0xf]  ;;  %v3028_v1 = vld [vmem:[%s4135_s30 + $0x30] sm:$0xf0]  ;;  %v3027_v26 = vor.u32 %v3541_v18, %v3026_v16 }
 0x1a9   : > { %v3571_v19 = vld [vmem:[%s4135_s30 + $0x124] sm:$0xf]  ;;  %v3156_v25 = vld [vmem:[%s4135_s30 + $0x130] sm:$0xf0]  ;;  %v3010_v6 = vld [vmem:[%s4135_s30] sm:$0xf]  ;;  %v3155_v24 = vor.u32 %v3573_v63, %v3154_v22  ;;  %v3031_v27 = vor.u32 %v3539_v32, %v3028_v1 }
 0x1aa   : > { %1310 = vmatpush.bf16.msra.mxu0 %v3059_v12  ;;  %v3537_v7 = vld [vmem:[%s4135_s30 + $0xc] sm:$0xf0]  ;;  %v3138_v33 = vld [vmem:[%s4135_s30 + $0x100] sm:$0xf]  ;;  %v3535_v38 = vld [vmem:[%s4135_s30 + $0x4] sm:$0xf]  ;;  %v3159_v35 = vor.u32 %v3571_v19, %v3156_v25 }
 0x1ab   : > { %1339 = vmatpush.bf16.msra.mxu1 %v3187_v13  ;;  %1368 = vmatpush.bf16.msra.mxu2 %v3063_v14  ;;  %v3569_v34 = vld [vmem:[%s4135_s30 + $0x10c] sm:$0xf0]  ;;  %v3012_v37 = vld [vmem:[%s4135_s30 + $0x10] sm:$0xf0]  ;;  %v3567_v39 = vld [vmem:[%s4135_s30 + $0x104] sm:$0xf]  ;;  %v3011_v43 = vor.u32 %v3537_v7, %v3010_v6 }
 0x1ac   : > { %1397 = vmatpush.bf16.msra.mxu3 %v3191_v17  ;;  %v3140_v40 = vld [vmem:[%s4135_s30 + $0x110] sm:$0xf0]  ;;  %v2978_v36 = vld [vmem:[#allocation2] sm:$0xf]  ;;  %v3564_v41 = vld [vmem:[%s4135_s30 + $0xec] sm:$0xf]  ;;  %v3139_v50 = vor.u32 %v3569_v34, %v3138_v33  ;;  %v3015_v46 = vor.u32 %v3535_v38, %v3012_v37 }
 0x1ad   : > { %v3132_v42 = vld [vmem:[%s4135_s30 + $0xf8] sm:$0xf0]  ;;  %v3528_v44 = vld [vmem:[#allocation2 + $0x4] sm:$0xf0]  ;;  %v3596_v45 = vld [vmem:[%s4135_s30 + $0x1ec] sm:$0xf]  ;;  %v3143_v28 = vor.u32 %v3567_v39, %v3140_v40 }
 0x1ae   : > { %1311 = vmatpush.bf16.msra.mxu0 %v3043_v9  ;;  %v3260_v48 = vld [vmem:[%s4135_s30 + $0x1f8] sm:$0xf0]  ;;  %v3527_v47 = vld [vmem:[#allocation2 + $0x4] sm:$0xf]  ;;  %v2980_v51 = vld [vmem:[#allocation2 + $0x8] sm:$0xf0]  ;;  %v3135_v54 = vor.u32 %v3564_v41, %v3132_v42  ;;  %v4461_v56 = vor.u32 %v3528_v44, %v2978_v36 }
 0x1af   : > { %1340 = vmatpush.bf16.msra.mxu1 %v3171_v10  ;;  %1369 = vmatpush.bf16.msra.mxu2 %v3047_v62  ;;  %v3130_v55 = vld [vmem:[%s4135_s30 + $0xe8] sm:$0xf]  ;;  %v3566_v20 = vld [vmem:[%s4135_s30 + $0xf4] sm:$0xf0]  ;;  %v3263_v29 = vor.u32 %v3596_v45, %v3260_v48  ;;  %v3560_v58 = vld [vmem:[%s4135_s30 + $0xcc] sm:$0xf]  ;;  %v4466_v3 = vor.u32 %v3527_v47, %v2980_v51 }
 0x1b0   : > { %1398 = vmatpush.bf16.msra.mxu3 %v3175_v31  ;;  %v3258_v21 = vld [vmem:[%s4135_s30 + $0x1e8] sm:$0xf]  ;;  %v3598_v57 = vld [vmem:[%s4135_s30 + $0x1f4] sm:$0xf0]  ;;  %v3116_v8 = vld [vmem:[%s4135_s30 + $0xd8] sm:$0xf0]  ;;  %v3131_v4 = vor.u32 %v3566_v20, %v3130_v55 }
 0x1b1   : > { %v3592_v49 = vld [vmem:[%s4135_s30 + $0x1cc] sm:$0xf]  ;;  %v3244_v0 = vld [vmem:[%s4135_s30 + $0x1d8] sm:$0xf0]  ;;  %v3259_v2 = vor.u32 %v3598_v57, %v3258_v21  ;;  %v3119_v5 = vor.u32 %v3560_v58, %v3116_v8  ;;  %v3114_v11 = vld [vmem:[%s4135_s30 + $0xc8] sm:$0xf] }
 0x1b2   : > { %1312 = vmatpush.bf16.msra.mxu0 %v3027_v26  ;;  %v3562_v12 = vld [vmem:[%s4135_s30 + $0xd4] sm:$0xf0]  ;;  %v3242_v13 = vld [vmem:[%s4135_s30 + $0x1c8] sm:$0xf]  ;;  %v3247_v14 = vor.u32 %v3592_v49, %v3244_v0  ;;  %v3556_v15 = vld [vmem:[%s4135_s30 + $0xac] sm:$0xf] }
 0x1b3   : > { %1341 = vmatpush.bf16.msra.mxu1 %v3155_v24  ;;  %1370 = vmatpush.bf16.msra.mxu2 %v3031_v27  ;;  %v3594_v52 = vld [vmem:[%s4135_s30 + $0x1d4] sm:$0xf0]  ;;  %v3100_v53 = vld [vmem:[%s4135_s30 + $0xb8] sm:$0xf0]  ;;  %v3588_v17 = vld [vmem:[%s4135_s30 + $0x1ac] sm:$0xf]  ;;  %v3115_v23 = vor.u32 %v3562_v12, %v3114_v11 }
 0x1b4   : > { %1399 = vmatpush.bf16.msra.mxu3 %v3159_v35  ;;  %v3228_v61 = vld [vmem:[%s4135_s30 + $0x1b8] sm:$0xf0]  ;;  %v3243_v30 = vor.u32 %v3594_v52, %v3242_v13  ;;  %v3103_v59 = vor.u32 %v3556_v15, %v3100_v53  ;;  %v3098_v60 = vld [vmem:[%s4135_s30 + $0xa8] sm:$0xf]  ;;  %v3558_v9 = vld [vmem:[%s4135_s30 + $0xb4] sm:$0xf0] }
 0x1b5   : > { %v3226_v10 = vld [vmem:[%s4135_s30 + $0x1a8] sm:$0xf]  ;;  %v3231_v62 = vor.u32 %v3588_v17, %v3228_v61  ;;  %v3590_v16 = vld [vmem:[%s4135_s30 + $0x1b4] sm:$0xf0]  ;;  %v3552_v18 = vld [vmem:[%s4135_s30 + $0x8c] sm:$0xf]  ;;  %v3099_v32 = vor.u32 %v3558_v9, %v3098_v60 }
 0x1b6   : > { %1313 = vmatpush.bf16.msra.mxu0 %v3011_v43  ;;  %v3084_v22 = vld [vmem:[%s4135_s30 + $0x98] sm:$0xf0]  ;;  %v3584_v31 = vld [vmem:[%s4135_s30 + $0x18c] sm:$0xf]  ;;  %v2986_v1 = vld [vmem:[#allocation2 + $0x10] sm:$0xf]  ;;  %v3227_v19 = vor.u32 %v3590_v16, %v3226_v10 }
 0x1b7   : > { %1342 = vmatpush.bf16.msra.mxu1 %v3139_v50  ;;  %1371 = vmatpush.bf16.msra.mxu2 %v3015_v46  ;;  %v3212_v63 = vld [vmem:[%s4135_s30 + $0x198] sm:$0xf0]  ;;  %v3087_v25 = vor.u32 %v3552_v18, %v3084_v22  ;;  %v3082_v26 = vld [vmem:[%s4135_s30 + $0x88] sm:$0xf]  ;;  %v3554_v6 = vld [vmem:[%s4135_s30 + $0x94] sm:$0xf0] }
 0x1b8   : > { %1400 = vmatpush.bf16.msra.mxu3 %v3143_v28  ;;  %v3210_v7 = vld [vmem:[%s4135_s30 + $0x188] sm:$0xf]  ;;  %v3215_v24 = vor.u32 %v3584_v31, %v3212_v63  ;;  %v3586_v27 = vld [vmem:[%s4135_s30 + $0x194] sm:$0xf0]  ;;  %v3548_v33 = vld [vmem:[%s4135_s30 + $0x6c] sm:$0xf]  ;;  %v3083_v36 = vor.u32 %v3554_v6, %v3082_v26 }
 0x1b9   : > { %1314 = vmatmul.bf16.vlgmr.msra.gmra.mxu0 %v4461_v56  ;;  %v3068_v34 = vld [vmem:[%s4135_s30 + $0x78] sm:$0xf0]  ;;  %v3530_v38 = vld [vmem:[#allocation2 + $0x14] sm:$0xf0]  ;;  %v3580_v35 = vld [vmem:[%s4135_s30 + $0x16c] sm:$0xf]  ;;  %v3211_v41 = vor.u32 %v3586_v27, %v3210_v7 }
 0x1ba   : > { %1343 = vmatmul.bf16.vlgmr.msra.gmra.mxu1 %v4466_v3  ;;  %1372 = vmatmul.bf16.vlgmr.msra.gmra.mxu2 %v4461_v56  ;;  %v3196_v37 = vld [vmem:[%s4135_s30 + $0x178] sm:$0xf0]  ;;  %v3529_v39 = vld [vmem:[#allocation2 + $0x14] sm:$0xf]  ;;  %v3071_v42 = vor.u32 %v3548_v33, %v3068_v34  ;;  %v3066_v43 = vld [vmem:[%s4135_s30 + $0x68] sm:$0xf]  ;;  %v4501_v48 = vor.u32 %v3530_v38, %v2986_v1 }
 0x1bb   : > { %1480 = vmatpush.bf16.msrb.mxu2 %v3135_v54  ;;  %1401 = vmatmul.bf16.vlgmr.msra.gmra.mxu3 %v4466_v3  ;;  %v2988_v40 = vld [vmem:[#allocation2 + $0x18] sm:$0xf0]  ;;  %v3550_v44 = vld [vmem:[%s4135_s30 + $0x74] sm:$0xf0]  ;;  %v3194_v45 = vld [vmem:[%s4135_s30 + $0x168] sm:$0xf]  ;;  %v3199_v50 = vor.u32 %v3580_v35, %v3196_v37 }
 0x1bc   : > { %1509 = vmatpush.bf16.msrb.mxu3 %v3263_v29  ;;  %1422 = vmatpush.bf16.msrb.mxu0 %v3131_v4  ;;  %v3582_v46 = vld [vmem:[%s4135_s30 + $0x174] sm:$0xf0]  ;;  %v3544_v47 = vld [vmem:[%s4135_s30 + $0x4c] sm:$0xf]  ;;  %v3052_v51 = vld [vmem:[%s4135_s30 + $0x58] sm:$0xf0]  ;;  %v4506_v28 = vor.u32 %v3529_v39, %v2988_v40  ;;  %v3067_v20 = vor.u32 %v3550_v44, %v3066_v43 }
 0x1bd   : > { %1451 = vmatpush.bf16.msrb.mxu1 %v3259_v2  ;;  %v3576_v54 = vld [vmem:[%s4135_s30 + $0x14c] sm:$0xf]  ;;  %v3180_v55 = vld [vmem:[%s4135_s30 + $0x158] sm:$0xf0]  ;;  %v3195_v21 = vor.u32 %v3582_v46, %v3194_v45  ;;  %v3055_v29 = vor.u32 %v3544_v47, %v3052_v51  ;;  %v3050_v57 = vld [vmem:[%s4135_s30 + $0x48] sm:$0xf] }
 0x1be   : > { %v3546_v58 = vld [vmem:[%s4135_s30 + $0x54] sm:$0xf0]  ;;  %v3183_v8 = vor.u32 %v3576_v54, %v3180_v55  ;;  %v3178_v49 = vld [vmem:[%s4135_s30 + $0x148] sm:$0xf]  ;;  %v3540_v2 = vld [vmem:[%s4135_s30 + $0x2c] sm:$0xf] }
 0x1bf   : > { %1481 = vmatpush.bf16.msrb.mxu2 %v3119_v5  ;;  %v3578_v0 = vld [vmem:[%s4135_s30 + $0x154] sm:$0xf0]  ;;  %v3051_v4 = vor.u32 %v3546_v58, %v3050_v57  ;;  %v3036_v5 = vld [vmem:[%s4135_s30 + $0x38] sm:$0xf0]  ;;  %v3572_v11 = vld [vmem:[%s4135_s30 + $0x12c] sm:$0xf] }
 0x1c0   : > { %1510 = vmatpush.bf16.msrb.mxu3 %v3247_v14  ;;  %1423 = vmatpush.bf16.msrb.mxu0 %v3115_v23  ;;  %v3179_v12 = vor.u32 %v3578_v0, %v3178_v49  ;;  %v3039_v13 = vor.u32 %v3540_v2, %v3036_v5  ;;  %v3164_v14 = vld [vmem:[%s4135_s30 + $0x138] sm:$0xf0]  ;;  %v3034_v52 = vld [vmem:[%s4135_s30 + $0x28] sm:$0xf]  ;;  %v3542_v15 = vld [vmem:[%s4135_s30 + $0x34] sm:$0xf0] }
 0x1c1   : > { %1452 = vmatpush.bf16.msrb.mxu1 %v3243_v30  ;;  %v3167_v53 = vor.u32 %v3572_v11, %v3164_v14  ;;  %v3162_v17 = vld [vmem:[%s4135_s30 + $0x128] sm:$0xf]  ;;  %v3574_v61 = vld [vmem:[%s4135_s30 + $0x134] sm:$0xf0]  ;;  %v3536_v23 = vld [vmem:[%s4135_s30 + $0xc] sm:$0xf]  ;;  %v3035_v9 = vor.u32 %v3542_v15, %v3034_v52 }
 0x1c2   : > { %v3020_v30 = vld [vmem:[%s4135_s30 + $0x18] sm:$0xf0]  ;;  %v3163_v10 = vor.u32 %v3574_v61, %v3162_v17  ;;  %v3018_v16 = vld [vmem:[%s4135_s30 + $0x8] sm:$0xf]  ;;  %v3538_v18 = vld [vmem:[%s4135_s30 + $0x14] sm:$0xf0] }
 0x1c3   : > { %1482 = vmatpush.bf16.msrb.mxu2 %v3103_v59  ;;  %v3568_v59 = vld [vmem:[%s4135_s30 + $0x10c] sm:$0xf]  ;;  %v3148_v60 = vld [vmem:[%s4135_s30 + $0x118] sm:$0xf0]  ;;  %v3146_v31 = vld [vmem:[%s4135_s30 + $0x108] sm:$0xf]  ;;  %v3019_v26 = vor.u32 %v3538_v18, %v3018_v16 }
 0x1c4   : > { %1511 = vmatpush.bf16.msrb.mxu3 %v3231_v62  ;;  %1424 = vmatpush.bf16.msrb.mxu0 %v3099_v32  ;;  %v3023_v62 = vor.u32 %v3536_v23, %v3020_v30  ;;  %v3151_v22 = vor.u32 %v3568_v59, %v3148_v60  ;;  %v3570_v63 = vld [vmem:[%s4135_s30 + $0x114] sm:$0xf0]  ;;  %v2994_v32 = vld [vmem:[#allocation2 + $0x20] sm:$0xf]  ;;  %v3532_v1 = vld [vmem:[#allocation2 + $0x24] sm:$0xf0] }
 0x1c5   : > { %1453 = vmatpush.bf16.msrb.mxu1 %v3227_v19  ;;  %v3531_v19 = vld [vmem:[#allocation2 + $0x24] sm:$0xf]  ;;  %v3147_v6 = vor.u32 %v3570_v63, %v3146_v31  ;;  %v2995_v7 = vor.u32 %v3532_v1, %v2994_v32  ;;  %v3002_v27 = vld [vmem:[#allocation2 + $0x30] sm:$0xf]  ;;  %v3534_v33 = vld [vmem:[#allocation2 + $0x34] sm:$0xf0] }
 0x1c6   : > { %v3533_v34 = vld [vmem:[#allocation2 + $0x34] sm:$0xf]  ;;  %v3004_v38 = vld [vmem:[#allocation2 + $0x38] sm:$0xf0]  ;;  %v3003_v35 = vor.u32 %v3534_v33, %v3002_v27  ;;  %v3314_v40 = vld [vmem:[%s4133_s23 + $0x60] sm:$0xf] }
 0x1c7   : > { %1483 = vmatpush.bf16.msrb.mxu2 %v3087_v25  ;;  %v2996_v25 = vld [vmem:[#allocation2 + $0x28] sm:$0xf0]  ;;  %v3007_v37 = vor.u32 %v3533_v34, %v3004_v38  ;;  %v3630_v43 = vld [vmem:[%s4133_s23 + $0xf4] sm:$0xf0]  ;;  %v3306_v45 = vld [vmem:[%s4133_s23 + $0x50] sm:$0xf] }
 0x1c8   : > { %1512 = vmatpush.bf16.msrb.mxu3 %v3215_v24  ;;  %1425 = vmatpush.bf16.msrb.mxu0 %v3083_v36  ;;  %v2999_v24 = vor.u32 %v3531_v19, %v2996_v25  ;;  %v3612_v36 = vld [vmem:[%s4133_s23 + $0x64] sm:$0xf0]  ;;  %v3378_v46 = vld [vmem:[%s4133_s23 + $0xe0] sm:$0xf]  ;;  %v3290_v57 = vld [vmem:[%s4133_s23 + $0x30] sm:$0xf] }
 0x1c9   : > { %1454 = vmatpush.bf16.msrb.mxu1 %v3211_v41  ;;  %1319 = vmatmul.bf16.gmra.mxu0 %v4501_v48  ;;  %v3315_v41 = vor.u32 %v3612_v36, %v3314_v40  ;;  %v3628_v47 = vld [vmem:[%s4133_s23 + $0xe4] sm:$0xf0]  ;;  %v3606_v58 = vld [vmem:[%s4133_s23 + $0x34] sm:$0xf0]  ;;  %v3362_v49 = vld [vmem:[%s4133_s23 + $0xc0] sm:$0xf] }
 0x1ca   : > { %1348 = vmatmul.bf16.gmra.mxu1 %v4506_v28  ;;  %1377 = vmatmul.bf16.gmra.mxu2 %v4501_v48  ;;  %v3379_v51 = vor.u32 %v3628_v47, %v3378_v46  ;;  %v3608_v54 = vld [vmem:[%s4133_s23 + $0x44] sm:$0xf0]  ;;  %v4565_v2 = vld [vmem:[%s543_s19] sm:$0xf]  ;;  %v3622_v14 = vld [vmem:[%s4133_s23 + $0xb4] sm:$0xf0] }
 0x1cb   : > { %1484 = vmatpush.bf16.msrb.mxu2 %v3071_v42  ;;  %1406 = vmatmul.bf16.gmra.mxu3 %v4506_v28  ;;  %v3386_v42 = vld [vmem:[%s4133_s23 + $0xf0] sm:$0xf]  ;;  %v3624_v0 = vld [vmem:[%s4133_s23 + $0xc4] sm:$0xf0]  ;;  %v3282_v5 = vld [vmem:[%s4133_s23 + $0x20] sm:$0xf] }
 0x1cc   : > { %1513 = vmatpush.bf16.msrb.mxu3 %v3199_v50  ;;  %1426 = vmatpush.bf16.msrb.mxu0 %v3067_v20  ;;  %v3387_v44 = vor.u32 %v3630_v43, %v3386_v42  ;;  %v3370_v20 = vld [vmem:[%s4133_s23 + $0xd0] sm:$0xf]  ;;  %v3604_v11 = vld [vmem:[%s4133_s23 + $0x24] sm:$0xf0]  ;;  %v4572_v52 = vperm.slane %v4565_v2, 0  ;;  %v4584_v31 = vperm.slane %v4565_v2, 1 }
 0x1cd   : > { %1455 = vmatpush.bf16.msrb.mxu1 %v3195_v21  ;;  %v3626_v21 = vld [vmem:[%s4133_s23 + $0xd4] sm:$0xf0]  ;;  %v3346_v30 = vld [vmem:[%s4133_s23 + $0xa0] sm:$0xf]  ;;  %v3620_v59 = vld [vmem:[%s4133_s23 + $0xa4] sm:$0xf0] }
 0x1ce   : > { %v3602_v17 = vld [vmem:[%s4133_s23 + $0x14] sm:$0xf0]  ;;  %v3600_v16 = vld [vmem:[%s4133_s23 + $0x4] sm:$0xf0]  ;;  %v3338_v63 = vld [vmem:[%s4133_s23 + $0x90] sm:$0xf] }
 0x1cf   : > { %1485 = vmatpush.bf16.msrb.mxu2 %v3055_v29  ;;  %v3371_v29 = vor.u32 %v3626_v21, %v3370_v20  ;;  %v3618_v32 = vld [vmem:[%s4133_s23 + $0x94] sm:$0xf0]  ;;  %v3330_v27 = vld [vmem:[%s4133_s23 + $0x80] sm:$0xf]  ;;  %v3616_v33 = vld [vmem:[%s4133_s23 + $0x84] sm:$0xf0] }
 0x1d0   : > { %1514 = vmatpush.bf16.msrb.mxu3 %v3183_v8  ;;  %1427 = vmatpush.bf16.msrb.mxu0 %v3051_v4  ;;  %v3291_v8 = vor.u32 %v3606_v58, %v3290_v57  ;;  %v3363_v4 = vor.u32 %v3624_v0, %v3362_v49  ;;  %v3339_v19 = vor.u32 %v3618_v32, %v3338_v63  ;;  %v3450_v20 = vld [vmem:[%s4133_s23 + $0x170] sm:$0xf]  ;;  %v3646_v21 = vld [vmem:[%s4133_s23 + $0x174] sm:$0xf0]  ;;  %v3442_v32 = vld [vmem:[%s4133_s23 + $0x160] sm:$0xf] }
 0x1d1   : > { %1456 = vmatpush.bf16.msrb.mxu1 %v3179_v12  ;;  %v3283_v12 = vor.u32 %v3604_v11, %v3282_v5  ;;  %v3662_v49 = vld [vmem:[%s4133_s23 + $0x1f4] sm:$0xf0]  ;;  %p3520_p12 = scmp.ne.s32.totalorder %s3877_s11, 1 }
 0x1d3   : > { %1486 = vmatpush.bf16.msrb.mxu2 %v3039_v13  ;;  %v3354_v13 = vld [vmem:[%s4133_s23 + $0xb0] sm:$0xf] }
 0x1d4   : > { %1515 = vmatpush.bf16.msrb.mxu3 %v3167_v53  ;;  %1428 = vmatpush.bf16.msrb.mxu0 %v3035_v9  ;;  %v3355_v15 = vor.u32 %v3622_v14, %v3354_v13  ;;  %v3274_v53 = vld [vmem:[%s4133_s23 + $0x10] sm:$0xf] }
 0x1d5   : > { %1457 = vmatpush.bf16.msrb.mxu1 %v3163_v10  ;;  %v3275_v61 = vor.u32 %v3602_v17, %v3274_v53  ;;  %v3347_v10 = vor.u32 %v3620_v59, %v3346_v30 }
 0x1d7   : > { %1487 = vmatpush.bf16.msrb.mxu2 %v3023_v62  ;;  %v3266_v62 = vld [vmem:[%s4133_s23] sm:$0xf] }
 0x1d8   : > { %1516 = vmatpush.bf16.msrb.mxu3 %v3151_v22  ;;  %1429 = vmatpush.bf16.msrb.mxu0 %v3019_v26  ;;  %v3267_v22 = vor.u32 %v3600_v16, %v3266_v62 }
 0x1d9   : > { %1458 = vmatpush.bf16.msrb.mxu1 %v3147_v6  ;;  %1324 = vmatmul.bf16.gmra.mxu0 %v2995_v7 }
 0x1da   : > { %1353 = vmatmul.bf16.gmra.mxu1 %v2999_v24  ;;  %1382 = vmatmul.bf16.gmra.mxu2 %v2995_v7 }
 0x1db   : > { %1411 = vmatmul.bf16.gmra.mxu3 %v2999_v24 }
 0x1dd   : > { %2271 = vmatpush.bf16.msra.mxu1 %v3387_v44 }
 0x1e1   : > { %2272 = vmatpush.bf16.msra.mxu1 %v3379_v51 }
 0x1e5   : > { %2273 = vmatpush.bf16.msra.mxu1 %v3371_v29  ;;  %v3514_v29 = vld [vmem:[%s4133_s23 + $0x1f0] sm:$0xf] }
 0x1e6   : > { %v3515_v5 = vor.u32 %v3662_v49, %v3514_v29  ;;  %v3642_v29 = vld [vmem:[%s4133_s23 + $0x154] sm:$0xf0] }
 0x1e8   : > { %2329 = vmatpush.bf16.msra.mxu3 %v3515_v5  ;;  %v3658_v5 = vld [vmem:[%s4133_s23 + $0x1d4] sm:$0xf0] }
 0x1e9   : > { %1329 = vmatmul.bf16.gmra.mxu0 %v3003_v35  ;;  %2274 = vmatpush.bf16.msra.mxu1 %v3363_v4 }
 0x1ea   : > { %1358 = vmatmul.bf16.gmra.mxu1 %v3007_v37  ;;  %1387 = vmatmul.bf16.gmra.mxu2 %v3003_v35 }
 0x1eb   : > { %1416 = vmatmul.bf16.gmra.mxu3 %v3007_v37 }
 0x1ed   : > { %2275 = vmatpush.bf16.msra.mxu1 %v3355_v15 }
 0x1f1   : > { %2276 = vmatpush.bf16.msra.mxu1 %v3347_v10 }
 0x1f5   : > { %2277 = vmatpush.bf16.msra.mxu1 %v3339_v19  ;;  %v3506_v19 = vld [vmem:[%s4133_s23 + $0x1e0] sm:$0xf] }
 0x1f9   : > { %1430 = vmatmul.bf16.vlgmr.msrb.gmra.mxu0 %v4461_v56 }
 0x1fa   : > { %1459 = vmatmul.bf16.vlgmr.msrb.gmra.mxu1 %v4466_v3  ;;  %1488 = vmatmul.bf16.vlgmr.msrb.gmra.mxu2 %v4461_v56  ;;  %v3322_v56 = vld [vmem:[%s4133_s23 + $0x70] sm:$0xf] }
 0x1fb   : > { %1517 = vmatmul.bf16.vlgmr.msrb.gmra.mxu3 %v4466_v3  ;;  %v3614_v3 = vld [vmem:[%s4133_s23 + $0x74] sm:$0xf0] }
 0x1fc   : > { %v3323_v39 = vor.u32 %v3614_v3, %v3322_v56 }
 0x1fe   : > { %2242 = vmatpush.bf16.msra.mxu0 %v3323_v39 }
 0x202   : > { %2243 = vmatpush.bf16.msra.mxu0 %v3315_v41 }
 0x209   : > { %1435 = vmatmul.bf16.gmra.mxu0 %v4501_v48 }
 0x20a   : > { %1464 = vmatmul.bf16.gmra.mxu1 %v4506_v28  ;;  %1493 = vmatmul.bf16.gmra.mxu2 %v4501_v48  ;;  %v3610_v48 = vld [vmem:[%s4133_s23 + $0x54] sm:$0xf0] }
 0x20b   : > { %1522 = vmatmul.bf16.gmra.mxu3 %v4506_v28  ;;  %v3307_v50 = vor.u32 %v3610_v48, %v3306_v45  ;;  %v3298_v28 = vld [vmem:[%s4133_s23 + $0x40] sm:$0xf] }
 0x20c   : > { %v3299_v55 = vor.u32 %v3608_v54, %v3298_v28 }
 0x20d   : > { %2244 = vmatpush.bf16.msra.mxu0 %v3307_v50 }
 0x211   : > { %2245 = vmatpush.bf16.msra.mxu0 %v3299_v55 }
 0x215   : > { %2246 = vmatpush.bf16.msra.mxu0 %v3291_v8  ;;  %v3451_v8 = vor.u32 %v3646_v21, %v3450_v20  ;;  %v3434_v21 = vld [vmem:[%s4133_s23 + $0x150] sm:$0xf] }
 0x217   : > { %2300 = vmatpush.bf16.msra.mxu2 %v3451_v8 }
 0x219   : > { %1440 = vmatmul.bf16.gmra.mxu0 %v2995_v7 }
 0x21a   : > { %1469 = vmatmul.bf16.gmra.mxu1 %v2999_v24  ;;  %1498 = vmatmul.bf16.gmra.mxu2 %v2995_v7 }
 0x21b   : > { %1527 = vmatmul.bf16.gmra.mxu3 %v2999_v24  ;;  %2247 = vmatpush.bf16.msra.mxu0 %v3283_v12 }
 0x21f   : > { %2248 = vmatpush.bf16.msra.mxu0 %v3275_v61 }
 0x223   : > { %2249 = vmatpush.bf16.msra.mxu0 %v3267_v22 }
 0x229   : > { %1445 = vmatmul.bf16.gmra.mxu0 %v3003_v35 }
 0x22a   : > { %1474 = vmatmul.bf16.gmra.mxu1 %v3007_v37  ;;  %1503 = vmatmul.bf16.gmra.mxu2 %v3003_v35 }
 0x22b   : > { %1532 = vmatmul.bf16.gmra.mxu3 %v3007_v37  ;;  %v3331_v37 = vor.u32 %v3616_v33, %v3330_v27 }
 0x22d   : > { %2278 = vmatpush.bf16.msra.mxu1 %v3331_v37 }
 0x236   : > { %v1315_v23 = vpop.f32.mrf.mxu0 }
 0x237   : > { %v1316_v60 = vadd.f32 %v1315_v23, %v4572_v52  ;;  %v1344_v9 = vpop.f32.mrf.mxu1 }
 0x239   : > { %v4581_v18 = vadd.f32 %v1344_v9, %v1316_v60 }
 0x23b   : > { %v1538_v1 = vmul.f32 %v4581_v18, %v4581_v18 }
 0x23d   : > { %v1570_v25 = vmul.f32 %v1538_v1, %v4581_v18  ;;  %v1373_v26 = vpop.f32.mrf.mxu2  ;;  %v3644_v1 = vld [vmem:[%s4133_s23 + $0x164] sm:$0xf0] }
 0x23e   : > { %v1374_v6 = vadd.f32 %v1373_v26, %v4584_v31  ;;  %v1402_v7 = vpop.f32.mrf.mxu3  ;;  %v1317_v24 = vpop.f32.mrf.mxu0 }
 0x23f   : > { %v1602_v34 = vmul.f32 0.044715, %v1570_v25  ;;  %v1318_v38 = vadd.f32 %v1317_v24, %v4572_v52  ;;  %v1346_v35 = vpop.f32.mrf.mxu1  ;;  %v3660_v24 = vld [vmem:[%s4133_s23 + $0x1e4] sm:$0xf0] }
 0x240   : > { %v4595_v56 = vadd.f32 %v1402_v7, %v1374_v6  ;;  %v3443_v7 = vor.u32 %v3644_v1, %v3442_v32 }
 0x241   : > { %v1634_v3 = vadd.f32 %v1602_v34, %v4581_v18  ;;  %v4598_v39 = vadd.f32 %v1346_v35, %v1318_v38  ;;  %v3507_v34 = vor.u32 %v3660_v24, %v3506_v19 }
 0x242   : > { %v1539_v40 = vmul.f32 %v4595_v56, %v4595_v56  ;;  %2301 = vmatpush.bf16.msra.mxu2 %v3443_v7 }
 0x243   : > { %v1666_v36 = vmul.f32 0.7978846, %v1634_v3  ;;  %v1542_v41 = vmul.f32 %v4598_v39, %v4598_v39  ;;  %2330 = vmatpush.bf16.msra.mxu3 %v3507_v34  ;;  %v3316_v34 = vld [vmem:[%s4133_s23 + $0x68] sm:$0xf0] }
 0x244   : > { %v1571_v42 = vmul.f32 %v1539_v40, %v4595_v56 }
 0x245   : > { %v1574_v43 = vmul.f32 %v1542_v41, %v4598_v39  ;;  %v1375_v44 = vpop.f32.mrf.mxu2  ;;  %3733 = vtanh.f32 %v1666_v36 }
 0x246   : > { %v1603_v45 = vmul.f32 0.044715, %v1571_v42  ;;  %v1376_v48 = vadd.f32 %v1375_v44, %v4584_v31  ;;  %v1404_v50 = vpop.f32.mrf.mxu3  ;;  %v1320_v46 = vpop.f32.mrf.mxu0 }
 0x247   : > { %v1606_v47 = vmul.f32 0.044715, %v1574_v43  ;;  %v1321_v51 = vadd.f32 %v1320_v46, %v4572_v52  ;;  %v1349_v28 = vpop.f32.mrf.mxu1 }
 0x248   : > { %v1635_v54 = vadd.f32 %v1603_v45, %v4595_v56  ;;  %v4609_v55 = vadd.f32 %v1404_v50, %v1376_v48 }
 0x249   : > { %v1638_v57 = vadd.f32 %v1606_v47, %v4598_v39  ;;  %v4615_v58 = vadd.f32 %v1349_v28, %v1321_v51 }
 0x24a   : > { %v1667_v0 = vmul.f32 0.7978846, %v1635_v54  ;;  %v1543_v4 = vmul.f32 %v4609_v55, %v4609_v55 }
 0x24b   : > { %v1670_v11 = vmul.f32 0.7978846, %v1638_v57  ;;  %v1546_v12 = vmul.f32 %v4615_v58, %v4615_v58  ;;  %v3734_v14 = vpop.eup %3733  ;;  %v3498_v57 = vld [vmem:[%s4133_s23 + $0x1d0] sm:$0xf] }
 0x24c   : > { %3735 = vtanh.f32 %v1667_v0  ;;  %v1575_v13 = vmul.f32 %v1543_v4, %v4609_v55  ;;  %v1730_v10 = vadd.f32 1.0, %v3734_v14  ;;  %v3435_v4 = vor.u32 %v3642_v29, %v3434_v21 }
 0x24d   : > { %3737 = vtanh.f32 %v1670_v11  ;;  %v1578_v15 = vmul.f32 %v1546_v12, %v4615_v58  ;;  %v1378_v53 = vpop.f32.mrf.mxu2 }
 0x24e   : > { %v1607_v17 = vmul.f32 0.044715, %v1575_v13  ;;  %v1379_v61 = vadd.f32 %v1378_v53, %v4584_v31  ;;  %v1407_v23 = vpop.f32.mrf.mxu3  ;;  %v1322_v30 = vpop.f32.mrf.mxu0  ;;  %v1762_v35 = vmul.f32 0.5, %v1730_v10  ;;  %2302 = vmatpush.bf16.msra.mxu2 %v3435_v4 }
 0x24f   : > { %v1610_v59 = vmul.f32 0.044715, %v1578_v15  ;;  %v1323_v60 = vadd.f32 %v1322_v30, %v4572_v52  ;;  %v1351_v9 = vpop.f32.mrf.mxu1  ;;  %v3324_v30 = vld [vmem:[%s4133_s23 + $0x78] sm:$0xf0] }
 0x250   : > { %v1639_v62 = vadd.f32 %v1607_v17, %v4609_v55  ;;  %v4627_v16 = vadd.f32 %v1407_v23, %v1379_v61  ;;  %v1794_v51 = vmul.f32 %v1762_v35, %v4581_v18  ;;  %v3613_v23 = vld [vmem:[%s4133_s23 + $0x74] sm:$0xf] }
 0x251   : > { %v1642_v22 = vadd.f32 %v1610_v59, %v4615_v58  ;;  %v4630_v63 = vadd.f32 %v1351_v9, %v1323_v60  ;;  %v3327_v19 = vor.u32 %v3613_v23, %v3324_v30  ;;  %v3426_v30 = vld [vmem:[%s4133_s23 + $0x140] sm:$0xf] }
 0x252   : > { %v3736_v25 = vpop.eup %3735  ;;  %v1671_v26 = vmul.f32 0.7978846, %v1639_v62  ;;  %v1547_v6 = vmul.f32 %v4627_v16, %v4627_v16 }
 0x253   : > { %v3738_v27 = vpop.eup %3737  ;;  %v1550_v33 = vmul.f32 %v4630_v63, %v4630_v63  ;;  %v1674_v38 = vmul.f32 0.7978846, %v1642_v22  ;;  %v1731_v40 = vadd.f32 1.0, %v3736_v25  ;;  %2358 = vmatpush.bf16.msrb.mxu0 %v3327_v19 }
 0x254   : > { %3739 = vtanh.f32 %v1671_v26  ;;  %v1579_v37 = vmul.f32 %v1547_v6, %v4627_v16  ;;  %v1734_v3 = vadd.f32 1.0, %v3738_v27 }
 0x255   : > { %v1582_v36 = vmul.f32 %v1550_v33, %v4630_v63  ;;  %v1380_v41 = vpop.f32.mrf.mxu2  ;;  %3741 = vtanh.f32 %v1674_v38  ;;  %v1763_v8 = vmul.f32 0.5, %v1731_v40 }
 0x256   : > { %v1611_v42 = vmul.f32 0.044715, %v1579_v37  ;;  %v1381_v43 = vadd.f32 %v1380_v41, %v4584_v31  ;;  %v1409_v44 = vpop.f32.mrf.mxu3  ;;  %v1325_v45 = vpop.f32.mrf.mxu0  ;;  %v1766_v48 = vmul.f32 0.5, %v1734_v3  ;;  %v3629_v41 = vld [vmem:[%s4133_s23 + $0xf4] sm:$0xf] }
 0x257   : > { %v1614_v50 = vmul.f32 0.044715, %v1582_v36  ;;  %v1326_v46 = vadd.f32 %v1325_v45, %v4572_v52  ;;  %v1354_v47 = vpop.f32.mrf.mxu1  ;;  %v1795_v10 = vmul.f32 %v1763_v8, %v4595_v56  ;;  %v3611_v56 = vld [vmem:[%s4133_s23 + $0x64] sm:$0xf] }
 0x258   : > { %v1643_v28 = vadd.f32 %v1611_v42, %v4627_v16  ;;  %v4646_v54 = vadd.f32 %v1409_v44, %v1381_v43  ;;  %v1798_v20 = vmul.f32 %v1766_v48, %v4598_v39  ;;  %v3499_v39 = vor.u32 %v3658_v5, %v3498_v57  ;;  %v3388_v42 = vld [vmem:[%s4133_s23 + $0xf8] sm:$0xf0] }
 0x259   : > { %v4652_v49 = vadd.f32 %v1354_v47, %v1326_v46  ;;  %v1646_v0 = vadd.f32 %v1614_v50, %v4630_v63  ;;  %v3319_v3 = vor.u32 %v3611_v56, %v3316_v34  ;;  %v3391_v50 = vor.u32 %v3629_v41, %v3388_v42  ;;  %v3638_v41 = vld [vmem:[%s4133_s23 + $0x134] sm:$0xf0] }
 0x25a   : > { %v3740_v11 = vpop.eup %3739  ;;  %v1551_v18 = vmul.f32 %v4646_v54, %v4646_v54  ;;  %v4658_v12 = vpack.c.bf16 %v1798_v20, %v1794_v51  ;;  %v1675_v13 = vmul.f32 0.7978846, %v1643_v28  ;;  %2331 = vmatpush.bf16.msra.mxu3 %v3499_v39  ;;  %v3609_v51 = vld [vmem:[%s4133_s23 + $0x54] sm:$0xf]  ;;  %v3308_v28 = vld [vmem:[%s4133_s23 + $0x58] sm:$0xf0] }
 0x25b   : > { %v1554_v14 = vmul.f32 %v4652_v49, %v4652_v49  ;;  %v1735_v15 = vadd.f32 1.0, %v3740_v11  ;;  %v1678_v53 = vmul.f32 0.7978846, %v1646_v0  ;;  %v3742_v17 = vpop.eup %3741  ;;  %2359 = vmatpush.bf16.msrb.mxu0 %v3319_v3  ;;  %2387 = vmatpush.bf16.msrb.mxu1 %v3391_v50  ;;  %v3311_v57 = vor.u32 %v3609_v51, %v3308_v28  ;;  %v3292_v50 = vld [vmem:[%s4133_s23 + $0x38] sm:$0xf0] }
 0x25c   : > { %v1583_v61 = vmul.f32 %v1551_v18, %v4646_v54  ;;  %2250 = vmatmul.bf16.vlgmr.msra.gmra.mxu0 %v4658_v12  ;;  %3743 = vtanh.f32 %v1675_v13  ;;  %v1738_v24 = vadd.f32 1.0, %v3742_v17  ;;  %v3627_v18 = vld [vmem:[%s4133_s23 + $0xe4] sm:$0xf] }
 0x25d   : > { %v1586_v59 = vmul.f32 %v1554_v14, %v4652_v49  ;;  %v1383_v60 = vpop.f32.mrf.mxu2  ;;  %v1767_v9 = vmul.f32 0.5, %v1735_v15  ;;  %3745 = vtanh.f32 %v1678_v53  ;;  %v3380_v53 = vld [vmem:[%s4133_s23 + $0xe8] sm:$0xf0] }
 0x25e   : > { %v1615_v62 = vmul.f32 0.044715, %v1583_v61  ;;  %v1384_v22 = vadd.f32 %v1383_v60, %v4584_v31  ;;  %v1412_v32 = vpop.f32.mrf.mxu3  ;;  %v1327_v1 = vpop.f32.mrf.mxu0  ;;  %v1770_v45 = vmul.f32 0.5, %v1738_v24  ;;  %v3383_v60 = vor.u32 %v3627_v18, %v3380_v53  ;;  %v3623_v18 = vld [vmem:[%s4133_s23 + $0xc4] sm:$0xf] }
 0x25f   : > { %v1618_v25 = vmul.f32 0.044715, %v1586_v59  ;;  %v1328_v26 = vadd.f32 %v1327_v1, %v4572_v52  ;;  %v1356_v6 = vpop.f32.mrf.mxu1  ;;  %v1799_v7 = vmul.f32 %v1767_v9, %v4609_v55  ;;  %v3640_v59 = vld [vmem:[%s4133_s23 + $0x144] sm:$0xf0]  ;;  %2360 = vmatpush.bf16.msrb.mxu0 %v3311_v57  ;;  %v3607_v9 = vld [vmem:[%s4133_s23 + $0x44] sm:$0xf] }
 0x260   : > { %v4671_v27 = vadd.f32 %v1412_v32, %v1384_v22  ;;  %v1647_v33 = vadd.f32 %v1615_v62, %v4646_v54  ;;  %v1802_v15 = vmul.f32 %v1770_v45, %v4615_v58  ;;  %v3427_v22 = vor.u32 %v3640_v59, %v3426_v30  ;;  %v3300_v32 = vld [vmem:[%s4133_s23 + $0x48] sm:$0xf0]  ;;  %2388 = vmatpush.bf16.msrb.mxu1 %v3383_v60  ;;  %v3636_v53 = vld [vmem:[%s4133_s23 + $0x124] sm:$0xf0]  ;;  %v3603_v59 = vld [vmem:[%s4133_s23 + $0x24] sm:$0xf] }
 0x261   : > { %v1650_v38 = vadd.f32 %v1618_v25, %v4652_v49  ;;  %v4677_v35 = vadd.f32 %v1356_v6, %v1328_v26  ;;  %v4679_v37 = vpack.c.bf16 %v1799_v7, %v1795_v10  ;;  %v3303_v26 = vor.u32 %v3607_v9, %v3300_v32  ;;  %v3625_v6 = vld [vmem:[%s4133_s23 + $0xd4] sm:$0xf]  ;;  %v3372_v7 = vld [vmem:[%s4133_s23 + $0xd8] sm:$0xf0]  ;;  %v3284_v60 = vld [vmem:[%s4133_s23 + $0x28] sm:$0xf0] }
 0x262   : > { %v3744_v40 = vpop.eup %3743  ;;  %v1555_v55 = vmul.f32 %v4671_v27, %v4671_v27  ;;  %v1679_v36 = vmul.f32 0.7978846, %v1647_v33  ;;  %2303 = vmatpush.bf16.msra.mxu2 %v3427_v22  ;;  %v3654_v32 = vld [vmem:[%s4133_s23 + $0x1b4] sm:$0xf0] }
 0x263   : > { %v3746_v43 = vpop.eup %3745  ;;  %v1558_v44 = vmul.f32 %v4677_v35, %v4677_v35  ;;  %2279 = vmatmul.bf16.vlgmr.msra.gmra.mxu1 %v4679_v37  ;;  %v1682_v48 = vmul.f32 0.7978846, %v1650_v38  ;;  %v1739_v29 = vadd.f32 1.0, %v3744_v40  ;;  %v3375_v38 = vor.u32 %v3625_v6, %v3372_v7  ;;  %2361 = vmatpush.bf16.msrb.mxu0 %v3303_v26 }
 0x264   : > { %v1587_v46 = vmul.f32 %v1555_v55, %v4671_v27  ;;  %v1742_v47 = vadd.f32 1.0, %v3746_v43  ;;  %3747 = vtanh.f32 %v1679_v36  ;;  %v4719_v40 = vperm.slane %v4565_v2, 2  ;;  %v3418_v36 = vld [vmem:[%s4133_s23 + $0x130] sm:$0xf] }
 0x265   : > { %v1590_v20 = vmul.f32 %v1558_v44, %v4677_v35  ;;  %v1385_v21 = vpop.f32.mrf.mxu2  ;;  %3749 = vtanh.f32 %v1682_v48  ;;  %v1771_v62 = vmul.f32 0.5, %v1739_v29  ;;  %v3419_v45 = vor.u32 %v3638_v41, %v3418_v36  ;;  %v3605_v48 = vld [vmem:[%s4133_s23 + $0x34] sm:$0xf]  ;;  %v3656_v29 = vld [vmem:[%s4133_s23 + $0x1c4] sm:$0xf0]  ;;  %2389 = vmatpush.bf16.msrb.mxu1 %v3375_v38 }
 0x266   : > { %v1619_v8 = vmul.f32 0.044715, %v1587_v46  ;;  %v1386_v0 = vadd.f32 %v1385_v21, %v4584_v31  ;;  %v1414_v4 = vpop.f32.mrf.mxu3  ;;  %v1330_v5 = vpop.f32.mrf.mxu0  ;;  %v1774_v11 = vmul.f32 0.5, %v1742_v47  ;;  %v3490_v21 = vld [vmem:[%s4133_s23 + $0x1c0] sm:$0xf]  ;;  %v3295_v57 = vor.u32 %v3605_v48, %v3292_v50 }
 0x267   : > { %v1622_v13 = vmul.f32 0.044715, %v1590_v20  ;;  %v1331_v39 = vadd.f32 %v1330_v5, %v4572_v52  ;;  %v1359_v14 = vpop.f32.mrf.mxu1  ;;  %v1803_v20 = vmul.f32 %v1771_v62, %v4627_v16  ;;  %2304 = vmatpush.bf16.msra.mxu2 %v3419_v45  ;;  %v3402_v38 = vld [vmem:[%s4133_s23 + $0x110] sm:$0xf] }
 0x268   : > { %v1651_v17 = vadd.f32 %v1619_v8, %v4671_v27  ;;  %v4698_v61 = vadd.f32 %v1414_v4, %v1386_v0  ;;  %v1806_v23 = vmul.f32 %v1774_v11, %v4630_v63  ;;  %v3491_v11 = vor.u32 %v3656_v29, %v3490_v21  ;;  %2362 = vmatpush.bf16.msrb.mxu0 %v3295_v57  ;;  %v3652_v57 = vld [vmem:[%s4133_s23 + $0x1a4] sm:$0xf0] }
 0x269   : > { %v4704_v10 = vadd.f32 %v1359_v14, %v1331_v39  ;;  %v1654_v58 = vadd.f32 %v1622_v13, %v4677_v35  ;;  %v3364_v13 = vld [vmem:[%s4133_s23 + $0xc8] sm:$0xf0] }
 0x26a   : > { %v3748_v1 = vpop.eup %3747  ;;  %v1559_v19 = vmul.f32 %v4698_v61, %v4698_v61  ;;  %v4710_v25 = vpack.c.bf16 %v1806_v23, %v1802_v15  ;;  %v1683_v63 = vmul.f32 0.7978846, %v1651_v17  ;;  %v3410_v15 = vld [vmem:[%s4133_s23 + $0x120] sm:$0xf]  ;;  %v3367_v17 = vor.u32 %v3623_v18, %v3364_v13  ;;  %2332 = vmatpush.bf16.msra.mxu3 %v3491_v11  ;;  %v3619_v11 = vld [vmem:[%s4133_s23 + $0xa4] sm:$0xf] }
 0x26b   : > { %v3750_v24 = vpop.eup %3749  ;;  %v1562_v33 = vmul.f32 %v4704_v10, %v4704_v10  ;;  %v1743_v56 = vadd.f32 1.0, %v3748_v1  ;;  %v1686_v34 = vmul.f32 0.7978846, %v1654_v58  ;;  %v3411_v30 = vor.u32 %v3636_v53, %v3410_v15  ;;  %v3482_v58 = vld [vmem:[%s4133_s23 + $0x1b0] sm:$0xf] }
 0x26c   : > { %v1591_v3 = vmul.f32 %v1559_v19, %v4698_v61  ;;  %2255 = vmatmul.bf16.gmra.mxu0 %v4710_v25  ;;  %v1746_v55 = vadd.f32 1.0, %v3750_v24  ;;  %3751 = vtanh.f32 %v1683_v63  ;;  %2390 = vmatpush.bf16.msrb.mxu1 %v3367_v17  ;;  %v3287_v1 = vor.u32 %v3603_v59, %v3284_v60  ;;  %v3621_v24 = vld [vmem:[%s4133_s23 + $0xb4] sm:$0xf]  ;;  %v3348_v18 = vld [vmem:[%s4133_s23 + $0xa8] sm:$0xf0] }
 0x26d   : > { %v1594_v42 = vmul.f32 %v1562_v33, %v4704_v10  ;;  %v1388_v43 = vpop.f32.mrf.mxu2  ;;  %v1775_v44 = vmul.f32 0.5, %v1743_v56  ;;  %3753 = vtanh.f32 %v1686_v34  ;;  %v3483_v6 = vor.u32 %v3654_v32, %v3482_v58  ;;  %2305 = vmatpush.bf16.msra.mxu2 %v3411_v30  ;;  %v3394_v13 = vld [vmem:[%s4133_s23 + $0x100] sm:$0xf]  ;;  %v3632_v53 = vld [vmem:[%s4133_s23 + $0x104] sm:$0xf0] }
 0x26e   : > { %v1623_v46 = vmul.f32 0.044715, %v1591_v3  ;;  %v1389_v47 = vadd.f32 %v1388_v43, %v4584_v31  ;;  %v1417_v51 = vpop.f32.mrf.mxu3  ;;  %v1332_v28 = vpop.f32.mrf.mxu0  ;;  %v1778_v16 = vmul.f32 0.5, %v1746_v55  ;;  %v4756_v56 = vperm.slane %v4565_v2, 3  ;;  %v3634_v3 = vld [vmem:[%s4133_s23 + $0x114] sm:$0xf0]  ;;  %2363 = vmatpush.bf16.msrb.mxu0 %v3287_v1 }
 0x26f   : > { %v1626_v8 = vmul.f32 0.044715, %v1594_v42  ;;  %v1333_v0 = vadd.f32 %v1332_v28, %v4572_v52  ;;  %v1361_v4 = vpop.f32.mrf.mxu1  ;;  %v1807_v5 = vmul.f32 %v1775_v44, %v4646_v54  ;;  %2333 = vmatpush.bf16.msra.mxu3 %v3483_v6  ;;  %v3403_v42 = vor.u32 %v3634_v3, %v3402_v38  ;;  %v3356_v43 = vld [vmem:[%s4133_s23 + $0xb8] sm:$0xf0]  ;;  %v3601_v44 = vld [vmem:[%s4133_s23 + $0x14] sm:$0xf] }
 0x270   : > { %v4734_v39 = vadd.f32 %v1417_v51, %v1389_v47  ;;  %v1655_v14 = vadd.f32 %v1623_v46, %v4698_v61  ;;  %v3474_v47 = vld [vmem:[%s4133_s23 + $0x1a0] sm:$0xf]  ;;  %v3359_v51 = vor.u32 %v3621_v24, %v3356_v43  ;;  %v1810_v29 = vmul.f32 %v1778_v16, %v4652_v49  ;;  %v3599_v17 = vld [vmem:[%s4133_s23 + $0x4] sm:$0xf]  ;;  %v3340_v24 = vld [vmem:[%s4133_s23 + $0x98] sm:$0xf0] }
 0x271   : > { %v1658_v52 = vadd.f32 %v1626_v8, %v4704_v10  ;;  %v4740_v23 = vadd.f32 %v1361_v4, %v1333_v0  ;;  %v4742_v54 = vpack.c.bf16 %v1807_v5, %v1803_v20  ;;  %2306 = vmatpush.bf16.msra.mxu2 %v3403_v42  ;;  %v3475_v5 = vor.u32 %v3652_v57, %v3474_v47  ;;  %v3332_v57 = vld [vmem:[%s4133_s23 + $0x88] sm:$0xf0] }
 0x272   : > { %v3752_v9 = vpop.eup %3751  ;;  %v1563_v62 = vmul.f32 %v4734_v39, %v4734_v39  ;;  %v1687_v22 = vmul.f32 0.7978846, %v1655_v14  ;;  %2391 = vmatpush.bf16.msrb.mxu1 %v3359_v51  ;;  %v3351_v15 = vor.u32 %v3619_v11, %v3348_v18  ;;  %v3648_v51 = vld [vmem:[%s4133_s23 + $0x184] sm:$0xf0] }
 0x273   : > { %v3754_v19 = vpop.eup %3753  ;;  %v1566_v63 = vmul.f32 %v4740_v23, %v4740_v23  ;;  %2284 = vmatmul.bf16.gmra.mxu1 %v4742_v54  ;;  %v1747_v26 = vadd.f32 1.0, %v3752_v9  ;;  %v1690_v7 = vmul.f32 0.7978846, %v1658_v52  ;;  %v3268_v52 = vld [vmem:[%s4133_s23 + $0x8] sm:$0xf0]  ;;  %2334 = vmatpush.bf16.msra.mxu3 %v3475_v5 }
 0x274   : > { %v1595_v33 = vmul.f32 %v1563_v62, %v4734_v39  ;;  %v1750_v34 = vadd.f32 1.0, %v3754_v19  ;;  %3755 = vtanh.f32 %v1687_v22  ;;  %v3466_v9 = vld [vmem:[%s4133_s23 + $0x190] sm:$0xf]  ;;  %v3650_v62 = vld [vmem:[%s4133_s23 + $0x194] sm:$0xf0]  ;;  %v3395_v22 = vor.u32 %v3632_v53, %v3394_v13 }
 0x275   : > { %v1598_v55 = vmul.f32 %v1566_v63, %v4740_v23  ;;  %v1390_v36 = vpop.f32.mrf.mxu2  ;;  %v4761_v41 = vmul.f32 0.5, %v1747_v26  ;;  %3757 = vtanh.f32 %v1690_v7  ;;  %v3467_v63 = vor.u32 %v3650_v62, %v3466_v9  ;;  %v3617_v26 = vld [vmem:[%s4133_s23 + $0x94] sm:$0xf] }
 0x276   : > { %v1627_v45 = vmul.f32 0.044715, %v1595_v33  ;;  %v1391_v2 = vadd.f32 %v1390_v36, %v4584_v31  ;;  %v1419_v48 = vpop.f32.mrf.mxu3  ;;  %v1431_v50 = vpop.f32.mrf.mxu0  ;;  %v1782_v46 = vmul.f32 0.5, %v1750_v34  ;;  %v3276_v31 = vld [vmem:[%s4133_s23 + $0x18] sm:$0xf0]  ;;  %2392 = vmatpush.bf16.msrb.mxu1 %v3351_v15  ;;  %v3271_v7 = vor.u32 %v3599_v17, %v3268_v52  ;;  %2307 = vmatpush.bf16.msra.mxu2 %v3395_v22 }
 0x277   : > { %v1630_v28 = vmul.f32 0.044715, %v1598_v55  ;;  %v1432_v20 = vadd.f32 %v1431_v50, %v4719_v40  ;;  %v1460_v21 = vpop.f32.mrf.mxu1  ;;  %v3279_v14 = vor.u32 %v3601_v44, %v3276_v31  ;;  %v3343_v3 = vor.u32 %v3617_v26, %v3340_v24  ;;  %2335 = vmatpush.bf16.msra.mxu3 %v3467_v63 }
 0x278   : > { %v1659_v8 = vadd.f32 %v1627_v45, %v4734_v39  ;;  %v4772_v0 = vadd.f32 %v1419_v48, %v1391_v2  ;;  %v1814_v4 = vmul.f32 %v1782_v46, %v4677_v35  ;;  %v3458_v45 = vld [vmem:[%s4133_s23 + $0x180] sm:$0xf]  ;;  %v1811_v46 = vmul.f32 %v4761_v41, %v4671_v27 }
 0x279   : > { %v4778_v49 = vadd.f32 %v1460_v21, %v1432_v20  ;;  %v1662_v16 = vadd.f32 %v1630_v28, %v4740_v23  ;;  %2364 = vmatpush.bf16.msrb.mxu0 %v3279_v14  ;;  %v3615_v28 = vld [vmem:[%s4133_s23 + $0x84] sm:$0xf] }
 0x27a   : > { %v3756_v30 = vpop.eup %3755  ;;  %v1567_v35 = vmul.f32 %v4772_v0, %v4772_v0  ;;  %v4786_v59 = vpack.c.bf16 %v1814_v4, %v1810_v29  ;;  %v1691_v60 = vmul.f32 0.7978846, %v1659_v8  ;;  %v3459_v29 = vor.u32 %v3648_v51, %v3458_v45  ;;  %2393 = vmatpush.bf16.msrb.mxu1 %v3343_v3 }
 0x27b   : > { %v3758_v58 = vpop.eup %3757  ;;  %v1540_v32 = vmul.f32 %v4778_v49, %v4778_v49  ;;  %v1751_v1 = vadd.f32 1.0, %v3756_v30  ;;  %v1694_v19 = vmul.f32 0.7978846, %v1662_v16  ;;  %v3335_v5 = vor.u32 %v3615_v28, %v3332_v57 }
 0x27c   : > { %v1599_v6 = vmul.f32 %v1567_v35, %v4772_v0  ;;  %2260 = vmatmul.bf16.gmra.mxu0 %v4786_v59  ;;  %3759 = vtanh.f32 %v1691_v60  ;;  %v1754_v44 = vadd.f32 1.0, %v3758_v58  ;;  %2336 = vmatpush.bf16.msra.mxu3 %v3459_v29 }
 0x27d   : > { %v1572_v33 = vmul.f32 %v1540_v32, %v4778_v49  ;;  %v1489_v34 = vpop.f32.mrf.mxu2  ;;  %v1783_v38 = vmul.f32 0.5, %v1751_v1  ;;  %3761 = vtanh.f32 %v1694_v19  ;;  %2365 = vmatpush.bf16.msrb.mxu0 %v3271_v7 }
 0x27e   : > { %v1631_v55 = vmul.f32 0.044715, %v1599_v6  ;;  %v1490_v36 = vadd.f32 %v1489_v34, %v4756_v56  ;;  %v1518_v42 = vpop.f32.mrf.mxu3  ;;  %v1433_v43 = vpop.f32.mrf.mxu0  ;;  %v1786_v16 = vmul.f32 0.5, %v1754_v44  ;;  %2394 = vmatpush.bf16.msrb.mxu1 %v3335_v5  ;;  %v3452_v34 = vld [vmem:[%s4133_s23 + $0x178] sm:$0xf0] }
 0x27f   : > { %v1604_v2 = vmul.f32 0.044715, %v1572_v33  ;;  %v1434_v48 = vadd.f32 %v1433_v43, %v4719_v40  ;;  %v1462_v50 = vpop.f32.mrf.mxu1  ;;  %v1815_v47 = vmul.f32 %v1783_v38, %v4698_v61  ;;  %v3645_v33 = vld [vmem:[%s4133_s23 + $0x174] sm:$0xf]  ;;  %v3516_v43 = vld [vmem:[%s4133_s23 + $0x1f8] sm:$0xf0] }
 0x280   : > { %v4805_v20 = vadd.f32 %v1518_v42, %v1490_v36  ;;  %v1663_v21 = vadd.f32 %v1631_v55, %v4772_v0  ;;  %v1818_v1 = vmul.f32 %v1786_v16, %v4704_v10  ;;  %v3661_v38 = vld [vmem:[%s4133_s23 + $0x1f4] sm:$0xf]  ;;  %v3455_v42 = vor.u32 %v3645_v33, %v3452_v34 }
 0x281   : > { %v1636_v31 = vadd.f32 %v1604_v2, %v4778_v49  ;;  %v4810_v8 = vadd.f32 %v1462_v50, %v1434_v48  ;;  %v4812_v4 = vpack.c.bf16 %v1815_v47, %v1811_v46  ;;  %v3519_v2 = vor.u32 %v3661_v38, %v3516_v43 }
 0x282   : > { %v3760_v27 = vpop.eup %3759  ;;  %v1541_v61 = vmul.f32 %v4805_v20, %v4805_v20  ;;  %v1695_v41 = vmul.f32 0.7978846, %v1663_v21  ;;  %2416 = vmatpush.bf16.msrb.mxu2 %v3455_v42 }
 0x283   : > { %v3762_v11 = vpop.eup %3761  ;;  %v1668_v18 = vmul.f32 0.7978846, %v1636_v31  ;;  %v1544_v13 = vmul.f32 %v4810_v8, %v4810_v8  ;;  %2289 = vmatmul.bf16.gmra.mxu1 %v4812_v4  ;;  %v1755_v53 = vadd.f32 1.0, %v3760_v27  ;;  %2445 = vmatpush.bf16.msrb.mxu3 %v3519_v2 }
 0x284   : > { %v1573_v14 = vmul.f32 %v1541_v61, %v4805_v20  ;;  %v1758_v15 = vadd.f32 1.0, %v3762_v11  ;;  %3763 = vtanh.f32 %v1695_v41 }
 0x285   : > { %v1576_v17 = vmul.f32 %v1544_v13, %v4810_v8  ;;  %v1491_v52 = vpop.f32.mrf.mxu2  ;;  %3765 = vtanh.f32 %v1668_v18  ;;  %v1787_v6 = vmul.f32 0.5, %v1755_v53  ;;  %v3643_v53 = vld [vmem:[%s4133_s23 + $0x164] sm:$0xf] }
 0x286   : > { %v1605_v30 = vmul.f32 0.044715, %v1573_v14  ;;  %v1492_v35 = vadd.f32 %v1491_v52, %v4756_v56  ;;  %v1520_v60 = vpop.f32.mrf.mxu3  ;;  %v1436_v9 = vpop.f32.mrf.mxu0  ;;  %v1790_v62 = vmul.f32 0.5, %v1758_v15 }
 0x287   : > { %v1608_v22 = vmul.f32 0.044715, %v1576_v17  ;;  %v1437_v58 = vadd.f32 %v1436_v9, %v4719_v40  ;;  %v1465_v32 = vpop.f32.mrf.mxu1  ;;  %v1819_v31 = vmul.f32 %v1787_v6, %v4734_v39  ;;  %v3444_v39 = vld [vmem:[%s4133_s23 + $0x168] sm:$0xf0]  ;;  %v3659_v17 = vld [vmem:[%s4133_s23 + $0x1e4] sm:$0xf] }
 0x288   : > { %v1637_v19 = vadd.f32 %v1605_v30, %v4805_v20  ;;  %v4825_v63 = vadd.f32 %v1520_v60, %v1492_v35  ;;  %v1822_v26 = vmul.f32 %v1790_v62, %v4740_v23  ;;  %v3447_v60 = vor.u32 %v3643_v53, %v3444_v39 }
 0x289   : > { %v1640_v7 = vadd.f32 %v1608_v22, %v4810_v8  ;;  %v4829_v24 = vadd.f32 %v1465_v32, %v1437_v58 }
 0x28a   : > { %v3764_v3 = vpop.eup %3763  ;;  %v1669_v55 = vmul.f32 0.7978846, %v1637_v19  ;;  %v1545_v36 = vmul.f32 %v4825_v63, %v4825_v63  ;;  %v4836_v10 = vpack.c.bf16 %v1822_v26, %v1818_v1  ;;  %2417 = vmatpush.bf16.msrb.mxu2 %v3447_v60 }
 0x28b   : > { %v1672_v44 = vmul.f32 0.7978846, %v1640_v7  ;;  %v1548_v23 = vmul.f32 %v4829_v24, %v4829_v24  ;;  %v1759_v45 = vadd.f32 1.0, %v3764_v3  ;;  %v3766_v48 = vpop.eup %3765 }
 0x28c   : > { %3767 = vtanh.f32 %v1669_v55  ;;  %v1577_v50 = vmul.f32 %v1545_v36, %v4825_v63  ;;  %2265 = vmatmul.bf16.gmra.mxu0 %v4836_v10  ;;  %v1732_v5 = vadd.f32 1.0, %v3766_v48 }
 0x28d   : > { %3769 = vtanh.f32 %v1672_v44  ;;  %v1580_v46 = vmul.f32 %v1548_v23, %v4829_v24  ;;  %v1494_v47 = vpop.f32.mrf.mxu2  ;;  %v1791_v51 = vmul.f32 0.5, %v1759_v45 }
 0x28e   : > { %v1609_v28 = vmul.f32 0.044715, %v1577_v50  ;;  %v1495_v21 = vadd.f32 %v1494_v47, %v4756_v56  ;;  %v1523_v29 = vpop.f32.mrf.mxu3  ;;  %v1438_v57 = vpop.f32.mrf.mxu0  ;;  %v1764_v62 = vmul.f32 0.5, %v1732_v5  ;;  %v3641_v47 = vld [vmem:[%s4133_s23 + $0x154] sm:$0xf] }
 0x28f   : > { %v1612_v27 = vmul.f32 0.044715, %v1580_v46  ;;  %v1439_v61 = vadd.f32 %v1438_v57, %v4719_v40  ;;  %v1467_v41 = vpop.f32.mrf.mxu1  ;;  %v1823_v11 = vmul.f32 %v1791_v51, %v4772_v0  ;;  %v3508_v0 = vld [vmem:[%s4133_s23 + $0x1e8] sm:$0xf0]  ;;  %v3436_v51 = vld [vmem:[%s4133_s23 + $0x158] sm:$0xf0] }
 0x290   : > { %v1641_v18 = vadd.f32 %v1609_v28, %v4825_v63  ;;  %v4849_v13 = vadd.f32 %v1523_v29, %v1495_v21  ;;  %v3511_v58 = vor.u32 %v3659_v17, %v3508_v0  ;;  %v1796_v36 = vmul.f32 %v1764_v62, %v4778_v49  ;;  %v3657_v28 = vld [vmem:[%s4133_s23 + $0x1d4] sm:$0xf] }
 0x291   : > { %v1644_v16 = vadd.f32 %v1612_v27, %v4829_v24  ;;  %v4852_v14 = vadd.f32 %v1467_v41, %v1439_v61  ;;  %v4854_v15 = vpack.c.bf16 %v1823_v11, %v1819_v31  ;;  %v3439_v57 = vor.u32 %v3641_v47, %v3436_v51 }
 0x292   : > { %v3768_v52 = vpop.eup %3767  ;;  %v1673_v30 = vmul.f32 0.7978846, %v1641_v18  ;;  %v1549_v35 = vmul.f32 %v4849_v13, %v4849_v13  ;;  %2446 = vmatpush.bf16.msrb.mxu3 %v3511_v58 }
 0x293   : > { %v3770_v9 = vpop.eup %3769  ;;  %v1552_v22 = vmul.f32 %v4852_v14, %v4852_v14  ;;  %2294 = vmatmul.bf16.gmra.mxu1 %v4854_v15  ;;  %v1676_v32 = vmul.f32 0.7978846, %v1644_v16  ;;  %v1733_v1 = vadd.f32 1.0, %v3768_v52  ;;  %2418 = vmatpush.bf16.msrb.mxu2 %v3439_v57 }
 0x294   : > { %v1736_v19 = vadd.f32 1.0, %v3770_v9  ;;  %3771 = vtanh.f32 %v1673_v30  ;;  %v1581_v26 = vmul.f32 %v1549_v35, %v4849_v13 }
 0x295   : > { %v1584_v6 = vmul.f32 %v1552_v22, %v4852_v14  ;;  %v1496_v7 = vpop.f32.mrf.mxu2  ;;  %3773 = vtanh.f32 %v1676_v32  ;;  %v1765_v23 = vmul.f32 0.5, %v1733_v1  ;;  %v3639_v1 = vld [vmem:[%s4133_s23 + $0x144] sm:$0xf] }
 0x296   : > { %v1768_v33 = vmul.f32 0.5, %v1736_v19  ;;  %v1613_v34 = vmul.f32 0.044715, %v1581_v26  ;;  %v1497_v38 = vadd.f32 %v1496_v7, %v4756_v56  ;;  %v1525_v3 = vpop.f32.mrf.mxu3  ;;  %v1441_v55 = vpop.f32.mrf.mxu0  ;;  %v3428_v19 = vld [vmem:[%s4133_s23 + $0x148] sm:$0xf0] }
 0x297   : > { %v1616_v42 = vmul.f32 0.044715, %v1584_v6  ;;  %v1442_v43 = vadd.f32 %v1441_v55, %v4719_v40  ;;  %v1470_v44 = vpop.f32.mrf.mxu1  ;;  %v3655_v26 = vld [vmem:[%s4133_s23 + $0x1c4] sm:$0xf] }
 0x298   : > { %v1800_v45 = vmul.f32 %v1768_v33, %v4810_v8  ;;  %v1645_v2 = vadd.f32 %v1613_v34, %v4849_v13  ;;  %v4872_v48 = vadd.f32 %v1525_v3, %v1497_v38  ;;  %v3500_v8 = vld [vmem:[%s4133_s23 + $0x1d8] sm:$0xf0]  ;;  %v3431_v33 = vor.u32 %v3639_v1, %v3428_v19  ;;  %v3637_v34 = vld [vmem:[%s4133_s23 + $0x134] sm:$0xf] }
 0x299   : > { %v1648_v50 = vadd.f32 %v1616_v42, %v4852_v14  ;;  %v4875_v46 = vadd.f32 %v1470_v44, %v1442_v43  ;;  %v3503_v11 = vor.u32 %v3657_v28, %v3500_v8  ;;  %v3420_v38 = vld [vmem:[%s4133_s23 + $0x138] sm:$0xf0]  ;;  %v3412_v8 = vld [vmem:[%s4133_s23 + $0x128] sm:$0xf0] }
 0x29a   : > { %v3772_v49 = vpop.eup %3771  ;;  %v1553_v21 = vmul.f32 %v4872_v48, %v4872_v48  ;;  %v4882_v29 = vpack.c.bf16 %v1800_v45, %v1796_v36  ;;  %v1677_v31 = vmul.f32 0.7978846, %v1645_v2  ;;  %v3653_v45 = vld [vmem:[%s4133_s23 + $0x1b4] sm:$0xf]  ;;  %2419 = vmatpush.bf16.msrb.mxu2 %v3431_v33  ;;  %v3423_v51 = vor.u32 %v3637_v34, %v3420_v38  ;;  %v3484_v28 = vld [vmem:[%s4133_s23 + $0x1b8] sm:$0xf0] }
 0x29b   : > { %v3774_v5 = vpop.eup %3773  ;;  %v1737_v27 = vadd.f32 1.0, %v3772_v49  ;;  %v1556_v61 = vmul.f32 %v4875_v46, %v4875_v46  ;;  %v1680_v41 = vmul.f32 0.7978846, %v1648_v50  ;;  %2447 = vmatpush.bf16.msrb.mxu3 %v3503_v11  ;;  %v3487_v57 = vor.u32 %v3653_v45, %v3484_v28  ;;  %v3404_v34 = vld [vmem:[%s4133_s23 + $0x118] sm:$0xf0] }
 0x29c   : > { %v1585_v18 = vmul.f32 %v1553_v21, %v4872_v48  ;;  %2308 = vmatmul.bf16.vlgmr.msra.gmra.mxu2 %v4882_v29  ;;  %2366 = vmatmul.bf16.vlgmr.msrb.gmra.mxu0 %v4658_v12  ;;  %v1740_v60 = vadd.f32 1.0, %v3774_v5  ;;  %v1797_v12 = vmul.f32 %v1765_v23, %v4805_v20 }
 0x29d   : > { %v1769_v16 = vmul.f32 0.5, %v1737_v27  ;;  %v1588_v53 = vmul.f32 %v1556_v61, %v4875_v46  ;;  %v1499_v39 = vpop.f32.mrf.mxu2  ;;  %3775 = vtanh.f32 %v1680_v41 }
 0x29e   : > { %v1617_v17 = vmul.f32 0.044715, %v1585_v18  ;;  %v1500_v52 = vadd.f32 %v1499_v39, %v4756_v56  ;;  %v1528_v30 = vpop.f32.mrf.mxu3  ;;  %v1443_v35 = vpop.f32.mrf.mxu0  ;;  %3777 = vtanh.f32 %v1677_v31  ;;  %v1772_v55 = vmul.f32 0.5, %v1740_v60  ;;  %v3635_v31 = vld [vmem:[%s4133_s23 + $0x124] sm:$0xf]  ;;  %2420 = vmatpush.bf16.msrb.mxu2 %v3423_v51 }
 0x29f   : > { %v1801_v0 = vmul.f32 %v1769_v16, %v4825_v63  ;;  %v1620_v9 = vmul.f32 0.044715, %v1588_v53  ;;  %v1444_v62 = vadd.f32 %v1443_v35, %v4719_v40  ;;  %v1472_v22 = vpop.f32.mrf.mxu1  ;;  %v3492_v63 = vld [vmem:[%s4133_s23 + $0x1c8] sm:$0xf0] }
 0x2a0   : > { %v1649_v58 = vadd.f32 %v1617_v17, %v4872_v48  ;;  %v4896_v32 = vadd.f32 %v1528_v30, %v1500_v52  ;;  %v3495_v42 = vor.u32 %v3655_v26, %v3492_v63  ;;  %v1804_v18 = vmul.f32 %v1772_v55, %v4829_v24  ;;  %v3476_v16 = vld [vmem:[%s4133_s23 + $0x1a8] sm:$0xf0]  ;;  %v3633_v63 = vld [vmem:[%s4133_s23 + $0x114] sm:$0xf] }
 0x2a1   : > { %v1652_v6 = vadd.f32 %v1620_v9, %v4875_v46  ;;  %v4902_v7 = vadd.f32 %v1472_v22, %v1444_v62  ;;  %v4904_v20 = vpack.c.bf16 %v1801_v0, %v1797_v12  ;;  %v3415_v0 = vor.u32 %v3635_v31, %v3412_v8 }
 0x2a2   : > { %v1557_v3 = vmul.f32 %v4896_v32, %v4896_v32  ;;  %v1681_v36 = vmul.f32 0.7978846, %v1649_v58  ;;  %2448 = vmatpush.bf16.msrb.mxu3 %v3495_v42  ;;  %v3407_v42 = vor.u32 %v3633_v63, %v3404_v34  ;;  %v3460_v63 = vld [vmem:[%s4133_s23 + $0x188] sm:$0xf0] }
 0x2a3   : > { %v3776_v43 = vpop.eup %3775  ;;  %v1560_v44 = vmul.f32 %v4902_v7, %v4902_v7  ;;  %2337 = vmatmul.bf16.vlgmr.msra.gmra.mxu3 %v4904_v20  ;;  %2395 = vmatmul.bf16.vlgmr.msrb.gmra.mxu1 %v4679_v37  ;;  %v1684_v23 = vmul.f32 0.7978846, %v1652_v6  ;;  %v3651_v37 = vld [vmem:[%s4133_s23 + $0x1a4] sm:$0xf] }
 0x2a4   : > { %v3778_v2 = vpop.eup %3777  ;;  %v1589_v50 = vmul.f32 %v1557_v3, %v4896_v32  ;;  %v1744_v47 = vadd.f32 1.0, %v3776_v43  ;;  %3779 = vtanh.f32 %v1681_v36  ;;  %v3479_v9 = vor.u32 %v3651_v37, %v3476_v16  ;;  %2421 = vmatpush.bf16.msrb.mxu2 %v3415_v0  ;;  %v3468_v16 = vld [vmem:[%s4133_s23 + $0x198] sm:$0xf0] }
 0x2a5   : > { %v1592_v49 = vmul.f32 %v1560_v44, %v4902_v7  ;;  %v1501_v21 = vpop.f32.mrf.mxu2  ;;  %v1741_v52 = vadd.f32 1.0, %v3778_v2  ;;  %3781 = vtanh.f32 %v1684_v23 }
 0x2a6   : > { %v1621_v5 = vmul.f32 0.044715, %v1589_v50  ;;  %v1502_v27 = vadd.f32 %v1501_v21, %v4756_v56  ;;  %v1530_v61 = vpop.f32.mrf.mxu3  ;;  %v1446_v41 = vpop.f32.mrf.mxu0  ;;  %v1776_v11 = vmul.f32 0.5, %v1744_v47  ;;  %2449 = vmatpush.bf16.msrb.mxu3 %v3487_v57 }
 0x2a7   : > { %v1624_v53 = vmul.f32 0.044715, %v1592_v49  ;;  %v1447_v39 = vadd.f32 %v1446_v41, %v4719_v40  ;;  %v1475_v17 = vpop.f32.mrf.mxu1  ;;  %v1773_v26 = vmul.f32 0.5, %v1741_v52 }
 0x2a8   : > { %v1653_v30 = vadd.f32 %v1621_v5, %v4896_v32  ;;  %v4927_v35 = vadd.f32 %v1530_v61, %v1502_v27  ;;  %v1808_v60 = vmul.f32 %v1776_v11, %v4852_v14  ;;  %2422 = vmatpush.bf16.msrb.mxu2 %v3407_v42  ;;  %v3649_v27 = vld [vmem:[%s4133_s23 + $0x194] sm:$0xf] }
 0x2a9   : > { %v1656_v12 = vadd.f32 %v1624_v53, %v4902_v7  ;;  %v4931_v24 = vadd.f32 %v1475_v17, %v1447_v39  ;;  %v1805_v50 = vmul.f32 %v1773_v26, %v4849_v13  ;;  %v3631_v53 = vld [vmem:[%s4133_s23 + $0x104] sm:$0xf]  ;;  %v3471_v52 = vor.u32 %v3649_v27, %v3468_v16 }
 0x2aa   : > { %v3780_v62 = vpop.eup %3779  ;;  %v1561_v22 = vmul.f32 %v4927_v35, %v4927_v35  ;;  %v4935_v58 = vpack.c.bf16 %v1808_v60, %v1804_v18  ;;  %v1685_v1 = vmul.f32 0.7978846, %v1653_v30  ;;  %2450 = vmatpush.bf16.msrb.mxu3 %v3479_v9  ;;  %v3396_v30 = vld [vmem:[%s4133_s23 + $0x108] sm:$0xf0] }
 0x2ab   : > { %v1564_v14 = vmul.f32 %v4931_v24, %v4931_v24  ;;  %v1745_v19 = vadd.f32 1.0, %v3780_v62  ;;  %v1688_v6 = vmul.f32 0.7978846, %v1656_v12  ;;  %v3782_v38 = vpop.eup %3781  ;;  %v3399_v0 = vor.u32 %v3631_v53, %v3396_v30 }
 0x2ac   : > { %v1593_v33 = vmul.f32 %v1561_v22, %v4927_v35  ;;  %2313 = vmatmul.bf16.gmra.mxu2 %v4935_v58  ;;  %2371 = vmatmul.bf16.gmra.mxu0 %v4710_v25  ;;  %v1748_v21 = vadd.f32 1.0, %v3782_v38 }
 0x2ad   : > { %v1596_v3 = vmul.f32 %v1564_v14, %v4931_v24  ;;  %v1504_v55 = vpop.f32.mrf.mxu2  ;;  %v1777_v36 = vmul.f32 0.5, %v1745_v19  ;;  %3783 = vtanh.f32 %v1688_v6  ;;  %2423 = vmatpush.bf16.msrb.mxu2 %v3399_v0 }
 0x2ae   : > { %v1625_v43 = vmul.f32 0.044715, %v1593_v33  ;;  %v1505_v44 = vadd.f32 %v1504_v55, %v4756_v56  ;;  %v1533_v23 = vpop.f32.mrf.mxu3  ;;  %v1448_v45 = vpop.f32.mrf.mxu0  ;;  %3785 = vtanh.f32 %v1685_v1  ;;  %v1780_v18 = vmul.f32 0.5, %v1748_v21  ;;  %2451 = vmatpush.bf16.msrb.mxu3 %v3471_v52  ;;  %v3647_v33 = vld [vmem:[%s4133_s23 + $0x184] sm:$0xf] }
 0x2af   : > { %v1628_v2 = vmul.f32 0.044715, %v1596_v3  ;;  %v1449_v25 = vadd.f32 %v1448_v45, %v4719_v40  ;;  %v1809_v47 = vmul.f32 %v1777_v36, %v4872_v48  ;;  %v1477_v49 = vpop.f32.mrf.mxu1  ;;  %v3463_v55 = vor.u32 %v3647_v33, %v3460_v63  ;;  %v1830_v63 = vld [vmem:[#allocation3 + $0x50] sm:$0xff] }
 0x2b0   : > { %v1657_v51 = vadd.f32 %v1625_v43, %v4927_v35  ;;  %v4950_v28 = vadd.f32 %v1533_v23, %v1505_v44  ;;  %v1812_v19 = vmul.f32 %v1780_v18, %v4875_v46 }
 0x2b1   : > { %v1660_v57 = vadd.f32 %v1628_v2, %v4931_v24  ;;  %v4953_v31 = vadd.f32 %v1477_v49, %v1449_v25  ;;  %v4955_v8 = vpack.c.bf16 %v1809_v47, %v1805_v50 }
 0x2b2   : > { %v1565_v40 = vmul.f32 %v4950_v28, %v4950_v28  ;;  %v1689_v13 = vmul.f32 0.7978846, %v1657_v51  ;;  %2452 = vmatpush.bf16.msrb.mxu3 %v3463_v55 }
 0x2b3   : > { %v3784_v48 = vpop.eup %3783  ;;  %v1568_v37 = vmul.f32 %v4953_v31, %v4953_v31  ;;  %2342 = vmatmul.bf16.gmra.mxu3 %v4955_v8  ;;  %2400 = vmatmul.bf16.gmra.mxu1 %v4742_v54  ;;  %v1692_v5 = vmul.f32 0.7978846, %v1660_v57 }
 0x2b4   : > { %v3786_v61 = vpop.eup %3785  ;;  %v1597_v41 = vmul.f32 %v1565_v40, %v4950_v28  ;;  %v1752_v11 = vadd.f32 1.0, %v3784_v48  ;;  %3787 = vtanh.f32 %v1689_v13 }
 0x2b5   : > { %v1600_v39 = vmul.f32 %v1568_v37, %v4953_v31  ;;  %v1506_v17 = vpop.f32.mrf.mxu2  ;;  %v1749_v22 = vadd.f32 1.0, %v3786_v61  ;;  %3789 = vtanh.f32 %v1692_v5 }
 0x2b6   : > { %v1629_v60 = vmul.f32 0.044715, %v1597_v41  ;;  %v1507_v54 = vadd.f32 %v1506_v17, %v4756_v56  ;;  %v1784_v12 = vmul.f32 0.5, %v1752_v11  ;;  %v1535_v62 = vpop.f32.mrf.mxu3 }
 0x2b7   : > { %v1632_v9 = vmul.f32 0.044715, %v1600_v39  ;;  %v1781_v42 = vmul.f32 0.5, %v1749_v22 }
 0x2b8   : > { %v1661_v1 = vadd.f32 %v1629_v60, %v4950_v28  ;;  %v1536_v14 = vadd.f32 %v1535_v62, %v1507_v54  ;;  %v1816_v26 = vmul.f32 %v1784_v12, %v4902_v7 }
 0x2b9   : > { %v1664_v6 = vadd.f32 %v1632_v9, %v4953_v31  ;;  %v1813_v45 = vmul.f32 %v1781_v42, %v4896_v32  ;;  %v1828_v9 = vld [vmem:[#allocation3 + $0x58] sm:$0xff] }
 0x2ba   : > { %v3788_v56 = vpop.eup %3787  ;;  %v1569_v34 = vmul.f32 %v1536_v14, %v1536_v14  ;;  %v1852_v38 = vpack.c.bf16 %v1816_v26, %v1812_v19  ;;  %v1693_v3 = vmul.f32 0.7978846, %v1661_v1 }
 0x2bb   : > { %v1753_v36 = vadd.f32 1.0, %v3788_v56  ;;  %v1696_v43 = vmul.f32 0.7978846, %v1664_v6  ;;  %v3790_v46 = vpop.eup %3789 }
 0x2bc   : > { %v1601_v44 = vmul.f32 %v1569_v34, %v1536_v14  ;;  %2318 = vmatmul.bf16.gmra.mxu2 %v1852_v38  ;;  %2376 = vmatmul.bf16.gmra.mxu0 %v4786_v59  ;;  %v1756_v50 = vadd.f32 1.0, %v3790_v46 }
 0x2bd   : > { %v1785_v23 = vmul.f32 0.5, %v1753_v36  ;;  %3791 = vtanh.f32 %v1696_v43  ;;  %v1832_v43 = vld [vmem:[#allocation3 + $0x8] sm:$0xff] }
 0x2be   : > { %v1633_v7 = vmul.f32 0.044715, %v1601_v44  ;;  %3793 = vtanh.f32 %v1693_v3  ;;  %v1788_v57 = vmul.f32 0.5, %v1756_v50  ;;  %v1834_v50 = vld [vmem:[#allocation3 + $0x40] sm:$0xff] }
 0x2bf   : > { %v1817_v2 = vmul.f32 %v1785_v23, %v4927_v35 }
 0x2c0   : > { %v1665_v25 = vadd.f32 %v1633_v7, %v1536_v14  ;;  %v1820_v48 = vmul.f32 %v1788_v57, %v4931_v24 }
 0x2c1   : > { %v1853_v47 = vpack.c.bf16 %v1817_v2, %v1813_v45 }
 0x2c2   : > { %v1697_v51 = vmul.f32 0.7978846, %v1665_v25 }
 0x2c3   : > { %v3792_v49 = vpop.eup %3791  ;;  %2347 = vmatmul.bf16.gmra.mxu3 %v1853_v47  ;;  %2405 = vmatmul.bf16.gmra.mxu1 %v4812_v4 }
 0x2c4   : > { %v3794_v21 = vpop.eup %3793  ;;  %v1760_v59 = vadd.f32 1.0, %v3792_v49  ;;  %3795 = vtanh.f32 %v1697_v51 }
 0x2c5   : > { %v1757_v13 = vadd.f32 1.0, %v3794_v21 }
 0x2c6   : > { %v1792_v40 = vmul.f32 0.5, %v1760_v59 }
 0x2c7   : > { %v1789_v27 = vmul.f32 0.5, %v1757_v13 }
 0x2c8   : > { %v1824_v32 = vmul.f32 %v1792_v40, %v4953_v31 }
 0x2c9   : > { %v1821_v4 = vmul.f32 %v1789_v27, %v4950_v28 }
 0x2ca   : > { %v3796_v37 = vpop.eup %3795  ;;  %v1856_v35 = vpack.c.bf16 %v1824_v32, %v1820_v48  ;;  %v1836_v48 = vld [vmem:[#allocation3 + $0x10] sm:$0xff] }
 0x2cb   : > { %v1761_v5 = vadd.f32 1.0, %v3796_v37 }
 0x2cc   : > { %2323 = vmatmul.bf16.gmra.mxu2 %v1856_v35  ;;  %2381 = vmatmul.bf16.gmra.mxu0 %v4836_v10 }
 0x2cd   : > { %v1793_v61 = vmul.f32 0.5, %v1761_v5 }
 0x2cf   : > { %v1825_v41 = vmul.f32 %v1793_v61, %v1536_v14 }
 0x2d1   : > { %v1857_v11 = vpack.c.bf16 %v1825_v41, %v1821_v4 }
 0x2d3   : > { %2352 = vmatmul.bf16.gmra.mxu3 %v1857_v11  ;;  %2410 = vmatmul.bf16.gmra.mxu1 %v4854_v15 }
 0x2d9   : > { %v2251_v10 = vpop.f32.mrf.mxu0 }
 0x2dc   : > { %2424 = vmatmul.bf16.vlgmr.msrb.gmra.mxu2 %v4882_v29 }
 0x2e0   : > { %v2280_v24 = vpop.f32.mrf.mxu1 }
 0x2e1   : > { %v2253_v28 = vpop.f32.mrf.mxu0  ;;  %v2281_v29 = vadd.f32 %v2280_v24, %v2251_v10 }
 0x2e3   : > { %2453 = vmatmul.bf16.vlgmr.msrb.gmra.mxu3 %v4904_v20  ;;  %v1826_v20 = vld [vmem:[#allocation3 + $0x30] sm:$0xff] }
 0x2e8   : > { %v2282_v31 = vpop.f32.mrf.mxu1 }
 0x2e9   : > { %v2256_v16 = vpop.f32.mrf.mxu0  ;;  %v2283_v54 = vadd.f32 %v2282_v31, %v2253_v28 }
 0x2ec   : > { %2429 = vmatmul.bf16.gmra.mxu2 %v4935_v58 }
 0x2f0   : > { %v2285_v18 = vpop.f32.mrf.mxu1 }
 0x2f1   : > { %v2258_v39 = vpop.f32.mrf.mxu0  ;;  %v2286_v19 = vadd.f32 %v2285_v18, %v2256_v16 }
 0x2f3   : > { %2458 = vmatmul.bf16.gmra.mxu3 %v4955_v8 }
 0x2f8   : > { %v2287_v15 = vpop.f32.mrf.mxu1 }
 0x2f9   : > { %v2261_v12 = vpop.f32.mrf.mxu0  ;;  %v2288_v55 = vadd.f32 %v2287_v15, %v2258_v39  ;;  %v1840_v39 = vld [vmem:[#allocation3 + $0x78] sm:$0xff] }
 0x2fc   : > { %2434 = vmatmul.bf16.gmra.mxu2 %v1852_v38 }
 0x300   : > { %v2290_v60 = vpop.f32.mrf.mxu1 }
 0x301   : > { %v2263_v33 = vpop.f32.mrf.mxu0  ;;  %v2291_v2 = vadd.f32 %v2290_v60, %v2261_v12  ;;  %v1827_v60 = vld [vmem:[#allocation3] sm:$0xff] }
 0x303   : > { %2463 = vmatmul.bf16.gmra.mxu3 %v1853_v47 }
 0x308   : > { %v2292_v26 = vpop.f32.mrf.mxu1 }
 0x309   : > { %v2266_v7 = vpop.f32.mrf.mxu0  ;;  %v2293_v40 = vadd.f32 %v2292_v26, %v2263_v33 }
 0x30c   : > { %2439 = vmatmul.bf16.gmra.mxu2 %v1856_v35 }
 0x310   : > { %v2295_v42 = vpop.f32.mrf.mxu1 }
 0x311   : > { %v2268_v57 = vpop.f32.mrf.mxu0  ;;  %v2296_v61 = vadd.f32 %v2295_v42, %v2266_v7 }
 0x313   : > { %2468 = vmatmul.bf16.gmra.mxu3 %v1857_v11  ;;  %v1838_v11 = vld [vmem:[#allocation3 + $0x60] sm:$0xff] }
 0x318   : > { %v2297_v21 = vpop.f32.mrf.mxu1 }
 0x319   : > { %v2367_v4 = vpop.f32.mrf.mxu0  ;;  %v2298_v18 = vadd.f32 %v2297_v21, %v2268_v57  ;;  %v1835_v57 = vld [vmem:[#allocation3 + $0x20] sm:$0xff] }
 0x31f   : > { %v2309_v53 = vpop.f32.mrf.mxu2 }
 0x320   : > { %v2310_v17 = vadd.f32 %v2309_v53, %v2281_v29  ;;  %v2396_v27 = vpop.f32.mrf.mxu1 }
 0x321   : > { %v2369_v15 = vpop.f32.mrf.mxu0 }
 0x326   : > { %v2338_v52 = vpop.f32.mrf.mxu3 }
 0x327   : > { %v2339_v58 = vadd.f32 %v2338_v52, %v2310_v17  ;;  %v2311_v30 = vpop.f32.mrf.mxu2 }
 0x328   : > { %v2312_v0 = vadd.f32 %v2311_v30, %v2283_v54  ;;  %v2398_v16 = vpop.f32.mrf.mxu1 }
 0x329   : > { %v2474_v8 = vadd.f32 %v2339_v58, %v1826_v20  ;;  %v2397_v58 = vadd.f32 %v2396_v27, %v2367_v4  ;;  %v1837_v27 = vld [vmem:[#allocation3 + $0x38] sm:$0xff] }
 0x32b   : > { %2490 = vst [vmem:[#allocation3 + $0x30] sm:$0xff] %v2474_v8 }
 0x32e   : > { %v2340_v62 = vpop.f32.mrf.mxu3 }
 0x32f   : > { %v2341_v22 = vadd.f32 %v2340_v62, %v2312_v0  ;;  %v2314_v1 = vpop.f32.mrf.mxu2 }
 0x330   : > { %v2315_v6 = vadd.f32 %v2314_v1, %v2286_v19  ;;  %v2401_v8 = vpop.f32.mrf.mxu1 }
 0x331   : > { %v2476_v14 = vadd.f32 %v2341_v22, %v1828_v9  ;;  %v2372_v9 = vpop.f32.mrf.mxu0  ;;  %v2399_v22 = vadd.f32 %v2398_v16, %v2369_v15 }
 0x333   : > { %2492 = vst [vmem:[#allocation3 + $0x58] sm:$0xff] %v2476_v14  ;;  %v1829_v14 = vld [vmem:[#allocation3 + $0x18] sm:$0xff] }
 0x336   : > { %v2343_v56 = vpop.f32.mrf.mxu3 }
 0x337   : > { %v2344_v34 = vadd.f32 %v2343_v56, %v2315_v6  ;;  %v2316_v38 = vpop.f32.mrf.mxu2 }
 0x338   : > { %v2317_v36 = vadd.f32 %v2316_v38, %v2288_v55  ;;  %v2403_v33 = vpop.f32.mrf.mxu1 }
 0x339   : > { %v2478_v3 = vadd.f32 %v2344_v34, %v1830_v63  ;;  %v2374_v56 = vpop.f32.mrf.mxu0  ;;  %v2402_v34 = vadd.f32 %v2401_v8, %v2372_v9 }
 0x33b   : > { %2494 = vst [vmem:[#allocation3 + $0x50] sm:$0xff] %v2478_v3  ;;  %v1831_v3 = vld [vmem:[#allocation3 + $0x68] sm:$0xff] }
 0x33e   : > { %v2345_v44 = vpop.f32.mrf.mxu3 }
 0x33f   : > { %v2346_v46 = vadd.f32 %v2345_v44, %v2317_v36  ;;  %v2319_v23 = vpop.f32.mrf.mxu2 }
 0x340   : > { %v2320_v25 = vadd.f32 %v2319_v23, %v2291_v2  ;;  %v2406_v44 = vpop.f32.mrf.mxu1 }
 0x341   : > { %v2480_v45 = vadd.f32 %v2346_v46, %v1832_v43  ;;  %v2404_v46 = vadd.f32 %v2403_v33, %v2374_v56  ;;  %v2377_v23 = vpop.f32.mrf.mxu0 }
 0x343   : > { %2496 = vst [vmem:[#allocation3 + $0x8] sm:$0xff] %v2480_v45  ;;  %v1833_v45 = vld [vmem:[#allocation3 + $0x48] sm:$0xff] }
 0x346   : > { %v2348_v47 = vpop.f32.mrf.mxu3 }
 0x347   : > { %v2349_v51 = vadd.f32 %v2348_v47, %v2320_v25  ;;  %v2321_v49 = vpop.f32.mrf.mxu2 }
 0x348   : > { %v2322_v13 = vadd.f32 %v2321_v49, %v2293_v40  ;;  %v2408_v49 = vpop.f32.mrf.mxu1 }
 0x349   : > { %v2482_v59 = vadd.f32 %v2349_v51, %v1834_v50  ;;  %v2407_v51 = vadd.f32 %v2406_v44, %v2377_v23 }
 0x34b   : > { %2498 = vst [vmem:[#allocation3 + $0x40] sm:$0xff] %v2482_v59  ;;  %v2379_v59 = vpop.f32.mrf.mxu0 }
 0x34e   : > { %v2350_v32 = vpop.f32.mrf.mxu3 }
 0x34f   : > { %v2351_v37 = vadd.f32 %v2350_v32, %v2322_v13  ;;  %v2324_v35 = vpop.f32.mrf.mxu2 }
 0x350   : > { %v2325_v41 = vadd.f32 %v2324_v35, %v2296_v61 }
 0x351   : > { %v2484_v5 = vadd.f32 %v2351_v37, %v1836_v48  ;;  %v2409_v37 = vadd.f32 %v2408_v49, %v2379_v59 }
 0x353   : > { %2500 = vst [vmem:[#allocation3 + $0x10] sm:$0xff] %v2484_v5  ;;  %v2411_v5 = vpop.f32.mrf.mxu1 }
 0x356   : > { %v2353_v24 = vpop.f32.mrf.mxu3 }
 0x357   : > { %v2354_v10 = vadd.f32 %v2353_v24, %v2325_v41  ;;  %v2326_v31 = vpop.f32.mrf.mxu2  ;;  %v2382_v41 = vpop.f32.mrf.mxu0 }
 0x358   : > { %v2327_v53 = vadd.f32 %v2326_v31, %v2298_v18 }
 0x359   : > { %v2486_v28 = vadd.f32 %v2354_v10, %v1838_v11  ;;  %v2412_v10 = vadd.f32 %v2411_v5, %v2382_v41 }
 0x35b   : > { %2502 = vst [vmem:[#allocation3 + $0x60] sm:$0xff] %v2486_v28  ;;  %v1839_v28 = vld [vmem:[#allocation3 + $0x70] sm:$0xff] }
 0x35e   : > { %v2355_v29 = vpop.f32.mrf.mxu3 }
 0x35f   : > { %v2356_v17 = vadd.f32 %v2355_v29, %v2327_v53  ;;  %v2425_v20 = vpop.f32.mrf.mxu2  ;;  %v2413_v53 = vpop.f32.mrf.mxu1 }
 0x360   : > { %v2426_v30 = vadd.f32 %v2425_v20, %v2397_v58 }
 0x361   : > { %v2488_v52 = vadd.f32 %v2356_v17, %v1840_v39  ;;  %v2384_v39 = vpop.f32.mrf.mxu0 }
 0x362   : > { %v2414_v17 = vadd.f32 %v2413_v53, %v2384_v39 }
 0x363   : > { %2504 = vst [vmem:[#allocation3 + $0x78] sm:$0xff] %v2488_v52  ;;  %v1841_v52 = vld [vmem:[#allocation3 + $0x28] sm:$0xff] }
 0x366   : > { %v2454_v54 = vpop.f32.mrf.mxu3 }
 0x367   : > { %v2455_v12 = vadd.f32 %v2454_v54, %v2426_v30  ;;  %v2427_v0 = vpop.f32.mrf.mxu2 }
 0x368   : > { %v2428_v1 = vadd.f32 %v2427_v0, %v2399_v22 }
 0x369   : > { %v2475_v62 = vadd.f32 %v2455_v12, %v1827_v60 }
 0x36b   : > { %2491 = vst [vmem:[#allocation3] sm:$0xff] %v2475_v62 }
 0x36e   : > { %v2456_v19 = vpop.f32.mrf.mxu3 }
 0x36f   : > { %v2457_v26 = vadd.f32 %v2456_v19, %v2428_v1  ;;  %v2430_v6 = vpop.f32.mrf.mxu2 }
 0x370   : > { %v2431_v38 = vadd.f32 %v2430_v6, %v2402_v34 }
 0x371   : > { %v2477_v63 = vadd.f32 %v2457_v26, %v1829_v14 }
 0x373   : > { %2493 = vst [vmem:[#allocation3 + $0x18] sm:$0xff] %v2477_v63 }
 0x376   : > { %v2459_v55 = vpop.f32.mrf.mxu3 }
 0x377   : > { %v2460_v36 = vadd.f32 %v2459_v55, %v2431_v38  ;;  %v2432_v42 = vpop.f32.mrf.mxu2 }
 0x378   : > { %v2433_v7 = vadd.f32 %v2432_v42, %v2404_v46 }
 0x379   : > { %v2479_v43 = vadd.f32 %v2460_v36, %v1831_v3 }
 0x37b   : > { %2495 = vst [vmem:[#allocation3 + $0x68] sm:$0xff] %v2479_v43 }
 0x37e   : > { %v2461_v2 = vpop.f32.mrf.mxu3 }
 0x37f   : > { %v2462_v25 = vadd.f32 %v2461_v2, %v2433_v7  ;;  %v2435_v50 = vpop.f32.mrf.mxu2 }
 0x380   : > { %v2436_v21 = vadd.f32 %v2435_v50, %v2407_v51 }
 0x381   : > { %v2481_v47 = vadd.f32 %v2462_v25, %v1833_v45 }
 0x383   : > { %2497 = vst [vmem:[#allocation3 + $0x48] sm:$0xff] %v2481_v47 }
 0x386   : > { %v2464_v40 = vpop.f32.mrf.mxu3 }
 0x387   : > { %v2465_v13 = vadd.f32 %v2464_v40, %v2436_v21  ;;  %v2437_v48 = vpop.f32.mrf.mxu2 }
 0x388   : > { %v2438_v35 = vadd.f32 %v2437_v48, %v2409_v37 }
 0x389   : > { %v2483_v32 = vadd.f32 %v2465_v13, %v1835_v57 }
 0x38b   : > { %2499 = vst [vmem:[#allocation3 + $0x20] sm:$0xff] %v2483_v32 }
 0x38e   : > { %v2466_v61 = vpop.f32.mrf.mxu3 }
 0x38f   : > { %v2467_v4 = vadd.f32 %v2466_v61, %v2438_v35  ;;  %v2440_v11 = vpop.f32.mrf.mxu2 }
 0x390   : > { %v2441_v31 = vadd.f32 %v2440_v11, %v2412_v10 }
 0x391   : > { %v2485_v24 = vadd.f32 %v2467_v4, %v1837_v27 }
 0x393   : > { %2501 = vst [vmem:[#allocation3 + $0x38] sm:$0xff] %v2485_v24 }
 0x396   : > { %v2469_v18 = vpop.f32.mrf.mxu3 }
 0x397   : > { %v2470_v16 = vadd.f32 %v2469_v18, %v2441_v31  ;;  %v2442_v29 = vpop.f32.mrf.mxu2 }
 0x398   : > { %v2443_v20 = vadd.f32 %v2442_v29, %v2414_v17 }
 0x399   : > { %v2487_v15 = vadd.f32 %v2470_v16, %v1839_v28 }
 0x39b   : > { %2503 = vst [vmem:[#allocation3 + $0x70] sm:$0xff] %v2487_v15 }
 0x39e   : > { %v2471_v58 = vpop.f32.mrf.mxu3 }
 0x39f   : > { %v2472_v30 = vadd.f32 %v2471_v58, %v2443_v20  ;;  %2509 = sbr.rel (%p3520_p12) target bundleno = 1244 (0x4dc), region = 87 }
 0x3a1   : > { %v2489_v8 = vadd.f32 %v2472_v30, %v1841_v52 }
 0x3a3   : > { %2505 = vst [vmem:[#allocation3 + $0x28] sm:$0xff] %v2489_v8 }
 0x3a4   : > { %v2518_v60 = vld [vmem:[#allocation3 + $0x40] sm:$0xff]  ;;  %v2514_v22 = vld [vmem:[#allocation3 + $0x50] sm:$0xff]  ;;  %v2515_v1 = vld [vmem:[#allocation3 + $0x68] sm:$0xff] }
 0x3a5   : > { %v2519_v54 = vld [vmem:[#allocation3 + $0x20] sm:$0xff]  ;;  %v2550_v26 = vld [vmem:[%s5300_s0 + $0x10] sm:$0xff]  ;;  %v2521_v36 = vld [vmem:[#allocation3 + $0x38] sm:$0xff] }
 0x3a6   : > { %v2526_v12 = vld [vmem:[%s5306_s6] sm:$0x3]  ;;  %v2510_v6 = vld [vmem:[#allocation3 + $0x30] sm:$0xff]  ;;  %v2560_v42 = vunpack.c.l.bf16 %v2550_v26  ;;  %v2561_v43 = vunpack.c.h.bf16 %v2550_v26  ;;  %v2553_v23 = vld [vmem:[%s5300_s0 + $0x28] sm:$0xff] }
 0x3a7   : > { %v4993_v0 = vperm.slane %v2526_v12, 0  ;;  %v4995_v9 = vperm.slane %v2526_v12, 1  ;;  %v2552_v62 = vld [vmem:[%s5300_s0 + $0x20] sm:$0xff]  ;;  %v2520_v55 = vld [vmem:[#allocation3 + $0x10] sm:$0xff]  ;;  %v2516_v50 = vld [vmem:[#allocation3 + $0x8] sm:$0xff]  ;;  %v2566_v32 = vunpack.c.l.bf16 %v2553_v23  ;;  %v2567_v61 = vunpack.c.h.bf16 %v2553_v23 }
 0x3a8   : > { %v2564_v14 = vunpack.c.l.bf16 %v2552_v62  ;;  %v2565_v19 = vunpack.c.h.bf16 %v2552_v62  ;;  %v2511_v33 = vld [vmem:[#allocation3] sm:$0xff]  ;;  %v2517_v47 = vld [vmem:[#allocation3 + $0x48] sm:$0xff]  ;;  %v2551_v57 = vld [vmem:[%s5300_s0 + $0x18] sm:$0xff] }
 0x3a9   : > { %v2540_v63 = vadd.f32 %v4993_v0, %v2518_v60  ;;  %v2541_v56 = vadd.f32 %v4995_v9, %v2519_v54  ;;  %v2536_v34 = vadd.f32 %v4993_v0, %v2514_v22  ;;  %v2537_v38 = vadd.f32 %v4995_v9, %v2515_v1  ;;  %v2548_v3 = vld [vmem:[%s5300_s0] sm:$0xff]  ;;  %v2512_v37 = vld [vmem:[#allocation3 + $0x58] sm:$0xff]  ;;  %v2549_v5 = vld [vmem:[%s5300_s0 + $0x8] sm:$0xff] }
 0x3aa   : > { %v2532_v44 = vadd.f32 %v4993_v0, %v2510_v6  ;;  %v2533_v46 = vadd.f32 %v4995_v9, %v2511_v33  ;;  %v2556_v2 = vunpack.c.l.bf16 %v2548_v3  ;;  %v2557_v25 = vunpack.c.h.bf16 %v2548_v3  ;;  %v2513_v35 = vld [vmem:[#allocation3 + $0x18] sm:$0xff]  ;;  %v2522_v15 = vld [vmem:[#allocation3 + $0x60] sm:$0xff]  ;;  %v2525_v52 = vld [vmem:[#allocation3 + $0x28] sm:$0xff] }
 0x3ab   : > { %v5015_v7 = vadd.f32 %v2564_v14, %v2540_v63  ;;  %v5017_v45 = vadd.f32 %v2565_v19, %v2541_v56  ;;  %v5019_v51 = vadd.f32 %v2560_v42, %v2536_v34  ;;  %v5021_v49 = vadd.f32 %v2561_v43, %v2537_v38  ;;  %v2524_v20 = vld [vmem:[#allocation3 + $0x78] sm:$0xff]  ;;  %v2523_v8 = vld [vmem:[#allocation3 + $0x70] sm:$0xff] }
 0x3ac   : > { %v2542_v21 = vadd.f32 %v4993_v0, %v2520_v55  ;;  %v2543_v59 = vadd.f32 %v4995_v9, %v2521_v36  ;;  %v5030_v13 = vadd.f32 %v2556_v2, %v2532_v44  ;;  %v5032_v48 = vadd.f32 %v2557_v25, %v2533_v46  ;;  %v2555_v58 = vld [vmem:[%s5300_s0 + $0x38] sm:$0xff]  ;;  %v2554_v60 = vld [vmem:[%s5300_s0 + $0x30] sm:$0xff] }
 0x3ad   : > { %v2600_v40 = vadd.f32 %v5017_v45, %v5015_v7  ;;  %v2594_v27 = vadd.f32 %v5021_v49, %v5019_v51  ;;  %v2538_v4 = vadd.f32 %v4993_v0, %v2516_v50  ;;  %v2539_v41 = vadd.f32 %v4995_v9, %v2517_v47 }
 0x3ae   : > { %v2588_v11 = vadd.f32 %v5032_v48, %v5030_v13  ;;  %v5043_v24 = vadd.f32 %v2566_v32, %v2542_v21  ;;  %v2562_v10 = vunpack.c.l.bf16 %v2551_v57  ;;  %v2563_v31 = vunpack.c.h.bf16 %v2551_v57 }
 0x3af   : > { %2601 = vadd.xlane.f32.xlu2 %v2600_v40  ;;  %2595 = vadd.xlane.f32.xlu1 %v2594_v27  ;;  %v5045_v28 = vadd.f32 %v2567_v61, %v2543_v59  ;;  %v2534_v18 = vadd.f32 %v4993_v0, %v2512_v37  ;;  %v2535_v16 = vadd.f32 %v4995_v9, %v2513_v35  ;;  %v2558_v53 = vunpack.c.l.bf16 %v2549_v5 }
 0x3b0   : > { %2589 = vadd.xlane.f32.xlu0 %v2588_v11  ;;  %v5049_v39 = vadd.f32 %v2562_v10, %v2538_v4  ;;  %v5051_v29 = vadd.f32 %v2563_v31, %v2539_v41  ;;  %v2559_v17 = vunpack.c.h.bf16 %v2549_v5  ;;  %v2544_v22 = vadd.f32 %v4993_v0, %v2522_v15 }
 0x3b1   : > { %v5056_v30 = vadd.f32 %v2558_v53, %v2534_v18  ;;  %v2603_v54 = vadd.f32 %v5045_v28, %v5043_v24  ;;  %v2546_v1 = vadd.f32 %v4993_v0, %v2524_v20  ;;  %v2547_v14 = vadd.f32 %v4995_v9, %v2525_v52 }
 0x3b2   : > { %v2597_v12 = vadd.f32 %v5051_v29, %v5049_v39  ;;  %v2575_v62 = vadd.f32 %v2559_v17, %v2535_v16  ;;  %v2570_v19 = vunpack.c.l.bf16 %v2555_v58  ;;  %v2571_v26 = vunpack.c.h.bf16 %v2555_v58 }
 0x3b3   : > { %v2545_v33 = vadd.f32 %v4995_v9, %v2523_v8  ;;  %v2568_v63 = vunpack.c.l.bf16 %v2554_v60  ;;  %v2569_v56 = vunpack.c.h.bf16 %v2554_v60  ;;  %v3889_v9 = vmov 256.0  }
 0x3b4   : > { %v2591_v6 = vadd.f32 %v2575_v62, %v5056_v30  ;;  %v5070_v34 = vadd.f32 %v2570_v19, %v2546_v1  ;;  %v5072_v38 = vadd.f32 %v2571_v26, %v2547_v14  ;;  %3797 = vrcp.f32 %v3889_v9 }
 0x3b5   : > { %v5074_v3 = vadd.f32 %v2568_v63, %v2544_v22  ;;  %v5076_v0 = vadd.f32 %v2569_v56, %v2545_v33 }
 0x3b6   : > { %v2609_v55 = vadd.f32 %v5072_v38, %v5070_v34 }
 0x3b7   : > { %2604 = vadd.xlane.f32.xlu2 %v2603_v54  ;;  %2598 = vadd.xlane.f32.xlu1 %v2597_v12  ;;  %v2606_v36 = vadd.f32 %v5076_v0, %v5074_v3 }
 0x3b8   : > { %2592 = vadd.xlane.f32.xlu0 %v2591_v6 }
 0x3ba   : > { %v3798_v42 = vpop.eup %3797 }
 0x3bb   : > { %v2613_v43 = vmul.f32 256.0, %v3798_v42  ;;  %vm2617_vm9 = vweird.f32 %v3798_v42 }
 0x3bd   : > { %v2614_v44 = vsub.f32 1.0, %v2613_v43 }
 0x3bf   : > { %2610 = vadd.xlane.f32.xlu1 %v2609_v55  ;;  %v2615_v46 = vmul.f32 %v3798_v42, %v2614_v44 }
 0x3c0   : > { %2607 = vadd.xlane.f32.xlu0 %v2606_v36 }
 0x3c1   : > { %v2616_v23 = vadd.f32 %v3798_v42, %v2615_v46 }
 0x3c3   : > { %v5082_v2 = vsel %vm2617_vm9, %v3798_v42, %v2616_v23 }
 0x422   : > { %v2602_v25 = vpop.xlane.xlu2 %2601  ;;  %v2596_v50 = vpop.xlane.xlu1 %2595 }
 0x423   : > { %v2621_v47 = vmul.f32 %v5082_v2, %v2596_v50  ;;  %v2590_v21 = vpop.xlane.xlu0 %2589 }
 0x424   : > { %v2619_v59 = vmul.f32 %v5082_v2, %v2590_v21 }
 0x425   : > { %v5087_v57 = vsub.f32 %v5019_v51, %v2621_v47  ;;  %v5090_v40 = vsub.f32 %v5021_v49, %v2621_v47 }
 0x426   : > { %v5093_v32 = vsub.f32 %v5030_v13, %v2619_v59  ;;  %v5096_v37 = vsub.f32 %v5032_v48, %v2619_v59  ;;  %v2623_v48 = vmul.f32 %v5082_v2, %v2602_v25 }
 0x427   : > { %v2647_v35 = vmul.f32 %v5087_v57, %v5087_v57  ;;  %v2648_v5 = vmul.f32 %v5090_v40, %v5090_v40 }
 0x428   : > { %v2643_v27 = vmul.f32 %v5093_v32, %v5093_v32  ;;  %v2644_v51 = vmul.f32 %v5096_v37, %v5096_v37  ;;  %v5132_v52 = vsub.f32 %v5015_v7, %v2623_v48 }
 0x429   : > { %v2665_v61 = vadd.f32 %v2648_v5, %v2647_v35 }
 0x42a   : > { %v2605_v49 = vpop.xlane.xlu2 %2604  ;;  %v2599_v4 = vpop.xlane.xlu1 %2598  ;;  %v2659_v41 = vadd.f32 %v2644_v51, %v2643_v27 }
 0x42b   : > { %v2624_v13 = vmul.f32 %v5082_v2, %v2605_v49  ;;  %v2622_v11 = vmul.f32 %v5082_v2, %v2599_v4  ;;  %v2593_v10 = vpop.xlane.xlu0 %2592  ;;  %2666 = vadd.xlane.f32.xlu1 %v2665_v61 }
 0x42c   : > { %v2620_v16 = vmul.f32 %v5082_v2, %v2593_v10  ;;  %2660 = vadd.xlane.f32.xlu2 %v2659_v41  ;;  %v2817_v41 = vld [vmem:[%s5308_s8] sm:$0x3] }
 0x42d   : > { %v5110_v31 = vsub.f32 %v5043_v24, %v2624_v13  ;;  %v5113_v18 = vsub.f32 %v5045_v28, %v2624_v13  ;;  %v5117_v53 = vsub.f32 %v5049_v39, %v2622_v11  ;;  %v5120_v15 = vsub.f32 %v5051_v29, %v2622_v11  ;;  %v2795_v13 = vld [vmem:[%s5307_s7] sm:$0x3] }
 0x42e   : > { %v5123_v17 = vsub.f32 %v5056_v30, %v2620_v16  ;;  %v5125_v20 = vsub.f32 %v2575_v62, %v2620_v16  ;;  %v5135_v39 = vsub.f32 %v5017_v45, %v2623_v48  ;;  %v2651_v45 = vmul.f32 %v5132_v52, %v5132_v52 }
 0x42f   : > { %v2653_v24 = vmul.f32 %v5110_v31, %v5110_v31  ;;  %v2654_v28 = vmul.f32 %v5113_v18, %v5113_v18  ;;  %v2649_v29 = vmul.f32 %v5117_v53, %v5117_v53  ;;  %v2650_v58 = vmul.f32 %v5120_v15, %v5120_v15 }
 0x430   : > { %v2645_v8 = vmul.f32 %v5123_v17, %v5123_v17  ;;  %v2646_v60 = vmul.f32 %v5125_v20, %v5125_v20  ;;  %v2652_v22 = vmul.f32 %v5135_v39, %v5135_v39  ;;  %v5191_v10 = vperm.slane %v2795_v13, 0 }
 0x431   : > { %v2674_v30 = vadd.f32 %v2654_v28, %v2653_v24  ;;  %v2668_v54 = vadd.f32 %v2650_v58, %v2649_v29  ;;  %v5193_v16 = vperm.slane %v2795_v13, 1  ;;  %v5195_v28 = vperm.slane %v2817_v41, 0 }
 0x432   : > { %v2662_v12 = vadd.f32 %v2646_v60, %v2645_v8  ;;  %v2611_v7 = vpop.xlane.xlu1 %2610  ;;  %v2671_v6 = vadd.f32 %v2652_v22, %v2651_v45  ;;  %v5197_v29 = vperm.slane %v2817_v41, 1 }
 0x433   : > { %v2608_v62 = vpop.xlane.xlu0 %2607  ;;  %2675 = vadd.xlane.f32.xlu1 %v2674_v30  ;;  %v2626_v14 = vmul.f32 %v5082_v2, %v2611_v7 }
 0x434   : > { %v2625_v1 = vmul.f32 %v5082_v2, %v2608_v62  ;;  %2669 = vadd.xlane.f32.xlu2 %v2668_v54  ;;  %2663 = vadd.xlane.f32.xlu0 %v2662_v12 }
 0x435   : > { %v5158_v33 = vsub.f32 %v5070_v34, %v2626_v14  ;;  %v5161_v63 = vsub.f32 %v5072_v38, %v2626_v14 }
 0x436   : > { %v5152_v19 = vsub.f32 %v5074_v3, %v2625_v1  ;;  %v5155_v26 = vsub.f32 %v5076_v0, %v2625_v1 }
 0x437   : > { %v2657_v3 = vmul.f32 %v5158_v33, %v5158_v33  ;;  %v2658_v0 = vmul.f32 %v5161_v63, %v5161_v63 }
 0x438   : > { %v2655_v56 = vmul.f32 %v5152_v19, %v5152_v19  ;;  %v2656_v55 = vmul.f32 %v5155_v26, %v5155_v26 }
 0x439   : > { %v2680_v34 = vadd.f32 %v2658_v0, %v2657_v3 }
 0x43a   : > { %v2677_v36 = vadd.f32 %v2656_v55, %v2655_v56 }
 0x43c   : > { %2672 = vadd.xlane.f32.xlu0 %v2671_v6  ;;  %2678 = vadd.xlane.f32.xlu2 %v2677_v36 }
 0x444   : > { %2681 = vadd.xlane.f32.xlu0 %v2680_v34 }
 0x49e   : > { %v2667_v9 = vpop.xlane.xlu1 %2666 }
 0x49f   : > { %v2685_v38 = vmul.f32 %v2667_v9, %v5082_v2  ;;  %v2661_v42 = vpop.xlane.xlu2 %2660 }
 0x4a0   : > { %v2683_v43 = vmul.f32 %v2661_v42, %v5082_v2 }
 0x4a1   : > { %v2693_v44 = vadd.f32 1e-05, %v2685_v38 }
 0x4a2   : > { %v2691_v46 = vadd.f32 1e-05, %v2683_v43 }
 0x4a3   : > { %3799 = vrsqrt.f32 %v2693_v44  ;;  %vm2725_vm10 = vweird.f32 %v2693_v44 }
 0x4a4   : > { %3801 = vrsqrt.f32 %v2691_v46  ;;  %vm2705_vm12 = vweird.f32 %v2691_v46 }
 0x4a6   : > { %v2676_v23 = vpop.xlane.xlu1 %2675 }
 0x4a7   : > { %v2688_v25 = vmul.f32 %v2676_v23, %v5082_v2  ;;  %v2670_v50 = vpop.xlane.xlu2 %2669  ;;  %v2664_v47 = vpop.xlane.xlu0 %2663 }
 0x4a8   : > { %v2686_v21 = vmul.f32 %v2670_v50, %v5082_v2  ;;  %v2684_v59 = vmul.f32 %v2664_v47, %v5082_v2 }
 0x4a9   : > { %v3800_v35 = vpop.eup %3799  ;;  %v5176_v5 = vadd.f32 1e-05, %v2688_v25 }
 0x4aa   : > { %v3802_v27 = vpop.eup %3801  ;;  %v2720_v51 = vmul.f32 %v3800_v35, %v2693_v44  ;;  %v5178_v49 = vadd.f32 1e-05, %v2686_v21  ;;  %v5180_v61 = vadd.f32 1e-05, %v2684_v59  ;;  %vm2726_vm11 = vweird.f32 %v3800_v35 }
 0x4ab   : > { %v2700_v4 = vmul.f32 %v3802_v27, %v2691_v46  ;;  %3803 = vrsqrt.f32 %v5176_v5  ;;  %vm2706_vm13 = vweird.f32 %v3802_v27  ;;  %vm2755_vm14 = vweird.f32 %v5176_v5  ;;  %vm2727_vm1 = vmor %vm2725_vm10, %vm2726_vm11 }
 0x4ac   : > { %v2721_v48 = vmul.f32 %v3800_v35, %v2720_v51  ;;  %3805 = vrsqrt.f32 %v5178_v49  ;;  %vm2735_vm0 = vweird.f32 %v5178_v49  ;;  %vm2707_vm3 = vmor %vm2705_vm12, %vm2706_vm13  ;;  %vm2715_vm7 = vweird.f32 %v5180_v61 }
 0x4ad   : > { %v2701_v11 = vmul.f32 %v3802_v27, %v2700_v4  ;;  %3807 = vrsqrt.f32 %v5180_v61 }
 0x4ae   : > { %v2722_v24 = vmul.f32 0.5, %v2721_v48 }
 0x4af   : > { %v2702_v58 = vmul.f32 0.5, %v2701_v11  ;;  %v2679_v30 = vpop.xlane.xlu2 %2678  ;;  %v2673_v8 = vpop.xlane.xlu0 %2672 }
 0x4b0   : > { %v2723_v60 = vsub.f32 1.5, %v2722_v24  ;;  %v2689_v54 = vmul.f32 %v2679_v30, %v5082_v2  ;;  %v2687_v12 = vmul.f32 %v2673_v8, %v5082_v2 }
 0x4b1   : > { %v3804_v7 = vpop.eup %3803  ;;  %v2703_v62 = vsub.f32 1.5, %v2702_v58 }
 0x4b2   : > { %v3806_v45 = vpop.eup %3805  ;;  %v2724_v22 = vmul.f32 %v3800_v35, %v2723_v60  ;;  %v2750_v1 = vmul.f32 %v3804_v7, %v5176_v5  ;;  %vm2756_vm15 = vweird.f32 %v3804_v7  ;;  %v5206_v55 = vadd.f32 1e-05, %v2689_v54 }
 0x4b3   : > { %v3808_v14 = vpop.eup %3807  ;;  %v2704_v6 = vmul.f32 %v3802_v27, %v2703_v62  ;;  %v2730_v56 = vmul.f32 %v3806_v45, %v5178_v49  ;;  %vm2736_vm2 = vweird.f32 %v3806_v45  ;;  %v5210_v34 = vadd.f32 1e-05, %v2687_v12  ;;  %vm2757_vm4 = vmor %vm2755_vm14, %vm2756_vm15 }
 0x4b4   : > { %v2728_v36 = vsel %vm2727_vm1, %v3800_v35, %v2724_v22  ;;  %v2751_v3 = vmul.f32 %v3804_v7, %v2750_v1  ;;  %v2710_v0 = vmul.f32 %v3808_v14, %v5180_v61  ;;  %3809 = vrsqrt.f32 %v5206_v55  ;;  %vm2737_vm6 = vmor %vm2735_vm0, %vm2736_vm2 }
 0x4b5   : > { %v2783_v9 = vmul.f32 %v2728_v36, %v5087_v57  ;;  %v2784_v38 = vmul.f32 %v2728_v36, %v5090_v40  ;;  %v2708_v42 = vsel %vm2707_vm3, %v3802_v27, %v2704_v6  ;;  %v2731_v43 = vmul.f32 %v3806_v45, %v2730_v56 }
 0x4b6   : > { %v2779_v44 = vmul.f32 %v2708_v42, %v5093_v32  ;;  %v2780_v23 = vmul.f32 %v2708_v42, %v5096_v37  ;;  %v2752_v25 = vmul.f32 0.5, %v2751_v3  ;;  %v2711_v50 = vmul.f32 %v3808_v14, %v2710_v0 }
 0x4b7   : > { %v2805_v46 = vmul.f32 %v5191_v10, %v2783_v9  ;;  %v2806_v47 = vmul.f32 %v5193_v16, %v2784_v38  ;;  %v2732_v21 = vmul.f32 0.5, %v2731_v43  ;;  %v2682_v27 = vpop.xlane.xlu0 %2681  ;;  %vm2716_vm5 = vweird.f32 %v3808_v14 }
 0x4b8   : > { %v2801_v59 = vmul.f32 %v5191_v10, %v2779_v44  ;;  %v2802_v57 = vmul.f32 %v5193_v16, %v2780_v23  ;;  %v2753_v40 = vsub.f32 1.5, %v2752_v25  ;;  %v2712_v35 = vmul.f32 0.5, %v2711_v50  ;;  %vm2717_vm8 = vmor %vm2715_vm7, %vm2716_vm5 }
 0x4b9   : > { %v2827_v32 = vadd.f32 %v5195_v28, %v2805_v46  ;;  %v2828_v37 = vadd.f32 %v5197_v29, %v2806_v47  ;;  %v2733_v51 = vsub.f32 1.5, %v2732_v21  ;;  %3811 = vrsqrt.f32 %v5210_v34 }
 0x4ba   : > { %v2823_v13 = vadd.f32 %v5195_v28, %v2801_v59  ;;  %v2824_v4 = vadd.f32 %v5197_v29, %v2802_v57  ;;  %v2754_v41 = vmul.f32 %v3804_v7, %v2753_v40  ;;  %v2713_v48 = vsub.f32 1.5, %v2712_v35  ;;  %v3810_v30 = vpop.eup %3809 }
 0x4bb   : > { %2843 = vst [vmem:[#allocation5 + $0x20] sm:$0xff] %v2827_v32  ;;  %v2734_v11 = vmul.f32 %v3806_v45, %v2733_v51  ;;  %v2690_v24 = vmul.f32 %v2682_v27, %v5082_v2  ;;  %v2760_v62 = vmul.f32 %v3810_v30, %v5206_v55  ;;  %vm2765_vm9 = vweird.f32 %v5206_v55 }
 0x4bc   : > { %2844 = vst [vmem:[#allocation5 + $0x28] sm:$0xff] %v2828_v37  ;;  %v2758_v58 = vsel %vm2757_vm4, %v3804_v7, %v2754_v41  ;;  %v2714_v5 = vmul.f32 %v3808_v14, %v2713_v48  ;;  %vm2766_vm10 = vweird.f32 %v3810_v30  ;;  %vm2745_vm13 = vweird.f32 %v5210_v34 }
 0x4bd   : > { %2839 = vst [vmem:[#allocation5] sm:$0xff] %v2823_v13  ;;  %v2789_v8 = vmul.f32 %v2758_v58, %v5110_v31  ;;  %v2790_v60 = vmul.f32 %v2758_v58, %v5113_v18  ;;  %v2738_v54 = vsel %vm2737_vm6, %v3806_v45, %v2734_v11  ;;  %v5237_v12 = vadd.f32 1e-05, %v2690_v24  ;;  %vm2767_vm11 = vmor %vm2765_vm9, %vm2766_vm10 }
 0x4be   : > { %2840 = vst [vmem:[#allocation5 + $0x8] sm:$0xff] %v2824_v4  ;;  %v2785_v2 = vmul.f32 %v2738_v54, %v5117_v53  ;;  %v2786_v49 = vmul.f32 %v2738_v54, %v5120_v15  ;;  %v2718_v7 = vsel %vm2717_vm8, %v3808_v14, %v2714_v5  ;;  %v2761_v6 = vmul.f32 %v3810_v30, %v2760_v62 }
 0x4bf   : > { %v2811_v61 = vmul.f32 %v5191_v10, %v2789_v8  ;;  %v2812_v22 = vmul.f32 %v5193_v16, %v2790_v60  ;;  %v2781_v31 = vmul.f32 %v2718_v7, %v5123_v17  ;;  %v2782_v18 = vmul.f32 %v2718_v7, %v5125_v20  ;;  %v3812_v56 = vpop.eup %3811 }
 0x4c0   : > { %v2807_v45 = vmul.f32 %v5191_v10, %v2785_v2  ;;  %v2808_v1 = vmul.f32 %v5193_v16, %v2786_v49  ;;  %v2762_v0 = vmul.f32 0.5, %v2761_v6  ;;  %v2740_v20 = vmul.f32 %v3812_v56, %v5210_v34 }
 0x4c1   : > { %v2833_v53 = vadd.f32 %v5195_v28, %v2811_v61  ;;  %v2834_v15 = vadd.f32 %v5197_v29, %v2812_v22  ;;  %v2803_v14 = vmul.f32 %v5191_v10, %v2781_v31  ;;  %v2804_v36 = vmul.f32 %v5193_v16, %v2782_v18 }
 0x4c2   : > { %v2829_v3 = vadd.f32 %v5195_v28, %v2807_v45  ;;  %v2830_v17 = vadd.f32 %v5197_v29, %v2808_v1  ;;  %3813 = vrsqrt.f32 %v5237_v12  ;;  %v2763_v42 = vsub.f32 1.5, %v2762_v0 }
 0x4c3   : > { %2849 = vst [vmem:[#allocation5 + $0x50] sm:$0xff] %v2833_v53  ;;  %v2825_v9 = vadd.f32 %v5195_v28, %v2803_v14  ;;  %v2826_v38 = vadd.f32 %v5197_v29, %v2804_v36  ;;  %v2741_v43 = vmul.f32 %v3812_v56, %v2740_v20  ;;  %vm2746_vm12 = vweird.f32 %v3812_v56 }
 0x4c4   : > { %2850 = vst [vmem:[#allocation5 + $0x58] sm:$0xff] %v2834_v15  ;;  %v2764_v44 = vmul.f32 %v3810_v30, %v2763_v42  ;;  %vm2747_vm14 = vmor %vm2745_vm13, %vm2746_vm12  ;;  %vm2775_vm0 = vweird.f32 %v5237_v12 }
 0x4c5   : > { %2845 = vst [vmem:[#allocation5 + $0x30] sm:$0xff] %v2829_v3  ;;  %v2742_v23 = vmul.f32 0.5, %v2741_v43 }
 0x4c6   : > { %2846 = vst [vmem:[#allocation5 + $0x38] sm:$0xff] %v2830_v17  ;;  %v2768_v25 = vsel %vm2767_vm11, %v3810_v30, %v2764_v44 }
 0x4c7   : > { %2841 = vst [vmem:[#allocation5 + $0x10] sm:$0xff] %v2825_v9  ;;  %v2743_v50 = vsub.f32 1.5, %v2742_v23  ;;  %v2791_v55 = vmul.f32 %v2768_v25, %v5152_v19  ;;  %v2792_v47 = vmul.f32 %v2768_v25, %v5155_v26 }
 0x4c8   : > { %2842 = vst [vmem:[#allocation5 + $0x18] sm:$0xff] %v2826_v38  ;;  %v3814_v46 = vpop.eup %3813 }
 0x4c9   : > { %v2744_v21 = vmul.f32 %v3812_v56, %v2743_v50  ;;  %v2770_v59 = vmul.f32 %v3814_v46, %v5237_v12  ;;  %v2813_v57 = vmul.f32 %v5191_v10, %v2791_v55  ;;  %v2814_v40 = vmul.f32 %v5193_v16, %v2792_v47 }
 0x4ca   : > { %vm2776_vm15 = vweird.f32 %v3814_v46 }
 0x4cb   : > { %v2748_v35 = vsel %vm2747_vm14, %v3812_v56, %v2744_v21  ;;  %v2771_v27 = vmul.f32 %v3814_v46, %v2770_v59  ;;  %v2835_v32 = vadd.f32 %v5195_v28, %v2813_v57  ;;  %v2836_v37 = vadd.f32 %v5197_v29, %v2814_v40  ;;  %vm2777_vm1 = vmor %vm2775_vm0, %vm2776_vm15 }
 0x4cc   : > { %v2787_v19 = vmul.f32 %v2748_v35, %v5132_v52  ;;  %v2788_v26 = vmul.f32 %v2748_v35, %v5135_v39 }
 0x4cd   : > { %v2772_v51 = vmul.f32 0.5, %v2771_v27  ;;  %2851 = vst [vmem:[#allocation5 + $0x60] sm:$0xff] %v2835_v32 }
 0x4ce   : > { %v2809_v34 = vmul.f32 %v5191_v10, %v2787_v19  ;;  %v2810_v13 = vmul.f32 %v5193_v16, %v2788_v26  ;;  %2852 = vst [vmem:[#allocation5 + $0x68] sm:$0xff] %v2836_v37 }
 0x4cf   : > { %v2773_v4 = vsub.f32 1.5, %v2772_v51 }
 0x4d0   : > { %v2831_v41 = vadd.f32 %v5195_v28, %v2809_v34  ;;  %v2832_v48 = vadd.f32 %v5197_v29, %v2810_v13 }
 0x4d1   : > { %v2774_v11 = vmul.f32 %v3814_v46, %v2773_v4 }
 0x4d2   : > { %2847 = vst [vmem:[#allocation5 + $0x40] sm:$0xff] %v2831_v41 }
 0x4d3   : > { %2848 = vst [vmem:[#allocation5 + $0x48] sm:$0xff] %v2832_v48  ;;  %v2778_v52 = vsel %vm2777_vm1, %v3814_v46, %v2774_v11 }
 0x4d4   : > { %v2793_v39 = vmul.f32 %v2778_v52, %v5158_v33  ;;  %v2794_v24 = vmul.f32 %v2778_v52, %v5161_v63 }
 0x4d6   : > { %v2815_v58 = vmul.f32 %v5191_v10, %v2793_v39  ;;  %v2816_v5 = vmul.f32 %v5193_v16, %v2794_v24 }
 0x4d8   : > { %v2837_v30 = vadd.f32 %v5195_v28, %v2815_v58  ;;  %v2838_v8 = vadd.f32 %v5197_v29, %v2816_v5 }
 0x4da   : > { %2853 = vst [vmem:[#allocation5 + $0x70] sm:$0xff] %v2837_v30 }
 0x4db   : > { %2854 = vst [vmem:[#allocation5 + $0x78] sm:$0xff] %v2838_v8 }
 0x4dc PF: > { %p3667_p13 = scmp.eq.s32.totalorder %s2962_s14, 1  ;;  %s2866_s28 = sshll.u32 %s5309_s9, 4  ;;  %s2867_s28 = int_to_ptr.hbm [resolvable:$true] %s2866_s28 }
 0x4dd   : > { %s3890_s20 = smov [#allocation5]   ;;  %s3891_s22 = smov 256  }
 0x4de   : > { %s2864_s21 = sshll.u32 %s3890_s20, 4  ;;  %s3892_s30 = smov 16   ;;  %s2865_s21 = int_to_ptr.vmem [resolvable:$true] %s2864_s21 }
 0x4df   : > { %3664 = dma.vmem_to_hbm [thread:$0]  (%p3667_p13), %s2865_s21, 2048, %s2867_s28, [#allocation6], %s3891_s22, %s3891_s22, %s3892_s30  }
 0x4e0   : > { %3864 = dma.done.wait (%p3667_p13), [#allocation6], 2048  }
 0x4e1   : > { %3866 = vsyncadd (%p3667_p13), [#allocation6], 4294965248 }
 0x4e2 PF: > { %s20_s13 = sadd.s32 1, %s3885_s13   ;;  %s5310_s30 = smov %s3873_s10 }
 0x4e3   : > { %p17_p0 = scmp.ge.s32.totalorder %s20_s13, 4   ;;  %s5311_s10 = smov %s3979_s18 }
 0x4e4   : > { %s5312_s11 = smov %s3881_s12  ;;  %s5313_s12 = smov %s5315_s15 }
 0x4e5   :  { %19 = sbr.rel (!%p17_p0) target bundleno = 3 (0x3), region = 129 }
 0x4ea   :  { %2883 = vsyncpa [#allocation6], 1 }
 0x4eb   :  { %2885 = vsyncpa [#allocation6 + $0x1], 1 }

// kernel: _lambda_.10
= control target key start
LH: loop header
LB: loop body
LE: loop exit
PB: predicated region body
PF: predicated region fallthrough
CT: control target
= control target key end

     0   :  { %s3638_s30 = smov 0   ;;  %s3640_s10 = smov 0   ;;  %s4770_s0 = inlined_call_operand.vmem [shape: bf16[64,256], index: 0, kind: input, shape index: {}]   ;;  %s4771_s1 = inlined_call_operand.vmem [shape: f32[1,256], index: 1, kind: input, shape index: {}, may-alias: {1,7}]   ;;  %s4772_s2 = inlined_call_operand.vmem [shape: f32[1,256], index: 2, kind: input, shape index: {}, may-alias: {2,6,8}]   ;;  %s4773_s3 = inlined_call_operand.vmem [shape: bf16[256,1024], index: 3, kind: input, shape index: {}]   ;;  %s4774_s4 = inlined_call_operand.vmem [shape: f32[1,1024], index: 4, kind: input, shape index: {}]   ;;  %s4775_s5 = inlined_call_operand.vmem [shape: bf16[1024,256], index: 5, kind: input, shape index: {}]   ;;  %s4776_s6 = inlined_call_operand.vmem [shape: f32[1,256], index: 6, kind: input, shape index: {}, may-alias: {2,6,8}]   ;;  %s4777_s7 = inlined_call_operand.vmem [shape: f32[1,256], index: 7, kind: input, shape index: {}, may-alias: {1,7}]   ;;  %s4778_s8 = inlined_call_operand.vmem [shape: f32[1,256], index: 8, kind: input, shape index: {}, may-alias: {2,6,8}]   ;;  %s4779_s9 = inlined_call_operand.vmem [shape: bf16[64,256], index: 9, kind: output, shape index: {}]  }
   0x1   :  { %s3642_s11 = smov 0   ;;  %s3644_s12 = smov 0  }
   0x2   :  { %s3646_s13 = smov 0  }
   0x3 LB: > { %s28_s7 = sadd.s32 1, %s3580_s12  ;;  %p113_p1 = scmp.ne.s32.totalorder %s3572_s10, %s3568_s30  ;;  %s3584_s13 = sphi %s3646_s13, %s19_s13   ;;  %s3580_s12 = sphi %s3644_s12, %s4783_s12   ;;  %s3576_s11 = sphi %s3642_s11, %s4782_s11   ;;  %s3572_s10 = sphi %s3640_s10, %s4781_s10   ;;  %s3568_s30 = sphi %s3638_s30, %s4780_s30  }
   0x4   : > { %p29_p0 = scmp.ge.s32.totalorder %s28_s7, 2  ;;  %p114_p2 = scmp.eq.s32.totalorder %s3584_s13, 0 }
   0x5   : > { %s106_s14 = sadd.s32 1, %s3572_s10  ;;  %p2724_p5 = scmp.ge.s32.totalorder %s3584_s13, 2 }
   0x6   : > { %s4785_s7 = smov (%p29_p0, %s28_s7), 0  ;;  %p115_p3 = por %p114_p2, %p113_p1 }
   0x7   : > { %s103_s8 = ssub.s32 %s3580_s12, %s4785_s7  ;;  %305 = sbr.rel (%p2724_p5) target bundleno = 80 (0x50), region = 40 }
   0x8   : > { %p104_p4 = scmp.eq.s32.totalorder %s103_s8, 0 }
   0xa   : > { %s3673_s15 = scalar_select %p104_p4, %s3572_s10, %s106_s14  }
   0xc   : > { %308 = sbr.rel (!%p115_p3) target bundleno = 80 (0x50), region = 44  ;;  %s310_s16 = sand.u32 (%p115_p3), 1, %s3572_s10  }
   0xd   : > { %s3284_s17 = sshll.u32 (%p115_p3), %s3580_s12, 4  ;;  %s2725_s18 = sshll.u32 (%p115_p3), %s310_s16, 9 }
   0xe   : > { %s3681_s21 = scalar_lea.vmem (%p115_p3), %s4773_s3, %s3284_s17  ;;  %s3686_s22 = scalar_lea.vmem (%p115_p3), [#allocation4], %s2725_s18 }
   0xf   : > { %v328_v0 = vld [vmem:[%s3681_s21] sm:$0xff] (%p115_p3)  ;;  %v330_v1 = vld [vmem:[%s3681_s21 + $0x8] sm:$0xff] (%p115_p3) }
  0x10   : > { %v332_v2 = vld [vmem:[%s3681_s21 + $0x20] sm:$0xff] (%p115_p3)  ;;  %329 = vst [vmem:[%s3686_s22] sm:$0xff] (%p115_p3), %v328_v0  ;;  %v334_v3 = vld [vmem:[%s3681_s21 + $0x28] sm:$0xff] (%p115_p3) }
  0x11   : > { %331 = vst [vmem:[%s3686_s22 + $0x8] sm:$0xff] %v330_v1  ;;  %v336_v4 = vld [vmem:[%s3681_s21 + $0x40] sm:$0xff]  ;;  %v338_v5 = vld [vmem:[%s3681_s21 + $0x48] sm:$0xff] }
  0x12   : > { %333 = vst [vmem:[%s3686_s22 + $0x10] sm:$0xff] %v332_v2  ;;  %v340_v6 = vld [vmem:[%s3681_s21 + $0x60] sm:$0xff]  ;;  %v342_v7 = vld [vmem:[%s3681_s21 + $0x68] sm:$0xff] }
  0x13   : > { %335 = vst [vmem:[%s3686_s22 + $0x18] sm:$0xff] %v334_v3  ;;  %v344_v8 = vld [vmem:[%s3681_s21 + $0x80] sm:$0xff]  ;;  %v346_v9 = vld [vmem:[%s3681_s21 + $0x88] sm:$0xff] }
  0x14   : > { %337 = vst [vmem:[%s3686_s22 + $0x20] sm:$0xff] %v336_v4  ;;  %v348_v10 = vld [vmem:[%s3681_s21 + $0xa0] sm:$0xff]  ;;  %v350_v11 = vld [vmem:[%s3681_s21 + $0xa8] sm:$0xff] }
  0x15   : > { %339 = vst [vmem:[%s3686_s22 + $0x28] sm:$0xff] %v338_v5  ;;  %v352_v12 = vld [vmem:[%s3681_s21 + $0xc0] sm:$0xff]  ;;  %v354_v13 = vld [vmem:[%s3681_s21 + $0xc8] sm:$0xff] }
  0x16   : > { %341 = vst [vmem:[%s3686_s22 + $0x30] sm:$0xff] %v340_v6  ;;  %v356_v14 = vld [vmem:[%s3681_s21 + $0xe0] sm:$0xff]  ;;  %v358_v15 = vld [vmem:[%s3681_s21 + $0xe8] sm:$0xff] }
  0x17   : > { %343 = vst [vmem:[%s3686_s22 + $0x38] sm:$0xff] %v342_v7  ;;  %v360_v16 = vld [vmem:[%s3681_s21 + $0x100] sm:$0xff]  ;;  %v362_v17 = vld [vmem:[%s3681_s21 + $0x108] sm:$0xff] }
  0x18   : > { %345 = vst [vmem:[%s3686_s22 + $0x40] sm:$0xff] %v344_v8  ;;  %v364_v18 = vld [vmem:[%s3681_s21 + $0x120] sm:$0xff]  ;;  %v366_v19 = vld [vmem:[%s3681_s21 + $0x128] sm:$0xff] }
  0x19   : > { %347 = vst [vmem:[%s3686_s22 + $0x48] sm:$0xff] %v346_v9  ;;  %v368_v20 = vld [vmem:[%s3681_s21 + $0x140] sm:$0xff]  ;;  %v370_v21 = vld [vmem:[%s3681_s21 + $0x148] sm:$0xff] }
  0x1a   : > { %349 = vst [vmem:[%s3686_s22 + $0x50] sm:$0xff] %v348_v10  ;;  %v372_v22 = vld [vmem:[%s3681_s21 + $0x160] sm:$0xff]  ;;  %v374_v23 = vld [vmem:[%s3681_s21 + $0x168] sm:$0xff] }
  0x1b   : > { %351 = vst [vmem:[%s3686_s22 + $0x58] sm:$0xff] %v350_v11  ;;  %v376_v24 = vld [vmem:[%s3681_s21 + $0x180] sm:$0xff]  ;;  %v378_v25 = vld [vmem:[%s3681_s21 + $0x188] sm:$0xff] }
  0x1c   : > { %353 = vst [vmem:[%s3686_s22 + $0x60] sm:$0xff] %v352_v12  ;;  %v380_v26 = vld [vmem:[%s3681_s21 + $0x1a0] sm:$0xff]  ;;  %v382_v27 = vld [vmem:[%s3681_s21 + $0x1a8] sm:$0xff] }
  0x1d   : > { %355 = vst [vmem:[%s3686_s22 + $0x68] sm:$0xff] %v354_v13  ;;  %v384_v28 = vld [vmem:[%s3681_s21 + $0x1c0] sm:$0xff]  ;;  %v386_v29 = vld [vmem:[%s3681_s21 + $0x1c8] sm:$0xff] }
  0x1e   : > { %357 = vst [vmem:[%s3686_s22 + $0x70] sm:$0xff] %v356_v14  ;;  %v388_v30 = vld [vmem:[%s3681_s21 + $0x1e0] sm:$0xff]  ;;  %v390_v31 = vld [vmem:[%s3681_s21 + $0x1e8] sm:$0xff] }
  0x1f   : > { %359 = vst [vmem:[%s3686_s22 + $0x78] sm:$0xff] %v358_v15  ;;  %v392_v32 = vld [vmem:[%s3681_s21 + $0x200] sm:$0xff]  ;;  %v394_v33 = vld [vmem:[%s3681_s21 + $0x208] sm:$0xff] }
  0x20   : > { %361 = vst [vmem:[%s3686_s22 + $0x80] sm:$0xff] %v360_v16  ;;  %v396_v34 = vld [vmem:[%s3681_s21 + $0x220] sm:$0xff]  ;;  %v398_v35 = vld [vmem:[%s3681_s21 + $0x228] sm:$0xff] }
  0x21   : > { %363 = vst [vmem:[%s3686_s22 + $0x88] sm:$0xff] %v362_v17  ;;  %v400_v36 = vld [vmem:[%s3681_s21 + $0x240] sm:$0xff]  ;;  %v402_v37 = vld [vmem:[%s3681_s21 + $0x248] sm:$0xff] }
  0x22   : > { %365 = vst [vmem:[%s3686_s22 + $0x90] sm:$0xff] %v364_v18  ;;  %v404_v38 = vld [vmem:[%s3681_s21 + $0x260] sm:$0xff]  ;;  %v406_v39 = vld [vmem:[%s3681_s21 + $0x268] sm:$0xff] }
  0x23   : > { %367 = vst [vmem:[%s3686_s22 + $0x98] sm:$0xff] %v366_v19  ;;  %v408_v40 = vld [vmem:[%s3681_s21 + $0x280] sm:$0xff]  ;;  %v410_v41 = vld [vmem:[%s3681_s21 + $0x288] sm:$0xff] }
  0x24   : > { %369 = vst [vmem:[%s3686_s22 + $0xa0] sm:$0xff] %v368_v20  ;;  %v412_v42 = vld [vmem:[%s3681_s21 + $0x2a0] sm:$0xff]  ;;  %v414_v43 = vld [vmem:[%s3681_s21 + $0x2a8] sm:$0xff] }
  0x25   : > { %371 = vst [vmem:[%s3686_s22 + $0xa8] sm:$0xff] %v370_v21  ;;  %v416_v44 = vld [vmem:[%s3681_s21 + $0x2c0] sm:$0xff]  ;;  %v418_v45 = vld [vmem:[%s3681_s21 + $0x2c8] sm:$0xff] }
  0x26   : > { %373 = vst [vmem:[%s3686_s22 + $0xb0] sm:$0xff] %v372_v22  ;;  %v420_v46 = vld [vmem:[%s3681_s21 + $0x2e0] sm:$0xff]  ;;  %v422_v47 = vld [vmem:[%s3681_s21 + $0x2e8] sm:$0xff] }
  0x27   : > { %375 = vst [vmem:[%s3686_s22 + $0xb8] sm:$0xff] %v374_v23  ;;  %v424_v48 = vld [vmem:[%s3681_s21 + $0x300] sm:$0xff]  ;;  %v426_v49 = vld [vmem:[%s3681_s21 + $0x308] sm:$0xff] }
  0x28   : > { %377 = vst [vmem:[%s3686_s22 + $0xc0] sm:$0xff] %v376_v24  ;;  %v428_v50 = vld [vmem:[%s3681_s21 + $0x320] sm:$0xff]  ;;  %v430_v51 = vld [vmem:[%s3681_s21 + $0x328] sm:$0xff] }
  0x29   : > { %379 = vst [vmem:[%s3686_s22 + $0xc8] sm:$0xff] %v378_v25  ;;  %v432_v52 = vld [vmem:[%s3681_s21 + $0x340] sm:$0xff]  ;;  %v434_v53 = vld [vmem:[%s3681_s21 + $0x348] sm:$0xff] }
  0x2a   : > { %381 = vst [vmem:[%s3686_s22 + $0xd0] sm:$0xff] %v380_v26  ;;  %v436_v54 = vld [vmem:[%s3681_s21 + $0x360] sm:$0xff]  ;;  %v438_v55 = vld [vmem:[%s3681_s21 + $0x368] sm:$0xff] }
  0x2b   : > { %383 = vst [vmem:[%s3686_s22 + $0xd8] sm:$0xff] %v382_v27  ;;  %v440_v56 = vld [vmem:[%s3681_s21 + $0x380] sm:$0xff]  ;;  %v442_v57 = vld [vmem:[%s3681_s21 + $0x388] sm:$0xff] }
  0x2c   : > { %385 = vst [vmem:[%s3686_s22 + $0xe0] sm:$0xff] %v384_v28  ;;  %v444_v58 = vld [vmem:[%s3681_s21 + $0x3a0] sm:$0xff]  ;;  %v446_v59 = vld [vmem:[%s3681_s21 + $0x3a8] sm:$0xff] }
  0x2d   : > { %387 = vst [vmem:[%s3686_s22 + $0xe8] sm:$0xff] %v386_v29  ;;  %v448_v60 = vld [vmem:[%s3681_s21 + $0x3c0] sm:$0xff]  ;;  %v450_v61 = vld [vmem:[%s3681_s21 + $0x3c8] sm:$0xff] }
  0x2e   : > { %389 = vst [vmem:[%s3686_s22 + $0xf0] sm:$0xff] %v388_v30  ;;  %v452_v62 = vld [vmem:[%s3681_s21 + $0x3e0] sm:$0xff]  ;;  %v454_v63 = vld [vmem:[%s3681_s21 + $0x3e8] sm:$0xff] }
  0x2f   : > { %391 = vst [vmem:[%s3686_s22 + $0xf8] sm:$0xff] %v390_v31 }
  0x30   : > { %393 = vst [vmem:[%s3686_s22 + $0x100] sm:$0xff] %v392_v32 }
  0x31   : > { %395 = vst [vmem:[%s3686_s22 + $0x108] sm:$0xff] %v394_v33 }
  0x32   : > { %397 = vst [vmem:[%s3686_s22 + $0x110] sm:$0xff] %v396_v34 }
  0x33   : > { %399 = vst [vmem:[%s3686_s22 + $0x118] sm:$0xff] %v398_v35 }
  0x34   : > { %401 = vst [vmem:[%s3686_s22 + $0x120] sm:$0xff] %v400_v36 }
  0x35   : > { %403 = vst [vmem:[%s3686_s22 + $0x128] sm:$0xff] %v402_v37 }
  0x36   : > { %405 = vst [vmem:[%s3686_s22 + $0x130] sm:$0xff] %v404_v38 }
  0x37   : > { %407 = vst [vmem:[%s3686_s22 + $0x138] sm:$0xff] %v406_v39 }
  0x38   : > { %409 = vst [vmem:[%s3686_s22 + $0x140] sm:$0xff] %v408_v40 }
  0x39   : > { %411 = vst [vmem:[%s3686_s22 + $0x148] sm:$0xff] %v410_v41 }
  0x3a   : > { %413 = vst [vmem:[%s3686_s22 + $0x150] sm:$0xff] %v412_v42 }
  0x3b   : > { %415 = vst [vmem:[%s3686_s22 + $0x158] sm:$0xff] %v414_v43 }
  0x3c   : > { %417 = vst [vmem:[%s3686_s22 + $0x160] sm:$0xff] %v416_v44 }
  0x3d   : > { %419 = vst [vmem:[%s3686_s22 + $0x168] sm:$0xff] %v418_v45 }
  0x3e   : > { %421 = vst [vmem:[%s3686_s22 + $0x170] sm:$0xff] %v420_v46 }
  0x3f   : > { %423 = vst [vmem:[%s3686_s22 + $0x178] sm:$0xff] %v422_v47 }
  0x40   : > { %425 = vst [vmem:[%s3686_s22 + $0x180] sm:$0xff] %v424_v48 }
  0x41   : > { %427 = vst [vmem:[%s3686_s22 + $0x188] sm:$0xff] %v426_v49 }
  0x42   : > { %429 = vst [vmem:[%s3686_s22 + $0x190] sm:$0xff] %v428_v50 }
  0x43   : > { %431 = vst [vmem:[%s3686_s22 + $0x198] sm:$0xff] %v430_v51 }
  0x44   : > { %433 = vst [vmem:[%s3686_s22 + $0x1a0] sm:$0xff] %v432_v52 }
  0x45   : > { %435 = vst [vmem:[%s3686_s22 + $0x1a8] sm:$0xff] %v434_v53 }
  0x46   : > { %437 = vst [vmem:[%s3686_s22 + $0x1b0] sm:$0xff] %v436_v54 }
  0x47   : > { %439 = vst [vmem:[%s3686_s22 + $0x1b8] sm:$0xff] %v438_v55 }
  0x48   : > { %441 = vst [vmem:[%s3686_s22 + $0x1c0] sm:$0xff] %v440_v56 }
  0x49   : > { %443 = vst [vmem:[%s3686_s22 + $0x1c8] sm:$0xff] %v442_v57 }
  0x4a   : > { %445 = vst [vmem:[%s3686_s22 + $0x1d0] sm:$0xff] %v444_v58 }
  0x4b   : > { %447 = vst [vmem:[%s3686_s22 + $0x1d8] sm:$0xff] %v446_v59 }
  0x4c   : > { %449 = vst [vmem:[%s3686_s22 + $0x1e0] sm:$0xff] %v448_v60 }
  0x4d   : > { %451 = vst [vmem:[%s3686_s22 + $0x1e8] sm:$0xff] %v450_v61 }
  0x4e   : > { %453 = vst [vmem:[%s3686_s22 + $0x1f0] sm:$0xff] %v452_v62 }
  0x4f   : > { %455 = vst [vmem:[%s3686_s22 + $0x1f8] sm:$0xff] %v454_v63 }
  0x50 PF: > { %p2728_p6 = scmp.ge.s32.totalorder %s3584_s13, 1  ;;  %p478_p7 = scmp.lt.s32.totalorder %s3584_s13, 3 }
  0x52   : > { %p479_p8 = pnand %p2728_p6, %p478_p7 }
  0x53   : > { %s485_s23 = sand.u32 (!%p479_p8), 1, %s3568_s30   ;;  %s2730_s24 = sshll.u32 (!%p479_p8), %s3576_s11, 2 }
  0x54   : > { %482 = sbr.rel (%p479_p8) target bundleno = 953 (0x3b9), region = 75  ;;  %s2729_s25 = sshll.u32 (!%p479_p8), %s485_s23, 9 }
  0x55   : > { %p546_p9 = scmp.lt.s32.totalorder (!%p479_p8), %s2730_s24, 7  ;;  %s2731_s26 = sshll.u32 (!%p479_p8), %s3576_s11, 6 }
  0x56   : > { %p551_p10 = scmp.lt.s32.totalorder (!%p479_p8), %s2731_s26, 127  ;;  %s3829_s30 = scalar_lea.vmem (!%p479_p8), [#allocation4], %s2729_s25 }
  0x57   : > { %p2734_p11 = scmp.ne.s32.totalorder (!%p479_p8), %s3576_s11, 0 }
  0x59   : > { %s4787_s24 = smov (!%p546_p9, %s2730_s24), 7  ;;  %s4789_s26 = smov (!%p551_p10, %s2731_s26), 127 }
  0x5a   : > { %s548_s29 = scalar_lea.vmem %s4774_s4, %s4787_s24  ;;  %s3285_s8 = sshll.u32 %s4789_s26, 3 }
  0x5b   : > { %s3827_s17 = scalar_lea.vmem %s4775_s5, %s3285_s8  ;;  %567 = sbr.rel (%p2734_p11) target bundleno = 406 (0x196), region = 83 }
  0x60   : > { %v3835_v0 = vld [vmem:[%s4770_s0 + $0x20] sm:$0xff]  ;;  %v570_v1 = vld [vmem:[%s4770_s0 + $0x10] sm:$0xff]  ;;  %v3848_v9 = vld [vmem:[%s4770_s0 + $0x28] sm:$0xff]  ;;  %v3586_v32 = vmov 256.0  }
  0x61   : > { %v568_v2 = vld [vmem:[%s4770_s0] sm:$0xff]  ;;  %v584_v3 = vunpack.c.l.bf16 %v3835_v0  ;;  %v585_v4 = vunpack.c.h.bf16 %v3835_v0  ;;  %v580_v5 = vunpack.c.l.bf16 %v570_v1  ;;  %v581_v6 = vunpack.c.h.bf16 %v570_v1  ;;  %v3853_v10 = vld [vmem:[%s4770_s0 + $0x18] sm:$0xff]  ;;  %v3862_v13 = vld [vmem:[%s4770_s0 + $0x8] sm:$0xff] }
  0x62   : > { %v576_v7 = vunpack.c.l.bf16 %v568_v2  ;;  %v577_v8 = vunpack.c.h.bf16 %v568_v2  ;;  %v586_v15 = vunpack.c.l.bf16 %v3848_v9  ;;  %v587_v16 = vunpack.c.h.bf16 %v3848_v9  ;;  %v3873_v24 = vld [vmem:[%s4770_s0 + $0x38] sm:$0xff]  ;;  %v3878_v25 = vld [vmem:[%s4770_s0 + $0x30] sm:$0xff] }
  0x63   : > { %v604_v11 = vadd.f32 %v585_v4, %v584_v3  ;;  %v598_v12 = vadd.f32 %v581_v6, %v580_v5  ;;  %v582_v17 = vunpack.c.l.bf16 %v3853_v10  ;;  %v583_v18 = vunpack.c.h.bf16 %v3853_v10 }
  0x64   : > { %v592_v14 = vadd.f32 %v577_v8, %v576_v7  ;;  %v578_v19 = vunpack.c.l.bf16 %v3862_v13  ;;  %v579_v20 = vunpack.c.h.bf16 %v3862_v13  ;;  %v607_v21 = vadd.f32 %v587_v16, %v586_v15 }
  0x65   : > { %605 = vadd.xlane.f32.xlu2 %v604_v11  ;;  %599 = vadd.xlane.f32.xlu1 %v598_v12  ;;  %v601_v22 = vadd.f32 %v583_v18, %v582_v17  ;;  %v590_v26 = vunpack.c.l.bf16 %v3873_v24  ;;  %v591_v27 = vunpack.c.h.bf16 %v3873_v24  ;;  %v588_v28 = vunpack.c.l.bf16 %v3878_v25 }
  0x66   : > { %593 = vadd.xlane.f32.xlu0 %v592_v14  ;;  %v595_v23 = vadd.f32 %v579_v20, %v578_v19  ;;  %v589_v29 = vunpack.c.h.bf16 %v3878_v25  ;;  %3464 = vrcp.f32 %v3586_v32 }
  0x67   : > { %v613_v30 = vadd.f32 %v591_v27, %v590_v26 }
  0x68   : > { %v610_v31 = vadd.f32 %v589_v29, %v588_v28 }
  0x6c   : > { %v3465_v33 = vpop.eup %3464 }
  0x6d   : > { %608 = vadd.xlane.f32.xlu2 %v607_v21  ;;  %602 = vadd.xlane.f32.xlu1 %v601_v22  ;;  %v617_v34 = vmul.f32 256.0, %v3465_v33  ;;  %vm621_vm0 = vweird.f32 %v3465_v33 }
  0x6e   : > { %596 = vadd.xlane.f32.xlu0 %v595_v23 }
  0x6f   : > { %v618_v35 = vsub.f32 1.0, %v617_v34 }
  0x71   : > { %v619_v36 = vmul.f32 %v3465_v33, %v618_v35 }
  0x73   : > { %v620_v37 = vadd.f32 %v3465_v33, %v619_v36 }
  0x75   : > { %614 = vadd.xlane.f32.xlu1 %v613_v30  ;;  %v3892_v38 = vsel %vm621_vm0, %v3465_v33, %v620_v37 }
  0x76   : > { %611 = vadd.xlane.f32.xlu0 %v610_v31 }
  0xd8   : > { %v606_v39 = vpop.xlane.xlu2 %605  ;;  %v600_v40 = vpop.xlane.xlu1 %599 }
  0xd9   : > { %v625_v41 = vmul.f32 %v3892_v38, %v600_v40  ;;  %v594_v42 = vpop.xlane.xlu0 %593  ;;  %v627_v53 = vmul.f32 %v3892_v38, %v606_v39 }
  0xda   : > { %v623_v43 = vmul.f32 %v3892_v38, %v594_v42 }
  0xdb   : > { %v3896_v44 = vsub.f32 %v580_v5, %v625_v41  ;;  %v3898_v45 = vsub.f32 %v581_v6, %v625_v41  ;;  %v3926_v2 = vsub.f32 %v584_v3, %v627_v53  ;;  %v3930_v5 = vsub.f32 %v585_v4, %v627_v53 }
  0xdc   : > { %v3900_v46 = vsub.f32 %v576_v7, %v623_v43  ;;  %v3902_v47 = vsub.f32 %v577_v8, %v623_v43 }
  0xdd   : > { %v651_v48 = vmul.f32 %v3896_v44, %v3896_v44  ;;  %v652_v49 = vmul.f32 %v3898_v45, %v3898_v45 }
  0xde   : > { %v647_v50 = vmul.f32 %v3900_v46, %v3900_v46  ;;  %v648_v51 = vmul.f32 %v3902_v47, %v3902_v47 }
  0xdf   : > { %v669_v52 = vadd.f32 %v652_v49, %v651_v48 }
  0xe0   : > { %v609_v54 = vpop.xlane.xlu2 %608  ;;  %v603_v55 = vpop.xlane.xlu1 %602  ;;  %v663_v56 = vadd.f32 %v648_v51, %v647_v50 }
  0xe1   : > { %v628_v57 = vmul.f32 %v3892_v38, %v609_v54  ;;  %v626_v58 = vmul.f32 %v3892_v38, %v603_v55  ;;  %v597_v59 = vpop.xlane.xlu0 %596  ;;  %670 = vadd.xlane.f32.xlu1 %v669_v52  ;;  %v799_v54 = vld [vmem:[%s4771_s1] sm:$0x3] }
  0xe2   : > { %v624_v60 = vmul.f32 %v3892_v38, %v597_v59  ;;  %664 = vadd.xlane.f32.xlu2 %v663_v56  ;;  %v821_v56 = vld [vmem:[%s4772_s2] sm:$0x3]  ;;  %v3998_v59 = vperm.slane %v799_v54, 0 }
  0xe3   : > { %v3916_v61 = vsub.f32 %v586_v15, %v628_v57  ;;  %v3918_v62 = vsub.f32 %v587_v16, %v628_v57  ;;  %v3920_v63 = vsub.f32 %v582_v17, %v626_v58  ;;  %v3922_v1 = vsub.f32 %v583_v18, %v626_v58 }
  0xe4   : > { %v3932_v6 = vsub.f32 %v578_v19, %v624_v60  ;;  %v3934_v7 = vsub.f32 %v579_v20, %v624_v60  ;;  %v655_v16 = vmul.f32 %v3926_v2, %v3926_v2  ;;  %v656_v17 = vmul.f32 %v3930_v5, %v3930_v5 }
  0xe5   : > { %v657_v8 = vmul.f32 %v3916_v61, %v3916_v61  ;;  %v658_v9 = vmul.f32 %v3918_v62, %v3918_v62  ;;  %v653_v10 = vmul.f32 %v3920_v63, %v3920_v63  ;;  %v654_v3 = vmul.f32 %v3922_v1, %v3922_v1 }
  0xe6   : > { %v649_v0 = vmul.f32 %v3932_v6, %v3932_v6  ;;  %v650_v4 = vmul.f32 %v3934_v7, %v3934_v7  ;;  %v675_v22 = vadd.f32 %v656_v17, %v655_v16  ;;  %v4000_v60 = vperm.slane %v799_v54, 1 }
  0xe7   : > { %v678_v11 = vadd.f32 %v658_v9, %v657_v8  ;;  %v672_v12 = vadd.f32 %v654_v3, %v653_v10  ;;  %v4002_v9 = vperm.slane %v821_v56, 0  ;;  %v4004_v10 = vperm.slane %v821_v56, 1 }
  0xe8   : > { %v666_v13 = vadd.f32 %v650_v4, %v649_v0  ;;  %v615_v14 = vpop.xlane.xlu1 %614 }
  0xe9   : > { %v612_v15 = vpop.xlane.xlu0 %611  ;;  %679 = vadd.xlane.f32.xlu1 %v678_v11  ;;  %v630_v19 = vmul.f32 %v3892_v38, %v615_v14 }
  0xea   : > { %v629_v18 = vmul.f32 %v3892_v38, %v612_v15  ;;  %673 = vadd.xlane.f32.xlu2 %v672_v12  ;;  %667 = vadd.xlane.f32.xlu0 %v666_v13 }
  0xeb   : > { %v3964_v23 = vsub.f32 %v590_v26, %v630_v19  ;;  %v3968_v30 = vsub.f32 %v591_v27, %v630_v19 }
  0xec   : > { %v3956_v20 = vsub.f32 %v588_v28, %v629_v18  ;;  %v3960_v21 = vsub.f32 %v589_v29, %v629_v18 }
  0xed   : > { %v661_v25 = vmul.f32 %v3964_v23, %v3964_v23  ;;  %v662_v26 = vmul.f32 %v3968_v30, %v3968_v30 }
  0xee   : > { %v659_v31 = vmul.f32 %v3956_v20, %v3956_v20  ;;  %v660_v28 = vmul.f32 %v3960_v21, %v3960_v21 }
  0xef   : > { %v684_v29 = vadd.f32 %v662_v26, %v661_v25 }
  0xf0   : > { %v681_v32 = vadd.f32 %v660_v28, %v659_v31 }
  0xf2   : > { %676 = vadd.xlane.f32.xlu0 %v675_v22  ;;  %682 = vadd.xlane.f32.xlu2 %v681_v32 }
  0xfa   : > { %685 = vadd.xlane.f32.xlu0 %v684_v29 }
 0x154   : > { %v671_v24 = vpop.xlane.xlu1 %670 }
 0x155   : > { %v689_v27 = vmul.f32 %v671_v24, %v3892_v38  ;;  %v665_v33 = vpop.xlane.xlu2 %664 }
 0x156   : > { %v687_v34 = vmul.f32 %v665_v33, %v3892_v38 }
 0x157   : > { %v697_v35 = vadd.f32 1e-05, %v689_v27 }
 0x158   : > { %v695_v36 = vadd.f32 1e-05, %v687_v34 }
 0x159   : > { %3466 = vrsqrt.f32 %v697_v35  ;;  %vm729_vm1 = vweird.f32 %v697_v35 }
 0x15a   : > { %3468 = vrsqrt.f32 %v695_v36  ;;  %vm709_vm3 = vweird.f32 %v695_v36 }
 0x15c   : > { %v680_v37 = vpop.xlane.xlu1 %679 }
 0x15d   : > { %v692_v39 = vmul.f32 %v680_v37, %v3892_v38  ;;  %v674_v40 = vpop.xlane.xlu2 %673  ;;  %v668_v41 = vpop.xlane.xlu0 %667 }
 0x15e   : > { %v690_v42 = vmul.f32 %v674_v40, %v3892_v38  ;;  %v688_v43 = vmul.f32 %v668_v41, %v3892_v38 }
 0x15f   : > { %v3467_v48 = vpop.eup %3466  ;;  %v3983_v49 = vadd.f32 1e-05, %v692_v39 }
 0x160   : > { %v3469_v50 = vpop.eup %3468  ;;  %v724_v51 = vmul.f32 %v3467_v48, %v697_v35  ;;  %v3985_v52 = vadd.f32 1e-05, %v690_v42  ;;  %v3987_v53 = vadd.f32 1e-05, %v688_v43  ;;  %vm730_vm2 = vweird.f32 %v3467_v48 }
 0x161   : > { %v704_v55 = vmul.f32 %v3469_v50, %v695_v36  ;;  %3470 = vrsqrt.f32 %v3983_v49  ;;  %vm710_vm4 = vweird.f32 %v3469_v50  ;;  %vm759_vm5 = vweird.f32 %v3983_v49  ;;  %vm731_vm8 = vmor %vm729_vm1, %vm730_vm2 }
 0x162   : > { %v725_v57 = vmul.f32 %v3467_v48, %v724_v51  ;;  %3472 = vrsqrt.f32 %v3985_v52  ;;  %vm739_vm7 = vweird.f32 %v3985_v52  ;;  %vm711_vm10 = vmor %vm709_vm3, %vm710_vm4  ;;  %vm719_vm14 = vweird.f32 %v3987_v53 }
 0x163   : > { %v705_v58 = vmul.f32 %v3469_v50, %v704_v55  ;;  %3474 = vrsqrt.f32 %v3987_v53 }
 0x164   : > { %v726_v8 = vmul.f32 0.5, %v725_v57 }
 0x165   : > { %v706_v3 = vmul.f32 0.5, %v705_v58  ;;  %v683_v0 = vpop.xlane.xlu2 %682  ;;  %v677_v4 = vpop.xlane.xlu0 %676 }
 0x166   : > { %v727_v11 = vsub.f32 1.5, %v726_v8  ;;  %v693_v12 = vmul.f32 %v683_v0, %v3892_v38  ;;  %v691_v13 = vmul.f32 %v677_v4, %v3892_v38 }
 0x167   : > { %v3471_v14 = vpop.eup %3470  ;;  %v707_v15 = vsub.f32 1.5, %v706_v3 }
 0x168   : > { %v3473_v16 = vpop.eup %3472  ;;  %v728_v17 = vmul.f32 %v3467_v48, %v727_v11  ;;  %v754_v18 = vmul.f32 %v3471_v14, %v3983_v49  ;;  %vm760_vm6 = vweird.f32 %v3471_v14  ;;  %v4013_v28 = vadd.f32 1e-05, %v693_v12 }
 0x169   : > { %v3475_v19 = vpop.eup %3474  ;;  %v708_v22 = vmul.f32 %v3469_v50, %v707_v15  ;;  %v734_v31 = vmul.f32 %v3473_v16, %v3985_v52  ;;  %vm740_vm9 = vweird.f32 %v3473_v16  ;;  %v4017_v29 = vadd.f32 1e-05, %v691_v13  ;;  %vm761_vm11 = vmor %vm759_vm5, %vm760_vm6 }
 0x16a   : > { %v732_v32 = vsel %vm731_vm8, %v3467_v48, %v728_v17  ;;  %v755_v25 = vmul.f32 %v3471_v14, %v754_v18  ;;  %v714_v26 = vmul.f32 %v3475_v19, %v3987_v53  ;;  %3476 = vrsqrt.f32 %v4013_v28  ;;  %vm741_vm13 = vmor %vm739_vm7, %vm740_vm9 }
 0x16b   : > { %v787_v24 = vmul.f32 %v732_v32, %v3896_v44  ;;  %v788_v27 = vmul.f32 %v732_v32, %v3898_v45  ;;  %v712_v33 = vsel %vm711_vm10, %v3469_v50, %v708_v22  ;;  %v735_v34 = vmul.f32 %v3473_v16, %v734_v31 }
 0x16c   : > { %v783_v35 = vmul.f32 %v712_v33, %v3900_v46  ;;  %v784_v37 = vmul.f32 %v712_v33, %v3902_v47  ;;  %v756_v39 = vmul.f32 0.5, %v755_v25  ;;  %v715_v40 = vmul.f32 %v3475_v19, %v714_v26 }
 0x16d   : > { %v809_v36 = vmul.f32 %v3998_v59, %v787_v24  ;;  %v810_v41 = vmul.f32 %v4000_v60, %v788_v27  ;;  %v736_v42 = vmul.f32 0.5, %v735_v34  ;;  %vm720_vm12 = vweird.f32 %v3475_v19  ;;  %v686_v13 = vpop.xlane.xlu0 %685 }
 0x16e   : > { %v805_v43 = vmul.f32 %v3998_v59, %v783_v35  ;;  %v806_v44 = vmul.f32 %v4000_v60, %v784_v37  ;;  %v757_v45 = vsub.f32 1.5, %v756_v39  ;;  %v716_v48 = vmul.f32 0.5, %v715_v40  ;;  %vm721_vm15 = vmor %vm719_vm14, %vm720_vm12 }
 0x16f   : > { %v831_v50 = vadd.f32 %v4002_v9, %v809_v36  ;;  %v832_v46 = vadd.f32 %v4004_v10, %v810_v41  ;;  %v737_v47 = vsub.f32 1.5, %v736_v42  ;;  %3478 = vrsqrt.f32 %v4017_v29 }
 0x170   : > { %v827_v51 = vadd.f32 %v4002_v9, %v805_v43  ;;  %v828_v54 = vadd.f32 %v4004_v10, %v806_v44  ;;  %v758_v55 = vmul.f32 %v3471_v14, %v757_v45  ;;  %v717_v56 = vsub.f32 1.5, %v716_v48  ;;  %v3477_v0 = vpop.eup %3476 }
 0x171   : > { %v845_v57 = vpack.c.bf16 %v832_v46, %v831_v50  ;;  %v738_v58 = vmul.f32 %v3473_v16, %v737_v47  ;;  %vm769_vm0 = vweird.f32 %v4013_v28  ;;  %v764_v53 = vmul.f32 %v3477_v0, %v4013_v28 }
 0x172   : > { %v843_v8 = vpack.c.bf16 %v828_v54, %v827_v51  ;;  %v762_v3 = vsel %vm761_vm11, %v3471_v14, %v758_v55  ;;  %v718_v49 = vmul.f32 %v3475_v19, %v717_v56  ;;  %vm770_vm1 = vweird.f32 %v3477_v0 }
 0x173   : > { %853 = vst [vmem:[#allocation2 + $0x10] sm:$0xff] %v845_v57  ;;  %v793_v4 = vmul.f32 %v762_v3, %v3916_v61  ;;  %v794_v11 = vmul.f32 %v762_v3, %v3918_v62  ;;  %v742_v12 = vsel %vm741_vm13, %v3473_v16, %v738_v58  ;;  %v765_v31 = vmul.f32 %v3477_v0, %v764_v53  ;;  %vm771_vm2 = vmor %vm769_vm0, %vm770_vm1 }
 0x174   : > { %851 = vst [vmem:[#allocation2] sm:$0xff] %v843_v8  ;;  %v789_v14 = vmul.f32 %v742_v12, %v3920_v63  ;;  %v790_v52 = vmul.f32 %v742_v12, %v3922_v1  ;;  %v722_v15 = vsel %vm721_vm15, %v3475_v19, %v718_v49  ;;  %v694_v63 = vmul.f32 %v686_v13, %v3892_v38 }
 0x175   : > { %v815_v17 = vmul.f32 %v3998_v59, %v793_v4  ;;  %v816_v61 = vmul.f32 %v4000_v60, %v794_v11  ;;  %v785_v62 = vmul.f32 %v722_v15, %v3932_v6  ;;  %v786_v16 = vmul.f32 %v722_v15, %v3934_v7  ;;  %v3479_v32 = vpop.eup %3478 }
 0x176   : > { %v811_v18 = vmul.f32 %v3998_v59, %v789_v14  ;;  %v812_v22 = vmul.f32 %v4000_v60, %v790_v52  ;;  %v766_v24 = vmul.f32 0.5, %v765_v31  ;;  %v744_v27 = vmul.f32 %v3479_v32, %v4017_v29 }
 0x177   : > { %v837_v1 = vadd.f32 %v4002_v9, %v815_v17  ;;  %v838_v19 = vadd.f32 %v4004_v10, %v816_v61  ;;  %v807_v25 = vmul.f32 %v3998_v59, %v785_v62  ;;  %v808_v26 = vmul.f32 %v4000_v60, %v786_v16 }
 0x178   : > { %v833_v6 = vadd.f32 %v4002_v9, %v811_v18  ;;  %v834_v7 = vadd.f32 %v4004_v10, %v812_v22  ;;  %v767_v37 = vsub.f32 1.5, %v766_v24  ;;  %v745_v39 = vmul.f32 %v3479_v32, %v744_v27 }
 0x179   : > { %v848_v33 = vpack.c.bf16 %v838_v19, %v837_v1  ;;  %v829_v34 = vadd.f32 %v4002_v9, %v807_v25  ;;  %v830_v38 = vadd.f32 %v4004_v10, %v808_v26  ;;  %v702_v40 = vadd.f32 1e-05, %v694_v63 }
 0x17a   : > { %v846_v35 = vpack.c.bf16 %v834_v7, %v833_v6  ;;  %v768_v41 = vmul.f32 %v3477_v0, %v767_v37  ;;  %v746_v42 = vmul.f32 0.5, %v745_v39  ;;  %vm750_vm3 = vweird.f32 %v3479_v32 }
 0x17b   : > { %856 = vst [vmem:[#allocation2 + $0x28] sm:$0xff] %v848_v33  ;;  %v844_v36 = vpack.c.bf16 %v830_v38, %v829_v34  ;;  %3480 = vrsqrt.f32 %v702_v40  ;;  %v3587_v45 = vmov 0.0   ;;  %vm749_vm4 = vweird.f32 %v4017_v29 }
 0x17c   : > { %854 = vst [vmem:[#allocation2 + $0x18] sm:$0xff] %v846_v35  ;;  %v772_v43 = vsel %vm771_vm2, %v3477_v0, %v768_v41  ;;  %v747_v44 = vsub.f32 1.5, %v746_v42  ;;  %vm751_vm5 = vmor %vm749_vm4, %vm750_vm3  ;;  %vm779_vm7 = vweird.f32 %v702_v40 }
 0x17d   : > { %852 = vst [vmem:[#allocation2 + $0x8] sm:$0xff] %v844_v36  ;;  %v795_v48 = vmul.f32 %v772_v43, %v3956_v20  ;;  %v796_v50 = vmul.f32 %v772_v43, %v3960_v21 }
 0x17e   : > { %859 = vst [vmem:[#allocation3 + $0x30] sm:$0xff] %v3587_v45  ;;  %v748_v46 = vmul.f32 %v3479_v32, %v747_v44 }
 0x17f   : > { %860 = vst [vmem:[#allocation3] sm:$0xff] %v3587_v45  ;;  %v817_v47 = vmul.f32 %v3998_v59, %v795_v48  ;;  %v818_v51 = vmul.f32 %v4000_v60, %v796_v50 }
 0x180   : > { %861 = vst [vmem:[#allocation3 + $0x58] sm:$0xff] %v3587_v45  ;;  %v752_v54 = vsel %vm751_vm5, %v3479_v32, %v748_v46 }
 0x181   : > { %862 = vst [vmem:[#allocation3 + $0x18] sm:$0xff] %v3587_v45  ;;  %v3481_v28 = vpop.eup %3480  ;;  %v839_v55 = vadd.f32 %v4002_v9, %v817_v47  ;;  %v840_v20 = vadd.f32 %v4004_v10, %v818_v51  ;;  %v791_v21 = vmul.f32 %v752_v54, %v3926_v2  ;;  %v792_v56 = vmul.f32 %v752_v54, %v3930_v5 }
 0x182   : > { %863 = vst [vmem:[#allocation3 + $0x50] sm:$0xff] %v3587_v45  ;;  %v774_v29 = vmul.f32 %v3481_v28, %v702_v40  ;;  %vm780_vm6 = vweird.f32 %v3481_v28 }
 0x183   : > { %864 = vst [vmem:[#allocation3 + $0x68] sm:$0xff] %v3587_v45  ;;  %v849_v57 = vpack.c.bf16 %v840_v20, %v839_v55  ;;  %v813_v58 = vmul.f32 %v3998_v59, %v791_v21  ;;  %v814_v8 = vmul.f32 %v4000_v60, %v792_v56  ;;  %vm781_vm8 = vmor %vm779_vm7, %vm780_vm6 }
 0x184   : > { %865 = vst [vmem:[#allocation3 + $0x8] sm:$0xff] %v3587_v45  ;;  %v775_v3 = vmul.f32 %v3481_v28, %v774_v29 }
 0x185   : > { %866 = vst [vmem:[#allocation3 + $0x48] sm:$0xff] %v3587_v45  ;;  %v835_v49 = vadd.f32 %v4002_v9, %v813_v58  ;;  %v836_v0 = vadd.f32 %v4004_v10, %v814_v8 }
 0x186   : > { %867 = vst [vmem:[#allocation3 + $0x40] sm:$0xff] %v3587_v45  ;;  %v776_v4 = vmul.f32 0.5, %v775_v3 }
 0x187   : > { %857 = vst [vmem:[#allocation2 + $0x30] sm:$0xff] %v849_v57  ;;  %v847_v2 = vpack.c.bf16 %v836_v0, %v835_v49 }
 0x188   : > { %868 = vst [vmem:[#allocation3 + $0x20] sm:$0xff] %v3587_v45  ;;  %v777_v5 = vsub.f32 1.5, %v776_v4 }
 0x189   : > { %869 = vst [vmem:[#allocation3 + $0x10] sm:$0xff] %v3587_v45 }
 0x18a   : > { %870 = vst [vmem:[#allocation3 + $0x38] sm:$0xff] %v3587_v45  ;;  %v778_v11 = vmul.f32 %v3481_v28, %v777_v5 }
 0x18b   : > { %855 = vst [vmem:[#allocation2 + $0x20] sm:$0xff] %v847_v2 }
 0x18c   : > { %871 = vst [vmem:[#allocation3 + $0x60] sm:$0xff] %v3587_v45  ;;  %v782_v12 = vsel %vm781_vm8, %v3481_v28, %v778_v11 }
 0x18d   : > { %872 = vst [vmem:[#allocation3 + $0x70] sm:$0xff] %v3587_v45  ;;  %v797_v13 = vmul.f32 %v782_v12, %v3964_v23  ;;  %v798_v14 = vmul.f32 %v782_v12, %v3968_v30 }
 0x18e   : > { %873 = vst [vmem:[#allocation3 + $0x78] sm:$0xff] %v3587_v45 }
 0x18f   : > { %874 = vst [vmem:[#allocation3 + $0x28] sm:$0xff] %v3587_v45  ;;  %v819_v52 = vmul.f32 %v3998_v59, %v797_v13  ;;  %v820_v15 = vmul.f32 %v4000_v60, %v798_v14 }
 0x191   : > { %v841_v53 = vadd.f32 %v4002_v9, %v819_v52  ;;  %v842_v17 = vadd.f32 %v4004_v10, %v820_v15 }
 0x193   : > { %v850_v61 = vpack.c.bf16 %v842_v17, %v841_v53 }
 0x195   : > { %858 = vst [vmem:[#allocation2 + $0x38] sm:$0xff] %v850_v61 }
 0x196 PF: > { %v2881_v23 = vld [vmem:[%s3829_s30 + $0xe0] sm:$0xf]  ;;  %v3324_v30 = vld [vmem:[%s3829_s30 + $0xec] sm:$0xf0]  ;;  %v3322_v10 = vld [vmem:[%s3829_s30 + $0xe4] sm:$0xf] }
 0x197   : > { %v3009_v59 = vld [vmem:[%s3829_s30 + $0x1e0] sm:$0xf]  ;;  %v2882_v60 = vor.u32 %v3324_v30, %v2881_v23  ;;  %v3356_v9 = vld [vmem:[%s3829_s30 + $0x1ec] sm:$0xf0]  ;;  %v2883_v62 = vld [vmem:[%s3829_s30 + $0xf0] sm:$0xf0] }
 0x198   : > { %v3010_v16 = vor.u32 %v3356_v9, %v3009_v59  ;;  %v2886_v18 = vor.u32 %v3322_v10, %v2883_v62  ;;  %v3354_v22 = vld [vmem:[%s3829_s30 + $0x1e4] sm:$0xf]  ;;  %v3011_v31 = vld [vmem:[%s3829_s30 + $0x1f0] sm:$0xf0]  ;;  %v2865_v63 = vld [vmem:[%s3829_s30 + $0xc0] sm:$0xf] }
 0x199   : > { %1317 = vmatpush.bf16.msra.mxu0 %v2882_v60  ;;  %v3014_v32 = vor.u32 %v3354_v22, %v3011_v31  ;;  %v3320_v1 = vld [vmem:[%s3829_s30 + $0xcc] sm:$0xf0]  ;;  %v2993_v19 = vld [vmem:[%s3829_s30 + $0x1c0] sm:$0xf]  ;;  %v3318_v7 = vld [vmem:[%s3829_s30 + $0xc4] sm:$0xf] }
 0x19a   : > { %v3352_v25 = vld [vmem:[%s3829_s30 + $0x1cc] sm:$0xf0]  ;;  %1346 = vmatpush.bf16.msra.mxu1 %v3010_v16  ;;  %1375 = vmatpush.bf16.msra.mxu2 %v2886_v18  ;;  %v2866_v26 = vor.u32 %v3320_v1, %v2865_v63  ;;  %v2867_v24 = vld [vmem:[%s3829_s30 + $0xd0] sm:$0xf0]  ;;  %v3350_v27 = vld [vmem:[%s3829_s30 + $0x1c4] sm:$0xf] }
 0x19b   : > { %v2994_v6 = vor.u32 %v3352_v25, %v2993_v19  ;;  %1404 = vmatpush.bf16.msra.mxu3 %v3014_v32  ;;  %v2870_v33 = vor.u32 %v3318_v7, %v2867_v24  ;;  %v2995_v34 = vld [vmem:[%s3829_s30 + $0x1d0] sm:$0xf0]  ;;  %v2849_v38 = vld [vmem:[%s3829_s30 + $0xa0] sm:$0xf]  ;;  %v3316_v35 = vld [vmem:[%s3829_s30 + $0xac] sm:$0xf0] }
 0x19c   : > { %v2998_v37 = vor.u32 %v3350_v27, %v2995_v34  ;;  %v2977_v39 = vld [vmem:[%s3829_s30 + $0x1a0] sm:$0xf]  ;;  %v3348_v40 = vld [vmem:[%s3829_s30 + $0x1ac] sm:$0xf0]  ;;  %v3314_v36 = vld [vmem:[%s3829_s30 + $0xa4] sm:$0xf]  ;;  %v2850_v41 = vor.u32 %v3316_v35, %v2849_v38 }
 0x19d   : > { %1318 = vmatpush.bf16.msra.mxu0 %v2866_v26  ;;  %v2851_v42 = vld [vmem:[%s3829_s30 + $0xb0] sm:$0xf0]  ;;  %v3346_v43 = vld [vmem:[%s3829_s30 + $0x1a4] sm:$0xf]  ;;  %v2978_v45 = vor.u32 %v3348_v40, %v2977_v39  ;;  %v2833_v50 = vld [vmem:[%s3829_s30 + $0x80] sm:$0xf] }
 0x19e   : > { %v2979_v44 = vld [vmem:[%s3829_s30 + $0x1b0] sm:$0xf0]  ;;  %1347 = vmatpush.bf16.msra.mxu1 %v2994_v6  ;;  %1376 = vmatpush.bf16.msra.mxu2 %v2870_v33  ;;  %v2854_v48 = vor.u32 %v3314_v36, %v2851_v42  ;;  %v3312_v46 = vld [vmem:[%s3829_s30 + $0x8c] sm:$0xf0]  ;;  %v2961_v47 = vld [vmem:[%s3829_s30 + $0x180] sm:$0xf] }
 0x19f   : > { %1405 = vmatpush.bf16.msra.mxu3 %v2998_v37  ;;  %v2982_v51 = vor.u32 %v3346_v43, %v2979_v44  ;;  %v3344_v28 = vld [vmem:[%s3829_s30 + $0x18c] sm:$0xf0]  ;;  %v3310_v54 = vld [vmem:[%s3829_s30 + $0x84] sm:$0xf]  ;;  %v2835_v55 = vld [vmem:[%s3829_s30 + $0x90] sm:$0xf0]  ;;  %v2834_v56 = vor.u32 %v3312_v46, %v2833_v50 }
 0x1a0   : > { %v3342_v20 = vld [vmem:[%s3829_s30 + $0x184] sm:$0xf]  ;;  %v2963_v21 = vld [vmem:[%s3829_s30 + $0x190] sm:$0xf0]  ;;  %v2962_v29 = vor.u32 %v3344_v28, %v2961_v47  ;;  %v2838_v57 = vor.u32 %v3310_v54, %v2835_v55  ;;  %v2817_v58 = vld [vmem:[%s3829_s30 + $0x60] sm:$0xf] }
 0x1a1   : > { %1319 = vmatpush.bf16.msra.mxu0 %v2850_v41  ;;  %v3308_v8 = vld [vmem:[%s3829_s30 + $0x6c] sm:$0xf0]  ;;  %v2945_v3 = vld [vmem:[%s3829_s30 + $0x160] sm:$0xf]  ;;  %v2966_v49 = vor.u32 %v3342_v20, %v2963_v21  ;;  %v3306_v4 = vld [vmem:[%s3829_s30 + $0x64] sm:$0xf] }
 0x1a2   : > { %1348 = vmatpush.bf16.msra.mxu1 %v2978_v45  ;;  %1377 = vmatpush.bf16.msra.mxu2 %v2854_v48  ;;  %v3340_v0 = vld [vmem:[%s3829_s30 + $0x16c] sm:$0xf0]  ;;  %v2819_v2 = vld [vmem:[%s3829_s30 + $0x70] sm:$0xf0]  ;;  %v3338_v5 = vld [vmem:[%s3829_s30 + $0x164] sm:$0xf]  ;;  %v2818_v12 = vor.u32 %v3308_v8, %v2817_v58 }
 0x1a3   : > { %1406 = vmatpush.bf16.msra.mxu3 %v2982_v51  ;;  %v2947_v11 = vld [vmem:[%s3829_s30 + $0x170] sm:$0xf0]  ;;  %v2946_v13 = vor.u32 %v3340_v0, %v2945_v3  ;;  %v2822_v14 = vor.u32 %v3306_v4, %v2819_v2  ;;  %v2801_v52 = vld [vmem:[%s3829_s30 + $0x40] sm:$0xf]  ;;  %v3304_v15 = vld [vmem:[%s3829_s30 + $0x4c] sm:$0xf0] }
 0x1a4   : > { %v2929_v53 = vld [vmem:[%s3829_s30 + $0x140] sm:$0xf]  ;;  %v2950_v17 = vor.u32 %v3338_v5, %v2947_v11  ;;  %v3336_v61 = vld [vmem:[%s3829_s30 + $0x14c] sm:$0xf0]  ;;  %v3302_v23 = vld [vmem:[%s3829_s30 + $0x44] sm:$0xf]  ;;  %v2802_v9 = vor.u32 %v3304_v15, %v2801_v52 }
 0x1a5   : > { %1320 = vmatpush.bf16.msra.mxu0 %v2834_v56  ;;  %v2803_v30 = vld [vmem:[%s3829_s30 + $0x50] sm:$0xf0]  ;;  %v3334_v59 = vld [vmem:[%s3829_s30 + $0x144] sm:$0xf]  ;;  %v2930_v10 = vor.u32 %v3336_v61, %v2929_v53  ;;  %v2785_v16 = vld [vmem:[%s3829_s30 + $0x20] sm:$0xf] }
 0x1a6   : > { %1349 = vmatpush.bf16.msra.mxu1 %v2962_v29  ;;  %1378 = vmatpush.bf16.msra.mxu2 %v2838_v57  ;;  %v2931_v60 = vld [vmem:[%s3829_s30 + $0x150] sm:$0xf0]  ;;  %v2806_v62 = vor.u32 %v3302_v23, %v2803_v30  ;;  %v3300_v18 = vld [vmem:[%s3829_s30 + $0x2c] sm:$0xf0]  ;;  %v2913_v22 = vld [vmem:[%s3829_s30 + $0x120] sm:$0xf] }
 0x1a7   : > { %1407 = vmatpush.bf16.msra.mxu3 %v2966_v49  ;;  %v2934_v31 = vor.u32 %v3334_v59, %v2931_v60  ;;  %v3332_v63 = vld [vmem:[%s3829_s30 + $0x12c] sm:$0xf0]  ;;  %v3298_v32 = vld [vmem:[%s3829_s30 + $0x24] sm:$0xf]  ;;  %v2787_v1 = vld [vmem:[%s3829_s30 + $0x30] sm:$0xf0]  ;;  %v2786_v26 = vor.u32 %v3300_v18, %v2785_v16 }
 0x1a8   : > { %v3330_v19 = vld [vmem:[%s3829_s30 + $0x124] sm:$0xf]  ;;  %v2915_v25 = vld [vmem:[%s3829_s30 + $0x130] sm:$0xf0]  ;;  %v2769_v6 = vld [vmem:[%s3829_s30] sm:$0xf]  ;;  %v2914_v24 = vor.u32 %v3332_v63, %v2913_v22  ;;  %v2790_v27 = vor.u32 %v3298_v32, %v2787_v1 }
 0x1a9   : > { %1321 = vmatpush.bf16.msra.mxu0 %v2818_v12  ;;  %v3296_v7 = vld [vmem:[%s3829_s30 + $0xc] sm:$0xf0]  ;;  %v2897_v33 = vld [vmem:[%s3829_s30 + $0x100] sm:$0xf]  ;;  %v3294_v38 = vld [vmem:[%s3829_s30 + $0x4] sm:$0xf]  ;;  %v2918_v35 = vor.u32 %v3330_v19, %v2915_v25 }
 0x1aa   : > { %1350 = vmatpush.bf16.msra.mxu1 %v2946_v13  ;;  %1379 = vmatpush.bf16.msra.mxu2 %v2822_v14  ;;  %v3328_v34 = vld [vmem:[%s3829_s30 + $0x10c] sm:$0xf0]  ;;  %v2771_v37 = vld [vmem:[%s3829_s30 + $0x10] sm:$0xf0]  ;;  %v3326_v39 = vld [vmem:[%s3829_s30 + $0x104] sm:$0xf]  ;;  %v2770_v43 = vor.u32 %v3296_v7, %v2769_v6 }
 0x1ab   : > { %1408 = vmatpush.bf16.msra.mxu3 %v2950_v17  ;;  %v2899_v40 = vld [vmem:[%s3829_s30 + $0x110] sm:$0xf0]  ;;  %v2737_v36 = vld [vmem:[#allocation2] sm:$0xf]  ;;  %v3323_v41 = vld [vmem:[%s3829_s30 + $0xec] sm:$0xf]  ;;  %v2898_v50 = vor.u32 %v3328_v34, %v2897_v33  ;;  %v2774_v46 = vor.u32 %v3294_v38, %v2771_v37 }
 0x1ac   : > { %v2891_v42 = vld [vmem:[%s3829_s30 + $0xf8] sm:$0xf0]  ;;  %v3287_v44 = vld [vmem:[#allocation2 + $0x4] sm:$0xf0]  ;;  %v3355_v45 = vld [vmem:[%s3829_s30 + $0x1ec] sm:$0xf]  ;;  %v2902_v28 = vor.u32 %v3326_v39, %v2899_v40 }
 0x1ad   : > { %1322 = vmatpush.bf16.msra.mxu0 %v2802_v9  ;;  %v3019_v48 = vld [vmem:[%s3829_s30 + $0x1f8] sm:$0xf0]  ;;  %v3286_v47 = vld [vmem:[#allocation2 + $0x4] sm:$0xf]  ;;  %v2739_v51 = vld [vmem:[#allocation2 + $0x8] sm:$0xf0]  ;;  %v2894_v54 = vor.u32 %v3323_v41, %v2891_v42  ;;  %v4155_v56 = vor.u32 %v3287_v44, %v2737_v36 }
 0x1ae   : > { %1351 = vmatpush.bf16.msra.mxu1 %v2930_v10  ;;  %1380 = vmatpush.bf16.msra.mxu2 %v2806_v62  ;;  %v2889_v55 = vld [vmem:[%s3829_s30 + $0xe8] sm:$0xf]  ;;  %v3325_v20 = vld [vmem:[%s3829_s30 + $0xf4] sm:$0xf0]  ;;  %v3022_v29 = vor.u32 %v3355_v45, %v3019_v48  ;;  %v3319_v58 = vld [vmem:[%s3829_s30 + $0xcc] sm:$0xf]  ;;  %v4160_v3 = vor.u32 %v3286_v47, %v2739_v51 }
 0x1af   : > { %1409 = vmatpush.bf16.msra.mxu3 %v2934_v31  ;;  %v3017_v21 = vld [vmem:[%s3829_s30 + $0x1e8] sm:$0xf]  ;;  %v3357_v57 = vld [vmem:[%s3829_s30 + $0x1f4] sm:$0xf0]  ;;  %v2875_v8 = vld [vmem:[%s3829_s30 + $0xd8] sm:$0xf0]  ;;  %v2890_v4 = vor.u32 %v3325_v20, %v2889_v55 }
 0x1b0   : > { %v3351_v49 = vld [vmem:[%s3829_s30 + $0x1cc] sm:$0xf]  ;;  %v3003_v0 = vld [vmem:[%s3829_s30 + $0x1d8] sm:$0xf0]  ;;  %v3018_v2 = vor.u32 %v3357_v57, %v3017_v21  ;;  %v2878_v5 = vor.u32 %v3319_v58, %v2875_v8  ;;  %v2873_v11 = vld [vmem:[%s3829_s30 + $0xc8] sm:$0xf] }
 0x1b1   : > { %1323 = vmatpush.bf16.msra.mxu0 %v2786_v26  ;;  %v3321_v12 = vld [vmem:[%s3829_s30 + $0xd4] sm:$0xf0]  ;;  %v3001_v13 = vld [vmem:[%s3829_s30 + $0x1c8] sm:$0xf]  ;;  %v3006_v14 = vor.u32 %v3351_v49, %v3003_v0  ;;  %v3315_v15 = vld [vmem:[%s3829_s30 + $0xac] sm:$0xf] }
 0x1b2   : > { %1352 = vmatpush.bf16.msra.mxu1 %v2914_v24  ;;  %1381 = vmatpush.bf16.msra.mxu2 %v2790_v27  ;;  %v3353_v52 = vld [vmem:[%s3829_s30 + $0x1d4] sm:$0xf0]  ;;  %v2859_v53 = vld [vmem:[%s3829_s30 + $0xb8] sm:$0xf0]  ;;  %v3347_v17 = vld [vmem:[%s3829_s30 + $0x1ac] sm:$0xf]  ;;  %v2874_v23 = vor.u32 %v3321_v12, %v2873_v11 }
 0x1b3   : > { %1410 = vmatpush.bf16.msra.mxu3 %v2918_v35  ;;  %v2987_v61 = vld [vmem:[%s3829_s30 + $0x1b8] sm:$0xf0]  ;;  %v3002_v30 = vor.u32 %v3353_v52, %v3001_v13  ;;  %v2862_v59 = vor.u32 %v3315_v15, %v2859_v53  ;;  %v2857_v60 = vld [vmem:[%s3829_s30 + $0xa8] sm:$0xf]  ;;  %v3317_v9 = vld [vmem:[%s3829_s30 + $0xb4] sm:$0xf0] }
 0x1b4   : > { %v2985_v10 = vld [vmem:[%s3829_s30 + $0x1a8] sm:$0xf]  ;;  %v2990_v62 = vor.u32 %v3347_v17, %v2987_v61  ;;  %v3349_v16 = vld [vmem:[%s3829_s30 + $0x1b4] sm:$0xf0]  ;;  %v3311_v18 = vld [vmem:[%s3829_s30 + $0x8c] sm:$0xf]  ;;  %v2858_v32 = vor.u32 %v3317_v9, %v2857_v60 }
 0x1b5   : > { %1324 = vmatpush.bf16.msra.mxu0 %v2770_v43  ;;  %v2843_v22 = vld [vmem:[%s3829_s30 + $0x98] sm:$0xf0]  ;;  %v3343_v31 = vld [vmem:[%s3829_s30 + $0x18c] sm:$0xf]  ;;  %v2745_v1 = vld [vmem:[#allocation2 + $0x10] sm:$0xf]  ;;  %v2986_v19 = vor.u32 %v3349_v16, %v2985_v10 }
 0x1b6   : > { %1353 = vmatpush.bf16.msra.mxu1 %v2898_v50  ;;  %1382 = vmatpush.bf16.msra.mxu2 %v2774_v46  ;;  %v2971_v63 = vld [vmem:[%s3829_s30 + $0x198] sm:$0xf0]  ;;  %v2846_v25 = vor.u32 %v3311_v18, %v2843_v22  ;;  %v2841_v26 = vld [vmem:[%s3829_s30 + $0x88] sm:$0xf]  ;;  %v3313_v6 = vld [vmem:[%s3829_s30 + $0x94] sm:$0xf0] }
 0x1b7   : > { %1411 = vmatpush.bf16.msra.mxu3 %v2902_v28  ;;  %v2969_v7 = vld [vmem:[%s3829_s30 + $0x188] sm:$0xf]  ;;  %v2974_v24 = vor.u32 %v3343_v31, %v2971_v63  ;;  %v3345_v27 = vld [vmem:[%s3829_s30 + $0x194] sm:$0xf0]  ;;  %v3307_v33 = vld [vmem:[%s3829_s30 + $0x6c] sm:$0xf]  ;;  %v2842_v36 = vor.u32 %v3313_v6, %v2841_v26 }
 0x1b8   : > { %1325 = vmatmul.bf16.vlgmr.msra.gmra.mxu0 %v4155_v56  ;;  %v2827_v34 = vld [vmem:[%s3829_s30 + $0x78] sm:$0xf0]  ;;  %v3289_v38 = vld [vmem:[#allocation2 + $0x14] sm:$0xf0]  ;;  %v3339_v35 = vld [vmem:[%s3829_s30 + $0x16c] sm:$0xf]  ;;  %v2970_v41 = vor.u32 %v3345_v27, %v2969_v7 }
 0x1b9   : > { %1354 = vmatmul.bf16.vlgmr.msra.gmra.mxu1 %v4160_v3  ;;  %1383 = vmatmul.bf16.vlgmr.msra.gmra.mxu2 %v4155_v56  ;;  %v2955_v37 = vld [vmem:[%s3829_s30 + $0x178] sm:$0xf0]  ;;  %v3288_v39 = vld [vmem:[#allocation2 + $0x14] sm:$0xf]  ;;  %v2830_v42 = vor.u32 %v3307_v33, %v2827_v34  ;;  %v2825_v43 = vld [vmem:[%s3829_s30 + $0x68] sm:$0xf]  ;;  %v4195_v48 = vor.u32 %v3289_v38, %v2745_v1 }
 0x1ba   : > { %1491 = vmatpush.bf16.msrb.mxu2 %v2894_v54  ;;  %1412 = vmatmul.bf16.vlgmr.msra.gmra.mxu3 %v4160_v3  ;;  %v2747_v40 = vld [vmem:[#allocation2 + $0x18] sm:$0xf0]  ;;  %v3309_v44 = vld [vmem:[%s3829_s30 + $0x74] sm:$0xf0]  ;;  %v2953_v45 = vld [vmem:[%s3829_s30 + $0x168] sm:$0xf]  ;;  %v2958_v50 = vor.u32 %v3339_v35, %v2955_v37 }
 0x1bb   : > { %1520 = vmatpush.bf16.msrb.mxu3 %v3022_v29  ;;  %1433 = vmatpush.bf16.msrb.mxu0 %v2890_v4  ;;  %v3341_v46 = vld [vmem:[%s3829_s30 + $0x174] sm:$0xf0]  ;;  %v3303_v47 = vld [vmem:[%s3829_s30 + $0x4c] sm:$0xf]  ;;  %v2811_v51 = vld [vmem:[%s3829_s30 + $0x58] sm:$0xf0]  ;;  %v4200_v28 = vor.u32 %v3288_v39, %v2747_v40  ;;  %v2826_v20 = vor.u32 %v3309_v44, %v2825_v43 }
 0x1bc   : > { %1462 = vmatpush.bf16.msrb.mxu1 %v3018_v2  ;;  %v3335_v54 = vld [vmem:[%s3829_s30 + $0x14c] sm:$0xf]  ;;  %v2939_v55 = vld [vmem:[%s3829_s30 + $0x158] sm:$0xf0]  ;;  %v2954_v21 = vor.u32 %v3341_v46, %v2953_v45  ;;  %v2814_v29 = vor.u32 %v3303_v47, %v2811_v51  ;;  %v2809_v57 = vld [vmem:[%s3829_s30 + $0x48] sm:$0xf] }
 0x1bd   : > { %v3305_v58 = vld [vmem:[%s3829_s30 + $0x54] sm:$0xf0]  ;;  %v2942_v8 = vor.u32 %v3335_v54, %v2939_v55  ;;  %v2937_v49 = vld [vmem:[%s3829_s30 + $0x148] sm:$0xf]  ;;  %v3299_v2 = vld [vmem:[%s3829_s30 + $0x2c] sm:$0xf] }
 0x1be   : > { %1492 = vmatpush.bf16.msrb.mxu2 %v2878_v5  ;;  %v3337_v0 = vld [vmem:[%s3829_s30 + $0x154] sm:$0xf0]  ;;  %v2810_v4 = vor.u32 %v3305_v58, %v2809_v57  ;;  %v2795_v5 = vld [vmem:[%s3829_s30 + $0x38] sm:$0xf0]  ;;  %v3331_v11 = vld [vmem:[%s3829_s30 + $0x12c] sm:$0xf] }
 0x1bf   : > { %1521 = vmatpush.bf16.msrb.mxu3 %v3006_v14  ;;  %1434 = vmatpush.bf16.msrb.mxu0 %v2874_v23  ;;  %v2938_v12 = vor.u32 %v3337_v0, %v2937_v49  ;;  %v2798_v13 = vor.u32 %v3299_v2, %v2795_v5  ;;  %v2923_v14 = vld [vmem:[%s3829_s30 + $0x138] sm:$0xf0]  ;;  %v2793_v52 = vld [vmem:[%s3829_s30 + $0x28] sm:$0xf]  ;;  %v3301_v15 = vld [vmem:[%s3829_s30 + $0x34] sm:$0xf0] }
 0x1c0   : > { %1463 = vmatpush.bf16.msrb.mxu1 %v3002_v30  ;;  %v2926_v53 = vor.u32 %v3331_v11, %v2923_v14  ;;  %v2921_v17 = vld [vmem:[%s3829_s30 + $0x128] sm:$0xf]  ;;  %v3333_v61 = vld [vmem:[%s3829_s30 + $0x134] sm:$0xf0]  ;;  %v3295_v23 = vld [vmem:[%s3829_s30 + $0xc] sm:$0xf]  ;;  %v2794_v9 = vor.u32 %v3301_v15, %v2793_v52 }
 0x1c1   : > { %v2779_v30 = vld [vmem:[%s3829_s30 + $0x18] sm:$0xf0]  ;;  %v2922_v10 = vor.u32 %v3333_v61, %v2921_v17  ;;  %v2777_v16 = vld [vmem:[%s3829_s30 + $0x8] sm:$0xf]  ;;  %v3297_v18 = vld [vmem:[%s3829_s30 + $0x14] sm:$0xf0] }
 0x1c2   : > { %1493 = vmatpush.bf16.msrb.mxu2 %v2862_v59  ;;  %v3327_v59 = vld [vmem:[%s3829_s30 + $0x10c] sm:$0xf]  ;;  %v2907_v60 = vld [vmem:[%s3829_s30 + $0x118] sm:$0xf0]  ;;  %v2905_v31 = vld [vmem:[%s3829_s30 + $0x108] sm:$0xf]  ;;  %v2778_v26 = vor.u32 %v3297_v18, %v2777_v16 }
 0x1c3   : > { %1522 = vmatpush.bf16.msrb.mxu3 %v2990_v62  ;;  %1435 = vmatpush.bf16.msrb.mxu0 %v2858_v32  ;;  %v2782_v62 = vor.u32 %v3295_v23, %v2779_v30  ;;  %v2910_v22 = vor.u32 %v3327_v59, %v2907_v60  ;;  %v3329_v63 = vld [vmem:[%s3829_s30 + $0x114] sm:$0xf0]  ;;  %v2753_v32 = vld [vmem:[#allocation2 + $0x20] sm:$0xf]  ;;  %v3291_v1 = vld [vmem:[#allocation2 + $0x24] sm:$0xf0] }
 0x1c4   : > { %1464 = vmatpush.bf16.msrb.mxu1 %v2986_v19  ;;  %v3290_v19 = vld [vmem:[#allocation2 + $0x24] sm:$0xf]  ;;  %v2906_v6 = vor.u32 %v3329_v63, %v2905_v31  ;;  %v2754_v7 = vor.u32 %v3291_v1, %v2753_v32  ;;  %v2761_v27 = vld [vmem:[#allocation2 + $0x30] sm:$0xf]  ;;  %v3293_v33 = vld [vmem:[#allocation2 + $0x34] sm:$0xf0] }
 0x1c5   : > { %v3292_v34 = vld [vmem:[#allocation2 + $0x34] sm:$0xf]  ;;  %v2763_v38 = vld [vmem:[#allocation2 + $0x38] sm:$0xf0]  ;;  %v2762_v35 = vor.u32 %v3293_v33, %v2761_v27  ;;  %v3073_v40 = vld [vmem:[%s3827_s17 + $0x60] sm:$0xf] }
 0x1c6   : > { %1494 = vmatpush.bf16.msrb.mxu2 %v2846_v25  ;;  %v2755_v25 = vld [vmem:[#allocation2 + $0x28] sm:$0xf0]  ;;  %v2766_v37 = vor.u32 %v3292_v34, %v2763_v38  ;;  %v3389_v43 = vld [vmem:[%s3827_s17 + $0xf4] sm:$0xf0]  ;;  %v3065_v45 = vld [vmem:[%s3827_s17 + $0x50] sm:$0xf] }
 0x1c7   : > { %1523 = vmatpush.bf16.msrb.mxu3 %v2974_v24  ;;  %1436 = vmatpush.bf16.msrb.mxu0 %v2842_v36  ;;  %v2758_v24 = vor.u32 %v3290_v19, %v2755_v25  ;;  %v3371_v36 = vld [vmem:[%s3827_s17 + $0x64] sm:$0xf0]  ;;  %v3137_v46 = vld [vmem:[%s3827_s17 + $0xe0] sm:$0xf]  ;;  %v3049_v57 = vld [vmem:[%s3827_s17 + $0x30] sm:$0xf] }
 0x1c8   : > { %1465 = vmatpush.bf16.msrb.mxu1 %v2970_v41  ;;  %1330 = vmatmul.bf16.gmra.mxu0 %v4195_v48  ;;  %v3074_v41 = vor.u32 %v3371_v36, %v3073_v40  ;;  %v3387_v47 = vld [vmem:[%s3827_s17 + $0xe4] sm:$0xf0]  ;;  %v3365_v58 = vld [vmem:[%s3827_s17 + $0x34] sm:$0xf0]  ;;  %v3121_v49 = vld [vmem:[%s3827_s17 + $0xc0] sm:$0xf] }
 0x1c9   : > { %1359 = vmatmul.bf16.gmra.mxu1 %v4200_v28  ;;  %1388 = vmatmul.bf16.gmra.mxu2 %v4195_v48  ;;  %v3138_v51 = vor.u32 %v3387_v47, %v3137_v46  ;;  %v3367_v54 = vld [vmem:[%s3827_s17 + $0x44] sm:$0xf0]  ;;  %v4259_v2 = vld [vmem:[%s548_s29] sm:$0xf]  ;;  %v3381_v14 = vld [vmem:[%s3827_s17 + $0xb4] sm:$0xf0] }
 0x1ca   : > { %1495 = vmatpush.bf16.msrb.mxu2 %v2830_v42  ;;  %1417 = vmatmul.bf16.gmra.mxu3 %v4200_v28  ;;  %v3145_v42 = vld [vmem:[%s3827_s17 + $0xf0] sm:$0xf]  ;;  %v3383_v0 = vld [vmem:[%s3827_s17 + $0xc4] sm:$0xf0]  ;;  %v3041_v5 = vld [vmem:[%s3827_s17 + $0x20] sm:$0xf] }
 0x1cb   : > { %1524 = vmatpush.bf16.msrb.mxu3 %v2958_v50  ;;  %1437 = vmatpush.bf16.msrb.mxu0 %v2826_v20  ;;  %v3146_v44 = vor.u32 %v3389_v43, %v3145_v42  ;;  %v3129_v20 = vld [vmem:[%s3827_s17 + $0xd0] sm:$0xf]  ;;  %v3363_v11 = vld [vmem:[%s3827_s17 + $0x24] sm:$0xf0]  ;;  %v4266_v52 = vperm.slane %v4259_v2, 0  ;;  %v4278_v31 = vperm.slane %v4259_v2, 1 }
 0x1cc   : > { %1466 = vmatpush.bf16.msrb.mxu1 %v2954_v21  ;;  %v3385_v21 = vld [vmem:[%s3827_s17 + $0xd4] sm:$0xf0]  ;;  %v3105_v30 = vld [vmem:[%s3827_s17 + $0xa0] sm:$0xf]  ;;  %v3379_v59 = vld [vmem:[%s3827_s17 + $0xa4] sm:$0xf0] }
 0x1cd   : > { %v3361_v17 = vld [vmem:[%s3827_s17 + $0x14] sm:$0xf0]  ;;  %v3359_v16 = vld [vmem:[%s3827_s17 + $0x4] sm:$0xf0]  ;;  %v3097_v63 = vld [vmem:[%s3827_s17 + $0x90] sm:$0xf] }
 0x1ce   : > { %1496 = vmatpush.bf16.msrb.mxu2 %v2814_v29  ;;  %v3130_v29 = vor.u32 %v3385_v21, %v3129_v20  ;;  %v3377_v32 = vld [vmem:[%s3827_s17 + $0x94] sm:$0xf0]  ;;  %v3089_v27 = vld [vmem:[%s3827_s17 + $0x80] sm:$0xf]  ;;  %v3375_v33 = vld [vmem:[%s3827_s17 + $0x84] sm:$0xf0] }
 0x1cf   : > { %1525 = vmatpush.bf16.msrb.mxu3 %v2942_v8  ;;  %1438 = vmatpush.bf16.msrb.mxu0 %v2810_v4  ;;  %v3050_v8 = vor.u32 %v3365_v58, %v3049_v57  ;;  %v3122_v4 = vor.u32 %v3383_v0, %v3121_v49  ;;  %v3098_v19 = vor.u32 %v3377_v32, %v3097_v63  ;;  %v3209_v20 = vld [vmem:[%s3827_s17 + $0x170] sm:$0xf]  ;;  %v3405_v21 = vld [vmem:[%s3827_s17 + $0x174] sm:$0xf0]  ;;  %v3201_v32 = vld [vmem:[%s3827_s17 + $0x160] sm:$0xf] }
 0x1d0   : > { %1467 = vmatpush.bf16.msrb.mxu1 %v2938_v12  ;;  %v3042_v12 = vor.u32 %v3363_v11, %v3041_v5  ;;  %v3421_v49 = vld [vmem:[%s3827_s17 + $0x1f4] sm:$0xf0]  ;;  %p3279_p12 = scmp.ne.s32.totalorder %s3576_s11, 1 }
 0x1d2   : > { %1497 = vmatpush.bf16.msrb.mxu2 %v2798_v13  ;;  %v3113_v13 = vld [vmem:[%s3827_s17 + $0xb0] sm:$0xf] }
 0x1d3   : > { %1526 = vmatpush.bf16.msrb.mxu3 %v2926_v53  ;;  %1439 = vmatpush.bf16.msrb.mxu0 %v2794_v9  ;;  %v3114_v15 = vor.u32 %v3381_v14, %v3113_v13  ;;  %v3033_v53 = vld [vmem:[%s3827_s17 + $0x10] sm:$0xf] }
 0x1d4   : > { %1468 = vmatpush.bf16.msrb.mxu1 %v2922_v10  ;;  %v3034_v61 = vor.u32 %v3361_v17, %v3033_v53  ;;  %v3106_v10 = vor.u32 %v3379_v59, %v3105_v30 }
 0x1d6   : > { %1498 = vmatpush.bf16.msrb.mxu2 %v2782_v62  ;;  %v3025_v62 = vld [vmem:[%s3827_s17] sm:$0xf] }
 0x1d7   : > { %1527 = vmatpush.bf16.msrb.mxu3 %v2910_v22  ;;  %1440 = vmatpush.bf16.msrb.mxu0 %v2778_v26  ;;  %v3026_v22 = vor.u32 %v3359_v16, %v3025_v62 }
 0x1d8   : > { %1469 = vmatpush.bf16.msrb.mxu1 %v2906_v6  ;;  %1335 = vmatmul.bf16.gmra.mxu0 %v2754_v7 }
 0x1d9   : > { %1364 = vmatmul.bf16.gmra.mxu1 %v2758_v24  ;;  %1393 = vmatmul.bf16.gmra.mxu2 %v2754_v7 }
 0x1da   : > { %1422 = vmatmul.bf16.gmra.mxu3 %v2758_v24 }
 0x1dc   : > { %2282 = vmatpush.bf16.msra.mxu1 %v3146_v44 }
 0x1e0   : > { %2283 = vmatpush.bf16.msra.mxu1 %v3138_v51 }
 0x1e4   : > { %2284 = vmatpush.bf16.msra.mxu1 %v3130_v29  ;;  %v3273_v29 = vld [vmem:[%s3827_s17 + $0x1f0] sm:$0xf] }
 0x1e5   : > { %v3274_v5 = vor.u32 %v3421_v49, %v3273_v29  ;;  %v3401_v29 = vld [vmem:[%s3827_s17 + $0x154] sm:$0xf0] }
 0x1e7   : > { %2340 = vmatpush.bf16.msra.mxu3 %v3274_v5  ;;  %v3417_v5 = vld [vmem:[%s3827_s17 + $0x1d4] sm:$0xf0] }
 0x1e8   : > { %1340 = vmatmul.bf16.gmra.mxu0 %v2762_v35  ;;  %2285 = vmatpush.bf16.msra.mxu1 %v3122_v4 }
 0x1e9   : > { %1369 = vmatmul.bf16.gmra.mxu1 %v2766_v37  ;;  %1398 = vmatmul.bf16.gmra.mxu2 %v2762_v35 }
 0x1ea   : > { %1427 = vmatmul.bf16.gmra.mxu3 %v2766_v37 }
 0x1ec   : > { %2286 = vmatpush.bf16.msra.mxu1 %v3114_v15 }
 0x1f0   : > { %2287 = vmatpush.bf16.msra.mxu1 %v3106_v10 }
 0x1f4   : > { %2288 = vmatpush.bf16.msra.mxu1 %v3098_v19  ;;  %v3265_v19 = vld [vmem:[%s3827_s17 + $0x1e0] sm:$0xf] }
 0x1f8   : > { %1441 = vmatmul.bf16.vlgmr.msrb.gmra.mxu0 %v4155_v56 }
 0x1f9   : > { %1470 = vmatmul.bf16.vlgmr.msrb.gmra.mxu1 %v4160_v3  ;;  %1499 = vmatmul.bf16.vlgmr.msrb.gmra.mxu2 %v4155_v56  ;;  %v3081_v56 = vld [vmem:[%s3827_s17 + $0x70] sm:$0xf] }
 0x1fa   : > { %1528 = vmatmul.bf16.vlgmr.msrb.gmra.mxu3 %v4160_v3  ;;  %v3373_v3 = vld [vmem:[%s3827_s17 + $0x74] sm:$0xf0] }
 0x1fb   : > { %v3082_v39 = vor.u32 %v3373_v3, %v3081_v56 }
 0x1fd   : > { %2253 = vmatpush.bf16.msra.mxu0 %v3082_v39 }
 0x201   : > { %2254 = vmatpush.bf16.msra.mxu0 %v3074_v41 }
 0x208   : > { %1446 = vmatmul.bf16.gmra.mxu0 %v4195_v48 }
 0x209   : > { %1475 = vmatmul.bf16.gmra.mxu1 %v4200_v28  ;;  %1504 = vmatmul.bf16.gmra.mxu2 %v4195_v48  ;;  %v3369_v48 = vld [vmem:[%s3827_s17 + $0x54] sm:$0xf0] }
 0x20a   : > { %1533 = vmatmul.bf16.gmra.mxu3 %v4200_v28  ;;  %v3066_v50 = vor.u32 %v3369_v48, %v3065_v45  ;;  %v3057_v28 = vld [vmem:[%s3827_s17 + $0x40] sm:$0xf] }
 0x20b   : > { %v3058_v55 = vor.u32 %v3367_v54, %v3057_v28 }
 0x20c   : > { %2255 = vmatpush.bf16.msra.mxu0 %v3066_v50 }
 0x210   : > { %2256 = vmatpush.bf16.msra.mxu0 %v3058_v55 }
 0x214   : > { %2257 = vmatpush.bf16.msra.mxu0 %v3050_v8  ;;  %v3210_v8 = vor.u32 %v3405_v21, %v3209_v20  ;;  %v3193_v21 = vld [vmem:[%s3827_s17 + $0x150] sm:$0xf] }
 0x216   : > { %2311 = vmatpush.bf16.msra.mxu2 %v3210_v8 }
 0x218   : > { %1451 = vmatmul.bf16.gmra.mxu0 %v2754_v7 }
 0x219   : > { %1480 = vmatmul.bf16.gmra.mxu1 %v2758_v24  ;;  %1509 = vmatmul.bf16.gmra.mxu2 %v2754_v7 }
 0x21a   : > { %1538 = vmatmul.bf16.gmra.mxu3 %v2758_v24  ;;  %2258 = vmatpush.bf16.msra.mxu0 %v3042_v12 }
 0x21e   : > { %2259 = vmatpush.bf16.msra.mxu0 %v3034_v61 }
 0x222   : > { %2260 = vmatpush.bf16.msra.mxu0 %v3026_v22 }
 0x228   : > { %1456 = vmatmul.bf16.gmra.mxu0 %v2762_v35 }
 0x229   : > { %1485 = vmatmul.bf16.gmra.mxu1 %v2766_v37  ;;  %1514 = vmatmul.bf16.gmra.mxu2 %v2762_v35 }
 0x22a   : > { %1543 = vmatmul.bf16.gmra.mxu3 %v2766_v37  ;;  %v3090_v37 = vor.u32 %v3375_v33, %v3089_v27 }
 0x22c   : > { %2289 = vmatpush.bf16.msra.mxu1 %v3090_v37 }
 0x235   : > { %v1326_v23 = vpop.f32.mrf.mxu0 }
 0x236   : > { %v1327_v60 = vadd.f32 %v1326_v23, %v4266_v52  ;;  %v1355_v9 = vpop.f32.mrf.mxu1 }
 0x238   : > { %v4275_v18 = vadd.f32 %v1355_v9, %v1327_v60 }
 0x23a   : > { %v1549_v1 = vmul.f32 %v4275_v18, %v4275_v18 }
 0x23c   : > { %v1581_v25 = vmul.f32 %v1549_v1, %v4275_v18  ;;  %v1384_v26 = vpop.f32.mrf.mxu2  ;;  %v3403_v1 = vld [vmem:[%s3827_s17 + $0x164] sm:$0xf0] }
 0x23d   : > { %v1385_v6 = vadd.f32 %v1384_v26, %v4278_v31  ;;  %v1413_v7 = vpop.f32.mrf.mxu3  ;;  %v1328_v24 = vpop.f32.mrf.mxu0 }
 0x23e   : > { %v1613_v34 = vmul.f32 0.044715, %v1581_v25  ;;  %v1329_v38 = vadd.f32 %v1328_v24, %v4266_v52  ;;  %v1357_v35 = vpop.f32.mrf.mxu1  ;;  %v3419_v24 = vld [vmem:[%s3827_s17 + $0x1e4] sm:$0xf0] }
 0x23f   : > { %v4289_v56 = vadd.f32 %v1413_v7, %v1385_v6  ;;  %v3202_v7 = vor.u32 %v3403_v1, %v3201_v32 }
 0x240   : > { %v1645_v3 = vadd.f32 %v1613_v34, %v4275_v18  ;;  %v4292_v39 = vadd.f32 %v1357_v35, %v1329_v38  ;;  %v3266_v34 = vor.u32 %v3419_v24, %v3265_v19 }
 0x241   : > { %v1550_v40 = vmul.f32 %v4289_v56, %v4289_v56  ;;  %2312 = vmatpush.bf16.msra.mxu2 %v3202_v7 }
 0x242   : > { %v1677_v36 = vmul.f32 0.7978846, %v1645_v3  ;;  %v1553_v41 = vmul.f32 %v4292_v39, %v4292_v39  ;;  %2341 = vmatpush.bf16.msra.mxu3 %v3266_v34  ;;  %v3075_v34 = vld [vmem:[%s3827_s17 + $0x68] sm:$0xf0] }
 0x243   : > { %v1582_v42 = vmul.f32 %v1550_v40, %v4289_v56 }
 0x244   : > { %v1585_v43 = vmul.f32 %v1553_v41, %v4292_v39  ;;  %v1386_v44 = vpop.f32.mrf.mxu2  ;;  %3482 = vtanh.f32 %v1677_v36 }
 0x245   : > { %v1614_v45 = vmul.f32 0.044715, %v1582_v42  ;;  %v1387_v48 = vadd.f32 %v1386_v44, %v4278_v31  ;;  %v1415_v50 = vpop.f32.mrf.mxu3  ;;  %v1331_v46 = vpop.f32.mrf.mxu0 }
 0x246   : > { %v1617_v47 = vmul.f32 0.044715, %v1585_v43  ;;  %v1332_v51 = vadd.f32 %v1331_v46, %v4266_v52  ;;  %v1360_v28 = vpop.f32.mrf.mxu1 }
 0x247   : > { %v1646_v54 = vadd.f32 %v1614_v45, %v4289_v56  ;;  %v4303_v55 = vadd.f32 %v1415_v50, %v1387_v48 }
 0x248   : > { %v1649_v57 = vadd.f32 %v1617_v47, %v4292_v39  ;;  %v4309_v58 = vadd.f32 %v1360_v28, %v1332_v51 }
 0x249   : > { %v1678_v0 = vmul.f32 0.7978846, %v1646_v54  ;;  %v1554_v4 = vmul.f32 %v4303_v55, %v4303_v55 }
 0x24a   : > { %v1681_v11 = vmul.f32 0.7978846, %v1649_v57  ;;  %v1557_v12 = vmul.f32 %v4309_v58, %v4309_v58  ;;  %v3483_v14 = vpop.eup %3482  ;;  %v3257_v57 = vld [vmem:[%s3827_s17 + $0x1d0] sm:$0xf] }
 0x24b   : > { %3484 = vtanh.f32 %v1678_v0  ;;  %v1586_v13 = vmul.f32 %v1554_v4, %v4303_v55  ;;  %v1741_v10 = vadd.f32 1.0, %v3483_v14  ;;  %v3194_v4 = vor.u32 %v3401_v29, %v3193_v21 }
 0x24c   : > { %3486 = vtanh.f32 %v1681_v11  ;;  %v1589_v15 = vmul.f32 %v1557_v12, %v4309_v58  ;;  %v1389_v53 = vpop.f32.mrf.mxu2 }
 0x24d   : > { %v1618_v17 = vmul.f32 0.044715, %v1586_v13  ;;  %v1390_v61 = vadd.f32 %v1389_v53, %v4278_v31  ;;  %v1418_v23 = vpop.f32.mrf.mxu3  ;;  %v1333_v30 = vpop.f32.mrf.mxu0  ;;  %v1773_v35 = vmul.f32 0.5, %v1741_v10  ;;  %2313 = vmatpush.bf16.msra.mxu2 %v3194_v4 }
 0x24e   : > { %v1621_v59 = vmul.f32 0.044715, %v1589_v15  ;;  %v1334_v60 = vadd.f32 %v1333_v30, %v4266_v52  ;;  %v1362_v9 = vpop.f32.mrf.mxu1  ;;  %v3083_v30 = vld [vmem:[%s3827_s17 + $0x78] sm:$0xf0] }
 0x24f   : > { %v1650_v62 = vadd.f32 %v1618_v17, %v4303_v55  ;;  %v4321_v16 = vadd.f32 %v1418_v23, %v1390_v61  ;;  %v1805_v51 = vmul.f32 %v1773_v35, %v4275_v18  ;;  %v3372_v23 = vld [vmem:[%s3827_s17 + $0x74] sm:$0xf] }
 0x250   : > { %v1653_v22 = vadd.f32 %v1621_v59, %v4309_v58  ;;  %v4324_v63 = vadd.f32 %v1362_v9, %v1334_v60  ;;  %v3086_v19 = vor.u32 %v3372_v23, %v3083_v30  ;;  %v3185_v30 = vld [vmem:[%s3827_s17 + $0x140] sm:$0xf] }
 0x251   : > { %v3485_v25 = vpop.eup %3484  ;;  %v1682_v26 = vmul.f32 0.7978846, %v1650_v62  ;;  %v1558_v6 = vmul.f32 %v4321_v16, %v4321_v16 }
 0x252   : > { %v3487_v27 = vpop.eup %3486  ;;  %v1561_v33 = vmul.f32 %v4324_v63, %v4324_v63  ;;  %v1685_v38 = vmul.f32 0.7978846, %v1653_v22  ;;  %v1742_v40 = vadd.f32 1.0, %v3485_v25  ;;  %2369 = vmatpush.bf16.msrb.mxu0 %v3086_v19 }
 0x253   : > { %3488 = vtanh.f32 %v1682_v26  ;;  %v1590_v37 = vmul.f32 %v1558_v6, %v4321_v16  ;;  %v1745_v3 = vadd.f32 1.0, %v3487_v27 }
 0x254   : > { %v1593_v36 = vmul.f32 %v1561_v33, %v4324_v63  ;;  %v1391_v41 = vpop.f32.mrf.mxu2  ;;  %3490 = vtanh.f32 %v1685_v38  ;;  %v1774_v8 = vmul.f32 0.5, %v1742_v40 }
 0x255   : > { %v1622_v42 = vmul.f32 0.044715, %v1590_v37  ;;  %v1392_v43 = vadd.f32 %v1391_v41, %v4278_v31  ;;  %v1420_v44 = vpop.f32.mrf.mxu3  ;;  %v1336_v45 = vpop.f32.mrf.mxu0  ;;  %v1777_v48 = vmul.f32 0.5, %v1745_v3  ;;  %v3388_v41 = vld [vmem:[%s3827_s17 + $0xf4] sm:$0xf] }
 0x256   : > { %v1625_v50 = vmul.f32 0.044715, %v1593_v36  ;;  %v1337_v46 = vadd.f32 %v1336_v45, %v4266_v52  ;;  %v1365_v47 = vpop.f32.mrf.mxu1  ;;  %v1806_v10 = vmul.f32 %v1774_v8, %v4289_v56  ;;  %v3370_v56 = vld [vmem:[%s3827_s17 + $0x64] sm:$0xf] }
 0x257   : > { %v1654_v28 = vadd.f32 %v1622_v42, %v4321_v16  ;;  %v4340_v54 = vadd.f32 %v1420_v44, %v1392_v43  ;;  %v1809_v20 = vmul.f32 %v1777_v48, %v4292_v39  ;;  %v3258_v39 = vor.u32 %v3417_v5, %v3257_v57  ;;  %v3147_v42 = vld [vmem:[%s3827_s17 + $0xf8] sm:$0xf0] }
 0x258   : > { %v4346_v49 = vadd.f32 %v1365_v47, %v1337_v46  ;;  %v1657_v0 = vadd.f32 %v1625_v50, %v4324_v63  ;;  %v3078_v3 = vor.u32 %v3370_v56, %v3075_v34  ;;  %v3150_v50 = vor.u32 %v3388_v41, %v3147_v42  ;;  %v3397_v41 = vld [vmem:[%s3827_s17 + $0x134] sm:$0xf0] }
 0x259   : > { %v3489_v11 = vpop.eup %3488  ;;  %v1562_v18 = vmul.f32 %v4340_v54, %v4340_v54  ;;  %v4352_v12 = vpack.c.bf16 %v1809_v20, %v1805_v51  ;;  %v1686_v13 = vmul.f32 0.7978846, %v1654_v28  ;;  %2342 = vmatpush.bf16.msra.mxu3 %v3258_v39  ;;  %v3368_v51 = vld [vmem:[%s3827_s17 + $0x54] sm:$0xf]  ;;  %v3067_v28 = vld [vmem:[%s3827_s17 + $0x58] sm:$0xf0] }
 0x25a   : > { %v1565_v14 = vmul.f32 %v4346_v49, %v4346_v49  ;;  %v1746_v15 = vadd.f32 1.0, %v3489_v11  ;;  %v1689_v53 = vmul.f32 0.7978846, %v1657_v0  ;;  %v3491_v17 = vpop.eup %3490  ;;  %2370 = vmatpush.bf16.msrb.mxu0 %v3078_v3  ;;  %2398 = vmatpush.bf16.msrb.mxu1 %v3150_v50  ;;  %v3070_v57 = vor.u32 %v3368_v51, %v3067_v28  ;;  %v3051_v50 = vld [vmem:[%s3827_s17 + $0x38] sm:$0xf0] }
 0x25b   : > { %v1594_v61 = vmul.f32 %v1562_v18, %v4340_v54  ;;  %2261 = vmatmul.bf16.vlgmr.msra.gmra.mxu0 %v4352_v12  ;;  %3492 = vtanh.f32 %v1686_v13  ;;  %v1749_v24 = vadd.f32 1.0, %v3491_v17  ;;  %v3386_v18 = vld [vmem:[%s3827_s17 + $0xe4] sm:$0xf] }
 0x25c   : > { %v1597_v59 = vmul.f32 %v1565_v14, %v4346_v49  ;;  %v1394_v60 = vpop.f32.mrf.mxu2  ;;  %v1778_v9 = vmul.f32 0.5, %v1746_v15  ;;  %3494 = vtanh.f32 %v1689_v53  ;;  %v3139_v53 = vld [vmem:[%s3827_s17 + $0xe8] sm:$0xf0] }
 0x25d   : > { %v1626_v62 = vmul.f32 0.044715, %v1594_v61  ;;  %v1395_v22 = vadd.f32 %v1394_v60, %v4278_v31  ;;  %v1423_v32 = vpop.f32.mrf.mxu3  ;;  %v1338_v1 = vpop.f32.mrf.mxu0  ;;  %v1781_v45 = vmul.f32 0.5, %v1749_v24  ;;  %v3142_v60 = vor.u32 %v3386_v18, %v3139_v53  ;;  %v3382_v18 = vld [vmem:[%s3827_s17 + $0xc4] sm:$0xf] }
 0x25e   : > { %v1629_v25 = vmul.f32 0.044715, %v1597_v59  ;;  %v1339_v26 = vadd.f32 %v1338_v1, %v4266_v52  ;;  %v1367_v6 = vpop.f32.mrf.mxu1  ;;  %v1810_v7 = vmul.f32 %v1778_v9, %v4303_v55  ;;  %v3399_v59 = vld [vmem:[%s3827_s17 + $0x144] sm:$0xf0]  ;;  %2371 = vmatpush.bf16.msrb.mxu0 %v3070_v57  ;;  %v3366_v9 = vld [vmem:[%s3827_s17 + $0x44] sm:$0xf] }
 0x25f   : > { %v4365_v27 = vadd.f32 %v1423_v32, %v1395_v22  ;;  %v1658_v33 = vadd.f32 %v1626_v62, %v4340_v54  ;;  %v1813_v15 = vmul.f32 %v1781_v45, %v4309_v58  ;;  %v3186_v22 = vor.u32 %v3399_v59, %v3185_v30  ;;  %v3059_v32 = vld [vmem:[%s3827_s17 + $0x48] sm:$0xf0]  ;;  %2399 = vmatpush.bf16.msrb.mxu1 %v3142_v60  ;;  %v3395_v53 = vld [vmem:[%s3827_s17 + $0x124] sm:$0xf0]  ;;  %v3362_v59 = vld [vmem:[%s3827_s17 + $0x24] sm:$0xf] }
 0x260   : > { %v1661_v38 = vadd.f32 %v1629_v25, %v4346_v49  ;;  %v4371_v35 = vadd.f32 %v1367_v6, %v1339_v26  ;;  %v4373_v37 = vpack.c.bf16 %v1810_v7, %v1806_v10  ;;  %v3062_v26 = vor.u32 %v3366_v9, %v3059_v32  ;;  %v3384_v6 = vld [vmem:[%s3827_s17 + $0xd4] sm:$0xf]  ;;  %v3131_v7 = vld [vmem:[%s3827_s17 + $0xd8] sm:$0xf0]  ;;  %v3043_v60 = vld [vmem:[%s3827_s17 + $0x28] sm:$0xf0] }
 0x261   : > { %v3493_v40 = vpop.eup %3492  ;;  %v1566_v55 = vmul.f32 %v4365_v27, %v4365_v27  ;;  %v1690_v36 = vmul.f32 0.7978846, %v1658_v33  ;;  %2314 = vmatpush.bf16.msra.mxu2 %v3186_v22  ;;  %v3413_v32 = vld [vmem:[%s3827_s17 + $0x1b4] sm:$0xf0] }
 0x262   : > { %v3495_v43 = vpop.eup %3494  ;;  %v1569_v44 = vmul.f32 %v4371_v35, %v4371_v35  ;;  %2290 = vmatmul.bf16.vlgmr.msra.gmra.mxu1 %v4373_v37  ;;  %v1693_v48 = vmul.f32 0.7978846, %v1661_v38  ;;  %v1750_v29 = vadd.f32 1.0, %v3493_v40  ;;  %v3134_v38 = vor.u32 %v3384_v6, %v3131_v7  ;;  %2372 = vmatpush.bf16.msrb.mxu0 %v3062_v26 }
 0x263   : > { %v1598_v46 = vmul.f32 %v1566_v55, %v4365_v27  ;;  %v1753_v47 = vadd.f32 1.0, %v3495_v43  ;;  %3496 = vtanh.f32 %v1690_v36  ;;  %v4413_v40 = vperm.slane %v4259_v2, 2  ;;  %v3177_v36 = vld [vmem:[%s3827_s17 + $0x130] sm:$0xf] }
 0x264   : > { %v1601_v20 = vmul.f32 %v1569_v44, %v4371_v35  ;;  %v1396_v21 = vpop.f32.mrf.mxu2  ;;  %3498 = vtanh.f32 %v1693_v48  ;;  %v1782_v62 = vmul.f32 0.5, %v1750_v29  ;;  %v3178_v45 = vor.u32 %v3397_v41, %v3177_v36  ;;  %v3364_v48 = vld [vmem:[%s3827_s17 + $0x34] sm:$0xf]  ;;  %v3415_v29 = vld [vmem:[%s3827_s17 + $0x1c4] sm:$0xf0]  ;;  %2400 = vmatpush.bf16.msrb.mxu1 %v3134_v38 }
 0x265   : > { %v1630_v8 = vmul.f32 0.044715, %v1598_v46  ;;  %v1397_v0 = vadd.f32 %v1396_v21, %v4278_v31  ;;  %v1425_v4 = vpop.f32.mrf.mxu3  ;;  %v1341_v5 = vpop.f32.mrf.mxu0  ;;  %v1785_v11 = vmul.f32 0.5, %v1753_v47  ;;  %v3249_v21 = vld [vmem:[%s3827_s17 + $0x1c0] sm:$0xf]  ;;  %v3054_v57 = vor.u32 %v3364_v48, %v3051_v50 }
 0x266   : > { %v1633_v13 = vmul.f32 0.044715, %v1601_v20  ;;  %v1342_v39 = vadd.f32 %v1341_v5, %v4266_v52  ;;  %v1370_v14 = vpop.f32.mrf.mxu1  ;;  %v1814_v20 = vmul.f32 %v1782_v62, %v4321_v16  ;;  %2315 = vmatpush.bf16.msra.mxu2 %v3178_v45  ;;  %v3161_v38 = vld [vmem:[%s3827_s17 + $0x110] sm:$0xf] }
 0x267   : > { %v1662_v17 = vadd.f32 %v1630_v8, %v4365_v27  ;;  %v4392_v61 = vadd.f32 %v1425_v4, %v1397_v0  ;;  %v1817_v23 = vmul.f32 %v1785_v11, %v4324_v63  ;;  %v3250_v11 = vor.u32 %v3415_v29, %v3249_v21  ;;  %2373 = vmatpush.bf16.msrb.mxu0 %v3054_v57  ;;  %v3411_v57 = vld [vmem:[%s3827_s17 + $0x1a4] sm:$0xf0] }
 0x268   : > { %v4398_v10 = vadd.f32 %v1370_v14, %v1342_v39  ;;  %v1665_v58 = vadd.f32 %v1633_v13, %v4371_v35  ;;  %v3123_v13 = vld [vmem:[%s3827_s17 + $0xc8] sm:$0xf0] }
 0x269   : > { %v3497_v1 = vpop.eup %3496  ;;  %v1570_v19 = vmul.f32 %v4392_v61, %v4392_v61  ;;  %v4404_v25 = vpack.c.bf16 %v1817_v23, %v1813_v15  ;;  %v1694_v63 = vmul.f32 0.7978846, %v1662_v17  ;;  %v3169_v15 = vld [vmem:[%s3827_s17 + $0x120] sm:$0xf]  ;;  %v3126_v17 = vor.u32 %v3382_v18, %v3123_v13  ;;  %2343 = vmatpush.bf16.msra.mxu3 %v3250_v11  ;;  %v3378_v11 = vld [vmem:[%s3827_s17 + $0xa4] sm:$0xf] }
 0x26a   : > { %v3499_v24 = vpop.eup %3498  ;;  %v1573_v33 = vmul.f32 %v4398_v10, %v4398_v10  ;;  %v1754_v56 = vadd.f32 1.0, %v3497_v1  ;;  %v1697_v34 = vmul.f32 0.7978846, %v1665_v58  ;;  %v3170_v30 = vor.u32 %v3395_v53, %v3169_v15  ;;  %v3241_v58 = vld [vmem:[%s3827_s17 + $0x1b0] sm:$0xf] }
 0x26b   : > { %v1602_v3 = vmul.f32 %v1570_v19, %v4392_v61  ;;  %2266 = vmatmul.bf16.gmra.mxu0 %v4404_v25  ;;  %v1757_v55 = vadd.f32 1.0, %v3499_v24  ;;  %3500 = vtanh.f32 %v1694_v63  ;;  %2401 = vmatpush.bf16.msrb.mxu1 %v3126_v17  ;;  %v3046_v1 = vor.u32 %v3362_v59, %v3043_v60  ;;  %v3380_v24 = vld [vmem:[%s3827_s17 + $0xb4] sm:$0xf]  ;;  %v3107_v18 = vld [vmem:[%s3827_s17 + $0xa8] sm:$0xf0] }
 0x26c   : > { %v1605_v42 = vmul.f32 %v1573_v33, %v4398_v10  ;;  %v1399_v43 = vpop.f32.mrf.mxu2  ;;  %v1786_v44 = vmul.f32 0.5, %v1754_v56  ;;  %3502 = vtanh.f32 %v1697_v34  ;;  %v3242_v6 = vor.u32 %v3413_v32, %v3241_v58  ;;  %2316 = vmatpush.bf16.msra.mxu2 %v3170_v30  ;;  %v3153_v13 = vld [vmem:[%s3827_s17 + $0x100] sm:$0xf]  ;;  %v3391_v53 = vld [vmem:[%s3827_s17 + $0x104] sm:$0xf0] }
 0x26d   : > { %v1634_v46 = vmul.f32 0.044715, %v1602_v3  ;;  %v1400_v47 = vadd.f32 %v1399_v43, %v4278_v31  ;;  %v1428_v51 = vpop.f32.mrf.mxu3  ;;  %v1343_v28 = vpop.f32.mrf.mxu0  ;;  %v1789_v16 = vmul.f32 0.5, %v1757_v55  ;;  %v4450_v56 = vperm.slane %v4259_v2, 3  ;;  %v3393_v3 = vld [vmem:[%s3827_s17 + $0x114] sm:$0xf0]  ;;  %2374 = vmatpush.bf16.msrb.mxu0 %v3046_v1 }
 0x26e   : > { %v1637_v8 = vmul.f32 0.044715, %v1605_v42  ;;  %v1344_v0 = vadd.f32 %v1343_v28, %v4266_v52  ;;  %v1372_v4 = vpop.f32.mrf.mxu1  ;;  %v1818_v5 = vmul.f32 %v1786_v44, %v4340_v54  ;;  %2344 = vmatpush.bf16.msra.mxu3 %v3242_v6  ;;  %v3162_v42 = vor.u32 %v3393_v3, %v3161_v38  ;;  %v3115_v43 = vld [vmem:[%s3827_s17 + $0xb8] sm:$0xf0]  ;;  %v3360_v44 = vld [vmem:[%s3827_s17 + $0x14] sm:$0xf] }
 0x26f   : > { %v4428_v39 = vadd.f32 %v1428_v51, %v1400_v47  ;;  %v1666_v14 = vadd.f32 %v1634_v46, %v4392_v61  ;;  %v3233_v47 = vld [vmem:[%s3827_s17 + $0x1a0] sm:$0xf]  ;;  %v3118_v51 = vor.u32 %v3380_v24, %v3115_v43  ;;  %v1821_v29 = vmul.f32 %v1789_v16, %v4346_v49  ;;  %v3358_v17 = vld [vmem:[%s3827_s17 + $0x4] sm:$0xf]  ;;  %v3099_v24 = vld [vmem:[%s3827_s17 + $0x98] sm:$0xf0] }
 0x270   : > { %v1669_v52 = vadd.f32 %v1637_v8, %v4398_v10  ;;  %v4434_v23 = vadd.f32 %v1372_v4, %v1344_v0  ;;  %v4436_v54 = vpack.c.bf16 %v1818_v5, %v1814_v20  ;;  %2317 = vmatpush.bf16.msra.mxu2 %v3162_v42  ;;  %v3234_v5 = vor.u32 %v3411_v57, %v3233_v47  ;;  %v3091_v57 = vld [vmem:[%s3827_s17 + $0x88] sm:$0xf0] }
 0x271   : > { %v3501_v9 = vpop.eup %3500  ;;  %v1574_v62 = vmul.f32 %v4428_v39, %v4428_v39  ;;  %v1698_v22 = vmul.f32 0.7978846, %v1666_v14  ;;  %2402 = vmatpush.bf16.msrb.mxu1 %v3118_v51  ;;  %v3110_v15 = vor.u32 %v3378_v11, %v3107_v18  ;;  %v3407_v51 = vld [vmem:[%s3827_s17 + $0x184] sm:$0xf0] }
 0x272   : > { %v3503_v19 = vpop.eup %3502  ;;  %v1577_v63 = vmul.f32 %v4434_v23, %v4434_v23  ;;  %2295 = vmatmul.bf16.gmra.mxu1 %v4436_v54  ;;  %v1758_v26 = vadd.f32 1.0, %v3501_v9  ;;  %v1701_v7 = vmul.f32 0.7978846, %v1669_v52  ;;  %v3027_v52 = vld [vmem:[%s3827_s17 + $0x8] sm:$0xf0]  ;;  %2345 = vmatpush.bf16.msra.mxu3 %v3234_v5 }
 0x273   : > { %v1606_v33 = vmul.f32 %v1574_v62, %v4428_v39  ;;  %v1761_v34 = vadd.f32 1.0, %v3503_v19  ;;  %3504 = vtanh.f32 %v1698_v22  ;;  %v3225_v9 = vld [vmem:[%s3827_s17 + $0x190] sm:$0xf]  ;;  %v3409_v62 = vld [vmem:[%s3827_s17 + $0x194] sm:$0xf0]  ;;  %v3154_v22 = vor.u32 %v3391_v53, %v3153_v13 }
 0x274   : > { %v1609_v55 = vmul.f32 %v1577_v63, %v4434_v23  ;;  %v1401_v36 = vpop.f32.mrf.mxu2  ;;  %v4455_v41 = vmul.f32 0.5, %v1758_v26  ;;  %3506 = vtanh.f32 %v1701_v7  ;;  %v3226_v63 = vor.u32 %v3409_v62, %v3225_v9  ;;  %v3376_v26 = vld [vmem:[%s3827_s17 + $0x94] sm:$0xf] }
 0x275   : > { %v1638_v45 = vmul.f32 0.044715, %v1606_v33  ;;  %v1402_v2 = vadd.f32 %v1401_v36, %v4278_v31  ;;  %v1430_v48 = vpop.f32.mrf.mxu3  ;;  %v1442_v50 = vpop.f32.mrf.mxu0  ;;  %v1793_v46 = vmul.f32 0.5, %v1761_v34  ;;  %v3035_v31 = vld [vmem:[%s3827_s17 + $0x18] sm:$0xf0]  ;;  %2403 = vmatpush.bf16.msrb.mxu1 %v3110_v15  ;;  %v3030_v7 = vor.u32 %v3358_v17, %v3027_v52  ;;  %2318 = vmatpush.bf16.msra.mxu2 %v3154_v22 }
 0x276   : > { %v1641_v28 = vmul.f32 0.044715, %v1609_v55  ;;  %v1443_v20 = vadd.f32 %v1442_v50, %v4413_v40  ;;  %v1471_v21 = vpop.f32.mrf.mxu1  ;;  %v3038_v14 = vor.u32 %v3360_v44, %v3035_v31  ;;  %v3102_v3 = vor.u32 %v3376_v26, %v3099_v24  ;;  %2346 = vmatpush.bf16.msra.mxu3 %v3226_v63 }
 0x277   : > { %v1670_v8 = vadd.f32 %v1638_v45, %v4428_v39  ;;  %v4466_v0 = vadd.f32 %v1430_v48, %v1402_v2  ;;  %v1825_v4 = vmul.f32 %v1793_v46, %v4371_v35  ;;  %v3217_v45 = vld [vmem:[%s3827_s17 + $0x180] sm:$0xf]  ;;  %v1822_v46 = vmul.f32 %v4455_v41, %v4365_v27 }
 0x278   : > { %v4472_v49 = vadd.f32 %v1471_v21, %v1443_v20  ;;  %v1673_v16 = vadd.f32 %v1641_v28, %v4434_v23  ;;  %2375 = vmatpush.bf16.msrb.mxu0 %v3038_v14  ;;  %v3374_v28 = vld [vmem:[%s3827_s17 + $0x84] sm:$0xf] }
 0x279   : > { %v3505_v30 = vpop.eup %3504  ;;  %v1578_v35 = vmul.f32 %v4466_v0, %v4466_v0  ;;  %v4480_v59 = vpack.c.bf16 %v1825_v4, %v1821_v29  ;;  %v1702_v60 = vmul.f32 0.7978846, %v1670_v8  ;;  %v3218_v29 = vor.u32 %v3407_v51, %v3217_v45  ;;  %2404 = vmatpush.bf16.msrb.mxu1 %v3102_v3 }
 0x27a   : > { %v3507_v58 = vpop.eup %3506  ;;  %v1551_v32 = vmul.f32 %v4472_v49, %v4472_v49  ;;  %v1762_v1 = vadd.f32 1.0, %v3505_v30  ;;  %v1705_v19 = vmul.f32 0.7978846, %v1673_v16  ;;  %v3094_v5 = vor.u32 %v3374_v28, %v3091_v57 }
 0x27b   : > { %v1610_v6 = vmul.f32 %v1578_v35, %v4466_v0  ;;  %2271 = vmatmul.bf16.gmra.mxu0 %v4480_v59  ;;  %3508 = vtanh.f32 %v1702_v60  ;;  %v1765_v44 = vadd.f32 1.0, %v3507_v58  ;;  %2347 = vmatpush.bf16.msra.mxu3 %v3218_v29 }
 0x27c   : > { %v1583_v33 = vmul.f32 %v1551_v32, %v4472_v49  ;;  %v1500_v34 = vpop.f32.mrf.mxu2  ;;  %v1794_v38 = vmul.f32 0.5, %v1762_v1  ;;  %3510 = vtanh.f32 %v1705_v19  ;;  %2376 = vmatpush.bf16.msrb.mxu0 %v3030_v7 }
 0x27d   : > { %v1642_v55 = vmul.f32 0.044715, %v1610_v6  ;;  %v1501_v36 = vadd.f32 %v1500_v34, %v4450_v56  ;;  %v1529_v42 = vpop.f32.mrf.mxu3  ;;  %v1444_v43 = vpop.f32.mrf.mxu0  ;;  %v1797_v16 = vmul.f32 0.5, %v1765_v44  ;;  %2405 = vmatpush.bf16.msrb.mxu1 %v3094_v5  ;;  %v3211_v34 = vld [vmem:[%s3827_s17 + $0x178] sm:$0xf0] }
 0x27e   : > { %v1615_v2 = vmul.f32 0.044715, %v1583_v33  ;;  %v1445_v48 = vadd.f32 %v1444_v43, %v4413_v40  ;;  %v1473_v50 = vpop.f32.mrf.mxu1  ;;  %v1826_v47 = vmul.f32 %v1794_v38, %v4392_v61  ;;  %v3404_v33 = vld [vmem:[%s3827_s17 + $0x174] sm:$0xf]  ;;  %v3275_v43 = vld [vmem:[%s3827_s17 + $0x1f8] sm:$0xf0] }
 0x27f   : > { %v4499_v20 = vadd.f32 %v1529_v42, %v1501_v36  ;;  %v1674_v21 = vadd.f32 %v1642_v55, %v4466_v0  ;;  %v1829_v1 = vmul.f32 %v1797_v16, %v4398_v10  ;;  %v3420_v38 = vld [vmem:[%s3827_s17 + $0x1f4] sm:$0xf]  ;;  %v3214_v42 = vor.u32 %v3404_v33, %v3211_v34 }
 0x280   : > { %v1647_v31 = vadd.f32 %v1615_v2, %v4472_v49  ;;  %v4504_v8 = vadd.f32 %v1473_v50, %v1445_v48  ;;  %v4506_v4 = vpack.c.bf16 %v1826_v47, %v1822_v46  ;;  %v3278_v2 = vor.u32 %v3420_v38, %v3275_v43 }
 0x281   : > { %v3509_v27 = vpop.eup %3508  ;;  %v1552_v61 = vmul.f32 %v4499_v20, %v4499_v20  ;;  %v1706_v41 = vmul.f32 0.7978846, %v1674_v21  ;;  %2427 = vmatpush.bf16.msrb.mxu2 %v3214_v42 }
 0x282   : > { %v3511_v11 = vpop.eup %3510  ;;  %v1679_v18 = vmul.f32 0.7978846, %v1647_v31  ;;  %v1555_v13 = vmul.f32 %v4504_v8, %v4504_v8  ;;  %2300 = vmatmul.bf16.gmra.mxu1 %v4506_v4  ;;  %v1766_v53 = vadd.f32 1.0, %v3509_v27  ;;  %2456 = vmatpush.bf16.msrb.mxu3 %v3278_v2 }
 0x283   : > { %v1584_v14 = vmul.f32 %v1552_v61, %v4499_v20  ;;  %v1769_v15 = vadd.f32 1.0, %v3511_v11  ;;  %3512 = vtanh.f32 %v1706_v41 }
 0x284   : > { %v1587_v17 = vmul.f32 %v1555_v13, %v4504_v8  ;;  %v1502_v52 = vpop.f32.mrf.mxu2  ;;  %3514 = vtanh.f32 %v1679_v18  ;;  %v1798_v6 = vmul.f32 0.5, %v1766_v53  ;;  %v3402_v53 = vld [vmem:[%s3827_s17 + $0x164] sm:$0xf] }
 0x285   : > { %v1616_v30 = vmul.f32 0.044715, %v1584_v14  ;;  %v1503_v35 = vadd.f32 %v1502_v52, %v4450_v56  ;;  %v1531_v60 = vpop.f32.mrf.mxu3  ;;  %v1447_v9 = vpop.f32.mrf.mxu0  ;;  %v1801_v62 = vmul.f32 0.5, %v1769_v15 }
 0x286   : > { %v1619_v22 = vmul.f32 0.044715, %v1587_v17  ;;  %v1448_v58 = vadd.f32 %v1447_v9, %v4413_v40  ;;  %v1476_v32 = vpop.f32.mrf.mxu1  ;;  %v1830_v31 = vmul.f32 %v1798_v6, %v4428_v39  ;;  %v3203_v39 = vld [vmem:[%s3827_s17 + $0x168] sm:$0xf0]  ;;  %v3418_v17 = vld [vmem:[%s3827_s17 + $0x1e4] sm:$0xf] }
 0x287   : > { %v1648_v19 = vadd.f32 %v1616_v30, %v4499_v20  ;;  %v4519_v63 = vadd.f32 %v1531_v60, %v1503_v35  ;;  %v1833_v26 = vmul.f32 %v1801_v62, %v4434_v23  ;;  %v3206_v60 = vor.u32 %v3402_v53, %v3203_v39 }
 0x288   : > { %v1651_v7 = vadd.f32 %v1619_v22, %v4504_v8  ;;  %v4523_v24 = vadd.f32 %v1476_v32, %v1448_v58 }
 0x289   : > { %v3513_v3 = vpop.eup %3512  ;;  %v1680_v55 = vmul.f32 0.7978846, %v1648_v19  ;;  %v1556_v36 = vmul.f32 %v4519_v63, %v4519_v63  ;;  %v4530_v10 = vpack.c.bf16 %v1833_v26, %v1829_v1  ;;  %2428 = vmatpush.bf16.msrb.mxu2 %v3206_v60 }
 0x28a   : > { %v1683_v44 = vmul.f32 0.7978846, %v1651_v7  ;;  %v1559_v23 = vmul.f32 %v4523_v24, %v4523_v24  ;;  %v1770_v45 = vadd.f32 1.0, %v3513_v3  ;;  %v3515_v48 = vpop.eup %3514 }
 0x28b   : > { %3516 = vtanh.f32 %v1680_v55  ;;  %v1588_v50 = vmul.f32 %v1556_v36, %v4519_v63  ;;  %2276 = vmatmul.bf16.gmra.mxu0 %v4530_v10  ;;  %v1743_v5 = vadd.f32 1.0, %v3515_v48 }
 0x28c   : > { %3518 = vtanh.f32 %v1683_v44  ;;  %v1591_v46 = vmul.f32 %v1559_v23, %v4523_v24  ;;  %v1505_v47 = vpop.f32.mrf.mxu2  ;;  %v1802_v51 = vmul.f32 0.5, %v1770_v45 }
 0x28d   : > { %v1620_v28 = vmul.f32 0.044715, %v1588_v50  ;;  %v1506_v21 = vadd.f32 %v1505_v47, %v4450_v56  ;;  %v1534_v29 = vpop.f32.mrf.mxu3  ;;  %v1449_v57 = vpop.f32.mrf.mxu0  ;;  %v1775_v62 = vmul.f32 0.5, %v1743_v5  ;;  %v3400_v47 = vld [vmem:[%s3827_s17 + $0x154] sm:$0xf] }
 0x28e   : > { %v1623_v27 = vmul.f32 0.044715, %v1591_v46  ;;  %v1450_v61 = vadd.f32 %v1449_v57, %v4413_v40  ;;  %v1478_v41 = vpop.f32.mrf.mxu1  ;;  %v1834_v11 = vmul.f32 %v1802_v51, %v4466_v0  ;;  %v3267_v0 = vld [vmem:[%s3827_s17 + $0x1e8] sm:$0xf0]  ;;  %v3195_v51 = vld [vmem:[%s3827_s17 + $0x158] sm:$0xf0] }
 0x28f   : > { %v1652_v18 = vadd.f32 %v1620_v28, %v4519_v63  ;;  %v4543_v13 = vadd.f32 %v1534_v29, %v1506_v21  ;;  %v3270_v58 = vor.u32 %v3418_v17, %v3267_v0  ;;  %v1807_v36 = vmul.f32 %v1775_v62, %v4472_v49  ;;  %v3416_v28 = vld [vmem:[%s3827_s17 + $0x1d4] sm:$0xf] }
 0x290   : > { %v1655_v16 = vadd.f32 %v1623_v27, %v4523_v24  ;;  %v4546_v14 = vadd.f32 %v1478_v41, %v1450_v61  ;;  %v4548_v15 = vpack.c.bf16 %v1834_v11, %v1830_v31  ;;  %v3198_v57 = vor.u32 %v3400_v47, %v3195_v51 }
 0x291   : > { %v3517_v52 = vpop.eup %3516  ;;  %v1684_v30 = vmul.f32 0.7978846, %v1652_v18  ;;  %v1560_v35 = vmul.f32 %v4543_v13, %v4543_v13  ;;  %2457 = vmatpush.bf16.msrb.mxu3 %v3270_v58 }
 0x292   : > { %v3519_v9 = vpop.eup %3518  ;;  %v1563_v22 = vmul.f32 %v4546_v14, %v4546_v14  ;;  %2305 = vmatmul.bf16.gmra.mxu1 %v4548_v15  ;;  %v1687_v32 = vmul.f32 0.7978846, %v1655_v16  ;;  %v1744_v1 = vadd.f32 1.0, %v3517_v52  ;;  %2429 = vmatpush.bf16.msrb.mxu2 %v3198_v57 }
 0x293   : > { %v1747_v19 = vadd.f32 1.0, %v3519_v9  ;;  %3520 = vtanh.f32 %v1684_v30  ;;  %v1592_v26 = vmul.f32 %v1560_v35, %v4543_v13 }
 0x294   : > { %v1595_v6 = vmul.f32 %v1563_v22, %v4546_v14  ;;  %v1507_v7 = vpop.f32.mrf.mxu2  ;;  %3522 = vtanh.f32 %v1687_v32  ;;  %v1776_v23 = vmul.f32 0.5, %v1744_v1  ;;  %v3398_v1 = vld [vmem:[%s3827_s17 + $0x144] sm:$0xf] }
 0x295   : > { %v1779_v33 = vmul.f32 0.5, %v1747_v19  ;;  %v1624_v34 = vmul.f32 0.044715, %v1592_v26  ;;  %v1508_v38 = vadd.f32 %v1507_v7, %v4450_v56  ;;  %v1536_v3 = vpop.f32.mrf.mxu3  ;;  %v1452_v55 = vpop.f32.mrf.mxu0  ;;  %v3187_v19 = vld [vmem:[%s3827_s17 + $0x148] sm:$0xf0] }
 0x296   : > { %v1627_v42 = vmul.f32 0.044715, %v1595_v6  ;;  %v1453_v43 = vadd.f32 %v1452_v55, %v4413_v40  ;;  %v1481_v44 = vpop.f32.mrf.mxu1  ;;  %v3414_v26 = vld [vmem:[%s3827_s17 + $0x1c4] sm:$0xf] }
 0x297   : > { %v1811_v45 = vmul.f32 %v1779_v33, %v4504_v8  ;;  %v1656_v2 = vadd.f32 %v1624_v34, %v4543_v13  ;;  %v4566_v48 = vadd.f32 %v1536_v3, %v1508_v38  ;;  %v3259_v8 = vld [vmem:[%s3827_s17 + $0x1d8] sm:$0xf0]  ;;  %v3190_v33 = vor.u32 %v3398_v1, %v3187_v19  ;;  %v3396_v34 = vld [vmem:[%s3827_s17 + $0x134] sm:$0xf] }
 0x298   : > { %v1659_v50 = vadd.f32 %v1627_v42, %v4546_v14  ;;  %v4569_v46 = vadd.f32 %v1481_v44, %v1453_v43  ;;  %v3262_v11 = vor.u32 %v3416_v28, %v3259_v8  ;;  %v3179_v38 = vld [vmem:[%s3827_s17 + $0x138] sm:$0xf0]  ;;  %v3171_v8 = vld [vmem:[%s3827_s17 + $0x128] sm:$0xf0] }
 0x299   : > { %v3521_v49 = vpop.eup %3520  ;;  %v1564_v21 = vmul.f32 %v4566_v48, %v4566_v48  ;;  %v4576_v29 = vpack.c.bf16 %v1811_v45, %v1807_v36  ;;  %v1688_v31 = vmul.f32 0.7978846, %v1656_v2  ;;  %v3412_v45 = vld [vmem:[%s3827_s17 + $0x1b4] sm:$0xf]  ;;  %2430 = vmatpush.bf16.msrb.mxu2 %v3190_v33  ;;  %v3182_v51 = vor.u32 %v3396_v34, %v3179_v38  ;;  %v3243_v28 = vld [vmem:[%s3827_s17 + $0x1b8] sm:$0xf0] }
 0x29a   : > { %v3523_v5 = vpop.eup %3522  ;;  %v1748_v27 = vadd.f32 1.0, %v3521_v49  ;;  %v1567_v61 = vmul.f32 %v4569_v46, %v4569_v46  ;;  %v1691_v41 = vmul.f32 0.7978846, %v1659_v50  ;;  %2458 = vmatpush.bf16.msrb.mxu3 %v3262_v11  ;;  %v3246_v57 = vor.u32 %v3412_v45, %v3243_v28  ;;  %v3163_v34 = vld [vmem:[%s3827_s17 + $0x118] sm:$0xf0] }
 0x29b   : > { %v1596_v18 = vmul.f32 %v1564_v21, %v4566_v48  ;;  %2319 = vmatmul.bf16.vlgmr.msra.gmra.mxu2 %v4576_v29  ;;  %2377 = vmatmul.bf16.vlgmr.msrb.gmra.mxu0 %v4352_v12  ;;  %v1751_v60 = vadd.f32 1.0, %v3523_v5  ;;  %v1808_v12 = vmul.f32 %v1776_v23, %v4499_v20 }
 0x29c   : > { %v1780_v16 = vmul.f32 0.5, %v1748_v27  ;;  %v1599_v53 = vmul.f32 %v1567_v61, %v4569_v46  ;;  %v1510_v39 = vpop.f32.mrf.mxu2  ;;  %3524 = vtanh.f32 %v1691_v41 }
 0x29d   : > { %v1628_v17 = vmul.f32 0.044715, %v1596_v18  ;;  %v1511_v52 = vadd.f32 %v1510_v39, %v4450_v56  ;;  %v1539_v30 = vpop.f32.mrf.mxu3  ;;  %v1454_v35 = vpop.f32.mrf.mxu0  ;;  %3526 = vtanh.f32 %v1688_v31  ;;  %v1783_v55 = vmul.f32 0.5, %v1751_v60  ;;  %v3394_v31 = vld [vmem:[%s3827_s17 + $0x124] sm:$0xf]  ;;  %2431 = vmatpush.bf16.msrb.mxu2 %v3182_v51 }
 0x29e   : > { %v1812_v0 = vmul.f32 %v1780_v16, %v4519_v63  ;;  %v1631_v9 = vmul.f32 0.044715, %v1599_v53  ;;  %v1455_v62 = vadd.f32 %v1454_v35, %v4413_v40  ;;  %v1483_v22 = vpop.f32.mrf.mxu1  ;;  %v3251_v63 = vld [vmem:[%s3827_s17 + $0x1c8] sm:$0xf0] }
 0x29f   : > { %v1660_v58 = vadd.f32 %v1628_v17, %v4566_v48  ;;  %v4590_v32 = vadd.f32 %v1539_v30, %v1511_v52  ;;  %v3254_v42 = vor.u32 %v3414_v26, %v3251_v63  ;;  %v1815_v18 = vmul.f32 %v1783_v55, %v4523_v24  ;;  %v3235_v16 = vld [vmem:[%s3827_s17 + $0x1a8] sm:$0xf0]  ;;  %v3392_v63 = vld [vmem:[%s3827_s17 + $0x114] sm:$0xf] }
 0x2a0   : > { %v1663_v6 = vadd.f32 %v1631_v9, %v4569_v46  ;;  %v4596_v7 = vadd.f32 %v1483_v22, %v1455_v62  ;;  %v4598_v20 = vpack.c.bf16 %v1812_v0, %v1808_v12  ;;  %v3174_v0 = vor.u32 %v3394_v31, %v3171_v8 }
 0x2a1   : > { %v1568_v3 = vmul.f32 %v4590_v32, %v4590_v32  ;;  %v1692_v36 = vmul.f32 0.7978846, %v1660_v58  ;;  %2459 = vmatpush.bf16.msrb.mxu3 %v3254_v42  ;;  %v3166_v42 = vor.u32 %v3392_v63, %v3163_v34  ;;  %v3219_v63 = vld [vmem:[%s3827_s17 + $0x188] sm:$0xf0] }
 0x2a2   : > { %v3525_v43 = vpop.eup %3524  ;;  %v1571_v44 = vmul.f32 %v4596_v7, %v4596_v7  ;;  %2348 = vmatmul.bf16.vlgmr.msra.gmra.mxu3 %v4598_v20  ;;  %2406 = vmatmul.bf16.vlgmr.msrb.gmra.mxu1 %v4373_v37  ;;  %v1695_v23 = vmul.f32 0.7978846, %v1663_v6  ;;  %v3410_v37 = vld [vmem:[%s3827_s17 + $0x1a4] sm:$0xf] }
 0x2a3   : > { %v3527_v2 = vpop.eup %3526  ;;  %v1600_v50 = vmul.f32 %v1568_v3, %v4590_v32  ;;  %v1755_v47 = vadd.f32 1.0, %v3525_v43  ;;  %3528 = vtanh.f32 %v1692_v36  ;;  %v3238_v9 = vor.u32 %v3410_v37, %v3235_v16  ;;  %2432 = vmatpush.bf16.msrb.mxu2 %v3174_v0  ;;  %v3227_v16 = vld [vmem:[%s3827_s17 + $0x198] sm:$0xf0] }
 0x2a4   : > { %v1603_v49 = vmul.f32 %v1571_v44, %v4596_v7  ;;  %v1512_v21 = vpop.f32.mrf.mxu2  ;;  %v1752_v52 = vadd.f32 1.0, %v3527_v2  ;;  %3530 = vtanh.f32 %v1695_v23 }
 0x2a5   : > { %v1632_v5 = vmul.f32 0.044715, %v1600_v50  ;;  %v1513_v27 = vadd.f32 %v1512_v21, %v4450_v56  ;;  %v1541_v61 = vpop.f32.mrf.mxu3  ;;  %v1457_v41 = vpop.f32.mrf.mxu0  ;;  %v1787_v11 = vmul.f32 0.5, %v1755_v47  ;;  %2460 = vmatpush.bf16.msrb.mxu3 %v3246_v57 }
 0x2a6   : > { %v1635_v53 = vmul.f32 0.044715, %v1603_v49  ;;  %v1458_v39 = vadd.f32 %v1457_v41, %v4413_v40  ;;  %v1486_v17 = vpop.f32.mrf.mxu1  ;;  %v1784_v26 = vmul.f32 0.5, %v1752_v52 }
 0x2a7   : > { %v1664_v30 = vadd.f32 %v1632_v5, %v4590_v32  ;;  %v4621_v35 = vadd.f32 %v1541_v61, %v1513_v27  ;;  %v1819_v60 = vmul.f32 %v1787_v11, %v4546_v14  ;;  %2433 = vmatpush.bf16.msrb.mxu2 %v3166_v42  ;;  %v3408_v27 = vld [vmem:[%s3827_s17 + $0x194] sm:$0xf] }
 0x2a8   : > { %v1667_v12 = vadd.f32 %v1635_v53, %v4596_v7  ;;  %v4625_v24 = vadd.f32 %v1486_v17, %v1458_v39  ;;  %v1816_v50 = vmul.f32 %v1784_v26, %v4543_v13  ;;  %v3390_v53 = vld [vmem:[%s3827_s17 + $0x104] sm:$0xf]  ;;  %v3230_v52 = vor.u32 %v3408_v27, %v3227_v16 }
 0x2a9   : > { %v3529_v62 = vpop.eup %3528  ;;  %v1572_v22 = vmul.f32 %v4621_v35, %v4621_v35  ;;  %v4629_v58 = vpack.c.bf16 %v1819_v60, %v1815_v18  ;;  %v1696_v1 = vmul.f32 0.7978846, %v1664_v30  ;;  %2461 = vmatpush.bf16.msrb.mxu3 %v3238_v9  ;;  %v3155_v30 = vld [vmem:[%s3827_s17 + $0x108] sm:$0xf0] }
 0x2aa   : > { %v1575_v14 = vmul.f32 %v4625_v24, %v4625_v24  ;;  %v1756_v19 = vadd.f32 1.0, %v3529_v62  ;;  %v1699_v6 = vmul.f32 0.7978846, %v1667_v12  ;;  %v3531_v38 = vpop.eup %3530  ;;  %v3158_v0 = vor.u32 %v3390_v53, %v3155_v30 }
 0x2ab   : > { %v1604_v33 = vmul.f32 %v1572_v22, %v4621_v35  ;;  %2324 = vmatmul.bf16.gmra.mxu2 %v4629_v58  ;;  %2382 = vmatmul.bf16.gmra.mxu0 %v4404_v25  ;;  %v1759_v21 = vadd.f32 1.0, %v3531_v38 }
 0x2ac   : > { %v1607_v3 = vmul.f32 %v1575_v14, %v4625_v24  ;;  %v1515_v55 = vpop.f32.mrf.mxu2  ;;  %v1788_v36 = vmul.f32 0.5, %v1756_v19  ;;  %3532 = vtanh.f32 %v1699_v6  ;;  %2434 = vmatpush.bf16.msrb.mxu2 %v3158_v0 }
 0x2ad   : > { %v1636_v43 = vmul.f32 0.044715, %v1604_v33  ;;  %v1516_v44 = vadd.f32 %v1515_v55, %v4450_v56  ;;  %v1544_v23 = vpop.f32.mrf.mxu3  ;;  %v1459_v45 = vpop.f32.mrf.mxu0  ;;  %3534 = vtanh.f32 %v1696_v1  ;;  %v1791_v18 = vmul.f32 0.5, %v1759_v21  ;;  %2462 = vmatpush.bf16.msrb.mxu3 %v3230_v52  ;;  %v3406_v33 = vld [vmem:[%s3827_s17 + $0x184] sm:$0xf] }
 0x2ae   : > { %v1639_v2 = vmul.f32 0.044715, %v1607_v3  ;;  %v1460_v25 = vadd.f32 %v1459_v45, %v4413_v40  ;;  %v1820_v47 = vmul.f32 %v1788_v36, %v4566_v48  ;;  %v1488_v49 = vpop.f32.mrf.mxu1  ;;  %v3222_v55 = vor.u32 %v3406_v33, %v3219_v63  ;;  %v1841_v63 = vld [vmem:[#allocation3 + $0x50] sm:$0xff] }
 0x2af   : > { %v1668_v51 = vadd.f32 %v1636_v43, %v4621_v35  ;;  %v4644_v28 = vadd.f32 %v1544_v23, %v1516_v44  ;;  %v1823_v19 = vmul.f32 %v1791_v18, %v4569_v46 }
 0x2b0   : > { %v1671_v57 = vadd.f32 %v1639_v2, %v4625_v24  ;;  %v4647_v31 = vadd.f32 %v1488_v49, %v1460_v25  ;;  %v4649_v8 = vpack.c.bf16 %v1820_v47, %v1816_v50 }
 0x2b1   : > { %v1576_v40 = vmul.f32 %v4644_v28, %v4644_v28  ;;  %v1700_v13 = vmul.f32 0.7978846, %v1668_v51  ;;  %2463 = vmatpush.bf16.msrb.mxu3 %v3222_v55 }
 0x2b2   : > { %v3533_v48 = vpop.eup %3532  ;;  %v1579_v37 = vmul.f32 %v4647_v31, %v4647_v31  ;;  %2353 = vmatmul.bf16.gmra.mxu3 %v4649_v8  ;;  %2411 = vmatmul.bf16.gmra.mxu1 %v4436_v54  ;;  %v1703_v5 = vmul.f32 0.7978846, %v1671_v57 }
 0x2b3   : > { %v3535_v61 = vpop.eup %3534  ;;  %v1608_v41 = vmul.f32 %v1576_v40, %v4644_v28  ;;  %v1763_v11 = vadd.f32 1.0, %v3533_v48  ;;  %3536 = vtanh.f32 %v1700_v13 }
 0x2b4   : > { %v1611_v39 = vmul.f32 %v1579_v37, %v4647_v31  ;;  %v1517_v17 = vpop.f32.mrf.mxu2  ;;  %v1760_v22 = vadd.f32 1.0, %v3535_v61  ;;  %3538 = vtanh.f32 %v1703_v5 }
 0x2b5   : > { %v1640_v60 = vmul.f32 0.044715, %v1608_v41  ;;  %v1518_v54 = vadd.f32 %v1517_v17, %v4450_v56  ;;  %v1795_v12 = vmul.f32 0.5, %v1763_v11  ;;  %v1546_v62 = vpop.f32.mrf.mxu3 }
 0x2b6   : > { %v1643_v9 = vmul.f32 0.044715, %v1611_v39  ;;  %v1792_v42 = vmul.f32 0.5, %v1760_v22 }
 0x2b7   : > { %v1672_v1 = vadd.f32 %v1640_v60, %v4644_v28  ;;  %v1547_v14 = vadd.f32 %v1546_v62, %v1518_v54  ;;  %v1827_v26 = vmul.f32 %v1795_v12, %v4596_v7 }
 0x2b8   : > { %v1675_v6 = vadd.f32 %v1643_v9, %v4647_v31  ;;  %v1824_v45 = vmul.f32 %v1792_v42, %v4590_v32  ;;  %v1839_v9 = vld [vmem:[#allocation3 + $0x58] sm:$0xff] }
 0x2b9   : > { %v3537_v56 = vpop.eup %3536  ;;  %v1580_v34 = vmul.f32 %v1547_v14, %v1547_v14  ;;  %v1863_v38 = vpack.c.bf16 %v1827_v26, %v1823_v19  ;;  %v1704_v3 = vmul.f32 0.7978846, %v1672_v1 }
 0x2ba   : > { %v1764_v36 = vadd.f32 1.0, %v3537_v56  ;;  %v1707_v43 = vmul.f32 0.7978846, %v1675_v6  ;;  %v3539_v46 = vpop.eup %3538 }
 0x2bb   : > { %v1612_v44 = vmul.f32 %v1580_v34, %v1547_v14  ;;  %2329 = vmatmul.bf16.gmra.mxu2 %v1863_v38  ;;  %2387 = vmatmul.bf16.gmra.mxu0 %v4480_v59  ;;  %v1767_v50 = vadd.f32 1.0, %v3539_v46 }
 0x2bc   : > { %v1796_v23 = vmul.f32 0.5, %v1764_v36  ;;  %3540 = vtanh.f32 %v1707_v43  ;;  %v1843_v43 = vld [vmem:[#allocation3 + $0x8] sm:$0xff] }
 0x2bd   : > { %v1644_v7 = vmul.f32 0.044715, %v1612_v44  ;;  %3542 = vtanh.f32 %v1704_v3  ;;  %v1799_v57 = vmul.f32 0.5, %v1767_v50  ;;  %v1845_v50 = vld [vmem:[#allocation3 + $0x40] sm:$0xff] }
 0x2be   : > { %v1828_v2 = vmul.f32 %v1796_v23, %v4621_v35 }
 0x2bf   : > { %v1676_v25 = vadd.f32 %v1644_v7, %v1547_v14  ;;  %v1831_v48 = vmul.f32 %v1799_v57, %v4625_v24 }
 0x2c0   : > { %v1864_v47 = vpack.c.bf16 %v1828_v2, %v1824_v45 }
 0x2c1   : > { %v1708_v51 = vmul.f32 0.7978846, %v1676_v25 }
 0x2c2   : > { %v3541_v49 = vpop.eup %3540  ;;  %2358 = vmatmul.bf16.gmra.mxu3 %v1864_v47  ;;  %2416 = vmatmul.bf16.gmra.mxu1 %v4506_v4 }
 0x2c3   : > { %v3543_v21 = vpop.eup %3542  ;;  %v1771_v59 = vadd.f32 1.0, %v3541_v49  ;;  %3544 = vtanh.f32 %v1708_v51 }
 0x2c4   : > { %v1768_v13 = vadd.f32 1.0, %v3543_v21 }
 0x2c5   : > { %v1803_v40 = vmul.f32 0.5, %v1771_v59 }
 0x2c6   : > { %v1800_v27 = vmul.f32 0.5, %v1768_v13 }
 0x2c7   : > { %v1835_v32 = vmul.f32 %v1803_v40, %v4647_v31 }
 0x2c8   : > { %v1832_v4 = vmul.f32 %v1800_v27, %v4644_v28 }
 0x2c9   : > { %v3545_v37 = vpop.eup %3544  ;;  %v1867_v35 = vpack.c.bf16 %v1835_v32, %v1831_v48  ;;  %v1847_v48 = vld [vmem:[#allocation3 + $0x10] sm:$0xff] }
 0x2ca   : > { %v1772_v5 = vadd.f32 1.0, %v3545_v37 }
 0x2cb   : > { %2334 = vmatmul.bf16.gmra.mxu2 %v1867_v35  ;;  %2392 = vmatmul.bf16.gmra.mxu0 %v4530_v10 }
 0x2cc   : > { %v1804_v61 = vmul.f32 0.5, %v1772_v5 }
 0x2ce   : > { %v1836_v41 = vmul.f32 %v1804_v61, %v1547_v14 }
 0x2d0   : > { %v1868_v11 = vpack.c.bf16 %v1836_v41, %v1832_v4 }
 0x2d2   : > { %2363 = vmatmul.bf16.gmra.mxu3 %v1868_v11  ;;  %2421 = vmatmul.bf16.gmra.mxu1 %v4548_v15 }
 0x2d8   : > { %v2262_v10 = vpop.f32.mrf.mxu0 }
 0x2db   : > { %2435 = vmatmul.bf16.vlgmr.msrb.gmra.mxu2 %v4576_v29 }
 0x2df   : > { %v2291_v24 = vpop.f32.mrf.mxu1 }
 0x2e0   : > { %v2264_v28 = vpop.f32.mrf.mxu0  ;;  %v2292_v29 = vadd.f32 %v2291_v24, %v2262_v10 }
 0x2e2   : > { %2464 = vmatmul.bf16.vlgmr.msrb.gmra.mxu3 %v4598_v20  ;;  %v1837_v20 = vld [vmem:[#allocation3 + $0x30] sm:$0xff] }
 0x2e7   : > { %v2293_v31 = vpop.f32.mrf.mxu1 }
 0x2e8   : > { %v2267_v16 = vpop.f32.mrf.mxu0  ;;  %v2294_v54 = vadd.f32 %v2293_v31, %v2264_v28 }
 0x2eb   : > { %2440 = vmatmul.bf16.gmra.mxu2 %v4629_v58 }
 0x2ef   : > { %v2296_v18 = vpop.f32.mrf.mxu1 }
 0x2f0   : > { %v2269_v39 = vpop.f32.mrf.mxu0  ;;  %v2297_v19 = vadd.f32 %v2296_v18, %v2267_v16 }
 0x2f2   : > { %2469 = vmatmul.bf16.gmra.mxu3 %v4649_v8 }
 0x2f7   : > { %v2298_v15 = vpop.f32.mrf.mxu1 }
 0x2f8   : > { %v2272_v12 = vpop.f32.mrf.mxu0  ;;  %v2299_v55 = vadd.f32 %v2298_v15, %v2269_v39  ;;  %v1851_v39 = vld [vmem:[#allocation3 + $0x78] sm:$0xff] }
 0x2fb   : > { %2445 = vmatmul.bf16.gmra.mxu2 %v1863_v38 }
 0x2ff   : > { %v2301_v60 = vpop.f32.mrf.mxu1 }
 0x300   : > { %v2274_v33 = vpop.f32.mrf.mxu0  ;;  %v2302_v2 = vadd.f32 %v2301_v60, %v2272_v12  ;;  %v1838_v60 = vld [vmem:[#allocation3] sm:$0xff] }
 0x302   : > { %2474 = vmatmul.bf16.gmra.mxu3 %v1864_v47 }
 0x307   : > { %v2303_v26 = vpop.f32.mrf.mxu1 }
 0x308   : > { %v2277_v7 = vpop.f32.mrf.mxu0  ;;  %v2304_v40 = vadd.f32 %v2303_v26, %v2274_v33 }
 0x30b   : > { %2450 = vmatmul.bf16.gmra.mxu2 %v1867_v35 }
 0x30f   : > { %v2306_v42 = vpop.f32.mrf.mxu1 }
 0x310   : > { %v2279_v57 = vpop.f32.mrf.mxu0  ;;  %v2307_v61 = vadd.f32 %v2306_v42, %v2277_v7 }
 0x312   : > { %2479 = vmatmul.bf16.gmra.mxu3 %v1868_v11  ;;  %v1849_v11 = vld [vmem:[#allocation3 + $0x60] sm:$0xff] }
 0x317   : > { %v2308_v21 = vpop.f32.mrf.mxu1 }
 0x318   : > { %v2378_v4 = vpop.f32.mrf.mxu0  ;;  %v2309_v18 = vadd.f32 %v2308_v21, %v2279_v57  ;;  %v1846_v57 = vld [vmem:[#allocation3 + $0x20] sm:$0xff] }
 0x31e   : > { %v2320_v53 = vpop.f32.mrf.mxu2 }
 0x31f   : > { %v2321_v17 = vadd.f32 %v2320_v53, %v2292_v29  ;;  %v2407_v27 = vpop.f32.mrf.mxu1 }
 0x320   : > { %v2380_v15 = vpop.f32.mrf.mxu0 }
 0x325   : > { %v2349_v52 = vpop.f32.mrf.mxu3 }
 0x326   : > { %v2350_v58 = vadd.f32 %v2349_v52, %v2321_v17  ;;  %v2322_v30 = vpop.f32.mrf.mxu2 }
 0x327   : > { %v2323_v0 = vadd.f32 %v2322_v30, %v2294_v54  ;;  %v2409_v16 = vpop.f32.mrf.mxu1 }
 0x328   : > { %v2485_v8 = vadd.f32 %v2350_v58, %v1837_v20  ;;  %v2408_v58 = vadd.f32 %v2407_v27, %v2378_v4  ;;  %v1848_v27 = vld [vmem:[#allocation3 + $0x38] sm:$0xff] }
 0x32a   : > { %2501 = vst [vmem:[#allocation3 + $0x30] sm:$0xff] %v2485_v8 }
 0x32d   : > { %v2351_v62 = vpop.f32.mrf.mxu3 }
 0x32e   : > { %v2352_v22 = vadd.f32 %v2351_v62, %v2323_v0  ;;  %v2325_v1 = vpop.f32.mrf.mxu2 }
 0x32f   : > { %v2326_v6 = vadd.f32 %v2325_v1, %v2297_v19  ;;  %v2412_v8 = vpop.f32.mrf.mxu1 }
 0x330   : > { %v2487_v14 = vadd.f32 %v2352_v22, %v1839_v9  ;;  %v2383_v9 = vpop.f32.mrf.mxu0  ;;  %v2410_v22 = vadd.f32 %v2409_v16, %v2380_v15 }
 0x332   : > { %2503 = vst [vmem:[#allocation3 + $0x58] sm:$0xff] %v2487_v14  ;;  %v1840_v14 = vld [vmem:[#allocation3 + $0x18] sm:$0xff] }
 0x335   : > { %v2354_v56 = vpop.f32.mrf.mxu3 }
 0x336   : > { %v2355_v34 = vadd.f32 %v2354_v56, %v2326_v6  ;;  %v2327_v38 = vpop.f32.mrf.mxu2 }
 0x337   : > { %v2328_v36 = vadd.f32 %v2327_v38, %v2299_v55  ;;  %v2414_v33 = vpop.f32.mrf.mxu1 }
 0x338   : > { %v2489_v3 = vadd.f32 %v2355_v34, %v1841_v63  ;;  %v2385_v56 = vpop.f32.mrf.mxu0  ;;  %v2413_v34 = vadd.f32 %v2412_v8, %v2383_v9 }
 0x33a   : > { %2505 = vst [vmem:[#allocation3 + $0x50] sm:$0xff] %v2489_v3  ;;  %v1842_v3 = vld [vmem:[#allocation3 + $0x68] sm:$0xff] }
 0x33d   : > { %v2356_v44 = vpop.f32.mrf.mxu3 }
 0x33e   : > { %v2357_v46 = vadd.f32 %v2356_v44, %v2328_v36  ;;  %v2330_v23 = vpop.f32.mrf.mxu2 }
 0x33f   : > { %v2331_v25 = vadd.f32 %v2330_v23, %v2302_v2  ;;  %v2417_v44 = vpop.f32.mrf.mxu1 }
 0x340   : > { %v2491_v45 = vadd.f32 %v2357_v46, %v1843_v43  ;;  %v2415_v46 = vadd.f32 %v2414_v33, %v2385_v56  ;;  %v2388_v23 = vpop.f32.mrf.mxu0 }
 0x342   : > { %2507 = vst [vmem:[#allocation3 + $0x8] sm:$0xff] %v2491_v45  ;;  %v1844_v45 = vld [vmem:[#allocation3 + $0x48] sm:$0xff] }
 0x345   : > { %v2359_v47 = vpop.f32.mrf.mxu3 }
 0x346   : > { %v2360_v51 = vadd.f32 %v2359_v47, %v2331_v25  ;;  %v2332_v49 = vpop.f32.mrf.mxu2 }
 0x347   : > { %v2333_v13 = vadd.f32 %v2332_v49, %v2304_v40  ;;  %v2419_v49 = vpop.f32.mrf.mxu1 }
 0x348   : > { %v2493_v59 = vadd.f32 %v2360_v51, %v1845_v50  ;;  %v2418_v51 = vadd.f32 %v2417_v44, %v2388_v23 }
 0x34a   : > { %2509 = vst [vmem:[#allocation3 + $0x40] sm:$0xff] %v2493_v59  ;;  %v2390_v59 = vpop.f32.mrf.mxu0 }
 0x34d   : > { %v2361_v32 = vpop.f32.mrf.mxu3 }
 0x34e   : > { %v2362_v37 = vadd.f32 %v2361_v32, %v2333_v13  ;;  %v2335_v35 = vpop.f32.mrf.mxu2 }
 0x34f   : > { %v2336_v41 = vadd.f32 %v2335_v35, %v2307_v61 }
 0x350   : > { %v2495_v5 = vadd.f32 %v2362_v37, %v1847_v48  ;;  %v2420_v37 = vadd.f32 %v2419_v49, %v2390_v59 }
 0x352   : > { %2511 = vst [vmem:[#allocation3 + $0x10] sm:$0xff] %v2495_v5  ;;  %v2422_v5 = vpop.f32.mrf.mxu1 }
 0x355   : > { %v2364_v24 = vpop.f32.mrf.mxu3 }
 0x356   : > { %v2365_v10 = vadd.f32 %v2364_v24, %v2336_v41  ;;  %v2337_v31 = vpop.f32.mrf.mxu2  ;;  %v2393_v41 = vpop.f32.mrf.mxu0 }
 0x357   : > { %v2338_v53 = vadd.f32 %v2337_v31, %v2309_v18 }
 0x358   : > { %v2497_v28 = vadd.f32 %v2365_v10, %v1849_v11  ;;  %v2423_v10 = vadd.f32 %v2422_v5, %v2393_v41 }
 0x35a   : > { %2513 = vst [vmem:[#allocation3 + $0x60] sm:$0xff] %v2497_v28  ;;  %v1850_v28 = vld [vmem:[#allocation3 + $0x70] sm:$0xff] }
 0x35d   : > { %v2366_v29 = vpop.f32.mrf.mxu3 }
 0x35e   : > { %v2367_v17 = vadd.f32 %v2366_v29, %v2338_v53  ;;  %v2436_v20 = vpop.f32.mrf.mxu2  ;;  %v2424_v53 = vpop.f32.mrf.mxu1 }
 0x35f   : > { %v2437_v30 = vadd.f32 %v2436_v20, %v2408_v58 }
 0x360   : > { %v2499_v52 = vadd.f32 %v2367_v17, %v1851_v39  ;;  %v2395_v39 = vpop.f32.mrf.mxu0 }
 0x361   : > { %v2425_v17 = vadd.f32 %v2424_v53, %v2395_v39 }
 0x362   : > { %2515 = vst [vmem:[#allocation3 + $0x78] sm:$0xff] %v2499_v52  ;;  %v1852_v52 = vld [vmem:[#allocation3 + $0x28] sm:$0xff] }
 0x365   : > { %v2465_v54 = vpop.f32.mrf.mxu3 }
 0x366   : > { %v2466_v12 = vadd.f32 %v2465_v54, %v2437_v30  ;;  %v2438_v0 = vpop.f32.mrf.mxu2 }
 0x367   : > { %v2439_v1 = vadd.f32 %v2438_v0, %v2410_v22 }
 0x368   : > { %v2486_v62 = vadd.f32 %v2466_v12, %v1838_v60 }
 0x36a   : > { %2502 = vst [vmem:[#allocation3] sm:$0xff] %v2486_v62 }
 0x36d   : > { %v2467_v19 = vpop.f32.mrf.mxu3 }
 0x36e   : > { %v2468_v26 = vadd.f32 %v2467_v19, %v2439_v1  ;;  %v2441_v6 = vpop.f32.mrf.mxu2 }
 0x36f   : > { %v2442_v38 = vadd.f32 %v2441_v6, %v2413_v34 }
 0x370   : > { %v2488_v63 = vadd.f32 %v2468_v26, %v1840_v14 }
 0x372   : > { %2504 = vst [vmem:[#allocation3 + $0x18] sm:$0xff] %v2488_v63 }
 0x375   : > { %v2470_v55 = vpop.f32.mrf.mxu3 }
 0x376   : > { %v2471_v36 = vadd.f32 %v2470_v55, %v2442_v38  ;;  %v2443_v42 = vpop.f32.mrf.mxu2 }
 0x377   : > { %v2444_v7 = vadd.f32 %v2443_v42, %v2415_v46 }
 0x378   : > { %v2490_v43 = vadd.f32 %v2471_v36, %v1842_v3 }
 0x37a   : > { %2506 = vst [vmem:[#allocation3 + $0x68] sm:$0xff] %v2490_v43 }
 0x37d   : > { %v2472_v2 = vpop.f32.mrf.mxu3 }
 0x37e   : > { %v2473_v25 = vadd.f32 %v2472_v2, %v2444_v7  ;;  %v2446_v50 = vpop.f32.mrf.mxu2 }
 0x37f   : > { %v2447_v21 = vadd.f32 %v2446_v50, %v2418_v51 }
 0x380   : > { %v2492_v47 = vadd.f32 %v2473_v25, %v1844_v45 }
 0x382   : > { %2508 = vst [vmem:[#allocation3 + $0x48] sm:$0xff] %v2492_v47 }
 0x385   : > { %v2475_v40 = vpop.f32.mrf.mxu3 }
 0x386   : > { %v2476_v13 = vadd.f32 %v2475_v40, %v2447_v21  ;;  %v2448_v48 = vpop.f32.mrf.mxu2 }
 0x387   : > { %v2449_v35 = vadd.f32 %v2448_v48, %v2420_v37 }
 0x388   : > { %v2494_v32 = vadd.f32 %v2476_v13, %v1846_v57 }
 0x38a   : > { %2510 = vst [vmem:[#allocation3 + $0x20] sm:$0xff] %v2494_v32 }
 0x38d   : > { %v2477_v61 = vpop.f32.mrf.mxu3 }
 0x38e   : > { %v2478_v4 = vadd.f32 %v2477_v61, %v2449_v35  ;;  %v2451_v11 = vpop.f32.mrf.mxu2 }
 0x38f   : > { %v2452_v31 = vadd.f32 %v2451_v11, %v2423_v10 }
 0x390   : > { %v2496_v24 = vadd.f32 %v2478_v4, %v1848_v27 }
 0x392   : > { %2512 = vst [vmem:[#allocation3 + $0x38] sm:$0xff] %v2496_v24 }
 0x395   : > { %v2480_v18 = vpop.f32.mrf.mxu3 }
 0x396   : > { %v2481_v16 = vadd.f32 %v2480_v18, %v2452_v31  ;;  %v2453_v29 = vpop.f32.mrf.mxu2 }
 0x397   : > { %v2454_v20 = vadd.f32 %v2453_v29, %v2425_v17 }
 0x398   : > { %v2498_v15 = vadd.f32 %v2481_v16, %v1850_v28 }
 0x39a   : > { %2514 = vst [vmem:[#allocation3 + $0x70] sm:$0xff] %v2498_v15 }
 0x39d   : > { %v2482_v58 = vpop.f32.mrf.mxu3 }
 0x39e   : > { %v2483_v30 = vadd.f32 %v2482_v58, %v2454_v20  ;;  %2520 = sbr.rel (%p3279_p12) target bundleno = 953 (0x3b9), region = 87 }
 0x3a0   : > { %v2500_v8 = vadd.f32 %v2483_v30, %v1852_v52 }
 0x3a2   : > { %2516 = vst [vmem:[#allocation3 + $0x28] sm:$0xff] %v2500_v8 }
 0x3a3   : > { %v2521_v60 = vld [vmem:[#allocation3 + $0x30] sm:$0xff]  ;;  %v2522_v54 = vld [vmem:[#allocation3] sm:$0xff]  ;;  %v2523_v22 = vld [vmem:[#allocation3 + $0x58] sm:$0xff] }
 0x3a4   : > { %v2537_v12 = vld [vmem:[%s4776_s6] sm:$0x3]  ;;  %v2524_v1 = vld [vmem:[#allocation3 + $0x18] sm:$0xff]  ;;  %v2560_v26 = vld [vmem:[%s4770_s0 + $0x8] sm:$0xff] }
 0x3a5   : > { %v4687_v0 = vperm.slane %v2537_v12, 0  ;;  %v4689_v9 = vperm.slane %v2537_v12, 1  ;;  %v2559_v62 = vld [vmem:[%s4770_s0] sm:$0xff]  ;;  %v2525_v6 = vld [vmem:[#allocation3 + $0x50] sm:$0xff]  ;;  %v2526_v33 = vld [vmem:[#allocation3 + $0x68] sm:$0xff]  ;;  %v2569_v42 = vunpack.c.l.bf16 %v2560_v26  ;;  %v2570_v43 = vunpack.c.h.bf16 %v2560_v26 }
 0x3a6   : > { %v2567_v14 = vunpack.c.l.bf16 %v2559_v62  ;;  %v2568_v19 = vunpack.c.h.bf16 %v2559_v62  ;;  %v2561_v3 = vld [vmem:[%s4770_s0 + $0x10] sm:$0xff]  ;;  %v2527_v55 = vld [vmem:[#allocation3 + $0x8] sm:$0xff]  ;;  %v2562_v23 = vld [vmem:[%s4770_s0 + $0x18] sm:$0xff] }
 0x3a7   : > { %v2543_v63 = vadd.f32 %v4687_v0, %v2521_v60  ;;  %v2544_v56 = vadd.f32 %v4689_v9, %v2522_v54  ;;  %v2545_v34 = vadd.f32 %v4687_v0, %v2523_v22  ;;  %v2546_v38 = vadd.f32 %v4689_v9, %v2524_v1  ;;  %v2528_v36 = vld [vmem:[#allocation3 + $0x48] sm:$0xff]  ;;  %v2529_v50 = vld [vmem:[#allocation3 + $0x40] sm:$0xff]  ;;  %v2531_v37 = vld [vmem:[#allocation3 + $0x10] sm:$0xff] }
 0x3a8   : > { %v2547_v44 = vadd.f32 %v4687_v0, %v2525_v6  ;;  %v2548_v46 = vadd.f32 %v4689_v9, %v2526_v33  ;;  %v2571_v2 = vunpack.c.l.bf16 %v2561_v3  ;;  %v2572_v25 = vunpack.c.h.bf16 %v2561_v3  ;;  %v2530_v47 = vld [vmem:[#allocation3 + $0x20] sm:$0xff]  ;;  %v2532_v35 = vld [vmem:[#allocation3 + $0x38] sm:$0xff]  ;;  %v2564_v5 = vld [vmem:[%s4770_s0 + $0x28] sm:$0xff] }
 0x3a9   : > { %v2583_v7 = vadd.f32 %v2567_v14, %v2543_v63  ;;  %v2584_v45 = vadd.f32 %v2568_v19, %v2544_v56  ;;  %v2585_v51 = vadd.f32 %v2569_v42, %v2545_v34  ;;  %v2586_v49 = vadd.f32 %v2570_v43, %v2546_v38  ;;  %v2563_v57 = vld [vmem:[%s4770_s0 + $0x20] sm:$0xff]  ;;  %v2534_v18 = vld [vmem:[#allocation3 + $0x70] sm:$0xff]  ;;  %v2535_v17 = vld [vmem:[#allocation3 + $0x78] sm:$0xff] }
 0x3aa   : > { %v2549_v21 = vadd.f32 %v4687_v0, %v2527_v55  ;;  %v2550_v59 = vadd.f32 %v4689_v9, %v2528_v36  ;;  %v2587_v13 = vadd.f32 %v2571_v2, %v2547_v44  ;;  %v2588_v48 = vadd.f32 %v2572_v25, %v2548_v46  ;;  %v2533_v11 = vld [vmem:[#allocation3 + $0x60] sm:$0xff]  ;;  %v2565_v16 = vld [vmem:[%s4770_s0 + $0x30] sm:$0xff]  ;;  %v2536_v8 = vld [vmem:[#allocation3 + $0x28] sm:$0xff] }
 0x3ab   : > { %v2599_v40 = vpack.c.bf16 %v2584_v45, %v2583_v7  ;;  %v2573_v32 = vunpack.c.l.bf16 %v2562_v23  ;;  %v2600_v27 = vpack.c.bf16 %v2586_v49, %v2585_v51  ;;  %v2574_v61 = vunpack.c.h.bf16 %v2562_v23  ;;  %v2566_v60 = vld [vmem:[%s4770_s0 + $0x38] sm:$0xff] }
 0x3ac   : > { %v2551_v4 = vadd.f32 %v4687_v0, %v2529_v50  ;;  %v2552_v41 = vadd.f32 %v4689_v9, %v2530_v47  ;;  %v2601_v24 = vpack.c.bf16 %v2588_v48, %v2587_v13  ;;  %v2575_v31 = vunpack.c.l.bf16 %v2563_v57 }
 0x3ad   : > { %2607 = vst [vmem:[%s4779_s9] sm:$0xff] %v2599_v40  ;;  %v2589_v10 = vadd.f32 %v2573_v32, %v2549_v21  ;;  %v2576_v28 = vunpack.c.h.bf16 %v2563_v57  ;;  %v2590_v53 = vadd.f32 %v2574_v61, %v2550_v59  ;;  %v2553_v15 = vadd.f32 %v4687_v0, %v2531_v37 }
 0x3ae   : > { %2608 = vst [vmem:[%s4779_s9 + $0x8] sm:$0xff] %v2600_v27  ;;  %v2554_v39 = vadd.f32 %v4689_v9, %v2532_v35  ;;  %v2577_v29 = vunpack.c.l.bf16 %v2564_v5  ;;  %v2591_v20 = vadd.f32 %v2575_v31, %v2551_v4  ;;  %v2578_v58 = vunpack.c.h.bf16 %v2564_v5 }
 0x3af   : > { %2609 = vst [vmem:[%s4779_s9 + $0x10] sm:$0xff] %v2601_v24  ;;  %v2592_v52 = vadd.f32 %v2576_v28, %v2552_v41  ;;  %v2555_v30 = vadd.f32 %v4687_v0, %v2533_v11  ;;  %v2602_v54 = vpack.c.bf16 %v2590_v53, %v2589_v10  ;;  %v2556_v62 = vadd.f32 %v4689_v9, %v2534_v18 }
 0x3b0   : > { %v2593_v12 = vadd.f32 %v2577_v29, %v2553_v15  ;;  %v2579_v22 = vunpack.c.l.bf16 %v2565_v16  ;;  %v2594_v14 = vadd.f32 %v2578_v58, %v2554_v39  ;;  %v2580_v19 = vunpack.c.h.bf16 %v2565_v16 }
 0x3b1   : > { %v2603_v1 = vpack.c.bf16 %v2592_v52, %v2591_v20  ;;  %v2557_v26 = vadd.f32 %v4687_v0, %v2535_v17  ;;  %2610 = vst [vmem:[%s4779_s9 + $0x18] sm:$0xff] %v2602_v54  ;;  %v2558_v33 = vadd.f32 %v4689_v9, %v2536_v8  ;;  %v2581_v63 = vunpack.c.l.bf16 %v2566_v60 }
 0x3b2   : > { %v2595_v6 = vadd.f32 %v2579_v22, %v2555_v30  ;;  %v2582_v56 = vunpack.c.h.bf16 %v2566_v60  ;;  %v2604_v34 = vpack.c.bf16 %v2594_v14, %v2593_v12  ;;  %v2596_v38 = vadd.f32 %v2580_v19, %v2556_v62 }
 0x3b3   : > { %2611 = vst [vmem:[%s4779_s9 + $0x20] sm:$0xff] %v2603_v1  ;;  %v2597_v3 = vadd.f32 %v2581_v63, %v2557_v26 }
 0x3b4   : > { %v2598_v55 = vadd.f32 %v2582_v56, %v2558_v33  ;;  %2612 = vst [vmem:[%s4779_s9 + $0x28] sm:$0xff] %v2604_v34  ;;  %v2605_v0 = vpack.c.bf16 %v2596_v38, %v2595_v6 }
 0x3b6   : > { %v2606_v36 = vpack.c.bf16 %v2598_v55, %v2597_v3  ;;  %2613 = vst [vmem:[%s4779_s9 + $0x30] sm:$0xff] %v2605_v0 }
 0x3b8   : > { %2614 = vst [vmem:[%s4779_s9 + $0x38] sm:$0xff] %v2606_v36 }
 0x3b9 PF: > { %s19_s13 = sadd.s32 1, %s3584_s13   ;;  %s4780_s30 = smov %s3572_s10 }
 0x3ba   : > { %p16_p13 = scmp.ge.s32.totalorder %s19_s13, 4   ;;  %s4781_s10 = smov %s3673_s15 }
 0x3bb   : > { %s4782_s11 = smov %s3580_s12  ;;  %s4783_s12 = smov %s4785_s7 }
 0x3bc   :  { %18 = sbr.rel (!%p16_p13) target bundleno = 3 (0x3), region = 131 }

</bundles_post_ra>
